<compile_context>
chip_gen: v7x
topology: tpu7x:2x2x1
jax: 0.10.0
libtpu: 0.0.40
codegen_flags: <defaults>
</compile_context>

<pallas_src>
import functools
import math

import jax
import jax.numpy as jnp
from jax.experimental import pallas as pl
from jax.experimental.pallas import tpu as pltpu

# ---- scaled-down but structure-faithful model dims --------------------------
MM_MODEL = 128      # config.hidden_size            (PyTorch: e.g. 2560)
D_MODEL  = 256      # module hardcodes 1152
DOWN_DIM = 128      # module hardcodes 576
N_HEADS  = 4        # config.num_attention_heads
DOWN_HEAD_DIM = DOWN_DIM // N_HEADS   # 32
HEAD_DIM      = D_MODEL // N_HEADS    # 64
LN_EPS = 1e-5
N_WEIGHTS = 24      # number of weight/bias operands passed to the kernel


# ------------------------------ fused kernel ---------------------------------
def _fused_lqformer_kernel(*refs, has_mask):
    # --- unpack refs (order defined in lqformer_forward) ---
    lt_ref, img_ref, txt_ref = refs[:3]
    idx = 3
    mask_ref = None
    if has_mask:
        mask_ref = refs[idx]
        idx += 1
    (w_dlt, b_dlt, w_dimg, b_dimg,
     ln_q_g, ln_q_b, ln_t_g, ln_t_b, ln_kv_g, ln_kv_b,
     t2q_qw3, t2q_qb3, t2q_kw3, t2q_kb3, t2q_vw3, t2q_vb3,
     i2q_qw3, i2q_qb3, i2q_kw3, i2q_kb3, i2q_vw3, i2q_vb3,
     up_w3, up_b) = refs[idx:idx + N_WEIGHTS]
    o_ref = refs[idx + N_WEIGHTS]
    x_scratch = refs[idx + N_WEIGHTS + 1]          # (Lq, DOWN) f32 VMEM scratch

    bf16, f32 = jnp.bfloat16, jnp.float32
    BB, Lq, MM = lt_ref.shape
    Li, D = img_ref.shape[1], img_ref.shape[2]
    Lt = txt_ref.shape[1]

    def mm(a, b):
        # bf16 x bf16 operands, f32 accumulation on the MXU.
        return jnp.dot(a, b, preferred_element_type=f32)

    def qkT(q, k):
        # (Lq, dh) x (Lk, dh)^T -> (Lq, Lk), f32 accumulation.
        # TODO(synk): check the Mosaic bundle for an explicit vxpose of K here;
        # if present, produce K already transposed out of its projection.
        return jax.lax.dot_general(q, k, (((1,), (1,)), ((), ())),
                                   preferred_element_type=f32)

    def layernorm(x, g_r, b_r):
        # Kept in f32 (v5e has no bf16 VPU/EUP).
        mu = jnp.mean(x, axis=-1, keepdims=True)
        var = jnp.mean((x - mu) * (x - mu), axis=-1, keepdims=True)
        return (x - mu) * jax.lax.rsqrt(var + LN_EPS) * g_r[...] + b_r[...]

    def softmax_rows(s):
        # f32 softmax (max-subtraction) with EUP approx reciprocal.
        s = s - jnp.max(s, axis=-1, keepdims=True)
        p = jnp.exp(s)
        return p * pl.reciprocal(jnp.sum(p, axis=-1, keepdims=True), approx=True)

    learnable = lt_ref[...]                         # (BB, Lq, MM) f32 -- residual
    lt_flat  = learnable.reshape(BB * Lq, MM)
    txt_flat = txt_ref[...].reshape(BB * Lt, MM)
    img_flat = img_ref[...].reshape(BB * Li, D)

    # --- shared-weight down projections: fuse learnable+text rows (fat M) ----
    lt_txt = jnp.concatenate([lt_flat, txt_flat], axis=0).astype(bf16)
    lt_txt_down = mm(lt_txt, w_dlt[...]) + b_dlt[...]          # (BB*(Lq+Lt), DOWN) f32
    img_down    = mm(img_flat.astype(bf16), w_dimg[...]) + b_dimg[...]

    q_ln_all  = layernorm(lt_txt_down[:BB * Lq], ln_q_g, ln_q_b).astype(bf16)
    t_ln_all  = layernorm(lt_txt_down[BB * Lq:], ln_t_g, ln_t_b).astype(bf16)
    kv_ln_all = layernorm(img_down, ln_kv_g, ln_kv_b).astype(bf16)
    img_all   = img_flat.astype(bf16)               # raw image tokens feed i2q V

    up_bias = up_b[...]                              # (1, MM) f32

    for bb in range(BB):                             # static loop over batch-in-block
        q_ln  = q_ln_all[bb * Lq:(bb + 1) * Lq]      # sublane slices (x8 aligned)
        t_ln  = t_ln_all[bb * Lt:(bb + 1) * Lt]
        kv_ln = kv_ln_all[bb * Li:(bb + 1) * Li]
        img_b = img_all[bb * Li:(bb + 1) * Li]
        add_mask = mask_ref[bb] if has_mask else None   # (1, Lt) precomputed additive

        # ------------------ t2q cross attention (text -> queries) ------------
        # Per-head projections against head-pre-split weights (no activation
        # lane slices); head outputs written at merged offsets into VMEM
        # scratch (no lane-axis concat).  Q scale is pre-folded into W/b.
        for h in range(N_HEADS):
            lo = h * DOWN_HEAD_DIM
            qh = mm(q_ln, t2q_qw3[h]) + t2q_qb3[h]           # (Lq, dh) f32
            kh = mm(t_ln, t2q_kw3[h]) + t2q_kb3[h]           # (Lt, dh)
            vh = mm(t_ln, t2q_vw3[h]) + t2q_vb3[h]           # (Lt, dh)
            s = qkT(qh.astype(bf16), kh.astype(bf16))        # (Lq, Lt) f32
            if has_mask:
                s = s + add_mask
            p = softmax_rows(s).astype(bf16)
            x_scratch[:, lo:lo + DOWN_HEAD_DIM] = mm(p, vh.astype(bf16))

        x_merged = x_scratch[...].astype(bf16)               # (Lq, DOWN) merged heads

        # --------------- i2q cross attention (image -> queries) --------------
        # Head merge + up projection + residual folded into one f32 accumulator.
        acc = learnable[bb] + up_bias                         # (Lq, MM) f32
        for h in range(N_HEADS):
            q2h = mm(x_merged, i2q_qw3[h]) + i2q_qb3[h]       # (Lq, dh)  scale folded
            k2h = mm(kv_ln,   i2q_kw3[h]) + i2q_kb3[h]        # (Li, dh)
            v2h = mm(img_b,   i2q_vw3[h]) + i2q_vb3[h]        # (Li, HEAD_DIM)
            s2 = qkT(q2h.astype(bf16), k2h.astype(bf16))      # (Lq, Li) f32
            p2 = softmax_rows(s2).astype(bf16)
            head = mm(p2, v2h.astype(bf16))                   # (Lq, HEAD_DIM) f32
            acc = acc + mm(head.astype(bf16), up_w3[h])       # merge folded into up-proj
        # TODO(synk): the PyTorch layer also returns the head-averaged i2q
        # attention weights; LQFormer.forward discards them, so not materialized.
        o_ref[bb] = acc                                       # lane-dense (Lq, 128) store


# -------------------- one-time kernel-ready weight prep ----------------------
def prepare_kernel_params(params):
    """Done ONCE (not per call): bf16 casts, per-head weight splits (H, in, dh),
    up-projector row split (H, HEAD_DIM, MM), 1/sqrt(down_head_dim) folded into
    both q projections."""
    lay = params["layer0"]
    t2q, i2q = lay["t2q"], lay["i2q"]
    inv_scale = 1.0 / math.sqrt(DOWN_HEAD_DIM)   # same scale for both attentions

    def split_heads_out(w, b, dh, scale=1.0):
        din = w.shape[0]
        w3 = (w * scale).reshape(din, N_HEADS, dh).transpose(1, 0, 2)
        b3 = (b * scale).reshape(1, N_HEADS, dh).transpose(1, 0, 2)
        return w3.astype(jnp.bfloat16), b3.astype(jnp.float32)

    kp = {
        "w_dlt": params["down_lt_w"].astype(jnp.bfloat16),
        "b_dlt": params["down_lt_b"].astype(jnp.float32),
        "w_dimg": params["down_img_w"].astype(jnp.bfloat16),
        "b_dimg": params["down_img_b"].astype(jnp.float32),
        "ln_q_g": lay["ln_q_g"], "ln_q_b": lay["ln_q_b"],
        "ln_text_g": lay["ln_text_g"], "ln_text_b": lay["ln_text_b"],
        "ln_kv_g": lay["ln_kv_g"], "ln_kv_b": lay["ln_kv_b"],
        "up_w3": params["up_w"].reshape(N_HEADS, HEAD_DIM, MM_MODEL).astype(jnp.bfloat16),
        "up_b": params["up_b"].astype(jnp.float32),
    }
    kp["t2q_qw3"], kp["t2q_qb3"] = split_heads_out(t2q["q_w"], t2q["q_b"],
                                                   DOWN_HEAD_DIM, inv_scale)
    kp["t2q_kw3"], kp["t2q_kb3"] = split_heads_out(t2q["k_w"], t2q["k_b"], DOWN_HEAD_DIM)
    kp["t2q_vw3"], kp["t2q_vb3"] = split_heads_out(t2q["v_w"], t2q["v_b"], DOWN_HEAD_DIM)
    kp["i2q_qw3"], kp["i2q_qb3"] = split_heads_out(i2q["q_w"], i2q["q_b"],
                                                   DOWN_HEAD_DIM, inv_scale)
    kp["i2q_kw3"], kp["i2q_kb3"] = split_heads_out(i2q["k_w"], i2q["k_b"], DOWN_HEAD_DIM)
    kp["i2q_vw3"], kp["i2q_vb3"] = split_heads_out(i2q["v_w"], i2q["v_b"], HEAD_DIM)
    return kp


# ------------------------------ forward wrapper -------------------------------
def lqformer_forward(kparams, learnable_tokens, image_tokens, text_tokens,
                     text_mask=None, *, batch_block=None):
    B, Lq, MM = learnable_tokens.shape
    Li, D = image_tokens.shape[1], image_tokens.shape[2]
    Lt = text_tokens.shape[1]
    has_mask = text_mask is not None

    # Fold the whole batch into one compute block by default: v5e/v6e have a
    # single TensorCore (grid = serial loop, ~0.35us/step) and folding fattens
    # M for the shared-weight matmuls.
    # TODO(synk): on v7x (2 TCs) pass batch_block = B // 2 so both cores work.
    if batch_block is None:
        batch_block = B
    assert B % batch_block == 0
    n_blocks = B // batch_block

    weight_args = [
        kparams["w_dlt"], kparams["b_dlt"], kparams["w_dimg"], kparams["b_dimg"],
        kparams["ln_q_g"], kparams["ln_q_b"],
        kparams["ln_text_g"], kparams["ln_text_b"],
        kparams["ln_kv_g"], kparams["ln_kv_b"],
        kparams["t2q_qw3"], kparams["t2q_qb3"],
        kparams["t2q_kw3"], kparams["t2q_kb3"],
        kparams["t2q_vw3"], kparams["t2q_vb3"],
        kparams["i2q_qw3"], kparams["i2q_qb3"],
        kparams["i2q_kw3"], kparams["i2q_kb3"],
        kparams["i2q_vw3"], kparams["i2q_vb3"],
        kparams["up_w3"], kparams["up_b"],
    ]
    assert len(weight_args) == N_WEIGHTS

    in_specs = [
        pl.BlockSpec((batch_block, Lq, MM), lambda b: (b, 0, 0)),
        pl.BlockSpec((batch_block, Li, D),  lambda b: (b, 0, 0)),
        pl.BlockSpec((batch_block, Lt, MM), lambda b: (b, 0, 0)),
    ]
    args = [learnable_tokens, image_tokens, text_tokens]
    if has_mask:
        # Additive mask precomputed outside the kernel (PyTorch quirk kept:
        # masked positions -> -1e4, kept positions ADD the mask value itself).
        add_mask = jnp.where(text_mask == 0, -10000.0,
                             text_mask.astype(jnp.float32)).reshape(B, 1, Lt)
        in_specs.append(pl.BlockSpec((batch_block, 1, Lt), lambda b: (b, 0, 0)))
        args.append(add_mask)

    # weights: whole-array blocks, constant index_map -> fetched once, resident.
    # TODO(synk): at production dims mark these pipeline_mode=pl.Buffered(1) and
    # raise vmem_limit_bytes (v6e) / tile the big projections (v7x).
    def const_spec(w):
        nd = w.ndim
        return pl.BlockSpec(w.shape, lambda b, _nd=nd: (0,) * _nd)

    in_specs += [const_spec(w) for w in weight_args]
    args += weight_args

    kernel = functools.partial(_fused_lqformer_kernel, has_mask=has_mask)
    return pl.pallas_call(
        kernel,
        out_shape=jax.ShapeDtypeStruct((B, Lq, MM), jnp.float32),
        grid=(n_blocks,),
        in_specs=in_specs,
        out_specs=pl.BlockSpec((batch_block, Lq, MM), lambda b: (b, 0, 0)),
        scratch_shapes=[pltpu.VMEM((Lq, DOWN_DIM), jnp.float32)],
        compiler_params=pltpu.CompilerParams(
            dimension_semantics=("parallel",)),
    )(*args)


# ------------------------ deterministic parameter init -----------------------
def init_params(key):
    def lin(k, din, dout, scale=0.05):
        k1, k2 = jax.random.split(k)
        w = scale * jax.random.normal(k1, (din, dout), jnp.float32)
        b = scale * jax.random.normal(k2, (1, dout), jnp.float32)
        return w, b

    ks = jax.random.split(key, 16)
    params = {}
    params["down_lt_w"], params["down_lt_b"] = lin(ks[0], MM_MODEL, DOWN_DIM)
    params["down_img_w"], params["down_img_b"] = lin(ks[1], D_MODEL, DOWN_DIM)
    params["up_w"], params["up_b"] = lin(ks[2], D_MODEL, MM_MODEL)

    t2q = {}
    t2q["q_w"], t2q["q_b"] = lin(ks[3], DOWN_DIM, DOWN_DIM)
    t2q["k_w"], t2q["k_b"] = lin(ks[4], DOWN_DIM, DOWN_DIM)
    t2q["v_w"], t2q["v_b"] = lin(ks[5], DOWN_DIM, DOWN_DIM)   # embed_dim == down_dim

    i2q = {}
    i2q["q_w"], i2q["q_b"] = lin(ks[6], DOWN_DIM, DOWN_DIM)
    i2q["k_w"], i2q["k_b"] = lin(ks[7], DOWN_DIM, DOWN_DIM)
    i2q["v_w"], i2q["v_b"] = lin(ks[8], D_MODEL, D_MODEL)     # embed_dim == d_model

    def ln_pair(kg, kb):
        g = 1.0 + 0.05 * jax.random.normal(kg, (1, DOWN_DIM), jnp.float32)
        b = 0.05 * jax.random.normal(kb, (1, DOWN_DIM), jnp.float32)
        return g, b

    layer = {"t2q": t2q, "i2q": i2q}
    layer["ln_q_g"], layer["ln_q_b"] = ln_pair(ks[9], ks[10])
    layer["ln_text_g"], layer["ln_text_b"] = ln_pair(ks[11], ks[12])
    layer["ln_kv_g"], layer["ln_kv_b"] = ln_pair(ks[13], ks[14])
    params["layer0"] = layer
    return params


# --------------------------- pure-JAX reference -------------------------------
def _split_heads(x, n_heads):
    B, L, Dm = x.shape
    return x.reshape(B, L, n_heads, Dm // n_heads).transpose(0, 2, 1, 3)


def _merge_heads(x):
    B, H, L, dh = x.shape
    return x.transpose(0, 2, 1, 3).reshape(B, L, H * dh)


def _ref_forward(params, learnable, image, text, text_mask):
    def lin(x, w, b):
        return x @ w + b[0]

    def ln(x, g, b):
        mu = x.mean(-1, keepdims=True)
        var = ((x - mu) ** 2).mean(-1, keepdims=True)
        return (x - mu) / jnp.sqrt(var + LN_EPS) * g[0] + b[0]

    def attn(p, q_in, k_in, v_in, mask):
        q = _split_heads(lin(q_in, p["q_w"], p["q_b"]), N_HEADS)
        k = _split_heads(lin(k_in, p["k_w"], p["k_b"]), N_HEADS)
        v = _split_heads(lin(v_in, p["v_w"], p["v_b"]), N_HEADS)
        s = jnp.einsum("bhqd,bhkd->bhqk", q, k) / math.sqrt(DOWN_HEAD_DIM)
        if mask is not None:
            s = s + jnp.where(mask == 0.0, -10000.0, mask)
        w = jax.nn.softmax(s, axis=-1)
        return _merge_heads(jnp.einsum("bhqk,bhkd->bhqd", w, v))

    p = params["layer0"]
    lt_down = lin(learnable, params["down_lt_w"], params["down_lt_b"])
    tt_down = lin(text, params["down_lt_w"], params["down_lt_b"])
    it_down = lin(image, params["down_img_w"], params["down_img_b"])

    B, Lq, _ = lt_down.shape
    Lt = tt_down.shape[1]
    mask = None
    if text_mask is not None:
        mask = jnp.broadcast_to(
            text_mask[:, None, None, :].astype(jnp.float32), (B, N_HEADS, Lq, Lt))
    q_ln = ln(lt_down, p["ln_q_g"], p["ln_q_b"])
    t_ln = ln(tt_down, p["ln_text_g"], p["ln_text_b"])
    x = attn(p["t2q"], q_ln, t_ln, t_ln, mask)
    kv_ln = ln(it_down, p["ln_kv_g"], p["ln_kv_b"])
    x = attn(p["i2q"], x, kv_ln, image, None)
    x = lin(x, params["up_w"], params["up_b"])
    return learnable + x


# ----------------------------------- main -------------------------------------
if __name__ == "__main__":
    key = jax.random.PRNGKey(0)
    kp_key, k1, k2, k3 = jax.random.split(key, 4)
    params = init_params(kp_key)
    kernel_params = prepare_kernel_params(params)   # one-time weight prep

    B, Lq, Lt, Li = 2, 8, 8, 16
    learnable_tokens = jax.random.normal(k1, (B, Lq, MM_MODEL), jnp.float32)
    image_tokens = jax.random.normal(k2, (B, Li, D_MODEL), jnp.float32)
    text_tokens = jax.random.normal(k3, (B, Lt, MM_MODEL), jnp.float32)
    text_mask = jnp.array(
        [[1, 1, 1, 1, 1, 1, 1, 1],
         [1, 1, 1, 1, 1, 0, 0, 0]], dtype=jnp.float32
    )

    out = jax.jit(lqformer_forward)(
        kernel_params, learnable_tokens, image_tokens, text_tokens, text_mask
    )
    out = jax.block_until_ready(out)

    assert out.shape == (B, Lq, MM_MODEL), out.shape
    assert bool(jnp.all(jnp.isfinite(out)))

    ref = _ref_forward(params, learnable_tokens, image_tokens, text_tokens, text_mask)
    max_err = float(jnp.max(jnp.abs(out - ref)))
    # bf16 MXU operands (with f32 accumulation) + the approx softmax reciprocal
    # introduce ~0.5-1% relative error vs. the all-f32 reference.
    assert max_err < 5e-2, f"mismatch vs pure-JAX reference: {max_err}"

    print("KERNEL_OK")
</pallas_src>

<mosaic_0001>
module attributes {stable_mosaic.version = 11 : i64} {
  func.func @_fused_lqformer_kernel(%arg0: i32, %arg1: memref<2x8x128xf32, #tpu.memory_space<vmem>>, %arg2: memref<2x16x256xf32, #tpu.memory_space<vmem>>, %arg3: memref<2x8x128xf32, #tpu.memory_space<vmem>>, %arg4: memref<2x1x8xf32, #tpu.memory_space<vmem>>, %arg5: memref<128x128xbf16, #tpu.memory_space<vmem>>, %arg6: memref<1x128xf32, #tpu.memory_space<vmem>>, %arg7: memref<256x128xbf16, #tpu.memory_space<vmem>>, %arg8: memref<1x128xf32, #tpu.memory_space<vmem>>, %arg9: memref<1x128xf32, #tpu.memory_space<vmem>>, %arg10: memref<1x128xf32, #tpu.memory_space<vmem>>, %arg11: memref<1x128xf32, #tpu.memory_space<vmem>>, %arg12: memref<1x128xf32, #tpu.memory_space<vmem>>, %arg13: memref<1x128xf32, #tpu.memory_space<vmem>>, %arg14: memref<1x128xf32, #tpu.memory_space<vmem>>, %arg15: memref<4x128x32xbf16, #tpu.memory_space<vmem>>, %arg16: memref<4x1x32xf32, #tpu.memory_space<vmem>>, %arg17: memref<4x128x32xbf16, #tpu.memory_space<vmem>>, %arg18: memref<4x1x32xf32, #tpu.memory_space<vmem>>, %arg19: memref<4x128x32xbf16, #tpu.memory_space<vmem>>, %arg20: memref<4x1x32xf32, #tpu.memory_space<vmem>>, %arg21: memref<4x128x32xbf16, #tpu.memory_space<vmem>>, %arg22: memref<4x1x32xf32, #tpu.memory_space<vmem>>, %arg23: memref<4x128x32xbf16, #tpu.memory_space<vmem>>, %arg24: memref<4x1x32xf32, #tpu.memory_space<vmem>>, %arg25: memref<4x256x64xbf16, #tpu.memory_space<vmem>>, %arg26: memref<4x1x64xf32, #tpu.memory_space<vmem>>, %arg27: memref<4x64x128xbf16, #tpu.memory_space<vmem>>, %arg28: memref<1x128xf32, #tpu.memory_space<vmem>>, %arg29: memref<2x8x128xf32, #tpu.memory_space<vmem>>, %arg30: memref<8x128xf32, #tpu.memory_space<vmem>>) attributes {dimension_semantics = [#tpu.dimension_semantics<parallel>], iteration_bounds = array<i64: 1>, scalar_prefetch = 0 : i64, scratch_operands = 1 : i64, tpu.core_type = #tpu.core_type<tc>, window_params = [{transform_indices = @transform_0, window_bounds = array<i64: 2, 8, 128>}, {transform_indices = @transform_1, window_bounds = array<i64: 2, 16, 256>}, {transform_indices = @transform_2, window_bounds = array<i64: 2, 8, 128>}, {transform_indices = @transform_3, window_bounds = array<i64: 2, 1, 8>}, {pipeline_mode = #tpu.pipeline_mode<synchronous>, transform_indices = @transform_4, window_bounds = array<i64: 128, 128>}, {pipeline_mode = #tpu.pipeline_mode<synchronous>, transform_indices = @transform_5, window_bounds = array<i64: 1, 128>}, {pipeline_mode = #tpu.pipeline_mode<synchronous>, transform_indices = @transform_6, window_bounds = array<i64: 256, 128>}, {pipeline_mode = #tpu.pipeline_mode<synchronous>, transform_indices = @transform_7, window_bounds = array<i64: 1, 128>}, {pipeline_mode = #tpu.pipeline_mode<synchronous>, transform_indices = @transform_8, window_bounds = array<i64: 1, 128>}, {pipeline_mode = #tpu.pipeline_mode<synchronous>, transform_indices = @transform_9, window_bounds = array<i64: 1, 128>}, {pipeline_mode = #tpu.pipeline_mode<synchronous>, transform_indices = @transform_10, window_bounds = array<i64: 1, 128>}, {pipeline_mode = #tpu.pipeline_mode<synchronous>, transform_indices = @transform_11, window_bounds = array<i64: 1, 128>}, {pipeline_mode = #tpu.pipeline_mode<synchronous>, transform_indices = @transform_12, window_bounds = array<i64: 1, 128>}, {pipeline_mode = #tpu.pipeline_mode<synchronous>, transform_indices = @transform_13, window_bounds = array<i64: 1, 128>}, {pipeline_mode = #tpu.pipeline_mode<synchronous>, transform_indices = @transform_14, window_bounds = array<i64: 4, 128, 32>}, {pipeline_mode = #tpu.pipeline_mode<synchronous>, transform_indices = @transform_15, window_bounds = array<i64: 4, 1, 32>}, {pipeline_mode = #tpu.pipeline_mode<synchronous>, transform_indices = @transform_16, window_bounds = array<i64: 4, 128, 32>}, {pipeline_mode = #tpu.pipeline_mode<synchronous>, transform_indices = @transform_17, window_bounds = array<i64: 4, 1, 32>}, {pipeline_mode = #tpu.pipeline_mode<synchronous>, transform_indices = @transform_18, window_bounds = array<i64: 4, 128, 32>}, {pipeline_mode = #tpu.pipeline_mode<synchronous>, transform_indices = @transform_19, window_bounds = array<i64: 4, 1, 32>}, {pipeline_mode = #tpu.pipeline_mode<synchronous>, transform_indices = @transform_20, window_bounds = array<i64: 4, 128, 32>}, {pipeline_mode = #tpu.pipeline_mode<synchronous>, transform_indices = @transform_21, window_bounds = array<i64: 4, 1, 32>}, {pipeline_mode = #tpu.pipeline_mode<synchronous>, transform_indices = @transform_22, window_bounds = array<i64: 4, 128, 32>}, {pipeline_mode = #tpu.pipeline_mode<synchronous>, transform_indices = @transform_23, window_bounds = array<i64: 4, 1, 32>}, {pipeline_mode = #tpu.pipeline_mode<synchronous>, transform_indices = @transform_24, window_bounds = array<i64: 4, 256, 64>}, {pipeline_mode = #tpu.pipeline_mode<synchronous>, transform_indices = @transform_25, window_bounds = array<i64: 4, 1, 64>}, {pipeline_mode = #tpu.pipeline_mode<synchronous>, transform_indices = @transform_26, window_bounds = array<i64: 4, 64, 128>}, {pipeline_mode = #tpu.pipeline_mode<synchronous>, transform_indices = @transform_27, window_bounds = array<i64: 1, 128>}, {transform_indices = @transform_28, window_bounds = array<i64: 2, 8, 128>}]} {
    %c0 = arith.constant 0 : index
    %c0_0 = arith.constant 0 : index
    %c0_1 = arith.constant 0 : index
    %0 = vector.load %arg1[%c0, %c0_0, %c0_1] : memref<2x8x128xf32, #tpu.memory_space<vmem>>, vector<2x8x128xf32>
    %1 = vector.shape_cast %0 : vector<2x8x128xf32> to vector<16x128xf32>
    %c0_2 = arith.constant 0 : index
    %c0_3 = arith.constant 0 : index
    %c0_4 = arith.constant 0 : index
    %2 = vector.load %arg3[%c0_2, %c0_3, %c0_4] : memref<2x8x128xf32, #tpu.memory_space<vmem>>, vector<2x8x128xf32>
    %3 = vector.shape_cast %2 : vector<2x8x128xf32> to vector<16x128xf32>
    %c0_5 = arith.constant 0 : index
    %c0_6 = arith.constant 0 : index
    %c0_7 = arith.constant 0 : index
    %4 = vector.load %arg2[%c0_5, %c0_6, %c0_7] : memref<2x16x256xf32, #tpu.memory_space<vmem>>, vector<2x16x256xf32>
    %5 = vector.shape_cast %4 : vector<2x16x256xf32> to vector<32x256xf32>
    %6 = tpu.concatenate %1, %3 in 0 : vector<16x128xf32>, vector<16x128xf32> -> vector<32x128xf32>
    %7 = arith.truncf %6 : vector<32x128xf32> to vector<32x128xbf16>
    %c0_8 = arith.constant 0 : index
    %c0_9 = arith.constant 0 : index
    %8 = vector.load %arg5[%c0_8, %c0_9] : memref<128x128xbf16, #tpu.memory_space<vmem>>, vector<128x128xbf16>
    %cst = arith.constant dense<0.000000e+00> : vector<32x128xf32>
    %9 = tpu.matmul %7, %8, %cst {dimension_numbers = #tpu.dot_dimension_numbers<[1], [0], [0], [1], [0, 0, 1, 1], [], []>} : vector<32x128xbf16>, vector<128x128xbf16>, vector<32x128xf32> -> vector<32x128xf32>
    %c0_10 = arith.constant 0 : index
    %c0_11 = arith.constant 0 : index
    %10 = vector.load %arg6[%c0_10, %c0_11] : memref<1x128xf32, #tpu.memory_space<vmem>>, vector<1x128xf32>
    %11 = vector.broadcast %10 : vector<1x128xf32> to vector<32x128xf32>
    %12 = arith.addf %9, %11 : vector<32x128xf32>
    %13 = arith.truncf %5 : vector<32x256xf32> to vector<32x256xbf16>
    %c0_12 = arith.constant 0 : index
    %c0_13 = arith.constant 0 : index
    %14 = vector.load %arg7[%c0_12, %c0_13] : memref<256x128xbf16, #tpu.memory_space<vmem>>, vector<256x128xbf16>
    %cst_14 = arith.constant dense<0.000000e+00> : vector<32x128xf32>
    %15 = tpu.matmul %13, %14, %cst_14 {dimension_numbers = #tpu.dot_dimension_numbers<[1], [0], [0], [1], [0, 0, 1, 1], [], []>} : vector<32x256xbf16>, vector<256x128xbf16>, vector<32x128xf32> -> vector<32x128xf32>
    %c0_15 = arith.constant 0 : index
    %c0_16 = arith.constant 0 : index
    %16 = vector.load %arg8[%c0_15, %c0_16] : memref<1x128xf32, #tpu.memory_space<vmem>>, vector<1x128xf32>
    %17 = vector.broadcast %16 : vector<1x128xf32> to vector<32x128xf32>
    %18 = arith.addf %15, %17 : vector<32x128xf32>
    %19 = vector.extract_strided_slice %12 {offsets = [0, 0], sizes = [16, 128], strides = [1, 1]} : vector<32x128xf32> to vector<16x128xf32>
    %cst_17 = arith.constant dense<0.000000e+00> : vector<16xf32>
    %20 = vector.multi_reduction <add>, %19, %cst_17 [1] : vector<16x128xf32> to vector<16xf32>
    %21 = vector.shape_cast %20 : vector<16xf32> to vector<16x1xf32>
    %cst_18 = arith.constant 1.280000e+02 : f32
    %22 = vector.broadcast %cst_18 : f32 to vector<16x1xf32>
    %23 = arith.divf %21, %22 : vector<16x1xf32>
    %24 = vector.broadcast %23 : vector<16x1xf32> to vector<16x128xf32>
    %25 = arith.subf %19, %24 : vector<16x128xf32>
    %26 = vector.broadcast %23 : vector<16x1xf32> to vector<16x128xf32>
    %27 = arith.subf %19, %26 : vector<16x128xf32>
    %28 = arith.mulf %25, %27 : vector<16x128xf32>
    %cst_19 = arith.constant dense<0.000000e+00> : vector<16xf32>
    %29 = vector.multi_reduction <add>, %28, %cst_19 [1] : vector<16x128xf32> to vector<16xf32>
    %30 = vector.shape_cast %29 : vector<16xf32> to vector<16x1xf32>
    %cst_20 = arith.constant 1.280000e+02 : f32
    %31 = vector.broadcast %cst_20 : f32 to vector<16x1xf32>
    %32 = arith.divf %30, %31 : vector<16x1xf32>
    %33 = vector.broadcast %23 : vector<16x1xf32> to vector<16x128xf32>
    %34 = arith.subf %19, %33 : vector<16x128xf32>
    %cst_21 = arith.constant 9.99999974E-6 : f32
    %35 = vector.broadcast %cst_21 : f32 to vector<16x1xf32>
    %36 = arith.addf %32, %35 : vector<16x1xf32>
    %37 = math.rsqrt %36 : vector<16x1xf32>
    %38 = vector.broadcast %37 : vector<16x1xf32> to vector<16x128xf32>
    %39 = arith.mulf %34, %38 : vector<16x128xf32>
    %c0_22 = arith.constant 0 : index
    %c0_23 = arith.constant 0 : index
    %40 = vector.load %arg9[%c0_22, %c0_23] : memref<1x128xf32, #tpu.memory_space<vmem>>, vector<1x128xf32>
    %41 = vector.broadcast %40 : vector<1x128xf32> to vector<16x128xf32>
    %42 = arith.mulf %39, %41 : vector<16x128xf32>
    %c0_24 = arith.constant 0 : index
    %c0_25 = arith.constant 0 : index
    %43 = vector.load %arg10[%c0_24, %c0_25] : memref<1x128xf32, #tpu.memory_space<vmem>>, vector<1x128xf32>
    %44 = vector.broadcast %43 : vector<1x128xf32> to vector<16x128xf32>
    %45 = arith.addf %42, %44 : vector<16x128xf32>
    %46 = arith.truncf %45 : vector<16x128xf32> to vector<16x128xbf16>
    %47 = vector.extract_strided_slice %12 {offsets = [16, 0], sizes = [16, 128], strides = [1, 1]} : vector<32x128xf32> to vector<16x128xf32>
    %cst_26 = arith.constant dense<0.000000e+00> : vector<16xf32>
    %48 = vector.multi_reduction <add>, %47, %cst_26 [1] : vector<16x128xf32> to vector<16xf32>
    %49 = vector.shape_cast %48 : vector<16xf32> to vector<16x1xf32>
    %cst_27 = arith.constant 1.280000e+02 : f32
    %50 = vector.broadcast %cst_27 : f32 to vector<16x1xf32>
    %51 = arith.divf %49, %50 : vector<16x1xf32>
    %52 = vector.broadcast %51 : vector<16x1xf32> to vector<16x128xf32>
    %53 = arith.subf %47, %52 : vector<16x128xf32>
    %54 = vector.broadcast %51 : vector<16x1xf32> to vector<16x128xf32>
    %55 = arith.subf %47, %54 : vector<16x128xf32>
    %56 = arith.mulf %53, %55 : vector<16x128xf32>
    %cst_28 = arith.constant dense<0.000000e+00> : vector<16xf32>
    %57 = vector.multi_reduction <add>, %56, %cst_28 [1] : vector<16x128xf32> to vector<16xf32>
    %58 = vector.shape_cast %57 : vector<16xf32> to vector<16x1xf32>
    %cst_29 = arith.constant 1.280000e+02 : f32
    %59 = vector.broadcast %cst_29 : f32 to vector<16x1xf32>
    %60 = arith.divf %58, %59 : vector<16x1xf32>
    %61 = vector.broadcast %51 : vector<16x1xf32> to vector<16x128xf32>
    %62 = arith.subf %47, %61 : vector<16x128xf32>
    %cst_30 = arith.constant 9.99999974E-6 : f32
    %63 = vector.broadcast %cst_30 : f32 to vector<16x1xf32>
    %64 = arith.addf %60, %63 : vector<16x1xf32>
    %65 = math.rsqrt %64 : vector<16x1xf32>
    %66 = vector.broadcast %65 : vector<16x1xf32> to vector<16x128xf32>
    %67 = arith.mulf %62, %66 : vector<16x128xf32>
    %c0_31 = arith.constant 0 : index
    %c0_32 = arith.constant 0 : index
    %68 = vector.load %arg11[%c0_31, %c0_32] : memref<1x128xf32, #tpu.memory_space<vmem>>, vector<1x128xf32>
    %69 = vector.broadcast %68 : vector<1x128xf32> to vector<16x128xf32>
    %70 = arith.mulf %67, %69 : vector<16x128xf32>
    %c0_33 = arith.constant 0 : index
    %c0_34 = arith.constant 0 : index
    %71 = vector.load %arg12[%c0_33, %c0_34] : memref<1x128xf32, #tpu.memory_space<vmem>>, vector<1x128xf32>
    %72 = vector.broadcast %71 : vector<1x128xf32> to vector<16x128xf32>
    %73 = arith.addf %70, %72 : vector<16x128xf32>
    %74 = arith.truncf %73 : vector<16x128xf32> to vector<16x128xbf16>
    %cst_35 = arith.constant dense<0.000000e+00> : vector<32xf32>
    %75 = vector.multi_reduction <add>, %18, %cst_35 [1] : vector<32x128xf32> to vector<32xf32>
    %76 = vector.shape_cast %75 : vector<32xf32> to vector<32x1xf32>
    %cst_36 = arith.constant 1.280000e+02 : f32
    %77 = vector.broadcast %cst_36 : f32 to vector<32x1xf32>
    %78 = arith.divf %76, %77 : vector<32x1xf32>
    %79 = vector.broadcast %78 : vector<32x1xf32> to vector<32x128xf32>
    %80 = arith.subf %18, %79 : vector<32x128xf32>
    %81 = vector.broadcast %78 : vector<32x1xf32> to vector<32x128xf32>
    %82 = arith.subf %18, %81 : vector<32x128xf32>
    %83 = arith.mulf %80, %82 : vector<32x128xf32>
    %cst_37 = arith.constant dense<0.000000e+00> : vector<32xf32>
    %84 = vector.multi_reduction <add>, %83, %cst_37 [1] : vector<32x128xf32> to vector<32xf32>
    %85 = vector.shape_cast %84 : vector<32xf32> to vector<32x1xf32>
    %cst_38 = arith.constant 1.280000e+02 : f32
    %86 = vector.broadcast %cst_38 : f32 to vector<32x1xf32>
    %87 = arith.divf %85, %86 : vector<32x1xf32>
    %88 = vector.broadcast %78 : vector<32x1xf32> to vector<32x128xf32>
    %89 = arith.subf %18, %88 : vector<32x128xf32>
    %cst_39 = arith.constant 9.99999974E-6 : f32
    %90 = vector.broadcast %cst_39 : f32 to vector<32x1xf32>
    %91 = arith.addf %87, %90 : vector<32x1xf32>
    %92 = math.rsqrt %91 : vector<32x1xf32>
    %93 = vector.broadcast %92 : vector<32x1xf32> to vector<32x128xf32>
    %94 = arith.mulf %89, %93 : vector<32x128xf32>
    %c0_40 = arith.constant 0 : index
    %c0_41 = arith.constant 0 : index
    %95 = vector.load %arg13[%c0_40, %c0_41] : memref<1x128xf32, #tpu.memory_space<vmem>>, vector<1x128xf32>
    %96 = vector.broadcast %95 : vector<1x128xf32> to vector<32x128xf32>
    %97 = arith.mulf %94, %96 : vector<32x128xf32>
    %c0_42 = arith.constant 0 : index
    %c0_43 = arith.constant 0 : index
    %98 = vector.load %arg14[%c0_42, %c0_43] : memref<1x128xf32, #tpu.memory_space<vmem>>, vector<1x128xf32>
    %99 = vector.broadcast %98 : vector<1x128xf32> to vector<32x128xf32>
    %100 = arith.addf %97, %99 : vector<32x128xf32>
    %101 = arith.truncf %100 : vector<32x128xf32> to vector<32x128xbf16>
    %102 = arith.truncf %5 : vector<32x256xf32> to vector<32x256xbf16>
    %c0_44 = arith.constant 0 : index
    %c0_45 = arith.constant 0 : index
    %103 = vector.load %arg28[%c0_44, %c0_45] : memref<1x128xf32, #tpu.memory_space<vmem>>, vector<1x128xf32>
    %104 = vector.extract_strided_slice %46 {offsets = [0, 0], sizes = [8, 128], strides = [1, 1]} : vector<16x128xbf16> to vector<8x128xbf16>
    %105 = vector.extract_strided_slice %74 {offsets = [0, 0], sizes = [8, 128], strides = [1, 1]} : vector<16x128xbf16> to vector<8x128xbf16>
    %106 = vector.extract_strided_slice %101 {offsets = [0, 0], sizes = [16, 128], strides = [1, 1]} : vector<32x128xbf16> to vector<16x128xbf16>
    %107 = vector.extract_strided_slice %102 {offsets = [0, 0], sizes = [16, 256], strides = [1, 1]} : vector<32x256xbf16> to vector<16x256xbf16>
    %c0_46 = arith.constant 0 : index
    %c0_47 = arith.constant 0 : index
    %c0_48 = arith.constant 0 : index
    %108 = vector.load %arg4[%c0_46, %c0_47, %c0_48] : memref<2x1x8xf32, #tpu.memory_space<vmem>>, vector<1x1x8xf32>
    %109 = vector.shape_cast %108 : vector<1x1x8xf32> to vector<1x8xf32>
    %c0_49 = arith.constant 0 : index
    %c0_50 = arith.constant 0 : index
    %c0_51 = arith.constant 0 : index
    %110 = vector.load %arg15[%c0_49, %c0_50, %c0_51] : memref<4x128x32xbf16, #tpu.memory_space<vmem>>, vector<1x128x32xbf16>
    %111 = vector.shape_cast %110 : vector<1x128x32xbf16> to vector<128x32xbf16>
    %cst_52 = arith.constant dense<0.000000e+00> : vector<8x32xf32>
    %112 = tpu.matmul %104, %111, %cst_52 {dimension_numbers = #tpu.dot_dimension_numbers<[1], [0], [0], [1], [0, 0, 1, 1], [], []>} : vector<8x128xbf16>, vector<128x32xbf16>, vector<8x32xf32> -> vector<8x32xf32>
    %c0_53 = arith.constant 0 : index
    %c0_54 = arith.constant 0 : index
    %c0_55 = arith.constant 0 : index
    %113 = vector.load %arg16[%c0_53, %c0_54, %c0_55] : memref<4x1x32xf32, #tpu.memory_space<vmem>>, vector<1x1x32xf32>
    %114 = vector.shape_cast %113 : vector<1x1x32xf32> to vector<1x32xf32>
    %115 = vector.broadcast %114 : vector<1x32xf32> to vector<8x32xf32>
    %116 = arith.addf %112, %115 : vector<8x32xf32>
    %c0_56 = arith.constant 0 : index
    %c0_57 = arith.constant 0 : index
    %c0_58 = arith.constant 0 : index
    %117 = vector.load %arg17[%c0_56, %c0_57, %c0_58] : memref<4x128x32xbf16, #tpu.memory_space<vmem>>, vector<1x128x32xbf16>
    %118 = vector.shape_cast %117 : vector<1x128x32xbf16> to vector<128x32xbf16>
    %cst_59 = arith.constant dense<0.000000e+00> : vector<8x32xf32>
    %119 = tpu.matmul %105, %118, %cst_59 {dimension_numbers = #tpu.dot_dimension_numbers<[1], [0], [0], [1], [0, 0, 1, 1], [], []>} : vector<8x128xbf16>, vector<128x32xbf16>, vector<8x32xf32> -> vector<8x32xf32>
    %c0_60 = arith.constant 0 : index
    %c0_61 = arith.constant 0 : index
    %c0_62 = arith.constant 0 : index
    %120 = vector.load %arg18[%c0_60, %c0_61, %c0_62] : memref<4x1x32xf32, #tpu.memory_space<vmem>>, vector<1x1x32xf32>
    %121 = vector.shape_cast %120 : vector<1x1x32xf32> to vector<1x32xf32>
    %122 = vector.broadcast %121 : vector<1x32xf32> to vector<8x32xf32>
    %123 = arith.addf %119, %122 : vector<8x32xf32>
    %c0_63 = arith.constant 0 : index
    %c0_64 = arith.constant 0 : index
    %c0_65 = arith.constant 0 : index
    %124 = vector.load %arg19[%c0_63, %c0_64, %c0_65] : memref<4x128x32xbf16, #tpu.memory_space<vmem>>, vector<1x128x32xbf16>
    %125 = vector.shape_cast %124 : vector<1x128x32xbf16> to vector<128x32xbf16>
    %cst_66 = arith.constant dense<0.000000e+00> : vector<8x32xf32>
    %126 = tpu.matmul %105, %125, %cst_66 {dimension_numbers = #tpu.dot_dimension_numbers<[1], [0], [0], [1], [0, 0, 1, 1], [], []>} : vector<8x128xbf16>, vector<128x32xbf16>, vector<8x32xf32> -> vector<8x32xf32>
    %c0_67 = arith.constant 0 : index
    %c0_68 = arith.constant 0 : index
    %c0_69 = arith.constant 0 : index
    %127 = vector.load %arg20[%c0_67, %c0_68, %c0_69] : memref<4x1x32xf32, #tpu.memory_space<vmem>>, vector<1x1x32xf32>
    %128 = vector.shape_cast %127 : vector<1x1x32xf32> to vector<1x32xf32>
    %129 = vector.broadcast %128 : vector<1x32xf32> to vector<8x32xf32>
    %130 = arith.addf %126, %129 : vector<8x32xf32>
    %131 = arith.truncf %116 : vector<8x32xf32> to vector<8x32xbf16>
    %132 = arith.truncf %123 : vector<8x32xf32> to vector<8x32xbf16>
    %cst_70 = arith.constant dense<0.000000e+00> : vector<8x8xf32>
    %133 = tpu.matmul %131, %132, %cst_70 {dimension_numbers = #tpu.dot_dimension_numbers<[1], [1], [0], [0], [0, 0, 1, 0], [], []>} : vector<8x32xbf16>, vector<8x32xbf16>, vector<8x8xf32> -> vector<8x8xf32>
    %134 = vector.broadcast %109 : vector<1x8xf32> to vector<8x8xf32>
    %135 = arith.addf %133, %134 : vector<8x8xf32>
    %cst_71 = arith.constant dense<0xFF800000> : vector<8xf32>
    %136 = vector.multi_reduction <maximumf>, %135, %cst_71 [1] : vector<8x8xf32> to vector<8xf32>
    %137 = vector.shape_cast %136 : vector<8xf32> to vector<8x1xf32>
    %138 = vector.broadcast %137 : vector<8x1xf32> to vector<8x8xf32>
    %139 = arith.subf %135, %138 : vector<8x8xf32>
    %140 = math.exp %139 : vector<8x8xf32>
    %cst_72 = arith.constant dense<0.000000e+00> : vector<8xf32>
    %141 = vector.multi_reduction <add>, %140, %cst_72 [1] : vector<8x8xf32> to vector<8xf32>
    %142 = vector.shape_cast %141 : vector<8xf32> to vector<8x1xf32>
    %143 = tpu.reciprocal %142 {approx = true} : vector<8x1xf32> -> vector<8x1xf32>
    %144 = vector.broadcast %143 : vector<8x1xf32> to vector<8x8xf32>
    %145 = arith.mulf %140, %144 : vector<8x8xf32>
    %146 = arith.truncf %145 : vector<8x8xf32> to vector<8x8xbf16>
    %147 = arith.truncf %130 : vector<8x32xf32> to vector<8x32xbf16>
    %cst_73 = arith.constant dense<0.000000e+00> : vector<8x32xf32>
    %148 = tpu.matmul %146, %147, %cst_73 {dimension_numbers = #tpu.dot_dimension_numbers<[1], [0], [0], [1], [0, 0, 1, 1], [], []>} : vector<8x8xbf16>, vector<8x32xbf16>, vector<8x32xf32> -> vector<8x32xf32>
    %c0_74 = arith.constant 0 : index
    %c0_75 = arith.constant 0 : index
    %149 = vector.load %arg30[%c0_74, %c0_75] : memref<8x128xf32, #tpu.memory_space<vmem>>, vector<8x32xf32>
    tpu.vector_store %arg30[%c0_74, %c0_75], %148 {strides = array<i32>} : memref<8x128xf32, #tpu.memory_space<vmem>>, vector<8x32xf32>,
    %c1 = arith.constant 1 : index
    %c0_76 = arith.constant 0 : index
    %c0_77 = arith.constant 0 : index
    %150 = vector.load %arg15[%c1, %c0_76, %c0_77] : memref<4x128x32xbf16, #tpu.memory_space<vmem>>, vector<1x128x32xbf16>
    %151 = vector.shape_cast %150 : vector<1x128x32xbf16> to vector<128x32xbf16>
    %cst_78 = arith.constant dense<0.000000e+00> : vector<8x32xf32>
    %152 = tpu.matmul %104, %151, %cst_78 {dimension_numbers = #tpu.dot_dimension_numbers<[1], [0], [0], [1], [0, 0, 1, 1], [], []>} : vector<8x128xbf16>, vector<128x32xbf16>, vector<8x32xf32> -> vector<8x32xf32>
    %c1_79 = arith.constant 1 : index
    %c0_80 = arith.constant 0 : index
    %c0_81 = arith.constant 0 : index
    %153 = vector.load %arg16[%c1_79, %c0_80, %c0_81] : memref<4x1x32xf32, #tpu.memory_space<vmem>>, vector<1x1x32xf32>
    %154 = vector.shape_cast %153 : vector<1x1x32xf32> to vector<1x32xf32>
    %155 = vector.broadcast %154 : vector<1x32xf32> to vector<8x32xf32>
    %156 = arith.addf %152, %155 : vector<8x32xf32>
    %c1_82 = arith.constant 1 : index
    %c0_83 = arith.constant 0 : index
    %c0_84 = arith.constant 0 : index
    %157 = vector.load %arg17[%c1_82, %c0_83, %c0_84] : memref<4x128x32xbf16, #tpu.memory_space<vmem>>, vector<1x128x32xbf16>
    %158 = vector.shape_cast %157 : vector<1x128x32xbf16> to vector<128x32xbf16>
    %cst_85 = arith.constant dense<0.000000e+00> : vector<8x32xf32>
    %159 = tpu.matmul %105, %158, %cst_85 {dimension_numbers = #tpu.dot_dimension_numbers<[1], [0], [0], [1], [0, 0, 1, 1], [], []>} : vector<8x128xbf16>, vector<128x32xbf16>, vector<8x32xf32> -> vector<8x32xf32>
    %c1_86 = arith.constant 1 : index
    %c0_87 = arith.constant 0 : index
    %c0_88 = arith.constant 0 : index
    %160 = vector.load %arg18[%c1_86, %c0_87, %c0_88] : memref<4x1x32xf32, #tpu.memory_space<vmem>>, vector<1x1x32xf32>
    %161 = vector.shape_cast %160 : vector<1x1x32xf32> to vector<1x32xf32>
    %162 = vector.broadcast %161 : vector<1x32xf32> to vector<8x32xf32>
    %163 = arith.addf %159, %162 : vector<8x32xf32>
    %c1_89 = arith.constant 1 : index
    %c0_90 = arith.constant 0 : index
    %c0_91 = arith.constant 0 : index
    %164 = vector.load %arg19[%c1_89, %c0_90, %c0_91] : memref<4x128x32xbf16, #tpu.memory_space<vmem>>, vector<1x128x32xbf16>
    %165 = vector.shape_cast %164 : vector<1x128x32xbf16> to vector<128x32xbf16>
    %cst_92 = arith.constant dense<0.000000e+00> : vector<8x32xf32>
    %166 = tpu.matmul %105, %165, %cst_92 {dimension_numbers = #tpu.dot_dimension_numbers<[1], [0], [0], [1], [0, 0, 1, 1], [], []>} : vector<8x128xbf16>, vector<128x32xbf16>, vector<8x32xf32> -> vector<8x32xf32>
    %c1_93 = arith.constant 1 : index
    %c0_94 = arith.constant 0 : index
    %c0_95 = arith.constant 0 : index
    %167 = vector.load %arg20[%c1_93, %c0_94, %c0_95] : memref<4x1x32xf32, #tpu.memory_space<vmem>>, vector<1x1x32xf32>
    %168 = vector.shape_cast %167 : vector<1x1x32xf32> to vector<1x32xf32>
    %169 = vector.broadcast %168 : vector<1x32xf32> to vector<8x32xf32>
    %170 = arith.addf %166, %169 : vector<8x32xf32>
    %171 = arith.truncf %156 : vector<8x32xf32> to vector<8x32xbf16>
    %172 = arith.truncf %163 : vector<8x32xf32> to vector<8x32xbf16>
    %cst_96 = arith.constant dense<0.000000e+00> : vector<8x8xf32>
    %173 = tpu.matmul %171, %172, %cst_96 {dimension_numbers = #tpu.dot_dimension_numbers<[1], [1], [0], [0], [0, 0, 1, 0], [], []>} : vector<8x32xbf16>, vector<8x32xbf16>, vector<8x8xf32> -> vector<8x8xf32>
    %174 = vector.broadcast %109 : vector<1x8xf32> to vector<8x8xf32>
    %175 = arith.addf %173, %174 : vector<8x8xf32>
    %cst_97 = arith.constant dense<0xFF800000> : vector<8xf32>
    %176 = vector.multi_reduction <maximumf>, %175, %cst_97 [1] : vector<8x8xf32> to vector<8xf32>
    %177 = vector.shape_cast %176 : vector<8xf32> to vector<8x1xf32>
    %178 = vector.broadcast %177 : vector<8x1xf32> to vector<8x8xf32>
    %179 = arith.subf %175, %178 : vector<8x8xf32>
    %180 = math.exp %179 : vector<8x8xf32>
    %cst_98 = arith.constant dense<0.000000e+00> : vector<8xf32>
    %181 = vector.multi_reduction <add>, %180, %cst_98 [1] : vector<8x8xf32> to vector<8xf32>
    %182 = vector.shape_cast %181 : vector<8xf32> to vector<8x1xf32>
    %183 = tpu.reciprocal %182 {approx = true} : vector<8x1xf32> -> vector<8x1xf32>
    %184 = vector.broadcast %183 : vector<8x1xf32> to vector<8x8xf32>
    %185 = arith.mulf %180, %184 : vector<8x8xf32>
    %186 = arith.truncf %185 : vector<8x8xf32> to vector<8x8xbf16>
    %187 = arith.truncf %170 : vector<8x32xf32> to vector<8x32xbf16>
    %cst_99 = arith.constant dense<0.000000e+00> : vector<8x32xf32>
    %188 = tpu.matmul %186, %187, %cst_99 {dimension_numbers = #tpu.dot_dimension_numbers<[1], [0], [0], [1], [0, 0, 1, 1], [], []>} : vector<8x8xbf16>, vector<8x32xbf16>, vector<8x32xf32> -> vector<8x32xf32>
    %c0_100 = arith.constant 0 : index
    %c32 = arith.constant 32 : index
    %189 = vector.load %arg30[%c0_100, %c32] : memref<8x128xf32, #tpu.memory_space<vmem>>, vector<8x32xf32>
    tpu.vector_store %arg30[%c0_100, %c32], %188 {strides = array<i32>} : memref<8x128xf32, #tpu.memory_space<vmem>>, vector<8x32xf32>,
    %c2 = arith.constant 2 : index
    %c0_101 = arith.constant 0 : index
    %c0_102 = arith.constant 0 : index
    %190 = vector.load %arg15[%c2, %c0_101, %c0_102] : memref<4x128x32xbf16, #tpu.memory_space<vmem>>, vector<1x128x32xbf16>
    %191 = vector.shape_cast %190 : vector<1x128x32xbf16> to vector<128x32xbf16>
    %cst_103 = arith.constant dense<0.000000e+00> : vector<8x32xf32>
    %192 = tpu.matmul %104, %191, %cst_103 {dimension_numbers = #tpu.dot_dimension_numbers<[1], [0], [0], [1], [0, 0, 1, 1], [], []>} : vector<8x128xbf16>, vector<128x32xbf16>, vector<8x32xf32> -> vector<8x32xf32>
    %c2_104 = arith.constant 2 : index
    %c0_105 = arith.constant 0 : index
    %c0_106 = arith.constant 0 : index
    %193 = vector.load %arg16[%c2_104, %c0_105, %c0_106] : memref<4x1x32xf32, #tpu.memory_space<vmem>>, vector<1x1x32xf32>
    %194 = vector.shape_cast %193 : vector<1x1x32xf32> to vector<1x32xf32>
    %195 = vector.broadcast %194 : vector<1x32xf32> to vector<8x32xf32>
    %196 = arith.addf %192, %195 : vector<8x32xf32>
    %c2_107 = arith.constant 2 : index
    %c0_108 = arith.constant 0 : index
    %c0_109 = arith.constant 0 : index
    %197 = vector.load %arg17[%c2_107, %c0_108, %c0_109] : memref<4x128x32xbf16, #tpu.memory_space<vmem>>, vector<1x128x32xbf16>
    %198 = vector.shape_cast %197 : vector<1x128x32xbf16> to vector<128x32xbf16>
    %cst_110 = arith.constant dense<0.000000e+00> : vector<8x32xf32>
    %199 = tpu.matmul %105, %198, %cst_110 {dimension_numbers = #tpu.dot_dimension_numbers<[1], [0], [0], [1], [0, 0, 1, 1], [], []>} : vector<8x128xbf16>, vector<128x32xbf16>, vector<8x32xf32> -> vector<8x32xf32>
    %c2_111 = arith.constant 2 : index
    %c0_112 = arith.constant 0 : index
    %c0_113 = arith.constant 0 : index
    %200 = vector.load %arg18[%c2_111, %c0_112, %c0_113] : memref<4x1x32xf32, #tpu.memory_space<vmem>>, vector<1x1x32xf32>
    %201 = vector.shape_cast %200 : vector<1x1x32xf32> to vector<1x32xf32>
    %202 = vector.broadcast %201 : vector<1x32xf32> to vector<8x32xf32>
    %203 = arith.addf %199, %202 : vector<8x32xf32>
    %c2_114 = arith.constant 2 : index
    %c0_115 = arith.constant 0 : index
    %c0_116 = arith.constant 0 : index
    %204 = vector.load %arg19[%c2_114, %c0_115, %c0_116] : memref<4x128x32xbf16, #tpu.memory_space<vmem>>, vector<1x128x32xbf16>
    %205 = vector.shape_cast %204 : vector<1x128x32xbf16> to vector<128x32xbf16>
    %cst_117 = arith.constant dense<0.000000e+00> : vector<8x32xf32>
    %206 = tpu.matmul %105, %205, %cst_117 {dimension_numbers = #tpu.dot_dimension_numbers<[1], [0], [0], [1], [0, 0, 1, 1], [], []>} : vector<8x128xbf16>, vector<128x32xbf16>, vector<8x32xf32> -> vector<8x32xf32>
    %c2_118 = arith.constant 2 : index
    %c0_119 = arith.constant 0 : index
    %c0_120 = arith.constant 0 : index
    %207 = vector.load %arg20[%c2_118, %c0_119, %c0_120] : memref<4x1x32xf32, #tpu.memory_space<vmem>>, vector<1x1x32xf32>
    %208 = vector.shape_cast %207 : vector<1x1x32xf32> to vector<1x32xf32>
    %209 = vector.broadcast %208 : vector<1x32xf32> to vector<8x32xf32>
    %210 = arith.addf %206, %209 : vector<8x32xf32>
    %211 = arith.truncf %196 : vector<8x32xf32> to vector<8x32xbf16>
    %212 = arith.truncf %203 : vector<8x32xf32> to vector<8x32xbf16>
    %cst_121 = arith.constant dense<0.000000e+00> : vector<8x8xf32>
    %213 = tpu.matmul %211, %212, %cst_121 {dimension_numbers = #tpu.dot_dimension_numbers<[1], [1], [0], [0], [0, 0, 1, 0], [], []>} : vector<8x32xbf16>, vector<8x32xbf16>, vector<8x8xf32> -> vector<8x8xf32>
    %214 = vector.broadcast %109 : vector<1x8xf32> to vector<8x8xf32>
    %215 = arith.addf %213, %214 : vector<8x8xf32>
    %cst_122 = arith.constant dense<0xFF800000> : vector<8xf32>
    %216 = vector.multi_reduction <maximumf>, %215, %cst_122 [1] : vector<8x8xf32> to vector<8xf32>
    %217 = vector.shape_cast %216 : vector<8xf32> to vector<8x1xf32>
    %218 = vector.broadcast %217 : vector<8x1xf32> to vector<8x8xf32>
    %219 = arith.subf %215, %218 : vector<8x8xf32>
    %220 = math.exp %219 : vector<8x8xf32>
    %cst_123 = arith.constant dense<0.000000e+00> : vector<8xf32>
    %221 = vector.multi_reduction <add>, %220, %cst_123 [1] : vector<8x8xf32> to vector<8xf32>
    %222 = vector.shape_cast %221 : vector<8xf32> to vector<8x1xf32>
    %223 = tpu.reciprocal %222 {approx = true} : vector<8x1xf32> -> vector<8x1xf32>
    %224 = vector.broadcast %223 : vector<8x1xf32> to vector<8x8xf32>
    %225 = arith.mulf %220, %224 : vector<8x8xf32>
    %226 = arith.truncf %225 : vector<8x8xf32> to vector<8x8xbf16>
    %227 = arith.truncf %210 : vector<8x32xf32> to vector<8x32xbf16>
    %cst_124 = arith.constant dense<0.000000e+00> : vector<8x32xf32>
    %228 = tpu.matmul %226, %227, %cst_124 {dimension_numbers = #tpu.dot_dimension_numbers<[1], [0], [0], [1], [0, 0, 1, 1], [], []>} : vector<8x8xbf16>, vector<8x32xbf16>, vector<8x32xf32> -> vector<8x32xf32>
    %c0_125 = arith.constant 0 : index
    %c64 = arith.constant 64 : index
    %229 = vector.load %arg30[%c0_125, %c64] : memref<8x128xf32, #tpu.memory_space<vmem>>, vector<8x32xf32>
    tpu.vector_store %arg30[%c0_125, %c64], %228 {strides = array<i32>} : memref<8x128xf32, #tpu.memory_space<vmem>>, vector<8x32xf32>,
    %c3 = arith.constant 3 : index
    %c0_126 = arith.constant 0 : index
    %c0_127 = arith.constant 0 : index
    %230 = vector.load %arg15[%c3, %c0_126, %c0_127] : memref<4x128x32xbf16, #tpu.memory_space<vmem>>, vector<1x128x32xbf16>
    %231 = vector.shape_cast %230 : vector<1x128x32xbf16> to vector<128x32xbf16>
    %cst_128 = arith.constant dense<0.000000e+00> : vector<8x32xf32>
    %232 = tpu.matmul %104, %231, %cst_128 {dimension_numbers = #tpu.dot_dimension_numbers<[1], [0], [0], [1], [0, 0, 1, 1], [], []>} : vector<8x128xbf16>, vector<128x32xbf16>, vector<8x32xf32> -> vector<8x32xf32>
    %c3_129 = arith.constant 3 : index
    %c0_130 = arith.constant 0 : index
    %c0_131 = arith.constant 0 : index
    %233 = vector.load %arg16[%c3_129, %c0_130, %c0_131] : memref<4x1x32xf32, #tpu.memory_space<vmem>>, vector<1x1x32xf32>
    %234 = vector.shape_cast %233 : vector<1x1x32xf32> to vector<1x32xf32>
    %235 = vector.broadcast %234 : vector<1x32xf32> to vector<8x32xf32>
    %236 = arith.addf %232, %235 : vector<8x32xf32>
    %c3_132 = arith.constant 3 : index
    %c0_133 = arith.constant 0 : index
    %c0_134 = arith.constant 0 : index
    %237 = vector.load %arg17[%c3_132, %c0_133, %c0_134] : memref<4x128x32xbf16, #tpu.memory_space<vmem>>, vector<1x128x32xbf16>
    %238 = vector.shape_cast %237 : vector<1x128x32xbf16> to vector<128x32xbf16>
    %cst_135 = arith.constant dense<0.000000e+00> : vector<8x32xf32>
    %239 = tpu.matmul %105, %238, %cst_135 {dimension_numbers = #tpu.dot_dimension_numbers<[1], [0], [0], [1], [0, 0, 1, 1], [], []>} : vector<8x128xbf16>, vector<128x32xbf16>, vector<8x32xf32> -> vector<8x32xf32>
    %c3_136 = arith.constant 3 : index
    %c0_137 = arith.constant 0 : index
    %c0_138 = arith.constant 0 : index
    %240 = vector.load %arg18[%c3_136, %c0_137, %c0_138] : memref<4x1x32xf32, #tpu.memory_space<vmem>>, vector<1x1x32xf32>
    %241 = vector.shape_cast %240 : vector<1x1x32xf32> to vector<1x32xf32>
    %242 = vector.broadcast %241 : vector<1x32xf32> to vector<8x32xf32>
    %243 = arith.addf %239, %242 : vector<8x32xf32>
    %c3_139 = arith.constant 3 : index
    %c0_140 = arith.constant 0 : index
    %c0_141 = arith.constant 0 : index
    %244 = vector.load %arg19[%c3_139, %c0_140, %c0_141] : memref<4x128x32xbf16, #tpu.memory_space<vmem>>, vector<1x128x32xbf16>
    %245 = vector.shape_cast %244 : vector<1x128x32xbf16> to vector<128x32xbf16>
    %cst_142 = arith.constant dense<0.000000e+00> : vector<8x32xf32>
    %246 = tpu.matmul %105, %245, %cst_142 {dimension_numbers = #tpu.dot_dimension_numbers<[1], [0], [0], [1], [0, 0, 1, 1], [], []>} : vector<8x128xbf16>, vector<128x32xbf16>, vector<8x32xf32> -> vector<8x32xf32>
    %c3_143 = arith.constant 3 : index
    %c0_144 = arith.constant 0 : index
    %c0_145 = arith.constant 0 : index
    %247 = vector.load %arg20[%c3_143, %c0_144, %c0_145] : memref<4x1x32xf32, #tpu.memory_space<vmem>>, vector<1x1x32xf32>
    %248 = vector.shape_cast %247 : vector<1x1x32xf32> to vector<1x32xf32>
    %249 = vector.broadcast %248 : vector<1x32xf32> to vector<8x32xf32>
    %250 = arith.addf %246, %249 : vector<8x32xf32>
    %251 = arith.truncf %236 : vector<8x32xf32> to vector<8x32xbf16>
    %252 = arith.truncf %243 : vector<8x32xf32> to vector<8x32xbf16>
    %cst_146 = arith.constant dense<0.000000e+00> : vector<8x8xf32>
    %253 = tpu.matmul %251, %252, %cst_146 {dimension_numbers = #tpu.dot_dimension_numbers<[1], [1], [0], [0], [0, 0, 1, 0], [], []>} : vector<8x32xbf16>, vector<8x32xbf16>, vector<8x8xf32> -> vector<8x8xf32>
    %254 = vector.broadcast %109 : vector<1x8xf32> to vector<8x8xf32>
    %255 = arith.addf %253, %254 : vector<8x8xf32>
    %cst_147 = arith.constant dense<0xFF800000> : vector<8xf32>
    %256 = vector.multi_reduction <maximumf>, %255, %cst_147 [1] : vector<8x8xf32> to vector<8xf32>
    %257 = vector.shape_cast %256 : vector<8xf32> to vector<8x1xf32>
    %258 = vector.broadcast %257 : vector<8x1xf32> to vector<8x8xf32>
    %259 = arith.subf %255, %258 : vector<8x8xf32>
    %260 = math.exp %259 : vector<8x8xf32>
    %cst_148 = arith.constant dense<0.000000e+00> : vector<8xf32>
    %261 = vector.multi_reduction <add>, %260, %cst_148 [1] : vector<8x8xf32> to vector<8xf32>
    %262 = vector.shape_cast %261 : vector<8xf32> to vector<8x1xf32>
    %263 = tpu.reciprocal %262 {approx = true} : vector<8x1xf32> -> vector<8x1xf32>
    %264 = vector.broadcast %263 : vector<8x1xf32> to vector<8x8xf32>
    %265 = arith.mulf %260, %264 : vector<8x8xf32>
    %266 = arith.truncf %265 : vector<8x8xf32> to vector<8x8xbf16>
    %267 = arith.truncf %250 : vector<8x32xf32> to vector<8x32xbf16>
    %cst_149 = arith.constant dense<0.000000e+00> : vector<8x32xf32>
    %268 = tpu.matmul %266, %267, %cst_149 {dimension_numbers = #tpu.dot_dimension_numbers<[1], [0], [0], [1], [0, 0, 1, 1], [], []>} : vector<8x8xbf16>, vector<8x32xbf16>, vector<8x32xf32> -> vector<8x32xf32>
    %c0_150 = arith.constant 0 : index
    %c96 = arith.constant 96 : index
    %269 = vector.load %arg30[%c0_150, %c96] : memref<8x128xf32, #tpu.memory_space<vmem>>, vector<8x32xf32>
    tpu.vector_store %arg30[%c0_150, %c96], %268 {strides = array<i32>} : memref<8x128xf32, #tpu.memory_space<vmem>>, vector<8x32xf32>,
    %c0_151 = arith.constant 0 : index
    %c0_152 = arith.constant 0 : index
    %270 = vector.load %arg30[%c0_151, %c0_152] : memref<8x128xf32, #tpu.memory_space<vmem>>, vector<8x128xf32>
    %271 = arith.truncf %270 : vector<8x128xf32> to vector<8x128xbf16>
    %272 = vector.extract_strided_slice %0 {offsets = [0, 0, 0], sizes = [1, 8, 128], strides = [1, 1, 1]} : vector<2x8x128xf32> to vector<1x8x128xf32>
    %273 = vector.shape_cast %272 : vector<1x8x128xf32> to vector<8x128xf32>
    %274 = vector.broadcast %103 : vector<1x128xf32> to vector<8x128xf32>
    %275 = arith.addf %273, %274 : vector<8x128xf32>
    %c0_153 = arith.constant 0 : index
    %c0_154 = arith.constant 0 : index
    %c0_155 = arith.constant 0 : index
    %276 = vector.load %arg21[%c0_153, %c0_154, %c0_155] : memref<4x128x32xbf16, #tpu.memory_space<vmem>>, vector<1x128x32xbf16>
    %277 = vector.shape_cast %276 : vector<1x128x32xbf16> to vector<128x32xbf16>
    %cst_156 = arith.constant dense<0.000000e+00> : vector<8x32xf32>
    %278 = tpu.matmul %271, %277, %cst_156 {dimension_numbers = #tpu.dot_dimension_numbers<[1], [0], [0], [1], [0, 0, 1, 1], [], []>} : vector<8x128xbf16>, vector<128x32xbf16>, vector<8x32xf32> -> vector<8x32xf32>
    %c0_157 = arith.constant 0 : index
    %c0_158 = arith.constant 0 : index
    %c0_159 = arith.constant 0 : index
    %279 = vector.load %arg22[%c0_157, %c0_158, %c0_159] : memref<4x1x32xf32, #tpu.memory_space<vmem>>, vector<1x1x32xf32>
    %280 = vector.shape_cast %279 : vector<1x1x32xf32> to vector<1x32xf32>
    %281 = vector.broadcast %280 : vector<1x32xf32> to vector<8x32xf32>
    %282 = arith.addf %278, %281 : vector<8x32xf32>
    %c0_160 = arith.constant 0 : index
    %c0_161 = arith.constant 0 : index
    %c0_162 = arith.constant 0 : index
    %283 = vector.load %arg23[%c0_160, %c0_161, %c0_162] : memref<4x128x32xbf16, #tpu.memory_space<vmem>>, vector<1x128x32xbf16>
    %284 = vector.shape_cast %283 : vector<1x128x32xbf16> to vector<128x32xbf16>
    %cst_163 = arith.constant dense<0.000000e+00> : vector<16x32xf32>
    %285 = tpu.matmul %106, %284, %cst_163 {dimension_numbers = #tpu.dot_dimension_numbers<[1], [0], [0], [1], [0, 0, 1, 1], [], []>} : vector<16x128xbf16>, vector<128x32xbf16>, vector<16x32xf32> -> vector<16x32xf32>
    %c0_164 = arith.constant 0 : index
    %c0_165 = arith.constant 0 : index
    %c0_166 = arith.constant 0 : index
    %286 = vector.load %arg24[%c0_164, %c0_165, %c0_166] : memref<4x1x32xf32, #tpu.memory_space<vmem>>, vector<1x1x32xf32>
    %287 = vector.shape_cast %286 : vector<1x1x32xf32> to vector<1x32xf32>
    %288 = vector.broadcast %287 : vector<1x32xf32> to vector<16x32xf32>
    %289 = arith.addf %285, %288 : vector<16x32xf32>
    %c0_167 = arith.constant 0 : index
    %c0_168 = arith.constant 0 : index
    %c0_169 = arith.constant 0 : index
    %290 = vector.load %arg25[%c0_167, %c0_168, %c0_169] : memref<4x256x64xbf16, #tpu.memory_space<vmem>>, vector<1x256x64xbf16>
    %291 = vector.shape_cast %290 : vector<1x256x64xbf16> to vector<256x64xbf16>
    %cst_170 = arith.constant dense<0.000000e+00> : vector<16x64xf32>
    %292 = tpu.matmul %107, %291, %cst_170 {dimension_numbers = #tpu.dot_dimension_numbers<[1], [0], [0], [1], [0, 0, 1, 1], [], []>} : vector<16x256xbf16>, vector<256x64xbf16>, vector<16x64xf32> -> vector<16x64xf32>
    %c0_171 = arith.constant 0 : index
    %c0_172 = arith.constant 0 : index
    %c0_173 = arith.constant 0 : index
    %293 = vector.load %arg26[%c0_171, %c0_172, %c0_173] : memref<4x1x64xf32, #tpu.memory_space<vmem>>, vector<1x1x64xf32>
    %294 = vector.shape_cast %293 : vector<1x1x64xf32> to vector<1x64xf32>
    %295 = vector.broadcast %294 : vector<1x64xf32> to vector<16x64xf32>
    %296 = arith.addf %292, %295 : vector<16x64xf32>
    %297 = arith.truncf %282 : vector<8x32xf32> to vector<8x32xbf16>
    %298 = arith.truncf %289 : vector<16x32xf32> to vector<16x32xbf16>
    %cst_174 = arith.constant dense<0.000000e+00> : vector<8x16xf32>
    %299 = tpu.matmul %297, %298, %cst_174 {dimension_numbers = #tpu.dot_dimension_numbers<[1], [1], [0], [0], [0, 0, 1, 0], [], []>} : vector<8x32xbf16>, vector<16x32xbf16>, vector<8x16xf32> -> vector<8x16xf32>
    %cst_175 = arith.constant dense<0xFF800000> : vector<8xf32>
    %300 = vector.multi_reduction <maximumf>, %299, %cst_175 [1] : vector<8x16xf32> to vector<8xf32>
    %301 = vector.shape_cast %300 : vector<8xf32> to vector<8x1xf32>
    %302 = vector.broadcast %301 : vector<8x1xf32> to vector<8x16xf32>
    %303 = arith.subf %299, %302 : vector<8x16xf32>
    %304 = math.exp %303 : vector<8x16xf32>
    %cst_176 = arith.constant dense<0.000000e+00> : vector<8xf32>
    %305 = vector.multi_reduction <add>, %304, %cst_176 [1] : vector<8x16xf32> to vector<8xf32>
    %306 = vector.shape_cast %305 : vector<8xf32> to vector<8x1xf32>
    %307 = tpu.reciprocal %306 {approx = true} : vector<8x1xf32> -> vector<8x1xf32>
    %308 = vector.broadcast %307 : vector<8x1xf32> to vector<8x16xf32>
    %309 = arith.mulf %304, %308 : vector<8x16xf32>
    %310 = arith.truncf %309 : vector<8x16xf32> to vector<8x16xbf16>
    %311 = arith.truncf %296 : vector<16x64xf32> to vector<16x64xbf16>
    %cst_177 = arith.constant dense<0.000000e+00> : vector<8x64xf32>
    %312 = tpu.matmul %310, %311, %cst_177 {dimension_numbers = #tpu.dot_dimension_numbers<[1], [0], [0], [1], [0, 0, 1, 1], [], []>} : vector<8x16xbf16>, vector<16x64xbf16>, vector<8x64xf32> -> vector<8x64xf32>
    %313 = arith.truncf %312 : vector<8x64xf32> to vector<8x64xbf16>
    %c0_178 = arith.constant 0 : index
    %c0_179 = arith.constant 0 : index
    %c0_180 = arith.constant 0 : index
    %314 = vector.load %arg27[%c0_178, %c0_179, %c0_180] : memref<4x64x128xbf16, #tpu.memory_space<vmem>>, vector<1x64x128xbf16>
    %315 = vector.shape_cast %314 : vector<1x64x128xbf16> to vector<64x128xbf16>
    %cst_181 = arith.constant dense<0.000000e+00> : vector<8x128xf32>
    %316 = tpu.matmul %313, %315, %cst_181 {dimension_numbers = #tpu.dot_dimension_numbers<[1], [0], [0], [1], [0, 0, 1, 1], [], []>} : vector<8x64xbf16>, vector<64x128xbf16>, vector<8x128xf32> -> vector<8x128xf32>
    %317 = arith.addf %275, %316 : vector<8x128xf32>
    %c1_182 = arith.constant 1 : index
    %c0_183 = arith.constant 0 : index
    %c0_184 = arith.constant 0 : index
    %318 = vector.load %arg21[%c1_182, %c0_183, %c0_184] : memref<4x128x32xbf16, #tpu.memory_space<vmem>>, vector<1x128x32xbf16>
    %319 = vector.shape_cast %318 : vector<1x128x32xbf16> to vector<128x32xbf16>
    %cst_185 = arith.constant dense<0.000000e+00> : vector<8x32xf32>
    %320 = tpu.matmul %271, %319, %cst_185 {dimension_numbers = #tpu.dot_dimension_numbers<[1], [0], [0], [1], [0, 0, 1, 1], [], []>} : vector<8x128xbf16>, vector<128x32xbf16>, vector<8x32xf32> -> vector<8x32xf32>
    %c1_186 = arith.constant 1 : index
    %c0_187 = arith.constant 0 : index
    %c0_188 = arith.constant 0 : index
    %321 = vector.load %arg22[%c1_186, %c0_187, %c0_188] : memref<4x1x32xf32, #tpu.memory_space<vmem>>, vector<1x1x32xf32>
    %322 = vector.shape_cast %321 : vector<1x1x32xf32> to vector<1x32xf32>
    %323 = vector.broadcast %322 : vector<1x32xf32> to vector<8x32xf32>
    %324 = arith.addf %320, %323 : vector<8x32xf32>
    %c1_189 = arith.constant 1 : index
    %c0_190 = arith.constant 0 : index
    %c0_191 = arith.constant 0 : index
    %325 = vector.load %arg23[%c1_189, %c0_190, %c0_191] : memref<4x128x32xbf16, #tpu.memory_space<vmem>>, vector<1x128x32xbf16>
    %326 = vector.shape_cast %325 : vector<1x128x32xbf16> to vector<128x32xbf16>
    %cst_192 = arith.constant dense<0.000000e+00> : vector<16x32xf32>
    %327 = tpu.matmul %106, %326, %cst_192 {dimension_numbers = #tpu.dot_dimension_numbers<[1], [0], [0], [1], [0, 0, 1, 1], [], []>} : vector<16x128xbf16>, vector<128x32xbf16>, vector<16x32xf32> -> vector<16x32xf32>
    %c1_193 = arith.constant 1 : index
    %c0_194 = arith.constant 0 : index
    %c0_195 = arith.constant 0 : index
    %328 = vector.load %arg24[%c1_193, %c0_194, %c0_195] : memref<4x1x32xf32, #tpu.memory_space<vmem>>, vector<1x1x32xf32>
    %329 = vector.shape_cast %328 : vector<1x1x32xf32> to vector<1x32xf32>
    %330 = vector.broadcast %329 : vector<1x32xf32> to vector<16x32xf32>
    %331 = arith.addf %327, %330 : vector<16x32xf32>
    %c1_196 = arith.constant 1 : index
    %c0_197 = arith.constant 0 : index
    %c0_198 = arith.constant 0 : index
    %332 = vector.load %arg25[%c1_196, %c0_197, %c0_198] : memref<4x256x64xbf16, #tpu.memory_space<vmem>>, vector<1x256x64xbf16>
    %333 = vector.shape_cast %332 : vector<1x256x64xbf16> to vector<256x64xbf16>
    %cst_199 = arith.constant dense<0.000000e+00> : vector<16x64xf32>
    %334 = tpu.matmul %107, %333, %cst_199 {dimension_numbers = #tpu.dot_dimension_numbers<[1], [0], [0], [1], [0, 0, 1, 1], [], []>} : vector<16x256xbf16>, vector<256x64xbf16>, vector<16x64xf32> -> vector<16x64xf32>
    %c1_200 = arith.constant 1 : index
    %c0_201 = arith.constant 0 : index
    %c0_202 = arith.constant 0 : index
    %335 = vector.load %arg26[%c1_200, %c0_201, %c0_202] : memref<4x1x64xf32, #tpu.memory_space<vmem>>, vector<1x1x64xf32>
    %336 = vector.shape_cast %335 : vector<1x1x64xf32> to vector<1x64xf32>
    %337 = vector.broadcast %336 : vector<1x64xf32> to vector<16x64xf32>
    %338 = arith.addf %334, %337 : vector<16x64xf32>
    %339 = arith.truncf %324 : vector<8x32xf32> to vector<8x32xbf16>
    %340 = arith.truncf %331 : vector<16x32xf32> to vector<16x32xbf16>
    %cst_203 = arith.constant dense<0.000000e+00> : vector<8x16xf32>
    %341 = tpu.matmul %339, %340, %cst_203 {dimension_numbers = #tpu.dot_dimension_numbers<[1], [1], [0], [0], [0, 0, 1, 0], [], []>} : vector<8x32xbf16>, vector<16x32xbf16>, vector<8x16xf32> -> vector<8x16xf32>
    %cst_204 = arith.constant dense<0xFF800000> : vector<8xf32>
    %342 = vector.multi_reduction <maximumf>, %341, %cst_204 [1] : vector<8x16xf32> to vector<8xf32>
    %343 = vector.shape_cast %342 : vector<8xf32> to vector<8x1xf32>
    %344 = vector.broadcast %343 : vector<8x1xf32> to vector<8x16xf32>
    %345 = arith.subf %341, %344 : vector<8x16xf32>
    %346 = math.exp %345 : vector<8x16xf32>
    %cst_205 = arith.constant dense<0.000000e+00> : vector<8xf32>
    %347 = vector.multi_reduction <add>, %346, %cst_205 [1] : vector<8x16xf32> to vector<8xf32>
    %348 = vector.shape_cast %347 : vector<8xf32> to vector<8x1xf32>
    %349 = tpu.reciprocal %348 {approx = true} : vector<8x1xf32> -> vector<8x1xf32>
    %350 = vector.broadcast %349 : vector<8x1xf32> to vector<8x16xf32>
    %351 = arith.mulf %346, %350 : vector<8x16xf32>
    %352 = arith.truncf %351 : vector<8x16xf32> to vector<8x16xbf16>
    %353 = arith.truncf %338 : vector<16x64xf32> to vector<16x64xbf16>
    %cst_206 = arith.constant dense<0.000000e+00> : vector<8x64xf32>
    %354 = tpu.matmul %352, %353, %cst_206 {dimension_numbers = #tpu.dot_dimension_numbers<[1], [0], [0], [1], [0, 0, 1, 1], [], []>} : vector<8x16xbf16>, vector<16x64xbf16>, vector<8x64xf32> -> vector<8x64xf32>
    %355 = arith.truncf %354 : vector<8x64xf32> to vector<8x64xbf16>
    %c1_207 = arith.constant 1 : index
    %c0_208 = arith.constant 0 : index
    %c0_209 = arith.constant 0 : index
    %356 = vector.load %arg27[%c1_207, %c0_208, %c0_209] : memref<4x64x128xbf16, #tpu.memory_space<vmem>>, vector<1x64x128xbf16>
    %357 = vector.shape_cast %356 : vector<1x64x128xbf16> to vector<64x128xbf16>
    %cst_210 = arith.constant dense<0.000000e+00> : vector<8x128xf32>
    %358 = tpu.matmul %355, %357, %cst_210 {dimension_numbers = #tpu.dot_dimension_numbers<[1], [0], [0], [1], [0, 0, 1, 1], [], []>} : vector<8x64xbf16>, vector<64x128xbf16>, vector<8x128xf32> -> vector<8x128xf32>
    %359 = arith.addf %317, %358 : vector<8x128xf32>
    %c2_211 = arith.constant 2 : index
    %c0_212 = arith.constant 0 : index
    %c0_213 = arith.constant 0 : index
    %360 = vector.load %arg21[%c2_211, %c0_212, %c0_213] : memref<4x128x32xbf16, #tpu.memory_space<vmem>>, vector<1x128x32xbf16>
    %361 = vector.shape_cast %360 : vector<1x128x32xbf16> to vector<128x32xbf16>
    %cst_214 = arith.constant dense<0.000000e+00> : vector<8x32xf32>
    %362 = tpu.matmul %271, %361, %cst_214 {dimension_numbers = #tpu.dot_dimension_numbers<[1], [0], [0], [1], [0, 0, 1, 1], [], []>} : vector<8x128xbf16>, vector<128x32xbf16>, vector<8x32xf32> -> vector<8x32xf32>
    %c2_215 = arith.constant 2 : index
    %c0_216 = arith.constant 0 : index
    %c0_217 = arith.constant 0 : index
    %363 = vector.load %arg22[%c2_215, %c0_216, %c0_217] : memref<4x1x32xf32, #tpu.memory_space<vmem>>, vector<1x1x32xf32>
    %364 = vector.shape_cast %363 : vector<1x1x32xf32> to vector<1x32xf32>
    %365 = vector.broadcast %364 : vector<1x32xf32> to vector<8x32xf32>
    %366 = arith.addf %362, %365 : vector<8x32xf32>
    %c2_218 = arith.constant 2 : index
    %c0_219 = arith.constant 0 : index
    %c0_220 = arith.constant 0 : index
    %367 = vector.load %arg23[%c2_218, %c0_219, %c0_220] : memref<4x128x32xbf16, #tpu.memory_space<vmem>>, vector<1x128x32xbf16>
    %368 = vector.shape_cast %367 : vector<1x128x32xbf16> to vector<128x32xbf16>
    %cst_221 = arith.constant dense<0.000000e+00> : vector<16x32xf32>
    %369 = tpu.matmul %106, %368, %cst_221 {dimension_numbers = #tpu.dot_dimension_numbers<[1], [0], [0], [1], [0, 0, 1, 1], [], []>} : vector<16x128xbf16>, vector<128x32xbf16>, vector<16x32xf32> -> vector<16x32xf32>
    %c2_222 = arith.constant 2 : index
    %c0_223 = arith.constant 0 : index
    %c0_224 = arith.constant 0 : index
    %370 = vector.load %arg24[%c2_222, %c0_223, %c0_224] : memref<4x1x32xf32, #tpu.memory_space<vmem>>, vector<1x1x32xf32>
    %371 = vector.shape_cast %370 : vector<1x1x32xf32> to vector<1x32xf32>
    %372 = vector.broadcast %371 : vector<1x32xf32> to vector<16x32xf32>
    %373 = arith.addf %369, %372 : vector<16x32xf32>
    %c2_225 = arith.constant 2 : index
    %c0_226 = arith.constant 0 : index
    %c0_227 = arith.constant 0 : index
    %374 = vector.load %arg25[%c2_225, %c0_226, %c0_227] : memref<4x256x64xbf16, #tpu.memory_space<vmem>>, vector<1x256x64xbf16>
    %375 = vector.shape_cast %374 : vector<1x256x64xbf16> to vector<256x64xbf16>
    %cst_228 = arith.constant dense<0.000000e+00> : vector<16x64xf32>
    %376 = tpu.matmul %107, %375, %cst_228 {dimension_numbers = #tpu.dot_dimension_numbers<[1], [0], [0], [1], [0, 0, 1, 1], [], []>} : vector<16x256xbf16>, vector<256x64xbf16>, vector<16x64xf32> -> vector<16x64xf32>
    %c2_229 = arith.constant 2 : index
    %c0_230 = arith.constant 0 : index
    %c0_231 = arith.constant 0 : index
    %377 = vector.load %arg26[%c2_229, %c0_230, %c0_231] : memref<4x1x64xf32, #tpu.memory_space<vmem>>, vector<1x1x64xf32>
    %378 = vector.shape_cast %377 : vector<1x1x64xf32> to vector<1x64xf32>
    %379 = vector.broadcast %378 : vector<1x64xf32> to vector<16x64xf32>
    %380 = arith.addf %376, %379 : vector<16x64xf32>
    %381 = arith.truncf %366 : vector<8x32xf32> to vector<8x32xbf16>
    %382 = arith.truncf %373 : vector<16x32xf32> to vector<16x32xbf16>
    %cst_232 = arith.constant dense<0.000000e+00> : vector<8x16xf32>
    %383 = tpu.matmul %381, %382, %cst_232 {dimension_numbers = #tpu.dot_dimension_numbers<[1], [1], [0], [0], [0, 0, 1, 0], [], []>} : vector<8x32xbf16>, vector<16x32xbf16>, vector<8x16xf32> -> vector<8x16xf32>
    %cst_233 = arith.constant dense<0xFF800000> : vector<8xf32>
    %384 = vector.multi_reduction <maximumf>, %383, %cst_233 [1] : vector<8x16xf32> to vector<8xf32>
    %385 = vector.shape_cast %384 : vector<8xf32> to vector<8x1xf32>
    %386 = vector.broadcast %385 : vector<8x1xf32> to vector<8x16xf32>
    %387 = arith.subf %383, %386 : vector<8x16xf32>
    %388 = math.exp %387 : vector<8x16xf32>
    %cst_234 = arith.constant dense<0.000000e+00> : vector<8xf32>
    %389 = vector.multi_reduction <add>, %388, %cst_234 [1] : vector<8x16xf32> to vector<8xf32>
    %390 = vector.shape_cast %389 : vector<8xf32> to vector<8x1xf32>
    %391 = tpu.reciprocal %390 {approx = true} : vector<8x1xf32> -> vector<8x1xf32>
    %392 = vector.broadcast %391 : vector<8x1xf32> to vector<8x16xf32>
    %393 = arith.mulf %388, %392 : vector<8x16xf32>
    %394 = arith.truncf %393 : vector<8x16xf32> to vector<8x16xbf16>
    %395 = arith.truncf %380 : vector<16x64xf32> to vector<16x64xbf16>
    %cst_235 = arith.constant dense<0.000000e+00> : vector<8x64xf32>
    %396 = tpu.matmul %394, %395, %cst_235 {dimension_numbers = #tpu.dot_dimension_numbers<[1], [0], [0], [1], [0, 0, 1, 1], [], []>} : vector<8x16xbf16>, vector<16x64xbf16>, vector<8x64xf32> -> vector<8x64xf32>
    %397 = arith.truncf %396 : vector<8x64xf32> to vector<8x64xbf16>
    %c2_236 = arith.constant 2 : index
    %c0_237 = arith.constant 0 : index
    %c0_238 = arith.constant 0 : index
    %398 = vector.load %arg27[%c2_236, %c0_237, %c0_238] : memref<4x64x128xbf16, #tpu.memory_space<vmem>>, vector<1x64x128xbf16>
    %399 = vector.shape_cast %398 : vector<1x64x128xbf16> to vector<64x128xbf16>
    %cst_239 = arith.constant dense<0.000000e+00> : vector<8x128xf32>
    %400 = tpu.matmul %397, %399, %cst_239 {dimension_numbers = #tpu.dot_dimension_numbers<[1], [0], [0], [1], [0, 0, 1, 1], [], []>} : vector<8x64xbf16>, vector<64x128xbf16>, vector<8x128xf32> -> vector<8x128xf32>
    %401 = arith.addf %359, %400 : vector<8x128xf32>
    %c3_240 = arith.constant 3 : index
    %c0_241 = arith.constant 0 : index
    %c0_242 = arith.constant 0 : index
    %402 = vector.load %arg21[%c3_240, %c0_241, %c0_242] : memref<4x128x32xbf16, #tpu.memory_space<vmem>>, vector<1x128x32xbf16>
    %403 = vector.shape_cast %402 : vector<1x128x32xbf16> to vector<128x32xbf16>
    %cst_243 = arith.constant dense<0.000000e+00> : vector<8x32xf32>
    %404 = tpu.matmul %271, %403, %cst_243 {dimension_numbers = #tpu.dot_dimension_numbers<[1], [0], [0], [1], [0, 0, 1, 1], [], []>} : vector<8x128xbf16>, vector<128x32xbf16>, vector<8x32xf32> -> vector<8x32xf32>
    %c3_244 = arith.constant 3 : index
    %c0_245 = arith.constant 0 : index
    %c0_246 = arith.constant 0 : index
    %405 = vector.load %arg22[%c3_244, %c0_245, %c0_246] : memref<4x1x32xf32, #tpu.memory_space<vmem>>, vector<1x1x32xf32>
    %406 = vector.shape_cast %405 : vector<1x1x32xf32> to vector<1x32xf32>
    %407 = vector.broadcast %406 : vector<1x32xf32> to vector<8x32xf32>
    %408 = arith.addf %404, %407 : vector<8x32xf32>
    %c3_247 = arith.constant 3 : index
    %c0_248 = arith.constant 0 : index
    %c0_249 = arith.constant 0 : index
    %409 = vector.load %arg23[%c3_247, %c0_248, %c0_249] : memref<4x128x32xbf16, #tpu.memory_space<vmem>>, vector<1x128x32xbf16>
    %410 = vector.shape_cast %409 : vector<1x128x32xbf16> to vector<128x32xbf16>
    %cst_250 = arith.constant dense<0.000000e+00> : vector<16x32xf32>
    %411 = tpu.matmul %106, %410, %cst_250 {dimension_numbers = #tpu.dot_dimension_numbers<[1], [0], [0], [1], [0, 0, 1, 1], [], []>} : vector<16x128xbf16>, vector<128x32xbf16>, vector<16x32xf32> -> vector<16x32xf32>
    %c3_251 = arith.constant 3 : index
    %c0_252 = arith.constant 0 : index
    %c0_253 = arith.constant 0 : index
    %412 = vector.load %arg24[%c3_251, %c0_252, %c0_253] : memref<4x1x32xf32, #tpu.memory_space<vmem>>, vector<1x1x32xf32>
    %413 = vector.shape_cast %412 : vector<1x1x32xf32> to vector<1x32xf32>
    %414 = vector.broadcast %413 : vector<1x32xf32> to vector<16x32xf32>
    %415 = arith.addf %411, %414 : vector<16x32xf32>
    %c3_254 = arith.constant 3 : index
    %c0_255 = arith.constant 0 : index
    %c0_256 = arith.constant 0 : index
    %416 = vector.load %arg25[%c3_254, %c0_255, %c0_256] : memref<4x256x64xbf16, #tpu.memory_space<vmem>>, vector<1x256x64xbf16>
    %417 = vector.shape_cast %416 : vector<1x256x64xbf16> to vector<256x64xbf16>
    %cst_257 = arith.constant dense<0.000000e+00> : vector<16x64xf32>
    %418 = tpu.matmul %107, %417, %cst_257 {dimension_numbers = #tpu.dot_dimension_numbers<[1], [0], [0], [1], [0, 0, 1, 1], [], []>} : vector<16x256xbf16>, vector<256x64xbf16>, vector<16x64xf32> -> vector<16x64xf32>
    %c3_258 = arith.constant 3 : index
    %c0_259 = arith.constant 0 : index
    %c0_260 = arith.constant 0 : index
    %419 = vector.load %arg26[%c3_258, %c0_259, %c0_260] : memref<4x1x64xf32, #tpu.memory_space<vmem>>, vector<1x1x64xf32>
    %420 = vector.shape_cast %419 : vector<1x1x64xf32> to vector<1x64xf32>
    %421 = vector.broadcast %420 : vector<1x64xf32> to vector<16x64xf32>
    %422 = arith.addf %418, %421 : vector<16x64xf32>
    %423 = arith.truncf %408 : vector<8x32xf32> to vector<8x32xbf16>
    %424 = arith.truncf %415 : vector<16x32xf32> to vector<16x32xbf16>
    %cst_261 = arith.constant dense<0.000000e+00> : vector<8x16xf32>
    %425 = tpu.matmul %423, %424, %cst_261 {dimension_numbers = #tpu.dot_dimension_numbers<[1], [1], [0], [0], [0, 0, 1, 0], [], []>} : vector<8x32xbf16>, vector<16x32xbf16>, vector<8x16xf32> -> vector<8x16xf32>
    %cst_262 = arith.constant dense<0xFF800000> : vector<8xf32>
    %426 = vector.multi_reduction <maximumf>, %425, %cst_262 [1] : vector<8x16xf32> to vector<8xf32>
    %427 = vector.shape_cast %426 : vector<8xf32> to vector<8x1xf32>
    %428 = vector.broadcast %427 : vector<8x1xf32> to vector<8x16xf32>
    %429 = arith.subf %425, %428 : vector<8x16xf32>
    %430 = math.exp %429 : vector<8x16xf32>
    %cst_263 = arith.constant dense<0.000000e+00> : vector<8xf32>
    %431 = vector.multi_reduction <add>, %430, %cst_263 [1] : vector<8x16xf32> to vector<8xf32>
    %432 = vector.shape_cast %431 : vector<8xf32> to vector<8x1xf32>
    %433 = tpu.reciprocal %432 {approx = true} : vector<8x1xf32> -> vector<8x1xf32>
    %434 = vector.broadcast %433 : vector<8x1xf32> to vector<8x16xf32>
    %435 = arith.mulf %430, %434 : vector<8x16xf32>
    %436 = arith.truncf %435 : vector<8x16xf32> to vector<8x16xbf16>
    %437 = arith.truncf %422 : vector<16x64xf32> to vector<16x64xbf16>
    %cst_264 = arith.constant dense<0.000000e+00> : vector<8x64xf32>
    %438 = tpu.matmul %436, %437, %cst_264 {dimension_numbers = #tpu.dot_dimension_numbers<[1], [0], [0], [1], [0, 0, 1, 1], [], []>} : vector<8x16xbf16>, vector<16x64xbf16>, vector<8x64xf32> -> vector<8x64xf32>
    %439 = arith.truncf %438 : vector<8x64xf32> to vector<8x64xbf16>
    %c3_265 = arith.constant 3 : index
    %c0_266 = arith.constant 0 : index
    %c0_267 = arith.constant 0 : index
    %440 = vector.load %arg27[%c3_265, %c0_266, %c0_267] : memref<4x64x128xbf16, #tpu.memory_space<vmem>>, vector<1x64x128xbf16>
    %441 = vector.shape_cast %440 : vector<1x64x128xbf16> to vector<64x128xbf16>
    %cst_268 = arith.constant dense<0.000000e+00> : vector<8x128xf32>
    %442 = tpu.matmul %439, %441, %cst_268 {dimension_numbers = #tpu.dot_dimension_numbers<[1], [0], [0], [1], [0, 0, 1, 1], [], []>} : vector<8x64xbf16>, vector<64x128xbf16>, vector<8x128xf32> -> vector<8x128xf32>
    %443 = arith.addf %401, %442 : vector<8x128xf32>
    %c0_269 = arith.constant 0 : index
    %c0_270 = arith.constant 0 : index
    %c0_271 = arith.constant 0 : index
    %444 = vector.load %arg29[%c0_269, %c0_270, %c0_271] : memref<2x8x128xf32, #tpu.memory_space<vmem>>, vector<1x8x128xf32>
    %445 = vector.shape_cast %444 : vector<1x8x128xf32> to vector<8x128xf32>
    %446 = vector.shape_cast %443 : vector<8x128xf32> to vector<1x8x128xf32>
    tpu.vector_store %arg29[%c0_269, %c0_270, %c0_271], %446 {strides = array<i32>} : memref<2x8x128xf32, #tpu.memory_space<vmem>>, vector<1x8x128xf32>,
    %447 = vector.extract_strided_slice %46 {offsets = [8, 0], sizes = [8, 128], strides = [1, 1]} : vector<16x128xbf16> to vector<8x128xbf16>
    %448 = vector.extract_strided_slice %74 {offsets = [8, 0], sizes = [8, 128], strides = [1, 1]} : vector<16x128xbf16> to vector<8x128xbf16>
    %449 = vector.extract_strided_slice %101 {offsets = [16, 0], sizes = [16, 128], strides = [1, 1]} : vector<32x128xbf16> to vector<16x128xbf16>
    %450 = vector.extract_strided_slice %102 {offsets = [16, 0], sizes = [16, 256], strides = [1, 1]} : vector<32x256xbf16> to vector<16x256xbf16>
    %c1_272 = arith.constant 1 : index
    %c0_273 = arith.constant 0 : index
    %c0_274 = arith.constant 0 : index
    %451 = vector.load %arg4[%c1_272, %c0_273, %c0_274] : memref<2x1x8xf32, #tpu.memory_space<vmem>>, vector<1x1x8xf32>
    %452 = vector.shape_cast %451 : vector<1x1x8xf32> to vector<1x8xf32>
    %c0_275 = arith.constant 0 : index
    %c0_276 = arith.constant 0 : index
    %c0_277 = arith.constant 0 : index
    %453 = vector.load %arg15[%c0_275, %c0_276, %c0_277] : memref<4x128x32xbf16, #tpu.memory_space<vmem>>, vector<1x128x32xbf16>
    %454 = vector.shape_cast %453 : vector<1x128x32xbf16> to vector<128x32xbf16>
    %cst_278 = arith.constant dense<0.000000e+00> : vector<8x32xf32>
    %455 = tpu.matmul %447, %454, %cst_278 {dimension_numbers = #tpu.dot_dimension_numbers<[1], [0], [0], [1], [0, 0, 1, 1], [], []>} : vector<8x128xbf16>, vector<128x32xbf16>, vector<8x32xf32> -> vector<8x32xf32>
    %c0_279 = arith.constant 0 : index
    %c0_280 = arith.constant 0 : index
    %c0_281 = arith.constant 0 : index
    %456 = vector.load %arg16[%c0_279, %c0_280, %c0_281] : memref<4x1x32xf32, #tpu.memory_space<vmem>>, vector<1x1x32xf32>
    %457 = vector.shape_cast %456 : vector<1x1x32xf32> to vector<1x32xf32>
    %458 = vector.broadcast %457 : vector<1x32xf32> to vector<8x32xf32>
    %459 = arith.addf %455, %458 : vector<8x32xf32>
    %c0_282 = arith.constant 0 : index
    %c0_283 = arith.constant 0 : index
    %c0_284 = arith.constant 0 : index
    %460 = vector.load %arg17[%c0_282, %c0_283, %c0_284] : memref<4x128x32xbf16, #tpu.memory_space<vmem>>, vector<1x128x32xbf16>
    %461 = vector.shape_cast %460 : vector<1x128x32xbf16> to vector<128x32xbf16>
    %cst_285 = arith.constant dense<0.000000e+00> : vector<8x32xf32>
    %462 = tpu.matmul %448, %461, %cst_285 {dimension_numbers = #tpu.dot_dimension_numbers<[1], [0], [0], [1], [0, 0, 1, 1], [], []>} : vector<8x128xbf16>, vector<128x32xbf16>, vector<8x32xf32> -> vector<8x32xf32>
    %c0_286 = arith.constant 0 : index
    %c0_287 = arith.constant 0 : index
    %c0_288 = arith.constant 0 : index
    %463 = vector.load %arg18[%c0_286, %c0_287, %c0_288] : memref<4x1x32xf32, #tpu.memory_space<vmem>>, vector<1x1x32xf32>
    %464 = vector.shape_cast %463 : vector<1x1x32xf32> to vector<1x32xf32>
    %465 = vector.broadcast %464 : vector<1x32xf32> to vector<8x32xf32>
    %466 = arith.addf %462, %465 : vector<8x32xf32>
    %c0_289 = arith.constant 0 : index
    %c0_290 = arith.constant 0 : index
    %c0_291 = arith.constant 0 : index
    %467 = vector.load %arg19[%c0_289, %c0_290, %c0_291] : memref<4x128x32xbf16, #tpu.memory_space<vmem>>, vector<1x128x32xbf16>
    %468 = vector.shape_cast %467 : vector<1x128x32xbf16> to vector<128x32xbf16>
    %cst_292 = arith.constant dense<0.000000e+00> : vector<8x32xf32>
    %469 = tpu.matmul %448, %468, %cst_292 {dimension_numbers = #tpu.dot_dimension_numbers<[1], [0], [0], [1], [0, 0, 1, 1], [], []>} : vector<8x128xbf16>, vector<128x32xbf16>, vector<8x32xf32> -> vector<8x32xf32>
    %c0_293 = arith.constant 0 : index
    %c0_294 = arith.constant 0 : index
    %c0_295 = arith.constant 0 : index
    %470 = vector.load %arg20[%c0_293, %c0_294, %c0_295] : memref<4x1x32xf32, #tpu.memory_space<vmem>>, vector<1x1x32xf32>
    %471 = vector.shape_cast %470 : vector<1x1x32xf32> to vector<1x32xf32>
    %472 = vector.broadcast %471 : vector<1x32xf32> to vector<8x32xf32>
    %473 = arith.addf %469, %472 : vector<8x32xf32>
    %474 = arith.truncf %459 : vector<8x32xf32> to vector<8x32xbf16>
    %475 = arith.truncf %466 : vector<8x32xf32> to vector<8x32xbf16>
    %cst_296 = arith.constant dense<0.000000e+00> : vector<8x8xf32>
    %476 = tpu.matmul %474, %475, %cst_296 {dimension_numbers = #tpu.dot_dimension_numbers<[1], [1], [0], [0], [0, 0, 1, 0], [], []>} : vector<8x32xbf16>, vector<8x32xbf16>, vector<8x8xf32> -> vector<8x8xf32>
    %477 = vector.broadcast %452 : vector<1x8xf32> to vector<8x8xf32>
    %478 = arith.addf %476, %477 : vector<8x8xf32>
    %cst_297 = arith.constant dense<0xFF800000> : vector<8xf32>
    %479 = vector.multi_reduction <maximumf>, %478, %cst_297 [1] : vector<8x8xf32> to vector<8xf32>
    %480 = vector.shape_cast %479 : vector<8xf32> to vector<8x1xf32>
    %481 = vector.broadcast %480 : vector<8x1xf32> to vector<8x8xf32>
    %482 = arith.subf %478, %481 : vector<8x8xf32>
    %483 = math.exp %482 : vector<8x8xf32>
    %cst_298 = arith.constant dense<0.000000e+00> : vector<8xf32>
    %484 = vector.multi_reduction <add>, %483, %cst_298 [1] : vector<8x8xf32> to vector<8xf32>
    %485 = vector.shape_cast %484 : vector<8xf32> to vector<8x1xf32>
    %486 = tpu.reciprocal %485 {approx = true} : vector<8x1xf32> -> vector<8x1xf32>
    %487 = vector.broadcast %486 : vector<8x1xf32> to vector<8x8xf32>
    %488 = arith.mulf %483, %487 : vector<8x8xf32>
    %489 = arith.truncf %488 : vector<8x8xf32> to vector<8x8xbf16>
    %490 = arith.truncf %473 : vector<8x32xf32> to vector<8x32xbf16>
    %cst_299 = arith.constant dense<0.000000e+00> : vector<8x32xf32>
    %491 = tpu.matmul %489, %490, %cst_299 {dimension_numbers = #tpu.dot_dimension_numbers<[1], [0], [0], [1], [0, 0, 1, 1], [], []>} : vector<8x8xbf16>, vector<8x32xbf16>, vector<8x32xf32> -> vector<8x32xf32>
    %c0_300 = arith.constant 0 : index
    %c0_301 = arith.constant 0 : index
    %492 = vector.load %arg30[%c0_300, %c0_301] : memref<8x128xf32, #tpu.memory_space<vmem>>, vector<8x32xf32>
    tpu.vector_store %arg30[%c0_300, %c0_301], %491 {strides = array<i32>} : memref<8x128xf32, #tpu.memory_space<vmem>>, vector<8x32xf32>,
    %c1_302 = arith.constant 1 : index
    %c0_303 = arith.constant 0 : index
    %c0_304 = arith.constant 0 : index
    %493 = vector.load %arg15[%c1_302, %c0_303, %c0_304] : memref<4x128x32xbf16, #tpu.memory_space<vmem>>, vector<1x128x32xbf16>
    %494 = vector.shape_cast %493 : vector<1x128x32xbf16> to vector<128x32xbf16>
    %cst_305 = arith.constant dense<0.000000e+00> : vector<8x32xf32>
    %495 = tpu.matmul %447, %494, %cst_305 {dimension_numbers = #tpu.dot_dimension_numbers<[1], [0], [0], [1], [0, 0, 1, 1], [], []>} : vector<8x128xbf16>, vector<128x32xbf16>, vector<8x32xf32> -> vector<8x32xf32>
    %c1_306 = arith.constant 1 : index
    %c0_307 = arith.constant 0 : index
    %c0_308 = arith.constant 0 : index
    %496 = vector.load %arg16[%c1_306, %c0_307, %c0_308] : memref<4x1x32xf32, #tpu.memory_space<vmem>>, vector<1x1x32xf32>
    %497 = vector.shape_cast %496 : vector<1x1x32xf32> to vector<1x32xf32>
    %498 = vector.broadcast %497 : vector<1x32xf32> to vector<8x32xf32>
    %499 = arith.addf %495, %498 : vector<8x32xf32>
    %c1_309 = arith.constant 1 : index
    %c0_310 = arith.constant 0 : index
    %c0_311 = arith.constant 0 : index
    %500 = vector.load %arg17[%c1_309, %c0_310, %c0_311] : memref<4x128x32xbf16, #tpu.memory_space<vmem>>, vector<1x128x32xbf16>
    %501 = vector.shape_cast %500 : vector<1x128x32xbf16> to vector<128x32xbf16>
    %cst_312 = arith.constant dense<0.000000e+00> : vector<8x32xf32>
    %502 = tpu.matmul %448, %501, %cst_312 {dimension_numbers = #tpu.dot_dimension_numbers<[1], [0], [0], [1], [0, 0, 1, 1], [], []>} : vector<8x128xbf16>, vector<128x32xbf16>, vector<8x32xf32> -> vector<8x32xf32>
    %c1_313 = arith.constant 1 : index
    %c0_314 = arith.constant 0 : index
    %c0_315 = arith.constant 0 : index
    %503 = vector.load %arg18[%c1_313, %c0_314, %c0_315] : memref<4x1x32xf32, #tpu.memory_space<vmem>>, vector<1x1x32xf32>
    %504 = vector.shape_cast %503 : vector<1x1x32xf32> to vector<1x32xf32>
    %505 = vector.broadcast %504 : vector<1x32xf32> to vector<8x32xf32>
    %506 = arith.addf %502, %505 : vector<8x32xf32>
    %c1_316 = arith.constant 1 : index
    %c0_317 = arith.constant 0 : index
    %c0_318 = arith.constant 0 : index
    %507 = vector.load %arg19[%c1_316, %c0_317, %c0_318] : memref<4x128x32xbf16, #tpu.memory_space<vmem>>, vector<1x128x32xbf16>
    %508 = vector.shape_cast %507 : vector<1x128x32xbf16> to vector<128x32xbf16>
    %cst_319 = arith.constant dense<0.000000e+00> : vector<8x32xf32>
    %509 = tpu.matmul %448, %508, %cst_319 {dimension_numbers = #tpu.dot_dimension_numbers<[1], [0], [0], [1], [0, 0, 1, 1], [], []>} : vector<8x128xbf16>, vector<128x32xbf16>, vector<8x32xf32> -> vector<8x32xf32>
    %c1_320 = arith.constant 1 : index
    %c0_321 = arith.constant 0 : index
    %c0_322 = arith.constant 0 : index
    %510 = vector.load %arg20[%c1_320, %c0_321, %c0_322] : memref<4x1x32xf32, #tpu.memory_space<vmem>>, vector<1x1x32xf32>
    %511 = vector.shape_cast %510 : vector<1x1x32xf32> to vector<1x32xf32>
    %512 = vector.broadcast %511 : vector<1x32xf32> to vector<8x32xf32>
    %513 = arith.addf %509, %512 : vector<8x32xf32>
    %514 = arith.truncf %499 : vector<8x32xf32> to vector<8x32xbf16>
    %515 = arith.truncf %506 : vector<8x32xf32> to vector<8x32xbf16>
    %cst_323 = arith.constant dense<0.000000e+00> : vector<8x8xf32>
    %516 = tpu.matmul %514, %515, %cst_323 {dimension_numbers = #tpu.dot_dimension_numbers<[1], [1], [0], [0], [0, 0, 1, 0], [], []>} : vector<8x32xbf16>, vector<8x32xbf16>, vector<8x8xf32> -> vector<8x8xf32>
    %517 = vector.broadcast %452 : vector<1x8xf32> to vector<8x8xf32>
    %518 = arith.addf %516, %517 : vector<8x8xf32>
    %cst_324 = arith.constant dense<0xFF800000> : vector<8xf32>
    %519 = vector.multi_reduction <maximumf>, %518, %cst_324 [1] : vector<8x8xf32> to vector<8xf32>
    %520 = vector.shape_cast %519 : vector<8xf32> to vector<8x1xf32>
    %521 = vector.broadcast %520 : vector<8x1xf32> to vector<8x8xf32>
    %522 = arith.subf %518, %521 : vector<8x8xf32>
    %523 = math.exp %522 : vector<8x8xf32>
    %cst_325 = arith.constant dense<0.000000e+00> : vector<8xf32>
    %524 = vector.multi_reduction <add>, %523, %cst_325 [1] : vector<8x8xf32> to vector<8xf32>
    %525 = vector.shape_cast %524 : vector<8xf32> to vector<8x1xf32>
    %526 = tpu.reciprocal %525 {approx = true} : vector<8x1xf32> -> vector<8x1xf32>
    %527 = vector.broadcast %526 : vector<8x1xf32> to vector<8x8xf32>
    %528 = arith.mulf %523, %527 : vector<8x8xf32>
    %529 = arith.truncf %528 : vector<8x8xf32> to vector<8x8xbf16>
    %530 = arith.truncf %513 : vector<8x32xf32> to vector<8x32xbf16>
    %cst_326 = arith.constant dense<0.000000e+00> : vector<8x32xf32>
    %531 = tpu.matmul %529, %530, %cst_326 {dimension_numbers = #tpu.dot_dimension_numbers<[1], [0], [0], [1], [0, 0, 1, 1], [], []>} : vector<8x8xbf16>, vector<8x32xbf16>, vector<8x32xf32> -> vector<8x32xf32>
    %c0_327 = arith.constant 0 : index
    %c32_328 = arith.constant 32 : index
    %532 = vector.load %arg30[%c0_327, %c32_328] : memref<8x128xf32, #tpu.memory_space<vmem>>, vector<8x32xf32>
    tpu.vector_store %arg30[%c0_327, %c32_328], %531 {strides = array<i32>} : memref<8x128xf32, #tpu.memory_space<vmem>>, vector<8x32xf32>,
    %c2_329 = arith.constant 2 : index
    %c0_330 = arith.constant 0 : index
    %c0_331 = arith.constant 0 : index
    %533 = vector.load %arg15[%c2_329, %c0_330, %c0_331] : memref<4x128x32xbf16, #tpu.memory_space<vmem>>, vector<1x128x32xbf16>
    %534 = vector.shape_cast %533 : vector<1x128x32xbf16> to vector<128x32xbf16>
    %cst_332 = arith.constant dense<0.000000e+00> : vector<8x32xf32>
    %535 = tpu.matmul %447, %534, %cst_332 {dimension_numbers = #tpu.dot_dimension_numbers<[1], [0], [0], [1], [0, 0, 1, 1], [], []>} : vector<8x128xbf16>, vector<128x32xbf16>, vector<8x32xf32> -> vector<8x32xf32>
    %c2_333 = arith.constant 2 : index
    %c0_334 = arith.constant 0 : index
    %c0_335 = arith.constant 0 : index
    %536 = vector.load %arg16[%c2_333, %c0_334, %c0_335] : memref<4x1x32xf32, #tpu.memory_space<vmem>>, vector<1x1x32xf32>
    %537 = vector.shape_cast %536 : vector<1x1x32xf32> to vector<1x32xf32>
    %538 = vector.broadcast %537 : vector<1x32xf32> to vector<8x32xf32>
    %539 = arith.addf %535, %538 : vector<8x32xf32>
    %c2_336 = arith.constant 2 : index
    %c0_337 = arith.constant 0 : index
    %c0_338 = arith.constant 0 : index
    %540 = vector.load %arg17[%c2_336, %c0_337, %c0_338] : memref<4x128x32xbf16, #tpu.memory_space<vmem>>, vector<1x128x32xbf16>
    %541 = vector.shape_cast %540 : vector<1x128x32xbf16> to vector<128x32xbf16>
    %cst_339 = arith.constant dense<0.000000e+00> : vector<8x32xf32>
    %542 = tpu.matmul %448, %541, %cst_339 {dimension_numbers = #tpu.dot_dimension_numbers<[1], [0], [0], [1], [0, 0, 1, 1], [], []>} : vector<8x128xbf16>, vector<128x32xbf16>, vector<8x32xf32> -> vector<8x32xf32>
    %c2_340 = arith.constant 2 : index
    %c0_341 = arith.constant 0 : index
    %c0_342 = arith.constant 0 : index
    %543 = vector.load %arg18[%c2_340, %c0_341, %c0_342] : memref<4x1x32xf32, #tpu.memory_space<vmem>>, vector<1x1x32xf32>
    %544 = vector.shape_cast %543 : vector<1x1x32xf32> to vector<1x32xf32>
    %545 = vector.broadcast %544 : vector<1x32xf32> to vector<8x32xf32>
    %546 = arith.addf %542, %545 : vector<8x32xf32>
    %c2_343 = arith.constant 2 : index
    %c0_344 = arith.constant 0 : index
    %c0_345 = arith.constant 0 : index
    %547 = vector.load %arg19[%c2_343, %c0_344, %c0_345] : memref<4x128x32xbf16, #tpu.memory_space<vmem>>, vector<1x128x32xbf16>
    %548 = vector.shape_cast %547 : vector<1x128x32xbf16> to vector<128x32xbf16>
    %cst_346 = arith.constant dense<0.000000e+00> : vector<8x32xf32>
    %549 = tpu.matmul %448, %548, %cst_346 {dimension_numbers = #tpu.dot_dimension_numbers<[1], [0], [0], [1], [0, 0, 1, 1], [], []>} : vector<8x128xbf16>, vector<128x32xbf16>, vector<8x32xf32> -> vector<8x32xf32>
    %c2_347 = arith.constant 2 : index
    %c0_348 = arith.constant 0 : index
    %c0_349 = arith.constant 0 : index
    %550 = vector.load %arg20[%c2_347, %c0_348, %c0_349] : memref<4x1x32xf32, #tpu.memory_space<vmem>>, vector<1x1x32xf32>
    %551 = vector.shape_cast %550 : vector<1x1x32xf32> to vector<1x32xf32>
    %552 = vector.broadcast %551 : vector<1x32xf32> to vector<8x32xf32>
    %553 = arith.addf %549, %552 : vector<8x32xf32>
    %554 = arith.truncf %539 : vector<8x32xf32> to vector<8x32xbf16>
    %555 = arith.truncf %546 : vector<8x32xf32> to vector<8x32xbf16>
    %cst_350 = arith.constant dense<0.000000e+00> : vector<8x8xf32>
    %556 = tpu.matmul %554, %555, %cst_350 {dimension_numbers = #tpu.dot_dimension_numbers<[1], [1], [0], [0], [0, 0, 1, 0], [], []>} : vector<8x32xbf16>, vector<8x32xbf16>, vector<8x8xf32> -> vector<8x8xf32>
    %557 = vector.broadcast %452 : vector<1x8xf32> to vector<8x8xf32>
    %558 = arith.addf %556, %557 : vector<8x8xf32>
    %cst_351 = arith.constant dense<0xFF800000> : vector<8xf32>
    %559 = vector.multi_reduction <maximumf>, %558, %cst_351 [1] : vector<8x8xf32> to vector<8xf32>
    %560 = vector.shape_cast %559 : vector<8xf32> to vector<8x1xf32>
    %561 = vector.broadcast %560 : vector<8x1xf32> to vector<8x8xf32>
    %562 = arith.subf %558, %561 : vector<8x8xf32>
    %563 = math.exp %562 : vector<8x8xf32>
    %cst_352 = arith.constant dense<0.000000e+00> : vector<8xf32>
    %564 = vector.multi_reduction <add>, %563, %cst_352 [1] : vector<8x8xf32> to vector<8xf32>
    %565 = vector.shape_cast %564 : vector<8xf32> to vector<8x1xf32>
    %566 = tpu.reciprocal %565 {approx = true} : vector<8x1xf32> -> vector<8x1xf32>
    %567 = vector.broadcast %566 : vector<8x1xf32> to vector<8x8xf32>
    %568 = arith.mulf %563, %567 : vector<8x8xf32>
    %569 = arith.truncf %568 : vector<8x8xf32> to vector<8x8xbf16>
    %570 = arith.truncf %553 : vector<8x32xf32> to vector<8x32xbf16>
    %cst_353 = arith.constant dense<0.000000e+00> : vector<8x32xf32>
    %571 = tpu.matmul %569, %570, %cst_353 {dimension_numbers = #tpu.dot_dimension_numbers<[1], [0], [0], [1], [0, 0, 1, 1], [], []>} : vector<8x8xbf16>, vector<8x32xbf16>, vector<8x32xf32> -> vector<8x32xf32>
    %c0_354 = arith.constant 0 : index
    %c64_355 = arith.constant 64 : index
    %572 = vector.load %arg30[%c0_354, %c64_355] : memref<8x128xf32, #tpu.memory_space<vmem>>, vector<8x32xf32>
    tpu.vector_store %arg30[%c0_354, %c64_355], %571 {strides = array<i32>} : memref<8x128xf32, #tpu.memory_space<vmem>>, vector<8x32xf32>,
    %c3_356 = arith.constant 3 : index
    %c0_357 = arith.constant 0 : index
    %c0_358 = arith.constant 0 : index
    %573 = vector.load %arg15[%c3_356, %c0_357, %c0_358] : memref<4x128x32xbf16, #tpu.memory_space<vmem>>, vector<1x128x32xbf16>
    %574 = vector.shape_cast %573 : vector<1x128x32xbf16> to vector<128x32xbf16>
    %cst_359 = arith.constant dense<0.000000e+00> : vector<8x32xf32>
    %575 = tpu.matmul %447, %574, %cst_359 {dimension_numbers = #tpu.dot_dimension_numbers<[1], [0], [0], [1], [0, 0, 1, 1], [], []>} : vector<8x128xbf16>, vector<128x32xbf16>, vector<8x32xf32> -> vector<8x32xf32>
    %c3_360 = arith.constant 3 : index
    %c0_361 = arith.constant 0 : index
    %c0_362 = arith.constant 0 : index
    %576 = vector.load %arg16[%c3_360, %c0_361, %c0_362] : memref<4x1x32xf32, #tpu.memory_space<vmem>>, vector<1x1x32xf32>
    %577 = vector.shape_cast %576 : vector<1x1x32xf32> to vector<1x32xf32>
    %578 = vector.broadcast %577 : vector<1x32xf32> to vector<8x32xf32>
    %579 = arith.addf %575, %578 : vector<8x32xf32>
    %c3_363 = arith.constant 3 : index
    %c0_364 = arith.constant 0 : index
    %c0_365 = arith.constant 0 : index
    %580 = vector.load %arg17[%c3_363, %c0_364, %c0_365] : memref<4x128x32xbf16, #tpu.memory_space<vmem>>, vector<1x128x32xbf16>
    %581 = vector.shape_cast %580 : vector<1x128x32xbf16> to vector<128x32xbf16>
    %cst_366 = arith.constant dense<0.000000e+00> : vector<8x32xf32>
    %582 = tpu.matmul %448, %581, %cst_366 {dimension_numbers = #tpu.dot_dimension_numbers<[1], [0], [0], [1], [0, 0, 1, 1], [], []>} : vector<8x128xbf16>, vector<128x32xbf16>, vector<8x32xf32> -> vector<8x32xf32>
    %c3_367 = arith.constant 3 : index
    %c0_368 = arith.constant 0 : index
    %c0_369 = arith.constant 0 : index
    %583 = vector.load %arg18[%c3_367, %c0_368, %c0_369] : memref<4x1x32xf32, #tpu.memory_space<vmem>>, vector<1x1x32xf32>
    %584 = vector.shape_cast %583 : vector<1x1x32xf32> to vector<1x32xf32>
    %585 = vector.broadcast %584 : vector<1x32xf32> to vector<8x32xf32>
    %586 = arith.addf %582, %585 : vector<8x32xf32>
    %c3_370 = arith.constant 3 : index
    %c0_371 = arith.constant 0 : index
    %c0_372 = arith.constant 0 : index
    %587 = vector.load %arg19[%c3_370, %c0_371, %c0_372] : memref<4x128x32xbf16, #tpu.memory_space<vmem>>, vector<1x128x32xbf16>
    %588 = vector.shape_cast %587 : vector<1x128x32xbf16> to vector<128x32xbf16>
    %cst_373 = arith.constant dense<0.000000e+00> : vector<8x32xf32>
    %589 = tpu.matmul %448, %588, %cst_373 {dimension_numbers = #tpu.dot_dimension_numbers<[1], [0], [0], [1], [0, 0, 1, 1], [], []>} : vector<8x128xbf16>, vector<128x32xbf16>, vector<8x32xf32> -> vector<8x32xf32>
    %c3_374 = arith.constant 3 : index
    %c0_375 = arith.constant 0 : index
    %c0_376 = arith.constant 0 : index
    %590 = vector.load %arg20[%c3_374, %c0_375, %c0_376] : memref<4x1x32xf32, #tpu.memory_space<vmem>>, vector<1x1x32xf32>
    %591 = vector.shape_cast %590 : vector<1x1x32xf32> to vector<1x32xf32>
    %592 = vector.broadcast %591 : vector<1x32xf32> to vector<8x32xf32>
    %593 = arith.addf %589, %592 : vector<8x32xf32>
    %594 = arith.truncf %579 : vector<8x32xf32> to vector<8x32xbf16>
    %595 = arith.truncf %586 : vector<8x32xf32> to vector<8x32xbf16>
    %cst_377 = arith.constant dense<0.000000e+00> : vector<8x8xf32>
    %596 = tpu.matmul %594, %595, %cst_377 {dimension_numbers = #tpu.dot_dimension_numbers<[1], [1], [0], [0], [0, 0, 1, 0], [], []>} : vector<8x32xbf16>, vector<8x32xbf16>, vector<8x8xf32> -> vector<8x8xf32>
    %597 = vector.broadcast %452 : vector<1x8xf32> to vector<8x8xf32>
    %598 = arith.addf %596, %597 : vector<8x8xf32>
    %cst_378 = arith.constant dense<0xFF800000> : vector<8xf32>
    %599 = vector.multi_reduction <maximumf>, %598, %cst_378 [1] : vector<8x8xf32> to vector<8xf32>
    %600 = vector.shape_cast %599 : vector<8xf32> to vector<8x1xf32>
    %601 = vector.broadcast %600 : vector<8x1xf32> to vector<8x8xf32>
    %602 = arith.subf %598, %601 : vector<8x8xf32>
    %603 = math.exp %602 : vector<8x8xf32>
    %cst_379 = arith.constant dense<0.000000e+00> : vector<8xf32>
    %604 = vector.multi_reduction <add>, %603, %cst_379 [1] : vector<8x8xf32> to vector<8xf32>
    %605 = vector.shape_cast %604 : vector<8xf32> to vector<8x1xf32>
    %606 = tpu.reciprocal %605 {approx = true} : vector<8x1xf32> -> vector<8x1xf32>
    %607 = vector.broadcast %606 : vector<8x1xf32> to vector<8x8xf32>
    %608 = arith.mulf %603, %607 : vector<8x8xf32>
    %609 = arith.truncf %608 : vector<8x8xf32> to vector<8x8xbf16>
    %610 = arith.truncf %593 : vector<8x32xf32> to vector<8x32xbf16>
    %cst_380 = arith.constant dense<0.000000e+00> : vector<8x32xf32>
    %611 = tpu.matmul %609, %610, %cst_380 {dimension_numbers = #tpu.dot_dimension_numbers<[1], [0], [0], [1], [0, 0, 1, 1], [], []>} : vector<8x8xbf16>, vector<8x32xbf16>, vector<8x32xf32> -> vector<8x32xf32>
    %c0_381 = arith.constant 0 : index
    %c96_382 = arith.constant 96 : index
    %612 = vector.load %arg30[%c0_381, %c96_382] : memref<8x128xf32, #tpu.memory_space<vmem>>, vector<8x32xf32>
    tpu.vector_store %arg30[%c0_381, %c96_382], %611 {strides = array<i32>} : memref<8x128xf32, #tpu.memory_space<vmem>>, vector<8x32xf32>,
    %c0_383 = arith.constant 0 : index
    %c0_384 = arith.constant 0 : index
    %613 = vector.load %arg30[%c0_383, %c0_384] : memref<8x128xf32, #tpu.memory_space<vmem>>, vector<8x128xf32>
    %614 = arith.truncf %613 : vector<8x128xf32> to vector<8x128xbf16>
    %615 = vector.extract_strided_slice %0 {offsets = [1, 0, 0], sizes = [1, 8, 128], strides = [1, 1, 1]} : vector<2x8x128xf32> to vector<1x8x128xf32>
    %616 = vector.shape_cast %615 : vector<1x8x128xf32> to vector<8x128xf32>
    %617 = vector.broadcast %103 : vector<1x128xf32> to vector<8x128xf32>
    %618 = arith.addf %616, %617 : vector<8x128xf32>
    %c0_385 = arith.constant 0 : index
    %c0_386 = arith.constant 0 : index
    %c0_387 = arith.constant 0 : index
    %619 = vector.load %arg21[%c0_385, %c0_386, %c0_387] : memref<4x128x32xbf16, #tpu.memory_space<vmem>>, vector<1x128x32xbf16>
    %620 = vector.shape_cast %619 : vector<1x128x32xbf16> to vector<128x32xbf16>
    %cst_388 = arith.constant dense<0.000000e+00> : vector<8x32xf32>
    %621 = tpu.matmul %614, %620, %cst_388 {dimension_numbers = #tpu.dot_dimension_numbers<[1], [0], [0], [1], [0, 0, 1, 1], [], []>} : vector<8x128xbf16>, vector<128x32xbf16>, vector<8x32xf32> -> vector<8x32xf32>
    %c0_389 = arith.constant 0 : index
    %c0_390 = arith.constant 0 : index
    %c0_391 = arith.constant 0 : index
    %622 = vector.load %arg22[%c0_389, %c0_390, %c0_391] : memref<4x1x32xf32, #tpu.memory_space<vmem>>, vector<1x1x32xf32>
    %623 = vector.shape_cast %622 : vector<1x1x32xf32> to vector<1x32xf32>
    %624 = vector.broadcast %623 : vector<1x32xf32> to vector<8x32xf32>
    %625 = arith.addf %621, %624 : vector<8x32xf32>
    %c0_392 = arith.constant 0 : index
    %c0_393 = arith.constant 0 : index
    %c0_394 = arith.constant 0 : index
    %626 = vector.load %arg23[%c0_392, %c0_393, %c0_394] : memref<4x128x32xbf16, #tpu.memory_space<vmem>>, vector<1x128x32xbf16>
    %627 = vector.shape_cast %626 : vector<1x128x32xbf16> to vector<128x32xbf16>
    %cst_395 = arith.constant dense<0.000000e+00> : vector<16x32xf32>
    %628 = tpu.matmul %449, %627, %cst_395 {dimension_numbers = #tpu.dot_dimension_numbers<[1], [0], [0], [1], [0, 0, 1, 1], [], []>} : vector<16x128xbf16>, vector<128x32xbf16>, vector<16x32xf32> -> vector<16x32xf32>
    %c0_396 = arith.constant 0 : index
    %c0_397 = arith.constant 0 : index
    %c0_398 = arith.constant 0 : index
    %629 = vector.load %arg24[%c0_396, %c0_397, %c0_398] : memref<4x1x32xf32, #tpu.memory_space<vmem>>, vector<1x1x32xf32>
    %630 = vector.shape_cast %629 : vector<1x1x32xf32> to vector<1x32xf32>
    %631 = vector.broadcast %630 : vector<1x32xf32> to vector<16x32xf32>
    %632 = arith.addf %628, %631 : vector<16x32xf32>
    %c0_399 = arith.constant 0 : index
    %c0_400 = arith.constant 0 : index
    %c0_401 = arith.constant 0 : index
    %633 = vector.load %arg25[%c0_399, %c0_400, %c0_401] : memref<4x256x64xbf16, #tpu.memory_space<vmem>>, vector<1x256x64xbf16>
    %634 = vector.shape_cast %633 : vector<1x256x64xbf16> to vector<256x64xbf16>
    %cst_402 = arith.constant dense<0.000000e+00> : vector<16x64xf32>
    %635 = tpu.matmul %450, %634, %cst_402 {dimension_numbers = #tpu.dot_dimension_numbers<[1], [0], [0], [1], [0, 0, 1, 1], [], []>} : vector<16x256xbf16>, vector<256x64xbf16>, vector<16x64xf32> -> vector<16x64xf32>
    %c0_403 = arith.constant 0 : index
    %c0_404 = arith.constant 0 : index
    %c0_405 = arith.constant 0 : index
    %636 = vector.load %arg26[%c0_403, %c0_404, %c0_405] : memref<4x1x64xf32, #tpu.memory_space<vmem>>, vector<1x1x64xf32>
    %637 = vector.shape_cast %636 : vector<1x1x64xf32> to vector<1x64xf32>
    %638 = vector.broadcast %637 : vector<1x64xf32> to vector<16x64xf32>
    %639 = arith.addf %635, %638 : vector<16x64xf32>
    %640 = arith.truncf %625 : vector<8x32xf32> to vector<8x32xbf16>
    %641 = arith.truncf %632 : vector<16x32xf32> to vector<16x32xbf16>
    %cst_406 = arith.constant dense<0.000000e+00> : vector<8x16xf32>
    %642 = tpu.matmul %640, %641, %cst_406 {dimension_numbers = #tpu.dot_dimension_numbers<[1], [1], [0], [0], [0, 0, 1, 0], [], []>} : vector<8x32xbf16>, vector<16x32xbf16>, vector<8x16xf32> -> vector<8x16xf32>
    %cst_407 = arith.constant dense<0xFF800000> : vector<8xf32>
    %643 = vector.multi_reduction <maximumf>, %642, %cst_407 [1] : vector<8x16xf32> to vector<8xf32>
    %644 = vector.shape_cast %643 : vector<8xf32> to vector<8x1xf32>
    %645 = vector.broadcast %644 : vector<8x1xf32> to vector<8x16xf32>
    %646 = arith.subf %642, %645 : vector<8x16xf32>
    %647 = math.exp %646 : vector<8x16xf32>
    %cst_408 = arith.constant dense<0.000000e+00> : vector<8xf32>
    %648 = vector.multi_reduction <add>, %647, %cst_408 [1] : vector<8x16xf32> to vector<8xf32>
    %649 = vector.shape_cast %648 : vector<8xf32> to vector<8x1xf32>
    %650 = tpu.reciprocal %649 {approx = true} : vector<8x1xf32> -> vector<8x1xf32>
    %651 = vector.broadcast %650 : vector<8x1xf32> to vector<8x16xf32>
    %652 = arith.mulf %647, %651 : vector<8x16xf32>
    %653 = arith.truncf %652 : vector<8x16xf32> to vector<8x16xbf16>
    %654 = arith.truncf %639 : vector<16x64xf32> to vector<16x64xbf16>
    %cst_409 = arith.constant dense<0.000000e+00> : vector<8x64xf32>
    %655 = tpu.matmul %653, %654, %cst_409 {dimension_numbers = #tpu.dot_dimension_numbers<[1], [0], [0], [1], [0, 0, 1, 1], [], []>} : vector<8x16xbf16>, vector<16x64xbf16>, vector<8x64xf32> -> vector<8x64xf32>
    %656 = arith.truncf %655 : vector<8x64xf32> to vector<8x64xbf16>
    %c0_410 = arith.constant 0 : index
    %c0_411 = arith.constant 0 : index
    %c0_412 = arith.constant 0 : index
    %657 = vector.load %arg27[%c0_410, %c0_411, %c0_412] : memref<4x64x128xbf16, #tpu.memory_space<vmem>>, vector<1x64x128xbf16>
    %658 = vector.shape_cast %657 : vector<1x64x128xbf16> to vector<64x128xbf16>
    %cst_413 = arith.constant dense<0.000000e+00> : vector<8x128xf32>
    %659 = tpu.matmul %656, %658, %cst_413 {dimension_numbers = #tpu.dot_dimension_numbers<[1], [0], [0], [1], [0, 0, 1, 1], [], []>} : vector<8x64xbf16>, vector<64x128xbf16>, vector<8x128xf32> -> vector<8x128xf32>
    %660 = arith.addf %618, %659 : vector<8x128xf32>
    %c1_414 = arith.constant 1 : index
    %c0_415 = arith.constant 0 : index
    %c0_416 = arith.constant 0 : index
    %661 = vector.load %arg21[%c1_414, %c0_415, %c0_416] : memref<4x128x32xbf16, #tpu.memory_space<vmem>>, vector<1x128x32xbf16>
    %662 = vector.shape_cast %661 : vector<1x128x32xbf16> to vector<128x32xbf16>
    %cst_417 = arith.constant dense<0.000000e+00> : vector<8x32xf32>
    %663 = tpu.matmul %614, %662, %cst_417 {dimension_numbers = #tpu.dot_dimension_numbers<[1], [0], [0], [1], [0, 0, 1, 1], [], []>} : vector<8x128xbf16>, vector<128x32xbf16>, vector<8x32xf32> -> vector<8x32xf32>
    %c1_418 = arith.constant 1 : index
    %c0_419 = arith.constant 0 : index
    %c0_420 = arith.constant 0 : index
    %664 = vector.load %arg22[%c1_418, %c0_419, %c0_420] : memref<4x1x32xf32, #tpu.memory_space<vmem>>, vector<1x1x32xf32>
    %665 = vector.shape_cast %664 : vector<1x1x32xf32> to vector<1x32xf32>
    %666 = vector.broadcast %665 : vector<1x32xf32> to vector<8x32xf32>
    %667 = arith.addf %663, %666 : vector<8x32xf32>
    %c1_421 = arith.constant 1 : index
    %c0_422 = arith.constant 0 : index
    %c0_423 = arith.constant 0 : index
    %668 = vector.load %arg23[%c1_421, %c0_422, %c0_423] : memref<4x128x32xbf16, #tpu.memory_space<vmem>>, vector<1x128x32xbf16>
    %669 = vector.shape_cast %668 : vector<1x128x32xbf16> to vector<128x32xbf16>
    %cst_424 = arith.constant dense<0.000000e+00> : vector<16x32xf32>
    %670 = tpu.matmul %449, %669, %cst_424 {dimension_numbers = #tpu.dot_dimension_numbers<[1], [0], [0], [1], [0, 0, 1, 1], [], []>} : vector<16x128xbf16>, vector<128x32xbf16>, vector<16x32xf32> -> vector<16x32xf32>
    %c1_425 = arith.constant 1 : index
    %c0_426 = arith.constant 0 : index
    %c0_427 = arith.constant 0 : index
    %671 = vector.load %arg24[%c1_425, %c0_426, %c0_427] : memref<4x1x32xf32, #tpu.memory_space<vmem>>, vector<1x1x32xf32>
    %672 = vector.shape_cast %671 : vector<1x1x32xf32> to vector<1x32xf32>
    %673 = vector.broadcast %672 : vector<1x32xf32> to vector<16x32xf32>
    %674 = arith.addf %670, %673 : vector<16x32xf32>
    %c1_428 = arith.constant 1 : index
    %c0_429 = arith.constant 0 : index
    %c0_430 = arith.constant 0 : index
    %675 = vector.load %arg25[%c1_428, %c0_429, %c0_430] : memref<4x256x64xbf16, #tpu.memory_space<vmem>>, vector<1x256x64xbf16>
    %676 = vector.shape_cast %675 : vector<1x256x64xbf16> to vector<256x64xbf16>
    %cst_431 = arith.constant dense<0.000000e+00> : vector<16x64xf32>
    %677 = tpu.matmul %450, %676, %cst_431 {dimension_numbers = #tpu.dot_dimension_numbers<[1], [0], [0], [1], [0, 0, 1, 1], [], []>} : vector<16x256xbf16>, vector<256x64xbf16>, vector<16x64xf32> -> vector<16x64xf32>
    %c1_432 = arith.constant 1 : index
    %c0_433 = arith.constant 0 : index
    %c0_434 = arith.constant 0 : index
    %678 = vector.load %arg26[%c1_432, %c0_433, %c0_434] : memref<4x1x64xf32, #tpu.memory_space<vmem>>, vector<1x1x64xf32>
    %679 = vector.shape_cast %678 : vector<1x1x64xf32> to vector<1x64xf32>
    %680 = vector.broadcast %679 : vector<1x64xf32> to vector<16x64xf32>
    %681 = arith.addf %677, %680 : vector<16x64xf32>
    %682 = arith.truncf %667 : vector<8x32xf32> to vector<8x32xbf16>
    %683 = arith.truncf %674 : vector<16x32xf32> to vector<16x32xbf16>
    %cst_435 = arith.constant dense<0.000000e+00> : vector<8x16xf32>
    %684 = tpu.matmul %682, %683, %cst_435 {dimension_numbers = #tpu.dot_dimension_numbers<[1], [1], [0], [0], [0, 0, 1, 0], [], []>} : vector<8x32xbf16>, vector<16x32xbf16>, vector<8x16xf32> -> vector<8x16xf32>
    %cst_436 = arith.constant dense<0xFF800000> : vector<8xf32>
    %685 = vector.multi_reduction <maximumf>, %684, %cst_436 [1] : vector<8x16xf32> to vector<8xf32>
    %686 = vector.shape_cast %685 : vector<8xf32> to vector<8x1xf32>
    %687 = vector.broadcast %686 : vector<8x1xf32> to vector<8x16xf32>
    %688 = arith.subf %684, %687 : vector<8x16xf32>
    %689 = math.exp %688 : vector<8x16xf32>
    %cst_437 = arith.constant dense<0.000000e+00> : vector<8xf32>
    %690 = vector.multi_reduction <add>, %689, %cst_437 [1] : vector<8x16xf32> to vector<8xf32>
    %691 = vector.shape_cast %690 : vector<8xf32> to vector<8x1xf32>
    %692 = tpu.reciprocal %691 {approx = true} : vector<8x1xf32> -> vector<8x1xf32>
    %693 = vector.broadcast %692 : vector<8x1xf32> to vector<8x16xf32>
    %694 = arith.mulf %689, %693 : vector<8x16xf32>
    %695 = arith.truncf %694 : vector<8x16xf32> to vector<8x16xbf16>
    %696 = arith.truncf %681 : vector<16x64xf32> to vector<16x64xbf16>
    %cst_438 = arith.constant dense<0.000000e+00> : vector<8x64xf32>
    %697 = tpu.matmul %695, %696, %cst_438 {dimension_numbers = #tpu.dot_dimension_numbers<[1], [0], [0], [1], [0, 0, 1, 1], [], []>} : vector<8x16xbf16>, vector<16x64xbf16>, vector<8x64xf32> -> vector<8x64xf32>
    %698 = arith.truncf %697 : vector<8x64xf32> to vector<8x64xbf16>
    %c1_439 = arith.constant 1 : index
    %c0_440 = arith.constant 0 : index
    %c0_441 = arith.constant 0 : index
    %699 = vector.load %arg27[%c1_439, %c0_440, %c0_441] : memref<4x64x128xbf16, #tpu.memory_space<vmem>>, vector<1x64x128xbf16>
    %700 = vector.shape_cast %699 : vector<1x64x128xbf16> to vector<64x128xbf16>
    %cst_442 = arith.constant dense<0.000000e+00> : vector<8x128xf32>
    %701 = tpu.matmul %698, %700, %cst_442 {dimension_numbers = #tpu.dot_dimension_numbers<[1], [0], [0], [1], [0, 0, 1, 1], [], []>} : vector<8x64xbf16>, vector<64x128xbf16>, vector<8x128xf32> -> vector<8x128xf32>
    %702 = arith.addf %660, %701 : vector<8x128xf32>
    %c2_443 = arith.constant 2 : index
    %c0_444 = arith.constant 0 : index
    %c0_445 = arith.constant 0 : index
    %703 = vector.load %arg21[%c2_443, %c0_444, %c0_445] : memref<4x128x32xbf16, #tpu.memory_space<vmem>>, vector<1x128x32xbf16>
    %704 = vector.shape_cast %703 : vector<1x128x32xbf16> to vector<128x32xbf16>
    %cst_446 = arith.constant dense<0.000000e+00> : vector<8x32xf32>
    %705 = tpu.matmul %614, %704, %cst_446 {dimension_numbers = #tpu.dot_dimension_numbers<[1], [0], [0], [1], [0, 0, 1, 1], [], []>} : vector<8x128xbf16>, vector<128x32xbf16>, vector<8x32xf32> -> vector<8x32xf32>
    %c2_447 = arith.constant 2 : index
    %c0_448 = arith.constant 0 : index
    %c0_449 = arith.constant 0 : index
    %706 = vector.load %arg22[%c2_447, %c0_448, %c0_449] : memref<4x1x32xf32, #tpu.memory_space<vmem>>, vector<1x1x32xf32>
    %707 = vector.shape_cast %706 : vector<1x1x32xf32> to vector<1x32xf32>
    %708 = vector.broadcast %707 : vector<1x32xf32> to vector<8x32xf32>
    %709 = arith.addf %705, %708 : vector<8x32xf32>
    %c2_450 = arith.constant 2 : index
    %c0_451 = arith.constant 0 : index
    %c0_452 = arith.constant 0 : index
    %710 = vector.load %arg23[%c2_450, %c0_451, %c0_452] : memref<4x128x32xbf16, #tpu.memory_space<vmem>>, vector<1x128x32xbf16>
    %711 = vector.shape_cast %710 : vector<1x128x32xbf16> to vector<128x32xbf16>
    %cst_453 = arith.constant dense<0.000000e+00> : vector<16x32xf32>
    %712 = tpu.matmul %449, %711, %cst_453 {dimension_numbers = #tpu.dot_dimension_numbers<[1], [0], [0], [1], [0, 0, 1, 1], [], []>} : vector<16x128xbf16>, vector<128x32xbf16>, vector<16x32xf32> -> vector<16x32xf32>
    %c2_454 = arith.constant 2 : index
    %c0_455 = arith.constant 0 : index
    %c0_456 = arith.constant 0 : index
    %713 = vector.load %arg24[%c2_454, %c0_455, %c0_456] : memref<4x1x32xf32, #tpu.memory_space<vmem>>, vector<1x1x32xf32>
    %714 = vector.shape_cast %713 : vector<1x1x32xf32> to vector<1x32xf32>
    %715 = vector.broadcast %714 : vector<1x32xf32> to vector<16x32xf32>
    %716 = arith.addf %712, %715 : vector<16x32xf32>
    %c2_457 = arith.constant 2 : index
    %c0_458 = arith.constant 0 : index
    %c0_459 = arith.constant 0 : index
    %717 = vector.load %arg25[%c2_457, %c0_458, %c0_459] : memref<4x256x64xbf16, #tpu.memory_space<vmem>>, vector<1x256x64xbf16>
    %718 = vector.shape_cast %717 : vector<1x256x64xbf16> to vector<256x64xbf16>
    %cst_460 = arith.constant dense<0.000000e+00> : vector<16x64xf32>
    %719 = tpu.matmul %450, %718, %cst_460 {dimension_numbers = #tpu.dot_dimension_numbers<[1], [0], [0], [1], [0, 0, 1, 1], [], []>} : vector<16x256xbf16>, vector<256x64xbf16>, vector<16x64xf32> -> vector<16x64xf32>
    %c2_461 = arith.constant 2 : index
    %c0_462 = arith.constant 0 : index
    %c0_463 = arith.constant 0 : index
    %720 = vector.load %arg26[%c2_461, %c0_462, %c0_463] : memref<4x1x64xf32, #tpu.memory_space<vmem>>, vector<1x1x64xf32>
    %721 = vector.shape_cast %720 : vector<1x1x64xf32> to vector<1x64xf32>
    %722 = vector.broadcast %721 : vector<1x64xf32> to vector<16x64xf32>
    %723 = arith.addf %719, %722 : vector<16x64xf32>
    %724 = arith.truncf %709 : vector<8x32xf32> to vector<8x32xbf16>
    %725 = arith.truncf %716 : vector<16x32xf32> to vector<16x32xbf16>
    %cst_464 = arith.constant dense<0.000000e+00> : vector<8x16xf32>
    %726 = tpu.matmul %724, %725, %cst_464 {dimension_numbers = #tpu.dot_dimension_numbers<[1], [1], [0], [0], [0, 0, 1, 0], [], []>} : vector<8x32xbf16>, vector<16x32xbf16>, vector<8x16xf32> -> vector<8x16xf32>
    %cst_465 = arith.constant dense<0xFF800000> : vector<8xf32>
    %727 = vector.multi_reduction <maximumf>, %726, %cst_465 [1] : vector<8x16xf32> to vector<8xf32>
    %728 = vector.shape_cast %727 : vector<8xf32> to vector<8x1xf32>
    %729 = vector.broadcast %728 : vector<8x1xf32> to vector<8x16xf32>
    %730 = arith.subf %726, %729 : vector<8x16xf32>
    %731 = math.exp %730 : vector<8x16xf32>
    %cst_466 = arith.constant dense<0.000000e+00> : vector<8xf32>
    %732 = vector.multi_reduction <add>, %731, %cst_466 [1] : vector<8x16xf32> to vector<8xf32>
    %733 = vector.shape_cast %732 : vector<8xf32> to vector<8x1xf32>
    %734 = tpu.reciprocal %733 {approx = true} : vector<8x1xf32> -> vector<8x1xf32>
    %735 = vector.broadcast %734 : vector<8x1xf32> to vector<8x16xf32>
    %736 = arith.mulf %731, %735 : vector<8x16xf32>
    %737 = arith.truncf %736 : vector<8x16xf32> to vector<8x16xbf16>
    %738 = arith.truncf %723 : vector<16x64xf32> to vector<16x64xbf16>
    %cst_467 = arith.constant dense<0.000000e+00> : vector<8x64xf32>
    %739 = tpu.matmul %737, %738, %cst_467 {dimension_numbers = #tpu.dot_dimension_numbers<[1], [0], [0], [1], [0, 0, 1, 1], [], []>} : vector<8x16xbf16>, vector<16x64xbf16>, vector<8x64xf32> -> vector<8x64xf32>
    %740 = arith.truncf %739 : vector<8x64xf32> to vector<8x64xbf16>
    %c2_468 = arith.constant 2 : index
    %c0_469 = arith.constant 0 : index
    %c0_470 = arith.constant 0 : index
    %741 = vector.load %arg27[%c2_468, %c0_469, %c0_470] : memref<4x64x128xbf16, #tpu.memory_space<vmem>>, vector<1x64x128xbf16>
    %742 = vector.shape_cast %741 : vector<1x64x128xbf16> to vector<64x128xbf16>
    %cst_471 = arith.constant dense<0.000000e+00> : vector<8x128xf32>
    %743 = tpu.matmul %740, %742, %cst_471 {dimension_numbers = #tpu.dot_dimension_numbers<[1], [0], [0], [1], [0, 0, 1, 1], [], []>} : vector<8x64xbf16>, vector<64x128xbf16>, vector<8x128xf32> -> vector<8x128xf32>
    %744 = arith.addf %702, %743 : vector<8x128xf32>
    %c3_472 = arith.constant 3 : index
    %c0_473 = arith.constant 0 : index
    %c0_474 = arith.constant 0 : index
    %745 = vector.load %arg21[%c3_472, %c0_473, %c0_474] : memref<4x128x32xbf16, #tpu.memory_space<vmem>>, vector<1x128x32xbf16>
    %746 = vector.shape_cast %745 : vector<1x128x32xbf16> to vector<128x32xbf16>
    %cst_475 = arith.constant dense<0.000000e+00> : vector<8x32xf32>
    %747 = tpu.matmul %614, %746, %cst_475 {dimension_numbers = #tpu.dot_dimension_numbers<[1], [0], [0], [1], [0, 0, 1, 1], [], []>} : vector<8x128xbf16>, vector<128x32xbf16>, vector<8x32xf32> -> vector<8x32xf32>
    %c3_476 = arith.constant 3 : index
    %c0_477 = arith.constant 0 : index
    %c0_478 = arith.constant 0 : index
    %748 = vector.load %arg22[%c3_476, %c0_477, %c0_478] : memref<4x1x32xf32, #tpu.memory_space<vmem>>, vector<1x1x32xf32>
    %749 = vector.shape_cast %748 : vector<1x1x32xf32> to vector<1x32xf32>
    %750 = vector.broadcast %749 : vector<1x32xf32> to vector<8x32xf32>
    %751 = arith.addf %747, %750 : vector<8x32xf32>
    %c3_479 = arith.constant 3 : index
    %c0_480 = arith.constant 0 : index
    %c0_481 = arith.constant 0 : index
    %752 = vector.load %arg23[%c3_479, %c0_480, %c0_481] : memref<4x128x32xbf16, #tpu.memory_space<vmem>>, vector<1x128x32xbf16>
    %753 = vector.shape_cast %752 : vector<1x128x32xbf16> to vector<128x32xbf16>
    %cst_482 = arith.constant dense<0.000000e+00> : vector<16x32xf32>
    %754 = tpu.matmul %449, %753, %cst_482 {dimension_numbers = #tpu.dot_dimension_numbers<[1], [0], [0], [1], [0, 0, 1, 1], [], []>} : vector<16x128xbf16>, vector<128x32xbf16>, vector<16x32xf32> -> vector<16x32xf32>
    %c3_483 = arith.constant 3 : index
    %c0_484 = arith.constant 0 : index
    %c0_485 = arith.constant 0 : index
    %755 = vector.load %arg24[%c3_483, %c0_484, %c0_485] : memref<4x1x32xf32, #tpu.memory_space<vmem>>, vector<1x1x32xf32>
    %756 = vector.shape_cast %755 : vector<1x1x32xf32> to vector<1x32xf32>
    %757 = vector.broadcast %756 : vector<1x32xf32> to vector<16x32xf32>
    %758 = arith.addf %754, %757 : vector<16x32xf32>
    %c3_486 = arith.constant 3 : index
    %c0_487 = arith.constant 0 : index
    %c0_488 = arith.constant 0 : index
    %759 = vector.load %arg25[%c3_486, %c0_487, %c0_488] : memref<4x256x64xbf16, #tpu.memory_space<vmem>>, vector<1x256x64xbf16>
    %760 = vector.shape_cast %759 : vector<1x256x64xbf16> to vector<256x64xbf16>
    %cst_489 = arith.constant dense<0.000000e+00> : vector<16x64xf32>
    %761 = tpu.matmul %450, %760, %cst_489 {dimension_numbers = #tpu.dot_dimension_numbers<[1], [0], [0], [1], [0, 0, 1, 1], [], []>} : vector<16x256xbf16>, vector<256x64xbf16>, vector<16x64xf32> -> vector<16x64xf32>
    %c3_490 = arith.constant 3 : index
    %c0_491 = arith.constant 0 : index
    %c0_492 = arith.constant 0 : index
    %762 = vector.load %arg26[%c3_490, %c0_491, %c0_492] : memref<4x1x64xf32, #tpu.memory_space<vmem>>, vector<1x1x64xf32>
    %763 = vector.shape_cast %762 : vector<1x1x64xf32> to vector<1x64xf32>
    %764 = vector.broadcast %763 : vector<1x64xf32> to vector<16x64xf32>
    %765 = arith.addf %761, %764 : vector<16x64xf32>
    %766 = arith.truncf %751 : vector<8x32xf32> to vector<8x32xbf16>
    %767 = arith.truncf %758 : vector<16x32xf32> to vector<16x32xbf16>
    %cst_493 = arith.constant dense<0.000000e+00> : vector<8x16xf32>
    %768 = tpu.matmul %766, %767, %cst_493 {dimension_numbers = #tpu.dot_dimension_numbers<[1], [1], [0], [0], [0, 0, 1, 0], [], []>} : vector<8x32xbf16>, vector<16x32xbf16>, vector<8x16xf32> -> vector<8x16xf32>
    %cst_494 = arith.constant dense<0xFF800000> : vector<8xf32>
    %769 = vector.multi_reduction <maximumf>, %768, %cst_494 [1] : vector<8x16xf32> to vector<8xf32>
    %770 = vector.shape_cast %769 : vector<8xf32> to vector<8x1xf32>
    %771 = vector.broadcast %770 : vector<8x1xf32> to vector<8x16xf32>
    %772 = arith.subf %768, %771 : vector<8x16xf32>
    %773 = math.exp %772 : vector<8x16xf32>
    %cst_495 = arith.constant dense<0.000000e+00> : vector<8xf32>
    %774 = vector.multi_reduction <add>, %773, %cst_495 [1] : vector<8x16xf32> to vector<8xf32>
    %775 = vector.shape_cast %774 : vector<8xf32> to vector<8x1xf32>
    %776 = tpu.reciprocal %775 {approx = true} : vector<8x1xf32> -> vector<8x1xf32>
    %777 = vector.broadcast %776 : vector<8x1xf32> to vector<8x16xf32>
    %778 = arith.mulf %773, %777 : vector<8x16xf32>
    %779 = arith.truncf %778 : vector<8x16xf32> to vector<8x16xbf16>
    %780 = arith.truncf %765 : vector<16x64xf32> to vector<16x64xbf16>
    %cst_496 = arith.constant dense<0.000000e+00> : vector<8x64xf32>
    %781 = tpu.matmul %779, %780, %cst_496 {dimension_numbers = #tpu.dot_dimension_numbers<[1], [0], [0], [1], [0, 0, 1, 1], [], []>} : vector<8x16xbf16>, vector<16x64xbf16>, vector<8x64xf32> -> vector<8x64xf32>
    %782 = arith.truncf %781 : vector<8x64xf32> to vector<8x64xbf16>
    %c3_497 = arith.constant 3 : index
    %c0_498 = arith.constant 0 : index
    %c0_499 = arith.constant 0 : index
    %783 = vector.load %arg27[%c3_497, %c0_498, %c0_499] : memref<4x64x128xbf16, #tpu.memory_space<vmem>>, vector<1x64x128xbf16>
    %784 = vector.shape_cast %783 : vector<1x64x128xbf16> to vector<64x128xbf16>
    %cst_500 = arith.constant dense<0.000000e+00> : vector<8x128xf32>
    %785 = tpu.matmul %782, %784, %cst_500 {dimension_numbers = #tpu.dot_dimension_numbers<[1], [0], [0], [1], [0, 0, 1, 1], [], []>} : vector<8x64xbf16>, vector<64x128xbf16>, vector<8x128xf32> -> vector<8x128xf32>
    %786 = arith.addf %744, %785 : vector<8x128xf32>
    %c1_501 = arith.constant 1 : index
    %c0_502 = arith.constant 0 : index
    %c0_503 = arith.constant 0 : index
    %787 = vector.load %arg29[%c1_501, %c0_502, %c0_503] : memref<2x8x128xf32, #tpu.memory_space<vmem>>, vector<1x8x128xf32>
    %788 = vector.shape_cast %787 : vector<1x8x128xf32> to vector<8x128xf32>
    %789 = vector.shape_cast %786 : vector<8x128xf32> to vector<1x8x128xf32>
    tpu.vector_store %arg29[%c1_501, %c0_502, %c0_503], %789 {strides = array<i32>} : memref<2x8x128xf32, #tpu.memory_space<vmem>>, vector<1x8x128xf32>,
    return
  }
  func.func @transform_0(%arg0: i32) -> (i32, i32, i32) {
    %c0_i32 = arith.constant 0 : i32
    %c0_i32_0 = arith.constant 0 : i32
    %c0_i32_1 = arith.constant 0 : i32
    return %arg0, %c0_i32, %c0_i32_0 : i32, i32, i32
  }
  func.func @transform_1(%arg0: i32) -> (i32, i32, i32) {
    %c0_i32 = arith.constant 0 : i32
    %c0_i32_0 = arith.constant 0 : i32
    %c0_i32_1 = arith.constant 0 : i32
    return %arg0, %c0_i32, %c0_i32_0 : i32, i32, i32
  }
  func.func @transform_2(%arg0: i32) -> (i32, i32, i32) {
    %c0_i32 = arith.constant 0 : i32
    %c0_i32_0 = arith.constant 0 : i32
    %c0_i32_1 = arith.constant 0 : i32
    return %arg0, %c0_i32, %c0_i32_0 : i32, i32, i32
  }
  func.func @transform_3(%arg0: i32) -> (i32, i32, i32) {
    %c0_i32 = arith.constant 0 : i32
    %c0_i32_0 = arith.constant 0 : i32
    %c0_i32_1 = arith.constant 0 : i32
    return %arg0, %c0_i32, %c0_i32_0 : i32, i32, i32
  }
  func.func @transform_4(%arg0: i32) -> (i32, i32) {
    %c0_i32 = arith.constant 0 : i32
    %c0_i32_0 = arith.constant 0 : i32
    %c0_i32_1 = arith.constant 0 : i32
    return %c0_i32, %c0_i32_0 : i32, i32
  }
  func.func @transform_5(%arg0: i32) -> (i32, i32) {
    %c0_i32 = arith.constant 0 : i32
    %c0_i32_0 = arith.constant 0 : i32
    %c0_i32_1 = arith.constant 0 : i32
    return %c0_i32, %c0_i32_0 : i32, i32
  }
  func.func @transform_6(%arg0: i32) -> (i32, i32) {
    %c0_i32 = arith.constant 0 : i32
    %c0_i32_0 = arith.constant 0 : i32
    %c0_i32_1 = arith.constant 0 : i32
    return %c0_i32, %c0_i32_0 : i32, i32
  }
  func.func @transform_7(%arg0: i32) -> (i32, i32) {
    %c0_i32 = arith.constant 0 : i32
    %c0_i32_0 = arith.constant 0 : i32
    %c0_i32_1 = arith.constant 0 : i32
    return %c0_i32, %c0_i32_0 : i32, i32
  }
  func.func @transform_8(%arg0: i32) -> (i32, i32) {
    %c0_i32 = arith.constant 0 : i32
    %c0_i32_0 = arith.constant 0 : i32
    %c0_i32_1 = arith.constant 0 : i32
    return %c0_i32, %c0_i32_0 : i32, i32
  }
  func.func @transform_9(%arg0: i32) -> (i32, i32) {
    %c0_i32 = arith.constant 0 : i32
    %c0_i32_0 = arith.constant 0 : i32
    %c0_i32_1 = arith.constant 0 : i32
    return %c0_i32, %c0_i32_0 : i32, i32
  }
  func.func @transform_10(%arg0: i32) -> (i32, i32) {
    %c0_i32 = arith.constant 0 : i32
    %c0_i32_0 = arith.constant 0 : i32
    %c0_i32_1 = arith.constant 0 : i32
    return %c0_i32, %c0_i32_0 : i32, i32
  }
  func.func @transform_11(%arg0: i32) -> (i32, i32) {
    %c0_i32 = arith.constant 0 : i32
    %c0_i32_0 = arith.constant 0 : i32
    %c0_i32_1 = arith.constant 0 : i32
    return %c0_i32, %c0_i32_0 : i32, i32
  }
  func.func @transform_12(%arg0: i32) -> (i32, i32) {
    %c0_i32 = arith.constant 0 : i32
    %c0_i32_0 = arith.constant 0 : i32
    %c0_i32_1 = arith.constant 0 : i32
    return %c0_i32, %c0_i32_0 : i32, i32
  }
  func.func @transform_13(%arg0: i32) -> (i32, i32) {
    %c0_i32 = arith.constant 0 : i32
    %c0_i32_0 = arith.constant 0 : i32
    %c0_i32_1 = arith.constant 0 : i32
    return %c0_i32, %c0_i32_0 : i32, i32
  }
  func.func @transform_14(%arg0: i32) -> (i32, i32, i32) {
    %c0_i32 = arith.constant 0 : i32
    %c0_i32_0 = arith.constant 0 : i32
    %c0_i32_1 = arith.constant 0 : i32
    %c0_i32_2 = arith.constant 0 : i32
    return %c0_i32, %c0_i32_0, %c0_i32_1 : i32, i32, i32
  }
  func.func @transform_15(%arg0: i32) -> (i32, i32, i32) {
    %c0_i32 = arith.constant 0 : i32
    %c0_i32_0 = arith.constant 0 : i32
    %c0_i32_1 = arith.constant 0 : i32
    %c0_i32_2 = arith.constant 0 : i32
    return %c0_i32, %c0_i32_0, %c0_i32_1 : i32, i32, i32
  }
  func.func @transform_16(%arg0: i32) -> (i32, i32, i32) {
    %c0_i32 = arith.constant 0 : i32
    %c0_i32_0 = arith.constant 0 : i32
    %c0_i32_1 = arith.constant 0 : i32
    %c0_i32_2 = arith.constant 0 : i32
    return %c0_i32, %c0_i32_0, %c0_i32_1 : i32, i32, i32
  }
  func.func @transform_17(%arg0: i32) -> (i32, i32, i32) {
    %c0_i32 = arith.constant 0 : i32
    %c0_i32_0 = arith.constant 0 : i32
    %c0_i32_1 = arith.constant 0 : i32
    %c0_i32_2 = arith.constant 0 : i32
    return %c0_i32, %c0_i32_0, %c0_i32_1 : i32, i32, i32
  }
  func.func @transform_18(%arg0: i32) -> (i32, i32, i32) {
    %c0_i32 = arith.constant 0 : i32
    %c0_i32_0 = arith.constant 0 : i32
    %c0_i32_1 = arith.constant 0 : i32
    %c0_i32_2 = arith.constant 0 : i32
    return %c0_i32, %c0_i32_0, %c0_i32_1 : i32, i32, i32
  }
  func.func @transform_19(%arg0: i32) -> (i32, i32, i32) {
    %c0_i32 = arith.constant 0 : i32
    %c0_i32_0 = arith.constant 0 : i32
    %c0_i32_1 = arith.constant 0 : i32
    %c0_i32_2 = arith.constant 0 : i32
    return %c0_i32, %c0_i32_0, %c0_i32_1 : i32, i32, i32
  }
  func.func @transform_20(%arg0: i32) -> (i32, i32, i32) {
    %c0_i32 = arith.constant 0 : i32
    %c0_i32_0 = arith.constant 0 : i32
    %c0_i32_1 = arith.constant 0 : i32
    %c0_i32_2 = arith.constant 0 : i32
    return %c0_i32, %c0_i32_0, %c0_i32_1 : i32, i32, i32
  }
  func.func @transform_21(%arg0: i32) -> (i32, i32, i32) {
    %c0_i32 = arith.constant 0 : i32
    %c0_i32_0 = arith.constant 0 : i32
    %c0_i32_1 = arith.constant 0 : i32
    %c0_i32_2 = arith.constant 0 : i32
    return %c0_i32, %c0_i32_0, %c0_i32_1 : i32, i32, i32
  }
  func.func @transform_22(%arg0: i32) -> (i32, i32, i32) {
    %c0_i32 = arith.constant 0 : i32
    %c0_i32_0 = arith.constant 0 : i32
    %c0_i32_1 = arith.constant 0 : i32
    %c0_i32_2 = arith.constant 0 : i32
    return %c0_i32, %c0_i32_0, %c0_i32_1 : i32, i32, i32
  }
  func.func @transform_23(%arg0: i32) -> (i32, i32, i32) {
    %c0_i32 = arith.constant 0 : i32
    %c0_i32_0 = arith.constant 0 : i32
    %c0_i32_1 = arith.constant 0 : i32
    %c0_i32_2 = arith.constant 0 : i32
    return %c0_i32, %c0_i32_0, %c0_i32_1 : i32, i32, i32
  }
  func.func @transform_24(%arg0: i32) -> (i32, i32, i32) {
    %c0_i32 = arith.constant 0 : i32
    %c0_i32_0 = arith.constant 0 : i32
    %c0_i32_1 = arith.constant 0 : i32
    %c0_i32_2 = arith.constant 0 : i32
    return %c0_i32, %c0_i32_0, %c0_i32_1 : i32, i32, i32
  }
  func.func @transform_25(%arg0: i32) -> (i32, i32, i32) {
    %c0_i32 = arith.constant 0 : i32
    %c0_i32_0 = arith.constant 0 : i32
    %c0_i32_1 = arith.constant 0 : i32
    %c0_i32_2 = arith.constant 0 : i32
    return %c0_i32, %c0_i32_0, %c0_i32_1 : i32, i32, i32
  }
  func.func @transform_26(%arg0: i32) -> (i32, i32, i32) {
    %c0_i32 = arith.constant 0 : i32
    %c0_i32_0 = arith.constant 0 : i32
    %c0_i32_1 = arith.constant 0 : i32
    %c0_i32_2 = arith.constant 0 : i32
    return %c0_i32, %c0_i32_0, %c0_i32_1 : i32, i32, i32
  }
  func.func @transform_27(%arg0: i32) -> (i32, i32) {
    %c0_i32 = arith.constant 0 : i32
    %c0_i32_0 = arith.constant 0 : i32
    %c0_i32_1 = arith.constant 0 : i32
    return %c0_i32, %c0_i32_0 : i32, i32
  }
  func.func @transform_28(%arg0: i32) -> (i32, i32, i32) {
    %c0_i32 = arith.constant 0 : i32
    %c0_i32_0 = arith.constant 0 : i32
    %c0_i32_1 = arith.constant 0 : i32
    return %arg0, %c0_i32, %c0_i32_0 : i32, i32, i32
  }
}

</mosaic_0001>

<bundles_post_ra>
// kernel: lqformer_forward.1
= control target key start
LH: loop header
LB: loop body
LE: loop exit
PB: predicated region body
PF: predicated region fallthrough
CT: control target
= control target key end

     0   :  { %s15456_s0 = inlined_call_operand.vmem [shape: f32[2,8,128], index: 0, kind: input, shape index: {}]   ;;  %s15457_s1 = inlined_call_operand.vmem [shape: f32[2,16,256], index: 1, kind: input, shape index: {}]   ;;  %s15458_s2 = inlined_call_operand.vmem [shape: f32[2,8,128], index: 2, kind: input, shape index: {}]   ;;  %s15459_s3 = inlined_call_operand.vmem [shape: f32[2,1,8], index: 3, kind: input, shape index: {}]   ;;  %s15460_s4 = inlined_call_operand.vmem [shape: bf16[128,128], index: 4, kind: input, shape index: {}]   ;;  %s15461_s5 = inlined_call_operand.vmem [shape: f32[1,128], index: 5, kind: input, shape index: {}]   ;;  %s15462_s6 = inlined_call_operand.vmem [shape: bf16[256,128], index: 6, kind: input, shape index: {}]   ;;  %s15463_s7 = inlined_call_operand.vmem [shape: f32[1,128], index: 7, kind: input, shape index: {}]   ;;  %s15464_s8 = inlined_call_operand.vmem [shape: f32[1,128], index: 8, kind: input, shape index: {}]   ;;  %s15465_s9 = inlined_call_operand.vmem [shape: f32[1,128], index: 9, kind: input, shape index: {}]   ;;  %s15466_s10 = inlined_call_operand.vmem [shape: f32[1,128], index: 10, kind: input, shape index: {}]   ;;  %s15467_s11 = inlined_call_operand.vmem [shape: f32[1,128], index: 11, kind: input, shape index: {}]   ;;  %s15468_s12 = inlined_call_operand.vmem [shape: f32[1,128], index: 12, kind: input, shape index: {}]   ;;  %s15469_s13 = inlined_call_operand.vmem [shape: f32[1,128], index: 13, kind: input, shape index: {}]   ;;  %s15470_s14 = inlined_call_operand.vmem [shape: bf16[4,128,32], index: 14, kind: input, shape index: {}]   ;;  %s15471_s15 = inlined_call_operand.vmem [shape: f32[4,1,32], index: 15, kind: input, shape index: {}]   ;;  %s15472_s16 = inlined_call_operand.vmem [shape: bf16[4,128,32], index: 16, kind: input, shape index: {}]   ;;  %s15473_s17 = inlined_call_operand.vmem [shape: f32[4,1,32], index: 17, kind: input, shape index: {}]   ;;  %s15474_s18 = inlined_call_operand.vmem [shape: bf16[4,128,32], index: 18, kind: input, shape index: {}]   ;;  %s15475_s19 = inlined_call_operand.vmem [shape: f32[4,1,32], index: 19, kind: input, shape index: {}]   ;;  %s15476_s20 = inlined_call_operand.vmem [shape: bf16[4,128,32], index: 20, kind: input, shape index: {}]   ;;  %s15477_s21 = inlined_call_operand.vmem [shape: f32[4,1,32], index: 21, kind: input, shape index: {}]   ;;  %s15478_s22 = inlined_call_operand.vmem [shape: bf16[4,128,32], index: 22, kind: input, shape index: {}]   ;;  %s15479_s23 = inlined_call_operand.vmem [shape: f32[4,1,32], index: 23, kind: input, shape index: {}]   ;;  %s15480_s24 = inlined_call_operand.vmem [shape: bf16[4,256,64], index: 24, kind: input, shape index: {}]   ;;  %s15481_s25 = inlined_call_operand.vmem [shape: f32[4,1,64], index: 25, kind: input, shape index: {}]   ;;  %s15482_s26 = inlined_call_operand.vmem [shape: bf16[4,64,128], index: 26, kind: input, shape index: {}]   ;;  %s15483_s27 = inlined_call_operand.vmem [shape: f32[1,128], index: 27, kind: input, shape index: {}]   ;;  %s15484_s28 = inlined_call_operand.hbm [shape: f32[2,8,128], index: 28, kind: output, shape index: {}]  }
   0x1   :  { %15493 = sst [smem:[#allocation6_spill]] %s15456_s0 }
   0x2   :  { %15494 = sst [smem:[#allocation7_spill]] %s15457_s1 }
   0x3   :  { %15495 = sst [smem:[#allocation8_spill]] %s15458_s2 }
   0x4   :  { %15496 = sst [smem:[#allocation9_spill]] %s15459_s3 }
   0x5   :  { %15497 = sst [smem:[#allocation10_spill]] %s15460_s4 }
   0x6   :  { %15498 = sst [smem:[#allocation11_spill]] %s15461_s5 }
   0x7   :  { %15499 = sst [smem:[#allocation12_spill]] %s15462_s6 }
   0x8   :  { %15500 = sst [smem:[#allocation13_spill]] %s15463_s7 }
   0x9   :  { %15501 = sst [smem:[#allocation14_spill]] %s15464_s8 }
   0xa   :  { %15502 = sst [smem:[#allocation15_spill]] %s15465_s9 }
   0xb   :  { %15503 = sst [smem:[#allocation16_spill]] %s15466_s10 }
   0xc   :  { %15504 = sst [smem:[#allocation17_spill]] %s15467_s11 }
   0xd   :  { %15505 = sst [smem:[#allocation18_spill]] %s15468_s12 }
   0xe   :  { %s15506_s9 = sld [smem:[#allocation10_spill]]  ;;  %s15507_s7 = sld [smem:[#allocation6_spill]]  ;;  %v9158_v6 = vld [vmem:[%s15483_s27] ss:$0 sm:$0xff]  ;;  %v12648_v28 = vmov 0.0  }
   0xf   :  { %s15508_s1 = sld [smem:[#allocation8_spill]]  ;;  %s15509_s3 = sld [smem:[#allocation11_spill]]  ;;  %v12061_v36 = vld [vmem:[%s15470_s14] sm:$0xff]  }
  0x10   :  { %s15510_s10 = sld [smem:[#allocation12_spill]]  ;;  %v12060_v48 = vld [vmem:[%s15472_s16] sm:$0xff]  }
  0x14   :  { %v12036_v0 = vld [vmem:[%s15506_s9] sm:$0xff]   ;;  %v12037_v1 = vld [vmem:[%s15506_s9 + $0x8] sm:$0xff]   ;;  %v12038_v2 = vld [vmem:[%s15506_s9 + $0x10] sm:$0xff]  }
  0x15   :  { %10894 = vmatprep.subr.bf16.mxu0 %v12036_v0  ;;  %v12039_v3 = vld [vmem:[%s15506_s9 + $0x18] sm:$0xff]   ;;  %v91_v4 = vld [vmem:[%s15507_s7] sm:$0xff]  ;;  %v92_v5 = vld [vmem:[%s15507_s7 + $0x8] sm:$0xff] }
  0x16   :  { %10895 = vmatpush3.bf16.msra.mxu0 %v12036_v0  ;;  %v103_v7 = vpack.c.bf16 %v92_v5, %v91_v4  ;;  %v12822_v8 = vadd.f32 %v9158_v6, %v92_v5  ;;  %v12040_v9 = vld [vmem:[%s15506_s9 + $0x20] sm:$0xff]   ;;  %v12041_v10 = vld [vmem:[%s15506_s9 + $0x28] sm:$0xff]   ;;  %v12042_v11 = vld [vmem:[%s15506_s9 + $0x30] sm:$0xff]  }
  0x17   :  { %10896 = vmatprep.subr.bf16.mxu0 %v12037_v1  ;;  %v12043_v12 = vld [vmem:[%s15506_s9 + $0x38] sm:$0xff]   ;;  %v93_v13 = vld [vmem:[%s15508_s1] sm:$0xff]  ;;  %v94_v14 = vld [vmem:[%s15508_s1 + $0x8] sm:$0xff] }
  0x18   :  { %10910 = vmatprep.mubr.bf16.mxu0 %v103_v7  ;;  %v104_v15 = vpack.c.bf16 %v94_v14, %v93_v13  ;;  %v8856_v16 = vld [vmem:[%s15509_s3] ss:$0 sm:$0xff]  ;;  %v12046_v27 = vld [vmem:[%s15510_s10 + $0x48] sm:$0xff]   ;;  %v12048_v30 = vld [vmem:[%s15510_s10 + $0x50] sm:$0xff]   ;;  %s15511_s3 = sld [smem:[#allocation7_spill]] }
  0x19   :  { %v12044_v25 = vld [vmem:[%s15510_s10 + $0x40] sm:$0xff]   ;;  %v12047_v29 = vld [vmem:[%s15510_s10 + $0x8] sm:$0xff]   ;;  %v12049_v34 = vld [vmem:[%s15510_s10 + $0x10] sm:$0xff]  }
  0x1a   :  { %10897 = vmatpush3.bf16.msra.mxu0 %v12037_v1  ;;  %v12045_v26 = vld [vmem:[%s15510_s10] sm:$0xff]   ;;  %10226 = vmatprep.subr.bf16.mxu1 %v12044_v25  ;;  %v12050_v35 = vld [vmem:[%s15510_s10 + $0x58] sm:$0xff]   ;;  %v12054_v40 = vld [vmem:[%s15510_s10 + $0x68] sm:$0xff]  }
  0x1b   :  { %10898 = vmatprep.subr.bf16.mxu0 %v12038_v2  ;;  %10227 = vmatpush3.bf16.msra.mxu1 %v12045_v26  ;;  %v12051_v37 = vld [vmem:[%s15510_s10 + $0x18] sm:$0xff]   ;;  %v12052_v38 = vld [vmem:[%s15510_s10 + $0x60] sm:$0xff]   ;;  %v12055_v41 = vld [vmem:[%s15510_s10 + $0x28] sm:$0xff]  }
  0x1c   :  { %10228 = vmatprep.subr.bf16.mxu1 %v12046_v27  ;;  %v12053_v39 = vld [vmem:[%s15510_s10 + $0x20] sm:$0xff]   ;;  %v12056_v42 = vld [vmem:[%s15510_s10 + $0x70] sm:$0xff]   ;;  %v12058_v44 = vld [vmem:[%s15510_s10 + $0x78] sm:$0xff]  }
  0x1d   :  { %v12057_v43 = vld [vmem:[%s15510_s10 + $0x30] sm:$0xff]   ;;  %v12059_v45 = vld [vmem:[%s15510_s10 + $0x38] sm:$0xff]  }
  0x1e   :  { %10899 = vmatpush3.bf16.msra.mxu0 %v12038_v2  ;;  %v96_v31 = vld [vmem:[%s15511_s3 + $0x8] sm:$0xff]  ;;  %v98_v32 = vld [vmem:[%s15511_s3 + $0x18] sm:$0xff]  ;;  %v95_v46 = vld [vmem:[%s15511_s3] sm:$0xff] }
  0x1f   :  { %10900 = vmatprep.subr.bf16.mxu0 %v12039_v3  ;;  %v12879_v33 = vpack.c.bf16 %v98_v32, %v96_v31  ;;  %10229 = vmatpush3.bf16.msra.mxu1 %v12047_v29  ;;  %v97_v47 = vld [vmem:[%s15511_s3 + $0x10] sm:$0xff] }
  0x20   :  { %10230 = vmatprep.subr.bf16.mxu1 %v12048_v30  ;;  %v12928_v49 = vpack.c.bf16 %v97_v47, %v95_v46 }
  0x21   :  { %396 = vmatprep.mubr.bf16.mxu1 %v12879_v33 }
  0x22   :  { %10901 = vmatpush3.bf16.msra.mxu0 %v12039_v3 }
  0x23   :  { %10902 = vmatprep.subr.bf16.mxu0 %v12040_v9  ;;  %10231 = vmatpush3.bf16.msra.mxu1 %v12049_v34 }
  0x24   :  { %10232 = vmatprep.subr.bf16.mxu1 %v12050_v35 }
  0x26   :  { %10903 = vmatpush3.bf16.msra.mxu0 %v12040_v9 }
  0x27   :  { %10904 = vmatprep.subr.bf16.mxu0 %v12041_v10  ;;  %10233 = vmatpush3.bf16.msra.mxu1 %v12051_v37 }
  0x28   :  { %10234 = vmatprep.subr.bf16.mxu1 %v12052_v38 }
  0x2a   :  { %10905 = vmatpush3.bf16.msra.mxu0 %v12041_v10 }
  0x2b   :  { %10906 = vmatprep.subr.bf16.mxu0 %v12042_v11  ;;  %10235 = vmatpush3.bf16.msra.mxu1 %v12053_v39 }
  0x2c   :  { %10236 = vmatprep.subr.bf16.mxu1 %v12054_v40 }
  0x2e   :  { %10907 = vmatpush3.bf16.msra.mxu0 %v12042_v11 }
  0x2f   :  { %10908 = vmatprep.subr.bf16.mxu0 %v12043_v12  ;;  %10237 = vmatpush3.bf16.msra.mxu1 %v12055_v41 }
  0x30   :  { %10238 = vmatprep.subr.bf16.mxu1 %v12056_v42 }
  0x32   :  { %10909 = vmatpush3.bf16.msra.mxu0 %v12043_v12 }
  0x33   :  { %10914 = vmatprep.subr.bf16.mxu0 %v12648_v28  ;;  %10239 = vmatpush3.bf16.msra.mxu1 %v12057_v43 }
  0x34   :  { %10240 = vmatprep.subr.bf16.mxu1 %v12058_v44 }
  0x35   :  { %10911 = vmatmul.mubr.bf16.vlgmr.msra.gmra.mrb[0].mxu0 %v104_v15 }
  0x36   :  { %10915 = vmatpush3.bf16.msra.mxu0 %v12061_v36 }
  0x37   :  { %10916 = vmatprep.subr.bf16.mxu0 %v12648_v28  ;;  %10241 = vmatpush3.bf16.msra.mxu1 %v12059_v45 }
  0x38   :  { %10934 = vmatprep.subr.bf16.mxu1 %v12648_v28 }
  0x3a   :  { %397 = vmatmul.mubr.bf16.vlgmr.msra.gmra.mrb[0].mxu1 %v12928_v49 }
  0x3b   :  { %10935 = vmatpush3.bf16.msra.mxu1 %v12060_v48 }
  0x3c   :  { %10936 = vmatprep.subr.bf16.mxu1 %v12648_v28 }
 0x108   :  { %v10912_v17 = vpop.f32.mrb[0].mxu0 }
 0x109   :  { %v12845_v18 = vadd.f32 %v10912_v17, %v8856_v16  ;;  %v210_v19 = vpop.f32.mrb[1].mxu0 }
 0x10a   :  { %v12847_v20 = vadd.f32 %v8856_v16, %v210_v19  ;;  %v10913_v21 = vpop.f32.mrb[2].mxu0 }
 0x10b   :  { %455 = vadd.xlane.f32.xlu0 %v12845_v18  ;;  %v213_v22 = vpop.f32.mrb[3].mxu0  ;;  %v12851_v23 = vadd.f32 %v10913_v21, %v8856_v16 }
 0x10c   :  { %413 = vadd.xlane.f32.xlu1 %v12847_v20  ;;  %v12853_v24 = vadd.f32 %v8856_v16, %v213_v22 }
 0x10f   :  { %457 = vadd.xlane.f32.xlu0 %v12851_v23 }
 0x110   :  { %415 = vadd.xlane.f32.xlu1 %v12853_v24 }
 0x111   :  { %33 = vsyncpa [#allocation4], 0  ;;  %v12062_v2 = vld [vmem:[%s15472_s16 + $0x8] sm:$0xff]   ;;  %v12064_v4 = vld [vmem:[%s15472_s16 + $0x10] sm:$0xff]   ;;  %vm12649_vm0 = vmmov 0   ;;  %s15512_s12 = sld [smem:[#allocation16_spill]] }
 0x112   :  { %10937 = vmatpush3.bf16.msra.mxu1 %v12062_v2  ;;  %v12063_v3 = vld [vmem:[%s15470_s14 + $0x8] sm:$0xff]   ;;  %v12065_v5 = vld [vmem:[%s15470_s14 + $0x10] sm:$0xff]   ;;  %v12066_v6 = vld [vmem:[%s15472_s16 + $0x18] sm:$0xff]   ;;  %10930 = vmatprep.mubr.msk.bf16.mxu0 %vm12649_vm0, %v12648_v28  ;;  %s15513_s4 = sld [smem:[#allocation14_spill]]  ;;  %s15514_s5 = sld [smem:[#allocation17_spill]]  ;;  %vm907_vm1 = vcmask 261120  }
 0x113   :  { %10938 = vmatprep.subr.bf16.mxu1 %v12648_v28  ;;  %10917 = vmatpush3.bf16.msra.mxu0 %v12063_v3  ;;  %v12067_v7 = vld [vmem:[%s15470_s14 + $0x18] sm:$0xff]   ;;  %v12068_v9 = vld [vmem:[%s15472_s16 + $0x20] sm:$0xff]   ;;  %v100_v10 = vld [vmem:[%s15511_s3 + $0x28] sm:$0xff]  ;;  %s15515_s6 = sld [smem:[#allocation15_spill]]  ;;  %vm971_vm2 = vcmask 1043456   ;;  %s15517_s2 = sld [smem:[#allocation9_spill]] }
 0x114   :  { %10918 = vmatprep.subr.bf16.mxu0 %v12648_v28  ;;  %v102_v11 = vld [vmem:[%s15511_s3 + $0x38] sm:$0xff]  ;;  %v12069_v13 = vld [vmem:[%s15470_s14 + $0x20] sm:$0xff]   ;;  %v101_v15 = vld [vmem:[%s15511_s3 + $0x30] sm:$0xff]  ;;  %vm954_vm3 = vcmask 64512   ;;  %s12650_s1 = smov 32   ;;  %vm1466_vm4 = vcmask 523520  }
 0x115   :  { %v12986_v12 = vpack.c.bf16 %v102_v11, %v100_v10  ;;  %v99_v14 = vld [vmem:[%s15511_s3 + $0x20] sm:$0xff]  ;;  %v12070_v17 = vld [vmem:[%s15472_s16 + $0x28] sm:$0xff]   ;;  %v12072_v19 = vld [vmem:[%s15472_s16 + $0x30] sm:$0xff]   ;;  %s12651_s0 = smov 64   ;;  %vm1918_vm5 = vcmask 785920   ;;  %s15518_s11 = sld [smem:[#allocation18_spill]] }
 0x116   :  { %10939 = vmatpush3.bf16.msra.mxu1 %v12064_v4  ;;  %v12998_v16 = vpack.c.bf16 %v101_v15, %v99_v14  ;;  %v12074_v21 = vld [vmem:[%s15472_s16 + $0x38] sm:$0xff]   ;;  %v12076_v2 = vld [vmem:[%s15474_s18] sm:$0xff]   ;;  %v12078_v4 = vld [vmem:[%s15474_s18 + $0x10] sm:$0xff]   ;;  %s15492_s9 = smov 96   ;;  %vm2370_vm6 = vcmask 1048320   ;;  %vm2828_vm7 = vcmask 130048  }
 0x117   :  { %10940 = vmatprep.subr.bf16.mxu1 %v12648_v28  ;;  %10919 = vmatpush3.bf16.msra.mxu0 %v12065_v5  ;;  %v12075_v22 = vld [vmem:[%s15470_s14 + $0x38] sm:$0xff]   ;;  %v8884_v45 = vld [vmem:[%s15512_s12] ss:$0 sm:$0xff]  ;;  %v12086_v14 = vld [vmem:[%s15472_s16 + $0x50] sm:$0xff]   ;;  %s15516_s12 = sld [smem:[#allocation13_spill]]  ;;  %vm2918_vm8 = vcmask 523264  }
 0x118   :  { %10920 = vmatprep.subr.bf16.mxu0 %v12648_v28  ;;  %404 = vmatprep.mubr.bf16.mxu1 %v12986_v12  ;;  %v12079_v5 = vld [vmem:[%s15474_s18 + $0x18] sm:$0xff]   ;;  %v12084_v11 = vld [vmem:[%s15472_s16 + $0x40] sm:$0xff]  }
 0x119   :  { %405 = vmatmul.mubr.bf16.gmra.mrb[4].mxu1 %v12998_v16  ;;  %v12083_v10 = vld [vmem:[%s15474_s18 + $0x38] sm:$0xff]  }
 0x11a   :  { %10941 = vmatpush3.bf16.msra.mxu1 %v12066_v6  ;;  %10950 = vmatprep.mubr.msk.bf16.mxu1 %vm12649_vm0, %v12648_v28  ;;  %v12080_v6 = vld [vmem:[%s15474_s18 + $0x20] sm:$0xff]   ;;  %v12087_v15 = vld [vmem:[%s15472_s16 + $0x58] sm:$0xff]  }
 0x11b   :  { %10942 = vmatprep.subr.bf16.mxu1 %v12648_v28  ;;  %10921 = vmatpush3.bf16.msra.mxu0 %v12067_v7  ;;  %v12081_v7 = vld [vmem:[%s15474_s18 + $0x28] sm:$0xff]  }
 0x11c   :  { %10922 = vmatprep.subr.bf16.mxu0 %v12648_v28 }
 0x11e   :  { %10943 = vmatpush3.bf16.msra.mxu1 %v12068_v9  ;;  %v12082_v9 = vld [vmem:[%s15474_s18 + $0x30] sm:$0xff]  }
 0x11f   :  { %10944 = vmatprep.subr.bf16.mxu1 %v12648_v28  ;;  %10923 = vmatpush3.bf16.msra.mxu0 %v12069_v13  ;;  %v12085_v13 = vld [vmem:[%s15472_s16 + $0x48] sm:$0xff]  }
 0x120   :  { %10924 = vmatprep.subr.bf16.mxu0 %v12648_v28 }
 0x122   :  { %10945 = vmatpush3.bf16.msra.mxu1 %v12070_v17  ;;  %v12088_v17 = vld [vmem:[%s15472_s16 + $0x60] sm:$0xff]  }
 0x123   :  { %10946 = vmatprep.subr.bf16.mxu1 %v12648_v28 }
 0x126   :  { %10947 = vmatpush3.bf16.msra.mxu1 %v12072_v19  ;;  %v12090_v19 = vld [vmem:[%s15472_s16 + $0x70] sm:$0xff]  }
 0x127   :  { %10948 = vmatprep.subr.bf16.mxu1 %v12648_v28 }
 0x12a   :  { %10949 = vmatpush3.bf16.msra.mxu1 %v12074_v21 }
 0x12b   :  { %10974 = vmatprep.subr.bf16.mxu1 %v12648_v28 }
 0x198   :  { %v456_v50 = vpop.xlane.xlu0 %455 }
 0x199   :  { %v459_v51 = vmul.f32 0.0078125, %v456_v50  ;;  %v414_v52 = vpop.xlane.xlu1 %413 }
 0x19a   :  { %v418_v53 = vmul.f32 0.0078125, %v414_v52 }
 0x19b   :  { %v12934_v54 = vsub.f32 %v12845_v18, %v459_v51  ;;  %v12071_v18 = vld [vmem:[%s15470_s14 + $0x28] sm:$0xff]   ;;  %v8882_v51 = vld [vmem:[%s15513_s4] ss:$0 sm:$0xff] }
 0x19c   :  { %v458_v55 = vpop.xlane.xlu0 %457  ;;  %v12937_v56 = vsub.f32 %v12847_v20, %v418_v53  ;;  %10925 = vmatpush3.bf16.msra.mxu0 %v12071_v18  ;;  %v12073_v20 = vld [vmem:[%s15470_s14 + $0x30] sm:$0xff]   ;;  %v8885_v53 = vld [vmem:[%s15514_s5] ss:$0 sm:$0xff]  ;;  %v12089_v18 = vld [vmem:[%s15472_s16 + $0x68] sm:$0xff]  }
 0x19d   :  { %v460_v57 = vmul.f32 0.0078125, %v458_v55  ;;  %v416_v58 = vpop.xlane.xlu1 %415  ;;  %v463_v59 = vmul.f32 %v12934_v54, %v12934_v54  ;;  %10926 = vmatprep.subr.bf16.mxu0 %v12648_v28 }
 0x19e   :  { %v419_v60 = vmul.f32 0.0078125, %v416_v58  ;;  %v422_v0 = vmul.f32 %v12937_v56, %v12937_v56 }
 0x19f   :  { %v12942_v61 = vsub.f32 %v12851_v23, %v460_v57  ;;  %465 = vadd.xlane.f32.xlu0 %v463_v59  ;;  %v10242_v23 = vpop.f32.mrb[0].mxu1 }
 0x1a0   :  { %v12945_v62 = vsub.f32 %v12853_v24, %v419_v60  ;;  %10927 = vmatpush3.bf16.msra.mxu0 %v12073_v20  ;;  %v10243_v24 = vpop.f32.mrb[1].mxu1  ;;  %v13126_v20 = vld [vmem:[%s15516_s12] ss:$0 sm:$0xff] }
 0x1a1   :  { %v464_v63 = vmul.f32 %v12942_v61, %v12942_v61  ;;  %10928 = vmatprep.subr.bf16.mxu0 %v12648_v28  ;;  %v13031_v25 = vadd.f32 %v10243_v24, %v10242_v23  ;;  %v10245_v26 = vpop.f32.mrb[2].mxu1 }
 0x1a2   :  { %v423_v1 = vmul.f32 %v12945_v62, %v12945_v62  ;;  %v10246_v27 = vpop.f32.mrb[3].mxu1 }
 0x1a3   :  { %467 = vadd.xlane.f32.xlu1 %v464_v63  ;;  %424 = vadd.xlane.f32.xlu0 %v422_v0  ;;  %v13033_v29 = vadd.f32 %v10246_v27, %v10245_v26 }
 0x1a4   :  { %10929 = vmatpush3.bf16.msra.mxu0 %v12075_v22  ;;  %v12091_v22 = vld [vmem:[%s15472_s16 + $0x78] sm:$0xff]  }
 0x1a5   :  { %10954 = vmatprep.subr.bf16.mxu0 %v12648_v28  ;;  %v13130_v21 = vadd.f32 %v13033_v29, %v13126_v20 }
 0x1a7   :  { %426 = vadd.xlane.f32.xlu1 %v423_v1 }
 0x1ec   :  { %v10248_v23 = vpop.f32.mrb[4].mxu1 }
 0x1ed   :  { %v10249_v24 = vpop.f32.mrb[5].mxu1 }
 0x1ee   :  { %v10250_v26 = vadd.f32 %v10249_v24, %v10248_v23  ;;  %v10251_v27 = vpop.f32.mrb[6].mxu1  ;;  %v12092_v24 = vld [vmem:[%s15470_s14 + $0x40] sm:$0xff]  }
 0x1ef   :  { %v10252_v29 = vpop.f32.mrb[7].mxu1 }
 0x22c   :  { %v466_v30 = vpop.xlane.xlu0 %465 }
 0x22d   :  { %v469_v31 = vmul.f32 0.0078125, %v466_v30  ;;  %v10253_v30 = vadd.f32 %v10252_v29, %v10251_v27  ;;  %v12093_v27 = vld [vmem:[%s15470_s14 + $0x48] sm:$0xff]   ;;  %v12094_v29 = vld [vmem:[%s15470_s14 + $0x50] sm:$0xff]  }
 0x22f   :  { %v471_v32 = vadd.f32 1e-05, %v469_v31  ;;  %v13141_v31 = vadd.f32 %v10250_v26, %v13126_v20 }
 0x230   :  { %v425_v34 = vpop.xlane.xlu0 %424  ;;  %v468_v35 = vpop.xlane.xlu1 %467 }
 0x231   :  { %12540 = vrsqrt.f32 %v471_v32  ;;  %v428_v36 = vmul.f32 0.0078125, %v425_v34  ;;  %v470_v37 = vmul.f32 0.0078125, %v468_v35  ;;  %v13144_v32 = vadd.f32 %v10253_v30, %v13126_v20  ;;  %v8897_v34 = vld [vmem:[%s15473_s17] ss:$0 sm:$0xff]  ;;  %v12095_v30 = vld [vmem:[%s15470_s14 + $0x58] sm:$0xff]  }
 0x233   :  { %v430_v38 = vadd.f32 1e-05, %v428_v36  ;;  %v472_v39 = vadd.f32 1e-05, %v470_v37 }
 0x234   :  { %v427_v40 = vpop.xlane.xlu1 %426 }
 0x235   :  { %12542 = vrsqrt.f32 %v430_v38  ;;  %v429_v41 = vmul.f32 0.0078125, %v427_v40 }
 0x236   :  { %12544 = vrsqrt.f32 %v472_v39 }
 0x237   :  { %v431_v42 = vadd.f32 1e-05, %v429_v41 }
 0x239   :  { %12546 = vrsqrt.f32 %v431_v42  ;;  %v8888_v42 = vld [vmem:[%s15471_s15] ss:$0 sm:$0xff] }
 0x23b   :  { %v12541_v43 = vpop.eup %12540 }
 0x23c   :  { %v475_v44 = vmul.f32 %v12541_v43, %v12934_v54 }
 0x23e   :  { %v484_v50 = vmul.f32 %v8884_v45, %v475_v44 }
 0x23f   :  { %v12543_v46 = vpop.eup %12542 }
 0x240   :  { %v12545_v47 = vpop.eup %12544  ;;  %v434_v48 = vmul.f32 %v12543_v46, %v12937_v56  ;;  %v493_v59 = vadd.f32 %v8885_v53, %v484_v50  ;;  %v8883_v56 = vld [vmem:[%s15515_s6] ss:$0 sm:$0xff] }
 0x241   :  { %v476_v52 = vmul.f32 %v12545_v47, %v12942_v61  ;;  %v8906_v50 = vld [vmem:[%s15475_s19] ss:$0 sm:$0xff] }
 0x242   :  { %v443_v57 = vmul.f32 %v8882_v51, %v434_v48 }
 0x243   :  { %v12547_v54 = vpop.eup %12546  ;;  %v485_v55 = vmul.f32 %v8884_v45, %v476_v52 }
 0x244   :  { %v435_v58 = vmul.f32 %v12547_v54, %v12945_v62  ;;  %v452_v1 = vadd.f32 %v8883_v56, %v443_v57  ;;  %v12077_v62 = vld [vmem:[%s15474_s18 + $0x8] sm:$0xff]  }
 0x245   :  { %v494_v60 = vadd.f32 %v8885_v53, %v485_v55 }
 0x246   :  { %v444_v63 = vmul.f32 %v8882_v51, %v435_v58 }
 0x247   :  { %v13051_v0 = vpack.c.bf16 %v494_v60, %v493_v59  ;;  %v8961_v59 = vld [vmem:[%s15473_s17 + $0x1] ss:$0 sm:$0xff] }
 0x248   :  { %v453_v61 = vadd.f32 %v8883_v56, %v444_v63 }
 0x249   :  { %10951 = vmatmul.mubr.bf16.vlgmr.msra.gmra.mrb[8].mxu1 %v13051_v0 }
 0x24a   :  { %v13057_v3 = vpack.c.bf16 %v453_v61, %v452_v1  ;;  %10976 = vmatprep.mubr.msk.bf16.mxu1 %vm12649_vm0, %v12648_v28 }
 0x24c   :  { %10931 = vmatmul.mubr.bf16.vlgmr.msra.gmra.mrb[4].mxu0 %v13057_v3 }
 0x24d   :  { %10955 = vmatpush3.bf16.msra.mxu0 %v12076_v2  ;;  %10970 = vmatprep.mubr.msk.bf16.mxu0 %vm12649_vm0, %v12648_v28 }
 0x24e   :  { %10956 = vmatprep.subr.bf16.mxu0 %v12648_v28 }
 0x251   :  { %10957 = vmatpush3.bf16.msra.mxu0 %v12077_v62 }
 0x252   :  { %10958 = vmatprep.subr.bf16.mxu0 %v12648_v28 }
 0x255   :  { %10959 = vmatpush3.bf16.msra.mxu0 %v12078_v4  ;;  %v13170_v4 = vld [vmem:[%s15517_s2] ss:$0 sm:$0xff] }
 0x256   :  { %10960 = vmatprep.subr.bf16.mxu0 %v12648_v28 }
 0x259   :  { %10961 = vmatpush3.bf16.msra.mxu0 %v12079_v5 }
 0x25a   :  { %10962 = vmatprep.subr.bf16.mxu0 %v12648_v28 }
 0x25d   :  { %10963 = vmatpush3.bf16.msra.mxu0 %v12080_v6 }
 0x25e   :  { %10964 = vmatprep.subr.bf16.mxu0 %v12648_v28 }
 0x261   :  { %10965 = vmatpush3.bf16.msra.mxu0 %v12081_v7 }
 0x262   :  { %10966 = vmatprep.subr.bf16.mxu0 %v12648_v28 }
 0x265   :  { %10967 = vmatpush3.bf16.msra.mxu0 %v12082_v9 }
 0x266   :  { %10968 = vmatprep.subr.bf16.mxu0 %v12648_v28 }
 0x269   :  { %10969 = vmatpush3.bf16.msra.mxu0 %v12083_v10 }
 0x26a   :  { %11006 = vmatprep.subr.bf16.mxu0 %v12648_v28 }
 0x26c   :  { %10971 = vmatmul.mubr.bf16.vlgmr.msra.gmra.mrb[8].mxu0 %v13051_v0 }
 0x26d   :  { %11007 = vmatpush3.bf16.msra.mxu0 %v12084_v11  ;;  %11022 = vmatprep.mubr.msk.bf16.mxu0 %vm12649_vm0, %v12648_v28 }
 0x26e   :  { %11008 = vmatprep.subr.bf16.mxu0 %v12648_v28 }
 0x271   :  { %11009 = vmatpush3.bf16.msra.mxu0 %v12085_v13 }
 0x272   :  { %11010 = vmatprep.subr.bf16.mxu0 %v12648_v28 }
 0x275   :  { %11011 = vmatpush3.bf16.msra.mxu0 %v12086_v14 }
 0x276   :  { %11012 = vmatprep.subr.bf16.mxu0 %v12648_v28 }
 0x279   :  { %11013 = vmatpush3.bf16.msra.mxu0 %v12087_v15 }
 0x27a   :  { %11014 = vmatprep.subr.bf16.mxu0 %v12648_v28 }
 0x27d   :  { %11015 = vmatpush3.bf16.msra.mxu0 %v12088_v17 }
 0x27e   :  { %11016 = vmatprep.subr.bf16.mxu0 %v12648_v28 }
 0x281   :  { %11017 = vmatpush3.bf16.msra.mxu0 %v12089_v18 }
 0x282   :  { %11018 = vmatprep.subr.bf16.mxu0 %v12648_v28 }
 0x285   :  { %11019 = vmatpush3.bf16.msra.mxu0 %v12090_v19 }
 0x286   :  { %11020 = vmatprep.subr.bf16.mxu0 %v12648_v28 }
 0x289   :  { %11021 = vmatpush3.bf16.msra.mxu0 %v12091_v22 }
 0x28a   :  { %11046 = vmatprep.subr.bf16.mxu0 %v12648_v28 }
 0x28c   :  { %11023 = vmatmul.mubr.bf16.vlgmr.msra.gmra.mrb[12].mxu0 %v13051_v0 }
 0x28d   :  { %11048 = vmatprep.mubr.msk.bf16.mxu0 %vm12649_vm0, %v12648_v28 }
 0x31c   :  { %v782_v35 = vpop.f32.mrb[8].mxu1 }
 0x31d   :  { %v783_v36 = vadd.f32 %v8897_v34, %v782_v35  ;;  %v10952_v37 = vpop.f32.mrb[9].mxu1  ;;  %v12096_v34 = vld [vmem:[%s15470_s14 + $0x60] sm:$0xff]   ;;  %v12097_v35 = vld [vmem:[%s15470_s14 + $0x68] sm:$0xff]  }
 0x31e   :  { %v785_v38 = vpop.f32.mrb[10].mxu1  ;;  %v12099_v37 = vld [vmem:[%s15470_s14 + $0x78] sm:$0xff]  }
 0x31f   :  { %v900_v39 = vpack.c.bf16 %v783_v36, %v783_v36  ;;  %v10953_v40 = vpop.f32.mrb[11].mxu1  ;;  %v671_v41 = vpop.f32.mrb[4].mxu0  ;;  %v12098_v36 = vld [vmem:[%s15470_s14 + $0x70] sm:$0xff]   ;;  %v12100_v38 = vld [vmem:[%s15474_s18 + $0x40] sm:$0xff]  }
 0x320   :  { %v10932_v43 = vpop.f32.mrb[5].mxu0  ;;  %v672_v47 = vadd.f32 %v8888_v42, %v671_v41  ;;  %v12102_v40 = vld [vmem:[%s15474_s18 + $0x50] sm:$0xff]   ;;  %v12103_v41 = vld [vmem:[%s15474_s18 + $0x58] sm:$0xff]   ;;  %v12104_v42 = vld [vmem:[%s15474_s18 + $0x60] sm:$0xff]  }
 0x321   :  { %v912_v44 = vsel %vm907_vm1, %v900_v39, 0  ;;  %v674_v45 = vpop.f32.mrb[6].mxu0  ;;  %v12101_v39 = vld [vmem:[%s15474_s18 + $0x48] sm:$0xff]  }
 0x322   :  { %10975 = vmatpush3.bf16.xpose.msra.mxu1 %v912_v44  ;;  %v10933_v46 = vpop.f32.mrb[7].mxu0  ;;  %v899_v48 = vpack.c.bf16 %v672_v47, %v672_v47  ;;  %v12105_v43 = vld [vmem:[%s15474_s18 + $0x68] sm:$0xff]   ;;  %v12106_v44 = vld [vmem:[%s15474_s18 + $0x70] sm:$0xff]   ;;  %v12107_v45 = vld [vmem:[%s15474_s18 + $0x78] sm:$0xff]  }
 0x323   :  { %10980 = vmatprep.subr.bf16.mxu1 %v12648_v28  ;;  %v12108_v46 = vld [vmem:[%s15472_s16 + $0x80] sm:$0xff]   ;;  %v12109_v47 = vld [vmem:[%s15472_s16 + $0x88] sm:$0xff]  }
 0x329   :  { %10977 = vmatmul.mubr.msk.bf16.vlgmr.msra.gmra.mrb[12].mxu1 %vm907_vm1, %v899_v48  ;;  %v12110_v48 = vld [vmem:[%s15472_s16 + $0x90] sm:$0xff]  }
 0x32a   :  { %10982 = vmatprep.mubr.msk.bf16.mxu1 %vm12649_vm0, %v12648_v28 }
 0x33f   :  { %v893_v51 = vpop.f32.mrb[8].mxu0 }
 0x340   :  { %v894_v52 = vadd.f32 %v8906_v50, %v893_v51  ;;  %v10972_v53 = vpop.f32.mrb[9].mxu0  ;;  %v12111_v50 = vld [vmem:[%s15472_s16 + $0x98] sm:$0xff]   ;;  %v12112_v51 = vld [vmem:[%s15472_s16 + $0xa0] sm:$0xff]  }
 0x341   :  { %v896_v54 = vpop.f32.mrb[10].mxu0  ;;  %v12114_v53 = vld [vmem:[%s15472_s16 + $0xb0] sm:$0xff]  }
 0x342   :  { %v967_v55 = vpack.c.bf16 %v894_v52, %v894_v52  ;;  %v10973_v57 = vpop.f32.mrb[11].mxu0  ;;  %v12113_v52 = vld [vmem:[%s15472_s16 + $0xa8] sm:$0xff]   ;;  %v12115_v54 = vld [vmem:[%s15472_s16 + $0xb8] sm:$0xff]  }
 0x344   :  { %v973_v58 = vsel %vm971_vm2, %v967_v55, 0 }
 0x345   :  { %10981 = vmatpush3.bf16.msra.mxu1 %v973_v58 }
 0x346   :  { %10986 = vmatprep.subr.bf16.mxu1 %v12648_v28 }
 0x35f   :  { %v1236_v60 = vpop.f32.mrb[12].mxu0 }
 0x360   :  { %v1237_v56 = vadd.f32 %v8961_v59, %v1236_v60  ;;  %v11024_v63 = vpop.f32.mrb[13].mxu0  ;;  %v8935_v60 = vld [vmem:[%s15471_s15 + $0x1] ss:$0 sm:$0xff] }
 0x361   :  { %v1239_v1 = vpop.f32.mrb[14].mxu0 }
 0x362   :  { %v1356_v61 = vpack.c.bf16 %v1237_v56, %v1237_v56  ;;  %v11025_v2 = vpop.f32.mrb[15].mxu0 }
 0x364   :  { %v1361_v62 = vsel %vm907_vm1, %v1356_v61, 0 }
 0x365   :  { %11047 = vmatpush3.bf16.xpose.msra.mxu0 %v1361_v62 }
 0x366   :  { %11052 = vmatprep.subr.bf16.mxu0 %v12648_v28 }
 0x3fc   :  { %v948_v5 = vpop.f32.mrb[12].mxu1 }
 0x3fd   :  { %v949_v6 = vadd.f32 %v13170_v4, %v948_v5  ;;  %v10978_v7 = vpop.f32.mrb[13].mxu1  ;;  %v8987_v5 = vld [vmem:[%s15475_s19 + $0x1] ss:$0 sm:$0xff] }
 0x3fe   :  { %v951_v9 = vpop.f32.mrb[14].mxu1 }
 0x3ff   :  { %v10979_v10 = vpop.f32.mrb[15].mxu1  ;;  %v955_v11 = vsel %vm954_vm3, %v949_v6, -inf }
 0x400   :  { %956 = vmax.xlane.f32.xlu0 %v955_v11 }
 0x48d   :  { %v957_v13 = vpop.xlane.xlu0 %956 }
 0x48e   :  { %v958_v14 = vsub.f32 %v949_v6, %v957_v13 }
 0x490   :  { %v959_v15 = vmul.f32 1.442695, %v958_v14 }
 0x492   :  { %12548 = vpow2.f32 %v959_v15  ;;  %v9041_v15 = vld [vmem:[%s15473_s17 + $0x2] ss:$0 sm:$0xff] }
 0x49c   :  { %v12549_v17 = vpop.eup %12548 }
 0x49d   :  { %v961_v18 = vsel %vm954_vm3, %v12549_v17, 0.0 }
 0x49e   :  { %962 = vadd.xlane.f32.xlu1 %v961_v18 }
 0x52b   :  { %v963_v19 = vpop.xlane.xlu1 %962 }
 0x52c   :  { %12550 = vrcp.f32 %v963_v19 }
 0x536   :  { %v12551_v22 = vpop.eup %12550 }
 0x537   :  { %v965_v23 = vmul.f32 %v12551_v22, %v12549_v17 }
 0x539   :  { %v966_v26 = vpack.c.bf16 %v965_v23, %v965_v23 }
 0x53b   :  { %10983 = vmatmul.mubr.msk.bf16.vlgmr.msra.gmra.mrb[16].mxu1 %vm954_vm3, %v966_v26 }
 0x53c   :  { %10987 = vmatpush3.bf16.msra.mxu1 %v12092_v24  ;;  %11002 = vmatprep.mubr.msk.bf16.mxu1 %vm12649_vm0, %v12648_v28 }
 0x53d   :  { %10988 = vmatprep.subr.bf16.mxu1 %v12648_v28 }
 0x540   :  { %10989 = vmatpush3.bf16.msra.mxu1 %v12093_v27 }
 0x541   :  { %10990 = vmatprep.subr.bf16.mxu1 %v12648_v28 }
 0x544   :  { %10991 = vmatpush3.bf16.msra.mxu1 %v12094_v29 }
 0x545   :  { %10992 = vmatprep.subr.bf16.mxu1 %v12648_v28 }
 0x548   :  { %10993 = vmatpush3.bf16.msra.mxu1 %v12095_v30 }
 0x549   :  { %10994 = vmatprep.subr.bf16.mxu1 %v12648_v28 }
 0x54c   :  { %10995 = vmatpush3.bf16.msra.mxu1 %v12096_v34 }
 0x54d   :  { %10996 = vmatprep.subr.bf16.mxu1 %v12648_v28 }
 0x550   :  { %10997 = vmatpush3.bf16.msra.mxu1 %v12097_v35 }
 0x551   :  { %10998 = vmatprep.subr.bf16.mxu1 %v12648_v28 }
 0x554   :  { %10999 = vmatpush3.bf16.msra.mxu1 %v12098_v36 }
 0x555   :  { %11000 = vmatprep.subr.bf16.mxu1 %v12648_v28 }
 0x558   :  { %11001 = vmatpush3.bf16.msra.mxu1 %v12099_v37 }
 0x559   :  { %11026 = vmatprep.subr.bf16.mxu1 %v12648_v28 }
 0x55b   :  { %11003 = vmatmul.mubr.bf16.vlgmr.msra.gmra.mrb[20].mxu1 %v13057_v3 }
 0x55c   :  { %11027 = vmatpush3.bf16.msra.mxu1 %v12100_v38  ;;  %11042 = vmatprep.mubr.msk.bf16.mxu1 %vm12649_vm0, %v12648_v28 }
 0x55d   :  { %11028 = vmatprep.subr.bf16.mxu1 %v12648_v28 }
 0x560   :  { %11029 = vmatpush3.bf16.msra.mxu1 %v12101_v39 }
 0x561   :  { %11030 = vmatprep.subr.bf16.mxu1 %v12648_v28 }
 0x564   :  { %11031 = vmatpush3.bf16.msra.mxu1 %v12102_v40 }
 0x565   :  { %11032 = vmatprep.subr.bf16.mxu1 %v12648_v28 }
 0x568   :  { %11033 = vmatpush3.bf16.msra.mxu1 %v12103_v41 }
 0x569   :  { %11034 = vmatprep.subr.bf16.mxu1 %v12648_v28 }
 0x56c   :  { %11035 = vmatpush3.bf16.msra.mxu1 %v12104_v42 }
 0x56d   :  { %11036 = vmatprep.subr.bf16.mxu1 %v12648_v28 }
 0x570   :  { %11037 = vmatpush3.bf16.msra.mxu1 %v12105_v43 }
 0x571   :  { %11038 = vmatprep.subr.bf16.mxu1 %v12648_v28 }
 0x574   :  { %11039 = vmatpush3.bf16.msra.mxu1 %v12106_v44 }
 0x575   :  { %11040 = vmatprep.subr.bf16.mxu1 %v12648_v28 }
 0x578   :  { %11041 = vmatpush3.bf16.msra.mxu1 %v12107_v45  ;;  %v12116_v45 = vld [vmem:[%s15470_s14 + $0x80] sm:$0xff]  }
 0x579   :  { %11078 = vmatprep.subr.bf16.mxu1 %v12648_v28 }
 0x57b   :  { %11043 = vmatmul.mubr.bf16.vlgmr.msra.gmra.mrb[24].mxu1 %v13051_v0 }
 0x57c   :  { %11079 = vmatpush3.bf16.msra.mxu1 %v12108_v46  ;;  %11094 = vmatprep.mubr.msk.bf16.mxu1 %vm12649_vm0, %v12648_v28 }
 0x57d   :  { %11080 = vmatprep.subr.bf16.mxu1 %v12648_v28 }
 0x580   :  { %11081 = vmatpush3.bf16.msra.mxu1 %v12109_v47  ;;  %v12117_v47 = vld [vmem:[%s15470_s14 + $0x88] sm:$0xff]  }
 0x581   :  { %11082 = vmatprep.subr.bf16.mxu1 %v12648_v28 }
 0x584   :  { %11083 = vmatpush3.bf16.msra.mxu1 %v12110_v48  ;;  %v12118_v48 = vld [vmem:[%s15470_s14 + $0x90] sm:$0xff]  }
 0x585   :  { %11084 = vmatprep.subr.bf16.mxu1 %v12648_v28 }
 0x588   :  { %11085 = vmatpush3.bf16.msra.mxu1 %v12111_v50  ;;  %v12119_v50 = vld [vmem:[%s15470_s14 + $0x98] sm:$0xff]  }
 0x589   :  { %11086 = vmatprep.subr.bf16.mxu1 %v12648_v28 }
 0x58c   :  { %11087 = vmatpush3.bf16.msra.mxu1 %v12112_v51  ;;  %v12120_v51 = vld [vmem:[%s15470_s14 + $0xa0] sm:$0xff]  }
 0x58d   :  { %11088 = vmatprep.subr.bf16.mxu1 %v12648_v28 }
 0x590   :  { %11089 = vmatpush3.bf16.msra.mxu1 %v12113_v52  ;;  %v12121_v52 = vld [vmem:[%s15470_s14 + $0xa8] sm:$0xff]  }
 0x591   :  { %11090 = vmatprep.subr.bf16.mxu1 %v12648_v28 }
 0x594   :  { %11091 = vmatpush3.bf16.msra.mxu1 %v12114_v53  ;;  %v12122_v53 = vld [vmem:[%s15470_s14 + $0xb0] sm:$0xff]  }
 0x595   :  { %11092 = vmatprep.subr.bf16.mxu1 %v12648_v28 }
 0x598   :  { %11093 = vmatpush3.bf16.msra.mxu1 %v12115_v54  ;;  %v12123_v54 = vld [vmem:[%s15470_s14 + $0xb8] sm:$0xff]  }
 0x599   :  { %11118 = vmatprep.subr.bf16.mxu1 %v12648_v28 }
 0x59b   :  { %11095 = vmatmul.mubr.bf16.vlgmr.msra.gmra.mrb[28].mxu1 %v13051_v0 }
 0x59c   :  { %11120 = vmatprep.mubr.msk.bf16.mxu1 %vm12649_vm0, %v12648_v28 }
 0x60e   :  { %v1009_v55 = vpop.f32.mrb[16].mxu1 }
 0x60f   :  { %1015 = vst.msk [vmem:[#allocation2] sm:$0xff] %vm907_vm1, %v1009_v55  ;;  %v10984_v57 = vpop.f32.mrb[17].mxu1  ;;  %v12124_v55 = vld [vmem:[%s15474_s18 + $0x80] sm:$0xff]  }
 0x610   :  { %v1012_v58 = vpop.f32.mrb[18].mxu1  ;;  %v12125_v57 = vld [vmem:[%s15474_s18 + $0x88] sm:$0xff]  }
 0x611   :  { %v10985_v59 = vpop.f32.mrb[19].mxu1  ;;  %v12126_v58 = vld [vmem:[%s15474_s18 + $0x90] sm:$0xff]  }
 0x612   :  { %v12127_v59 = vld [vmem:[%s15474_s18 + $0x98] sm:$0xff]  }
 0x62e   :  { %v1123_v56 = vpop.f32.mrb[20].mxu1 }
 0x62f   :  { %v1124_v63 = vadd.f32 %v8935_v60, %v1123_v56  ;;  %v11004_v1 = vpop.f32.mrb[21].mxu1  ;;  %v12128_v60 = vld [vmem:[%s15474_s18 + $0xa0] sm:$0xff]   ;;  %v12129_v56 = vld [vmem:[%s15474_s18 + $0xa8] sm:$0xff]  }
 0x630   :  { %v1126_v61 = vpop.f32.mrb[22].mxu1  ;;  %v12131_v1 = vld [vmem:[%s15474_s18 + $0xb8] sm:$0xff]  }
 0x631   :  { %v1355_v2 = vpack.c.bf16 %v1124_v63, %v1124_v63  ;;  %v11005_v62 = vpop.f32.mrb[23].mxu1  ;;  %v12130_v63 = vld [vmem:[%s15474_s18 + $0xb0] sm:$0xff]   ;;  %v12132_v61 = vld [vmem:[%s15472_s16 + $0xc0] sm:$0xff]  }
 0x632   :  { %v12134_v62 = vld [vmem:[%s15472_s16 + $0xd0] sm:$0xff]  }
 0x633   :  { %11049 = vmatmul.mubr.msk.bf16.vlgmr.msra.gmra.mrb[16].mxu0 %vm907_vm1, %v1355_v2  ;;  %v12133_v2 = vld [vmem:[%s15472_s16 + $0xc8] sm:$0xff]  }
 0x634   :  { %11054 = vmatprep.mubr.msk.bf16.mxu0 %vm12649_vm0, %v12648_v28 }
 0x64e   :  { %v1349_v6 = vpop.f32.mrb[24].mxu1 }
 0x64f   :  { %v1350_v7 = vadd.f32 %v8987_v5, %v1349_v6  ;;  %v11044_v9 = vpop.f32.mrb[25].mxu1  ;;  %v12135_v5 = vld [vmem:[%s15472_s16 + $0xd8] sm:$0xff]   ;;  %v12136_v6 = vld [vmem:[%s15472_s16 + $0xe0] sm:$0xff]  }
 0x650   :  { %v1352_v10 = vpop.f32.mrb[26].mxu1  ;;  %v12138_v9 = vld [vmem:[%s15472_s16 + $0xf0] sm:$0xff]  }
 0x651   :  { %v1415_v11 = vpack.c.bf16 %v1350_v7, %v1350_v7  ;;  %v11045_v13 = vpop.f32.mrb[27].mxu1  ;;  %v12137_v7 = vld [vmem:[%s15472_s16 + $0xe8] sm:$0xff]   ;;  %v12139_v10 = vld [vmem:[%s15472_s16 + $0xf8] sm:$0xff]  }
 0x653   :  { %v1420_v14 = vsel %vm971_vm2, %v1415_v11, 0 }
 0x654   :  { %11053 = vmatpush3.bf16.msra.mxu0 %v1420_v14 }
 0x655   :  { %11058 = vmatprep.subr.bf16.mxu0 %v12648_v28 }
 0x66e   :  { %v1688_v17 = vpop.f32.mrb[28].mxu1 }
 0x66f   :  { %v1689_v18 = vadd.f32 %v9041_v15, %v1688_v17  ;;  %v11096_v19 = vpop.f32.mrb[29].mxu1  ;;  %v9015_v17 = vld [vmem:[%s15471_s15 + $0x2] ss:$0 sm:$0xff] }
 0x670   :  { %v1691_v22 = vpop.f32.mrb[30].mxu1 }
 0x671   :  { %v1808_v23 = vpack.c.bf16 %v1689_v18, %v1689_v18  ;;  %v11097_v24 = vpop.f32.mrb[31].mxu1 }
 0x673   :  { %v1813_v26 = vsel %vm907_vm1, %v1808_v23, 0 }
 0x674   :  { %11119 = vmatpush3.bf16.xpose.msra.mxu1 %v1813_v26 }
 0x675   :  { %11124 = vmatprep.subr.bf16.mxu1 %v12648_v28 }
 0x706   :  { %v1397_v27 = vpop.f32.mrb[16].mxu0 }
 0x707   :  { %v1398_v29 = vadd.f32 %v13170_v4, %v1397_v27  ;;  %v11050_v30 = vpop.f32.mrb[17].mxu0  ;;  %v9067_v27 = vld [vmem:[%s15475_s19 + $0x2] ss:$0 sm:$0xff] }
 0x708   :  { %v1400_v34 = vpop.f32.mrb[18].mxu0 }
 0x709   :  { %v11051_v35 = vpop.f32.mrb[19].mxu0  ;;  %v1403_v36 = vsel %vm954_vm3, %v1398_v29, -inf }
 0x70a   :  { %1404 = vmax.xlane.f32.xlu0 %v1403_v36 }
 0x797   :  { %v1405_v37 = vpop.xlane.xlu0 %1404 }
 0x798   :  { %v1406_v38 = vsub.f32 %v1398_v29, %v1405_v37 }
 0x79a   :  { %v1407_v39 = vmul.f32 1.442695, %v1406_v38 }
 0x79c   :  { %12552 = vpow2.f32 %v1407_v39  ;;  %v9121_v39 = vld [vmem:[%s15473_s17 + $0x3] ss:$0 sm:$0xff] }
 0x7a6   :  { %v12553_v40 = vpop.eup %12552 }
 0x7a7   :  { %v1409_v41 = vsel %vm954_vm3, %v12553_v40, 0.0 }
 0x7a8   :  { %1410 = vadd.xlane.f32.xlu1 %v1409_v41 }
 0x835   :  { %v1411_v42 = vpop.xlane.xlu1 %1410 }
 0x836   :  { %12554 = vrcp.f32 %v1411_v42 }
 0x840   :  { %v12555_v43 = vpop.eup %12554 }
 0x841   :  { %v1413_v44 = vmul.f32 %v12555_v43, %v12553_v40 }
 0x843   :  { %v1414_v46 = vpack.c.bf16 %v1413_v44, %v1413_v44 }
 0x845   :  { %11055 = vmatmul.mubr.msk.bf16.vlgmr.msra.gmra.mrb[20].mxu0 %vm954_vm3, %v1414_v46 }
 0x846   :  { %11059 = vmatpush3.bf16.msra.mxu0 %v12116_v45  ;;  %11074 = vmatprep.mubr.msk.bf16.mxu0 %vm12649_vm0, %v12648_v28 }
 0x847   :  { %11060 = vmatprep.subr.bf16.mxu0 %v12648_v28 }
 0x84a   :  { %11061 = vmatpush3.bf16.msra.mxu0 %v12117_v47 }
 0x84b   :  { %11062 = vmatprep.subr.bf16.mxu0 %v12648_v28 }
 0x84e   :  { %11063 = vmatpush3.bf16.msra.mxu0 %v12118_v48 }
 0x84f   :  { %11064 = vmatprep.subr.bf16.mxu0 %v12648_v28 }
 0x852   :  { %11065 = vmatpush3.bf16.msra.mxu0 %v12119_v50 }
 0x853   :  { %11066 = vmatprep.subr.bf16.mxu0 %v12648_v28 }
 0x856   :  { %11067 = vmatpush3.bf16.msra.mxu0 %v12120_v51 }
 0x857   :  { %11068 = vmatprep.subr.bf16.mxu0 %v12648_v28 }
 0x85a   :  { %11069 = vmatpush3.bf16.msra.mxu0 %v12121_v52 }
 0x85b   :  { %11070 = vmatprep.subr.bf16.mxu0 %v12648_v28 }
 0x85e   :  { %11071 = vmatpush3.bf16.msra.mxu0 %v12122_v53 }
 0x85f   :  { %11072 = vmatprep.subr.bf16.mxu0 %v12648_v28 }
 0x862   :  { %11073 = vmatpush3.bf16.msra.mxu0 %v12123_v54 }
 0x863   :  { %11098 = vmatprep.subr.bf16.mxu0 %v12648_v28 }
 0x865   :  { %11075 = vmatmul.mubr.bf16.vlgmr.msra.gmra.mrb[24].mxu0 %v13057_v3 }
 0x866   :  { %11099 = vmatpush3.bf16.msra.mxu0 %v12124_v55  ;;  %11114 = vmatprep.mubr.msk.bf16.mxu0 %vm12649_vm0, %v12648_v28 }
 0x867   :  { %11100 = vmatprep.subr.bf16.mxu0 %v12648_v28 }
 0x86a   :  { %11101 = vmatpush3.bf16.msra.mxu0 %v12125_v57 }
 0x86b   :  { %11102 = vmatprep.subr.bf16.mxu0 %v12648_v28 }
 0x86e   :  { %11103 = vmatpush3.bf16.msra.mxu0 %v12126_v58 }
 0x86f   :  { %11104 = vmatprep.subr.bf16.mxu0 %v12648_v28 }
 0x872   :  { %11105 = vmatpush3.bf16.msra.mxu0 %v12127_v59 }
 0x873   :  { %11106 = vmatprep.subr.bf16.mxu0 %v12648_v28 }
 0x876   :  { %11107 = vmatpush3.bf16.msra.mxu0 %v12128_v60 }
 0x877   :  { %11108 = vmatprep.subr.bf16.mxu0 %v12648_v28 }
 0x87a   :  { %11109 = vmatpush3.bf16.msra.mxu0 %v12129_v56 }
 0x87b   :  { %11110 = vmatprep.subr.bf16.mxu0 %v12648_v28 }
 0x87e   :  { %11111 = vmatpush3.bf16.msra.mxu0 %v12130_v63 }
 0x87f   :  { %11112 = vmatprep.subr.bf16.mxu0 %v12648_v28 }
 0x882   :  { %11113 = vmatpush3.bf16.msra.mxu0 %v12131_v1  ;;  %v12140_v1 = vld [vmem:[%s15470_s14 + $0xc0] sm:$0xff]  }
 0x883   :  { %11150 = vmatprep.subr.bf16.mxu0 %v12648_v28 }
 0x885   :  { %11115 = vmatmul.mubr.bf16.vlgmr.msra.gmra.mrb[28].mxu0 %v13051_v0 }
 0x886   :  { %11151 = vmatpush3.bf16.msra.mxu0 %v12132_v61  ;;  %11166 = vmatprep.mubr.msk.bf16.mxu0 %vm12649_vm0, %v12648_v28 }
 0x887   :  { %11152 = vmatprep.subr.bf16.mxu0 %v12648_v28 }
 0x88a   :  { %11153 = vmatpush3.bf16.msra.mxu0 %v12133_v2  ;;  %v12141_v2 = vld [vmem:[%s15470_s14 + $0xc8] sm:$0xff]  }
 0x88b   :  { %11154 = vmatprep.subr.bf16.mxu0 %v12648_v28 }
 0x88e   :  { %11155 = vmatpush3.bf16.msra.mxu0 %v12134_v62  ;;  %v12142_v62 = vld [vmem:[%s15470_s14 + $0xd0] sm:$0xff]  }
 0x88f   :  { %11156 = vmatprep.subr.bf16.mxu0 %v12648_v28 }
 0x892   :  { %11157 = vmatpush3.bf16.msra.mxu0 %v12135_v5  ;;  %v12143_v5 = vld [vmem:[%s15470_s14 + $0xd8] sm:$0xff]  }
 0x893   :  { %11158 = vmatprep.subr.bf16.mxu0 %v12648_v28 }
 0x896   :  { %11159 = vmatpush3.bf16.msra.mxu0 %v12136_v6  ;;  %v12144_v6 = vld [vmem:[%s15470_s14 + $0xe0] sm:$0xff]  }
 0x897   :  { %11160 = vmatprep.subr.bf16.mxu0 %v12648_v28 }
 0x89a   :  { %11161 = vmatpush3.bf16.msra.mxu0 %v12137_v7  ;;  %v12145_v7 = vld [vmem:[%s15470_s14 + $0xe8] sm:$0xff]  }
 0x89b   :  { %11162 = vmatprep.subr.bf16.mxu0 %v12648_v28 }
 0x89e   :  { %11163 = vmatpush3.bf16.msra.mxu0 %v12138_v9  ;;  %v12146_v9 = vld [vmem:[%s15470_s14 + $0xf0] sm:$0xff]  }
 0x89f   :  { %11164 = vmatprep.subr.bf16.mxu0 %v12648_v28 }
 0x8a2   :  { %11165 = vmatpush3.bf16.msra.mxu0 %v12139_v10  ;;  %v12147_v10 = vld [vmem:[%s15470_s14 + $0xf8] sm:$0xff]  }
 0x8a3   :  { %11190 = vmatprep.subr.bf16.mxu0 %v12648_v28 }
 0x8a5   :  { %11167 = vmatmul.mubr.bf16.vlgmr.msra.gmra.mrb[32].mxu0 %v13051_v0 }
 0x8a6   :  { %11192 = vmatprep.mubr.msk.bf16.mxu0 %vm12649_vm0, %v12648_v28 }
 0x918   :  { %v13411_v11 = vpop.f32.mrb[20].mxu0 }
 0x919   :  { %v11056_v13 = vpop.f32.mrb[21].mxu0 }
 0x91a   :  { %v1459_v14 = vpop.f32.mrb[22].mxu0  ;;  %v12148_v13 = vld [vmem:[%s15474_s18 + $0xc0] sm:$0xff]  }
 0x91b   :  { %v11057_v15 = vpop.f32.mrb[23].mxu0  ;;  %v12149_v14 = vld [vmem:[%s15474_s18 + $0xc8] sm:$0xff]  }
 0x91c   :  { %v12150_v15 = vld [vmem:[%s15474_s18 + $0xd0] sm:$0xff]  }
 0x938   :  { %v1575_v18 = vpop.f32.mrb[24].mxu0 }
 0x939   :  { %v1576_v19 = vadd.f32 %v9015_v17, %v1575_v18  ;;  %v11076_v22 = vpop.f32.mrb[25].mxu0  ;;  %v12151_v17 = vld [vmem:[%s15474_s18 + $0xd8] sm:$0xff]   ;;  %v12152_v18 = vld [vmem:[%s15474_s18 + $0xe0] sm:$0xff]  }
 0x93a   :  { %v1578_v23 = vpop.f32.mrb[26].mxu0  ;;  %v12154_v22 = vld [vmem:[%s15474_s18 + $0xf0] sm:$0xff]  }
 0x93b   :  { %v1807_v24 = vpack.c.bf16 %v1576_v19, %v1576_v19  ;;  %v11077_v26 = vpop.f32.mrb[27].mxu0  ;;  %v12153_v19 = vld [vmem:[%s15474_s18 + $0xe8] sm:$0xff]   ;;  %v12155_v23 = vld [vmem:[%s15474_s18 + $0xf8] sm:$0xff]  }
 0x93d   :  { %11121 = vmatmul.mubr.msk.bf16.vlgmr.msra.gmra.mrb[32].mxu1 %vm907_vm1, %v1807_v24 }
 0x93e   :  { %11126 = vmatprep.mubr.msk.bf16.mxu1 %vm12649_vm0, %v12648_v28 }
 0x958   :  { %v1801_v29 = vpop.f32.mrb[28].mxu0 }
 0x959   :  { %v1802_v30 = vadd.f32 %v9067_v27, %v1801_v29  ;;  %v11116_v34 = vpop.f32.mrb[29].mxu0 }
 0x95a   :  { %v1804_v35 = vpop.f32.mrb[30].mxu0 }
 0x95b   :  { %v1867_v36 = vpack.c.bf16 %v1802_v30, %v1802_v30  ;;  %v11117_v37 = vpop.f32.mrb[31].mxu0  ;;  %v9095_v30 = vld [vmem:[%s15471_s15 + $0x3] ss:$0 sm:$0xff] }
 0x95d   :  { %v1872_v38 = vsel %vm971_vm2, %v1867_v36, 0 }
 0x95e   :  { %11125 = vmatpush3.bf16.msra.mxu1 %v1872_v38 }
 0x95f   :  { %11130 = vmatprep.subr.bf16.mxu1 %v12648_v28 }
 0x978   :  { %v2140_v40 = vpop.f32.mrb[32].mxu0 }
 0x979   :  { %v2141_v41 = vadd.f32 %v9121_v39, %v2140_v40  ;;  %v11168_v42 = vpop.f32.mrb[33].mxu0  ;;  %v9147_v40 = vld [vmem:[%s15475_s19 + $0x3] ss:$0 sm:$0xff] }
 0x97a   :  { %v2143_v43 = vpop.f32.mrb[34].mxu0 }
 0x97b   :  { %v2260_v44 = vpack.c.bf16 %v2141_v41, %v2141_v41  ;;  %v11169_v45 = vpop.f32.mrb[35].mxu0 }
 0x97d   :  { %v2265_v46 = vsel %vm907_vm1, %v2260_v44, 0 }
 0x97e   :  { %11191 = vmatpush3.bf16.xpose.msra.mxu0 %v2265_v46 }
 0x97f   :  { %11196 = vmatprep.subr.bf16.mxu0 %v12648_v28 }
 0xa10   :  { %v1849_v47 = vpop.f32.mrb[32].mxu1 }
 0xa11   :  { %v1850_v48 = vadd.f32 %v13170_v4, %v1849_v47  ;;  %v11122_v50 = vpop.f32.mrb[33].mxu1 }
 0xa12   :  { %v1852_v51 = vpop.f32.mrb[34].mxu1 }
 0xa13   :  { %v11123_v52 = vpop.f32.mrb[35].mxu1  ;;  %v1855_v53 = vsel %vm954_vm3, %v1850_v48, -inf }
 0xa14   :  { %1856 = vmax.xlane.f32.xlu0 %v1855_v53 }
 0xaa1   :  { %v1857_v54 = vpop.xlane.xlu0 %1856 }
 0xaa2   :  { %v1858_v55 = vsub.f32 %v1850_v48, %v1857_v54 }
 0xaa4   :  { %v1859_v57 = vmul.f32 1.442695, %v1858_v55  ;;  %v399_v55 = vadd.f32 %v13031_v25, %v13126_v20  ;;  %v12156_v25 = vld [vmem:[%s15478_s22] sm:$0xff]   ;;  %v12157_v20 = vld [vmem:[%s15478_s22 + $0x8] sm:$0xff]  }
 0xaa6   :  { %12556 = vpow2.f32 %v1859_v57 }
 0xab0   :  { %v12557_v58 = vpop.eup %12556 }
 0xab1   :  { %v1861_v59 = vsel %vm954_vm3, %v12557_v58, 0.0 }
 0xab2   :  { %1862 = vadd.xlane.f32.xlu1 %v1861_v59 }
 0xb3f   :  { %v1863_v60 = vpop.xlane.xlu1 %1862 }
 0xb40   :  { %12558 = vrcp.f32 %v1863_v60 }
 0xb4a   :  { %v12559_v56 = vpop.eup %12558 }
 0xb4b   :  { %v1865_v63 = vmul.f32 %v12559_v56, %v12557_v58 }
 0xb4d   :  { %v1866_v61 = vpack.c.bf16 %v1865_v63, %v1865_v63 }
 0xb4f   :  { %11127 = vmatmul.mubr.msk.bf16.vlgmr.msra.gmra.mrb[36].mxu1 %vm954_vm3, %v1866_v61 }
 0xb50   :  { %11131 = vmatpush3.bf16.msra.mxu1 %v12140_v1  ;;  %11146 = vmatprep.mubr.msk.bf16.mxu1 %vm12649_vm0, %v12648_v28 }
 0xb51   :  { %11132 = vmatprep.subr.bf16.mxu1 %v12648_v28 }
 0xb54   :  { %11133 = vmatpush3.bf16.msra.mxu1 %v12141_v2 }
 0xb55   :  { %11134 = vmatprep.subr.bf16.mxu1 %v12648_v28 }
 0xb58   :  { %11135 = vmatpush3.bf16.msra.mxu1 %v12142_v62 }
 0xb59   :  { %11136 = vmatprep.subr.bf16.mxu1 %v12648_v28 }
 0xb5c   :  { %11137 = vmatpush3.bf16.msra.mxu1 %v12143_v5 }
 0xb5d   :  { %11138 = vmatprep.subr.bf16.mxu1 %v12648_v28 }
 0xb60   :  { %11139 = vmatpush3.bf16.msra.mxu1 %v12144_v6 }
 0xb61   :  { %11140 = vmatprep.subr.bf16.mxu1 %v12648_v28 }
 0xb64   :  { %11141 = vmatpush3.bf16.msra.mxu1 %v12145_v7 }
 0xb65   :  { %11142 = vmatprep.subr.bf16.mxu1 %v12648_v28 }
 0xb68   :  { %11143 = vmatpush3.bf16.msra.mxu1 %v12146_v9 }
 0xb69   :  { %11144 = vmatprep.subr.bf16.mxu1 %v12648_v28 }
 0xb6c   :  { %11145 = vmatpush3.bf16.msra.mxu1 %v12147_v10 }
 0xb6d   :  { %11170 = vmatprep.subr.bf16.mxu1 %v12648_v28 }
 0xb6f   :  { %11147 = vmatmul.mubr.bf16.vlgmr.msra.gmra.mrb[40].mxu1 %v13057_v3 }
 0xb70   :  { %11171 = vmatpush3.bf16.msra.mxu1 %v12148_v13  ;;  %11186 = vmatprep.mubr.msk.bf16.mxu1 %vm12649_vm0, %v12648_v28 }
 0xb71   :  { %11172 = vmatprep.subr.bf16.mxu1 %v12648_v28 }
 0xb74   :  { %11173 = vmatpush3.bf16.msra.mxu1 %v12149_v14 }
 0xb75   :  { %11174 = vmatprep.subr.bf16.mxu1 %v12648_v28 }
 0xb78   :  { %11175 = vmatpush3.bf16.msra.mxu1 %v12150_v15  ;;  %v12158_v15 = vld [vmem:[%s15478_s22 + $0x10] sm:$0xff]  }
 0xb79   :  { %11176 = vmatprep.subr.bf16.mxu1 %v12648_v28 }
 0xb7c   :  { %11177 = vmatpush3.bf16.msra.mxu1 %v12151_v17  ;;  %v12160_v17 = vld [vmem:[%s15478_s22 + $0x20] sm:$0xff]  }
 0xb7d   :  { %11178 = vmatprep.subr.bf16.mxu1 %v12648_v28 }
 0xb80   :  { %11179 = vmatpush3.bf16.msra.mxu1 %v12152_v18  ;;  %v12161_v18 = vld [vmem:[%s15478_s22 + $0x28] sm:$0xff]  }
 0xb81   :  { %11180 = vmatprep.subr.bf16.mxu1 %v12648_v28 }
 0xb84   :  { %11181 = vmatpush3.bf16.msra.mxu1 %v12153_v19  ;;  %v12162_v19 = vld [vmem:[%s15478_s22 + $0x30] sm:$0xff]  }
 0xb85   :  { %11182 = vmatprep.subr.bf16.mxu1 %v12648_v28 }
 0xb88   :  { %11183 = vmatpush3.bf16.msra.mxu1 %v12154_v22  ;;  %v12163_v22 = vld [vmem:[%s15478_s22 + $0x38] sm:$0xff]  }
 0xb89   :  { %11184 = vmatprep.subr.bf16.mxu1 %v12648_v28 }
 0xb8c   :  { %11185 = vmatpush3.bf16.msra.mxu1 %v12155_v23  ;;  %v12164_v23 = vld [vmem:[%s15476_s20] sm:$0xff]  }
 0xb8d   :  { %11222 = vmatprep.subr.bf16.mxu1 %v12648_v28 }
 0xb8f   :  { %11187 = vmatmul.mubr.bf16.vlgmr.msra.gmra.mrb[44].mxu1 %v13051_v0 }
 0xb90   :  { %11238 = vmatprep.mubr.msk.bf16.mxu1 %vm12649_vm0, %v12648_v28  ;;  %11223 = vmatpush3.bf16.msra.mxu1 %v12156_v25  ;;  %v12176_v25 = vld [vmem:[%s15480_s24 + $0x50] sm:$0xff]  }
 0xb91   :  { %11224 = vmatprep.subr.bf16.mxu1 %v12648_v28 }
 0xb94   :  { %11225 = vmatpush3.bf16.msra.mxu1 %v12157_v20  ;;  %v12177_v20 = vld [vmem:[%s15480_s24 + $0x10] sm:$0xff]  }
 0xb95   :  { %11226 = vmatprep.subr.bf16.mxu1 %v12648_v28 }
 0xb98   :  { %11227 = vmatpush3.bf16.msra.mxu1 %v12158_v15  ;;  %v12188_v15 = vld [vmem:[%s15476_s20 + $0x40] sm:$0xff]  }
 0xb99   :  { %11228 = vmatprep.subr.bf16.mxu1 %v12648_v28 }
 0xc22   :  { %v13505_v24 = vpop.f32.mrb[36].mxu1 }
 0xc23   :  { %v11128_v26 = vpop.f32.mrb[37].mxu1 }
 0xc24   :  { %v1911_v27 = vpop.f32.mrb[38].mxu1  ;;  %v12166_v26 = vld [vmem:[%s15476_s20 + $0x10] sm:$0xff]  }
 0xc25   :  { %v11129_v29 = vpop.f32.mrb[39].mxu1  ;;  %v12167_v27 = vld [vmem:[%s15476_s20 + $0x18] sm:$0xff]  }
 0xc26   :  { %v12168_v29 = vld [vmem:[%s15476_s20 + $0x20] sm:$0xff]  }
 0xc42   :  { %v2027_v34 = vpop.f32.mrb[40].mxu1 }
 0xc43   :  { %v2028_v35 = vadd.f32 %v9095_v30, %v2027_v34  ;;  %v11148_v36 = vpop.f32.mrb[41].mxu1  ;;  %v12169_v30 = vld [vmem:[%s15476_s20 + $0x28] sm:$0xff]  }
 0xc44   :  { %v2030_v37 = vpop.f32.mrb[42].mxu1 }
 0xc45   :  { %v2259_v38 = vpack.c.bf16 %v2028_v35, %v2028_v35  ;;  %v11149_v39 = vpop.f32.mrb[43].mxu1 }
 0xc47   :  { %11193 = vmatmul.mubr.msk.bf16.vlgmr.msra.gmra.mrb[36].mxu0 %vm907_vm1, %v2259_v38 }
 0xc48   :  { %11198 = vmatprep.mubr.msk.bf16.mxu0 %vm12649_vm0, %v12648_v28 }
 0xc62   :  { %v2253_v41 = vpop.f32.mrb[44].mxu1 }
 0xc63   :  { %v2254_v42 = vadd.f32 %v9147_v40, %v2253_v41  ;;  %v11188_v43 = vpop.f32.mrb[45].mxu1 }
 0xc64   :  { %v2256_v44 = vpop.f32.mrb[46].mxu1 }
 0xc65   :  { %v2319_v45 = vpack.c.bf16 %v2254_v42, %v2254_v42  ;;  %v11189_v46 = vpop.f32.mrb[47].mxu1  ;;  %v8886_v42 = vld [vmem:[%s15518_s11] ss:$0 sm:$0xff] }
 0xc66   :  { %v8887_v46 = vld [vmem:[%s15469_s13] ss:$0 sm:$0xff] }
 0xc67   :  { %v2324_v47 = vsel %vm971_vm2, %v2319_v45, 0 }
 0xc68   :  { %11197 = vmatpush3.bf16.msra.mxu0 %v2324_v47 }
 0xc69   :  { %11202 = vmatprep.subr.bf16.mxu0 %v12648_v28 }
 0xd1a   :  { %v2301_v48 = vpop.f32.mrb[36].mxu0 }
 0xd1b   :  { %v2302_v50 = vadd.f32 %v13170_v4, %v2301_v48  ;;  %v11194_v51 = vpop.f32.mrb[37].mxu0 }
 0xd1c   :  { %v2304_v52 = vpop.f32.mrb[38].mxu0 }
 0xd1d   :  { %v11195_v53 = vpop.f32.mrb[39].mxu0  ;;  %v2307_v54 = vsel %vm954_vm3, %v2302_v50, -inf  ;;  %v12170_v52 = vld [vmem:[%s15476_s20 + $0x30] sm:$0xff]  }
 0xd1e   :  { %2308 = vmax.xlane.f32.xlu0 %v2307_v54  ;;  %v12171_v53 = vld [vmem:[%s15476_s20 + $0x38] sm:$0xff]   ;;  %v12172_v54 = vld [vmem:[%s15480_s24 + $0x40] sm:$0xff]  }
 0xd22   :  { %496 = vadd.xlane.f32.xlu0 %v399_v55 }
 0xdab   :  { %v2309_v57 = vpop.xlane.xlu0 %2308 }
 0xdac   :  { %v2310_v58 = vsub.f32 %v2302_v50, %v2309_v57 }
 0xdae   :  { %v2311_v59 = vmul.f32 1.442695, %v2310_v58 }
 0xdaf   :  { %v497_v60 = vpop.xlane.xlu0 %496 }
 0xdb0   :  { %12560 = vpow2.f32 %v2311_v59  ;;  %v504_v56 = vmul.f32 0.0078125, %v497_v60 }
 0xdb2   :  { %v13522_v63 = vsub.f32 %v399_v55, %v504_v56 }
 0xdb4   :  { %v512_v4 = vmul.f32 %v13522_v63, %v13522_v63 }
 0xdb6   :  { %516 = vadd.xlane.f32.xlu0 %v512_v4 }
 0xdba   :  { %v12561_v1 = vpop.eup %12560 }
 0xdbb   :  { %v2313_v61 = vsel %vm954_vm3, %v12561_v1, 0.0 }
 0xdbc   :  { %2314 = vadd.xlane.f32.xlu1 %v2313_v61  ;;  %v12175_v61 = vld [vmem:[%s15480_s24 + $0x8] sm:$0xff]  }
 0xdc0   :  { %498 = vadd.xlane.f32.xlu1 %v13130_v21 }
 0xdcc   :  { %1463 = vrot.lane.b32.xlu0 %v13411_v11, %s12650_s1 }
 0xe43   :  { %v517_v2 = vpop.xlane.xlu0 %516 }
 0xe44   :  { %v524_v34 = vmul.f32 0.0078125, %v517_v2  ;;  %v12178_v2 = vld [vmem:[%s15480_s24 + $0x58] sm:$0xff]  }
 0xe46   :  { %v528_v35 = vadd.f32 1e-05, %v524_v34  ;;  %v12191_v34 = vld [vmem:[%s15476_s20 + $0x58] sm:$0xff]  }
 0xe47   :  { %v1464_v62 = vpop.permute.xlu0 %1463 }
 0xe48   :  { %1467 = vst.msk [vmem:[#allocation2] sm:$0xff] %vm1466_vm4, %v1464_v62  ;;  %v12179_v62 = vld [vmem:[%s15480_s24 + $0x18] sm:$0xff]  }
 0xe49   :  { %v2315_v11 = vpop.xlane.xlu1 %2314 }
 0xe4a   :  { %12562 = vrcp.f32 %v2315_v11  ;;  %v12180_v11 = vld [vmem:[%s15480_s24 + $0x60] sm:$0xff]  }
 0xe4b   :  { %12564 = vrsqrt.f32 %v528_v35  ;;  %v12192_v35 = vld [vmem:[%s15476_s20 + $0x60] sm:$0xff]  }
 0xe4d   :  { %v499_v5 = vpop.xlane.xlu1 %498 }
 0xe4e   :  { %v505_v6 = vmul.f32 0.0078125, %v499_v5  ;;  %v12181_v5 = vld [vmem:[%s15480_s24 + $0x20] sm:$0xff]  }
 0xe50   :  { %v509_v7 = vsub.f32 %v13130_v21, %v505_v6  ;;  %v12159_v21 = vld [vmem:[%s15478_s22 + $0x18] sm:$0xff]   ;;  %v12182_v6 = vld [vmem:[%s15480_s24 + $0x68] sm:$0xff]  }
 0xe51   :  { %11229 = vmatpush3.bf16.msra.mxu1 %v12159_v21  ;;  %v12189_v21 = vld [vmem:[%s15476_s20 + $0x48] sm:$0xff]  }
 0xe52   :  { %v513_v9 = vmul.f32 %v509_v7, %v509_v7  ;;  %11230 = vmatprep.subr.bf16.mxu1 %v12648_v28 }
 0xe54   :  { %v12563_v10 = vpop.eup %12562  ;;  %518 = vadd.xlane.f32.xlu1 %v513_v9  ;;  %v12184_v9 = vld [vmem:[%s15480_s24 + $0x70] sm:$0xff]  }
 0xe55   :  { %v2317_v13 = vmul.f32 %v12563_v10, %v12561_v1  ;;  %11231 = vmatpush3.bf16.msra.mxu1 %v12160_v17  ;;  %v12565_v40 = vpop.eup %12564  ;;  %v12174_v1 = vld [vmem:[%s15480_s24 + $0x48] sm:$0xff]   ;;  %v12185_v10 = vld [vmem:[%s15480_s24 + $0x30] sm:$0xff]   ;;  %v9168_v17 = vld [vmem:[%s15479_s23] ss:$0 sm:$0xff] }
 0xe56   :  { %11232 = vmatprep.subr.bf16.mxu1 %v12648_v28  ;;  %v536_v41 = vmul.f32 %v12565_v40, %v13522_v63  ;;  %v12173_v63 = vld [vmem:[%s15480_s24] sm:$0xff]  }
 0xe57   :  { %v2318_v14 = vpack.c.bf16 %v2317_v13, %v2317_v13  ;;  %v12186_v13 = vld [vmem:[%s15480_s24 + $0x78] sm:$0xff]   ;;  %v12197_v40 = vld [vmem:[%s15480_s24 + $0x80] sm:$0xff]  }
 0xe58   :  { %v547_v45 = vmul.f32 %v8886_v42, %v536_v41  ;;  %v12198_v41 = vld [vmem:[%s15480_s24 + $0xc8] sm:$0xff]  }
 0xe59   :  { %11199 = vmatmul.mubr.msk.bf16.vlgmr.msra.gmra.mrb[40].mxu0 %vm954_vm3, %v2318_v14  ;;  %11233 = vmatpush3.bf16.msra.mxu1 %v12161_v18  ;;  %v12187_v14 = vld [vmem:[%s15480_s24 + $0x38] sm:$0xff]  }
 0xe5a   :  { %11218 = vmatprep.mubr.msk.bf16.mxu0 %vm12649_vm0, %v12648_v28  ;;  %11234 = vmatprep.subr.bf16.mxu1 %v12648_v28  ;;  %v558_v48 = vadd.f32 %v8887_v46, %v547_v45  ;;  %v12202_v45 = vld [vmem:[%s15480_s24 + $0xd8] sm:$0xff]  }
 0xe5b   :  { %11203 = vmatpush3.bf16.msra.mxu0 %v12164_v23 }
 0xe5c   :  { %11204 = vmatprep.subr.bf16.mxu0 %v12648_v28 }
 0xe5d   :  { %11235 = vmatpush3.bf16.msra.mxu1 %v12162_v19 }
 0xe5e   :  { %11236 = vmatprep.subr.bf16.mxu1 %v12648_v28 }
 0xe61   :  { %11237 = vmatpush3.bf16.msra.mxu1 %v12163_v22 }
 0xe62   :  { %11242 = vmatprep.subr.bf16.mxu1 %v12648_v28 }
 0xe65   :  { %1915 = vrot.lane.b32.xlu1 %v13505_v24, %s12651_s0  ;;  %v12165_v24 = vld [vmem:[%s15476_s20 + $0x8] sm:$0xff]  }
 0xe66   :  { %11205 = vmatpush3.bf16.msra.mxu0 %v12165_v24 }
 0xe67   :  { %11206 = vmatprep.subr.bf16.mxu0 %v12648_v28 }
 0xe6a   :  { %11207 = vmatpush3.bf16.msra.mxu0 %v12166_v26 }
 0xe6b   :  { %11208 = vmatprep.subr.bf16.mxu0 %v12648_v28 }
 0xe6e   :  { %11209 = vmatpush3.bf16.msra.mxu0 %v12167_v27  ;;  %v12190_v27 = vld [vmem:[%s15476_s20 + $0x50] sm:$0xff]  }
 0xe6f   :  { %11210 = vmatprep.subr.bf16.mxu0 %v12648_v28 }
 0xe72   :  { %11211 = vmatpush3.bf16.msra.mxu0 %v12168_v29 }
 0xe73   :  { %11212 = vmatprep.subr.bf16.mxu0 %v12648_v28 }
 0xe76   :  { %11213 = vmatpush3.bf16.msra.mxu0 %v12169_v30 }
 0xe77   :  { %11214 = vmatprep.subr.bf16.mxu0 %v12648_v28 }
 0xe7a   :  { %11215 = vmatpush3.bf16.msra.mxu0 %v12170_v52  ;;  %v12207_v52 = vld [vmem:[%s15480_s24 + $0xa8] sm:$0xff]  }
 0xe7b   :  { %11216 = vmatprep.subr.bf16.mxu0 %v12648_v28 }
 0xe7e   :  { %11217 = vmatpush3.bf16.msra.mxu0 %v12171_v53  ;;  %v12208_v53 = vld [vmem:[%s15480_s24 + $0xf0] sm:$0xff]  }
 0xe7f   :  { %10396 = vmatprep.subr.bf16.mxu0 %v12172_v54  ;;  %v12209_v54 = vld [vmem:[%s15480_s24 + $0xb0] sm:$0xff]  }
 0xee1   :  { %v519_v36 = vpop.xlane.xlu1 %518 }
 0xee2   :  { %v525_v37 = vmul.f32 0.0078125, %v519_v36  ;;  %v12193_v36 = vld [vmem:[%s15476_s20 + $0x68] sm:$0xff]  }
 0xee4   :  { %v529_v38 = vadd.f32 1e-05, %v525_v37  ;;  %v12194_v37 = vld [vmem:[%s15476_s20 + $0x70] sm:$0xff]  }
 0xee5   :  { %v1916_v39 = vpop.permute.xlu1 %1915 }
 0xee6   :  { %12566 = vrsqrt.f32 %v529_v38  ;;  %1919 = vst.msk [vmem:[#allocation2] sm:$0xff] %vm1918_vm5, %v1916_v39  ;;  %v12195_v38 = vld [vmem:[%s15476_s20 + $0x78] sm:$0xff]   ;;  %v12196_v39 = vld [vmem:[%s15480_s24 + $0xc0] sm:$0xff]  }
 0xef0   :  { %v12567_v43 = vpop.eup %12566 }
 0xef1   :  { %v537_v44 = vmul.f32 %v12567_v43, %v509_v7  ;;  %v12183_v7 = vld [vmem:[%s15480_s24 + $0x28] sm:$0xff]   ;;  %v12200_v43 = vld [vmem:[%s15480_s24 + $0xd0] sm:$0xff]  }
 0xef3   :  { %v548_v47 = vmul.f32 %v8886_v42, %v537_v44  ;;  %v12199_v42 = vld [vmem:[%s15480_s24 + $0x88] sm:$0xff]   ;;  %v12201_v44 = vld [vmem:[%s15480_s24 + $0x90] sm:$0xff]  }
 0xef5   :  { %v559_v50 = vadd.f32 %v8887_v46, %v548_v47  ;;  %v12203_v46 = vld [vmem:[%s15480_s24 + $0x98] sm:$0xff]   ;;  %v12204_v47 = vld [vmem:[%s15480_s24 + $0xe0] sm:$0xff]  }
 0xef7   :  { %v13601_v51 = vpack.c.bf16 %v559_v50, %v558_v48  ;;  %v12205_v48 = vld [vmem:[%s15480_s24 + $0xa0] sm:$0xff]   ;;  %v12206_v50 = vld [vmem:[%s15480_s24 + $0xe8] sm:$0xff]  }
 0xef9   :  { %11239 = vmatmul.mubr.bf16.vlgmr.msra.gmra.mrb[48].mxu1 %v13601_v51 }
 0xefa   :  { %11244 = vmatprep.mubr.msk.bf16.mxu1 %vm12649_vm0, %v12648_v28 }
 0xf2c   :  { %v2360_v55 = vpop.f32.mrb[40].mxu0 }
 0xf2d   :  { %2367 = vrot.lane.b32.xlu1 %v2360_v55, %s15492_s9  ;;  %v11200_v57 = vpop.f32.mrb[41].mxu0  ;;  %v12210_v55 = vld [vmem:[%s15480_s24 + $0xf8] sm:$0xff]  }
 0xf2e   :  { %v2363_v58 = vpop.f32.mrb[42].mxu0  ;;  %v12211_v57 = vld [vmem:[%s15480_s24 + $0xb8] sm:$0xff]  }
 0xf2f   :  { %v11201_v59 = vpop.f32.mrb[43].mxu0  ;;  %v12212_v58 = vld [vmem:[%s15476_s20 + $0x80] sm:$0xff]  }
 0xf30   :  { %v12213_v59 = vld [vmem:[%s15476_s20 + $0x88] sm:$0xff]  }
 0xf9f   :  { %v2368_v60 = vpop.permute.xlu1 %2367 }
 0xfa0   :  { %2371 = vst.msk [vmem:[#allocation2] sm:$0xff] %vm2370_vm6, %v2368_v60  ;;  %v12214_v60 = vld [vmem:[%s15476_s20 + $0x90] sm:$0xff]  }
 0xfa7   :  { %v2372_v56 = vld [vmem:[#allocation2] sm:$0xff] }
 0xfa8   :  { %v13621_v4 = vpack.c.bf16 %v2372_v56, %v2372_v56  ;;  %v12215_v56 = vld [vmem:[%s15476_s20 + $0x98] sm:$0xff]  }
 0xfaa   :  { %11219 = vmatmul.mubr.bf16.vlgmr.msra.gmra.mrb[44].mxu0 %v13621_v4 }
 0xfab   :  { %10397 = vmatpush3.bf16.msra.mxu0 %v12173_v63  ;;  %2771 = vmatprep.mubr.bf16.mxu0 %v12879_v33  ;;  %v12216_v63 = vld [vmem:[%s15476_s20 + $0xa0] sm:$0xff]  }
 0xfac   :  { %10398 = vmatprep.subr.bf16.mxu0 %v12174_v1  ;;  %v12217_v1 = vld [vmem:[%s15476_s20 + $0xa8] sm:$0xff]  }
 0xfaf   :  { %10399 = vmatpush3.bf16.msra.mxu0 %v12175_v61  ;;  %v12218_v61 = vld [vmem:[%s15476_s20 + $0xb0] sm:$0xff]  }
 0xfb0   :  { %10400 = vmatprep.subr.bf16.mxu0 %v12176_v25  ;;  %v12219_v25 = vld [vmem:[%s15476_s20 + $0xb8] sm:$0xff]  }
 0xfb3   :  { %10401 = vmatpush3.bf16.msra.mxu0 %v12177_v20  ;;  %v12220_v20 = vld [vmem:[%s15480_s24 + $0x140] sm:$0xff]  }
 0xfb4   :  { %10402 = vmatprep.subr.bf16.mxu0 %v12178_v2  ;;  %v12221_v2 = vld [vmem:[%s15480_s24 + $0x100] sm:$0xff]  }
 0xfb7   :  { %10403 = vmatpush3.bf16.msra.mxu0 %v12179_v62  ;;  %v12222_v62 = vld [vmem:[%s15480_s24 + $0x148] sm:$0xff]  }
 0xfb8   :  { %10404 = vmatprep.subr.bf16.mxu0 %v12180_v11  ;;  %v12223_v11 = vld [vmem:[%s15480_s24 + $0x108] sm:$0xff]  }
 0xfbb   :  { %10405 = vmatpush3.bf16.msra.mxu0 %v12181_v5  ;;  %v12224_v5 = vld [vmem:[%s15480_s24 + $0x150] sm:$0xff]  }
 0xfbc   :  { %10406 = vmatprep.subr.bf16.mxu0 %v12182_v6  ;;  %v12225_v6 = vld [vmem:[%s15480_s24 + $0x110] sm:$0xff]  }
 0xfbf   :  { %10407 = vmatpush3.bf16.msra.mxu0 %v12183_v7  ;;  %v12226_v7 = vld [vmem:[%s15480_s24 + $0x158] sm:$0xff]  }
 0xfc0   :  { %10408 = vmatprep.subr.bf16.mxu0 %v12184_v9  ;;  %v12227_v9 = vld [vmem:[%s15480_s24 + $0x118] sm:$0xff]  }
 0xfc3   :  { %10409 = vmatpush3.bf16.msra.mxu0 %v12185_v10  ;;  %v12228_v10 = vld [vmem:[%s15480_s24 + $0x160] sm:$0xff]  }
 0xfc4   :  { %10410 = vmatprep.subr.bf16.mxu0 %v12186_v13  ;;  %v12229_v13 = vld [vmem:[%s15480_s24 + $0x120] sm:$0xff]  }
 0xfc7   :  { %10411 = vmatpush3.bf16.msra.mxu0 %v12187_v14  ;;  %v12230_v14 = vld [vmem:[%s15480_s24 + $0x168] sm:$0xff]  }
 0xfc8   :  { %11266 = vmatprep.subr.bf16.mxu0 %v12648_v28 }
 0xfca   :  { %2772 = vmatmul.mubr.bf16.vlgmr.msra.gmra.mrb[48].mxu0 %v12928_v49 }
 0xfcb   :  { %11267 = vmatpush3.bf16.msra.mxu0 %v12188_v15  ;;  %11282 = vmatprep.mubr.msk.bf16.mxu0 %vm12649_vm0, %v12648_v28  ;;  %v12231_v15 = vld [vmem:[%s15480_s24 + $0x128] sm:$0xff]  }
 0xfcc   :  { %v2597_v18 = vpop.f32.mrb[48].mxu1  ;;  %11268 = vmatprep.subr.bf16.mxu0 %v12648_v28 }
 0xfcd   :  { %v11240_v19 = vpop.f32.mrb[49].mxu1  ;;  %v2598_v23 = vadd.f32 %v9168_v17, %v2597_v18  ;;  %v12234_v18 = vld [vmem:[%s15480_s24 + $0x178] sm:$0xff]  }
 0xfce   :  { %v2600_v22 = vpop.f32.mrb[50].mxu1  ;;  %v12235_v19 = vld [vmem:[%s15480_s24 + $0x138] sm:$0xff]  }
 0xfcf   :  { %v2601_v24 = vadd.f32 %v9168_v17, %v2600_v22  ;;  %11269 = vmatpush3.bf16.msra.mxu0 %v12189_v21  ;;  %v11241_v26 = vpop.f32.mrb[51].mxu1  ;;  %v12232_v21 = vld [vmem:[%s15480_s24 + $0x170] sm:$0xff]   ;;  %v12236_v22 = vld [vmem:[%s15476_s20 + $0xc0] sm:$0xff]  }
 0xfd0   :  { %11270 = vmatprep.subr.bf16.mxu0 %v12648_v28  ;;  %v12233_v17 = vld [vmem:[%s15480_s24 + $0x130] sm:$0xff]   ;;  %v12239_v26 = vld [vmem:[%s15476_s20 + $0xd8] sm:$0xff]  }
 0xfd1   :  { %v2781_v29 = vpack.c.bf16 %v2601_v24, %v2598_v23  ;;  %v12237_v23 = vld [vmem:[%s15476_s20 + $0xc8] sm:$0xff]   ;;  %v12238_v24 = vld [vmem:[%s15476_s20 + $0xd0] sm:$0xff]  }
 0xfd3   :  { %11271 = vmatpush3.bf16.msra.mxu0 %v12190_v27  ;;  %v2786_v30 = vsel %vm907_vm1, %v2781_v29, 0  ;;  %v12240_v27 = vld [vmem:[%s15476_s20 + $0xe0] sm:$0xff]   ;;  %v12241_v29 = vld [vmem:[%s15476_s20 + $0xe8] sm:$0xff]  }
 0xfd4   :  { %11243 = vmatpush3.bf16.xpose.msra.mxu1 %v2786_v30  ;;  %11272 = vmatprep.subr.bf16.mxu0 %v12648_v28  ;;  %v12242_v30 = vld [vmem:[%s15476_s20 + $0xf0] sm:$0xff]  }
 0xfd5   :  { %11248 = vmatprep.subr.bf16.mxu1 %v12648_v28 }
 0xfd7   :  { %11273 = vmatpush3.bf16.msra.mxu0 %v12191_v34  ;;  %v12243_v34 = vld [vmem:[%s15476_s20 + $0xf8] sm:$0xff]  }
 0xfd8   :  { %11274 = vmatprep.subr.bf16.mxu0 %v12648_v28 }
 0xfdb   :  { %11275 = vmatpush3.bf16.msra.mxu0 %v12192_v35  ;;  %v12244_v35 = vld [vmem:[%s15480_s24 + $0x1c0] sm:$0xff]  }
 0xfdc   :  { %11276 = vmatprep.subr.bf16.mxu0 %v12648_v28 }
 0xfdf   :  { %11277 = vmatpush3.bf16.msra.mxu0 %v12193_v36  ;;  %v12245_v36 = vld [vmem:[%s15480_s24 + $0x180] sm:$0xff]  }
 0xfe0   :  { %11278 = vmatprep.subr.bf16.mxu0 %v12648_v28 }
 0xfe3   :  { %11279 = vmatpush3.bf16.msra.mxu0 %v12194_v37  ;;  %v12246_v37 = vld [vmem:[%s15480_s24 + $0x1c8] sm:$0xff]  }
 0xfe4   :  { %11280 = vmatprep.subr.bf16.mxu0 %v12648_v28 }
 0xfe7   :  { %11281 = vmatpush3.bf16.msra.mxu0 %v12195_v38  ;;  %v12247_v38 = vld [vmem:[%s15480_s24 + $0x188] sm:$0xff]  }
 0xfe8   :  { %10445 = vmatprep.subr.bf16.mxu0 %v12196_v39  ;;  %v12248_v39 = vld [vmem:[%s15480_s24 + $0x1d0] sm:$0xff]  }
 0xfea   :  { %11283 = vmatmul.mubr.bf16.vlgmr.msra.gmra.mrb[52].mxu0 %v13621_v4 }
 0xfeb   :  { %10446 = vmatpush3.bf16.msra.mxu0 %v12197_v40  ;;  %3359 = vmatprep.mubr.bf16.mxu0 %v12879_v33  ;;  %v12249_v40 = vld [vmem:[%s15480_s24 + $0x190] sm:$0xff]  }
 0xfec   :  { %10447 = vmatprep.subr.bf16.mxu0 %v12198_v41  ;;  %v12252_v41 = vld [vmem:[%s15480_s24 + $0x1e0] sm:$0xff]  }
 0xfef   :  { %10448 = vmatpush3.bf16.msra.mxu0 %v12199_v42  ;;  %v12253_v42 = vld [vmem:[%s15480_s24 + $0x1a0] sm:$0xff]  }
 0xff0   :  { %10449 = vmatprep.subr.bf16.mxu0 %v12200_v43  ;;  %v12254_v43 = vld [vmem:[%s15480_s24 + $0x1e8] sm:$0xff]  }
 0xff3   :  { %10450 = vmatpush3.bf16.msra.mxu0 %v12201_v44  ;;  %v9159_v44 = vld [vmem:[%s15477_s21] ss:$0 sm:$0xff] }
 0xff4   :  { %10451 = vmatprep.subr.bf16.mxu0 %v12202_v45  ;;  %v12255_v45 = vld [vmem:[%s15480_s24 + $0x1a8] sm:$0xff]  }
 0xff7   :  { %10452 = vmatpush3.bf16.msra.mxu0 %v12203_v46  ;;  %v12256_v46 = vld [vmem:[%s15480_s24 + $0x1f0] sm:$0xff]  }
 0xff8   :  { %10453 = vmatprep.subr.bf16.mxu0 %v12204_v47 }
 0xffb   :  { %10454 = vmatpush3.bf16.msra.mxu0 %v12205_v48 }
 0xffc   :  { %10455 = vmatprep.subr.bf16.mxu0 %v12206_v50 }
 0xfff   :  { %10456 = vmatpush3.bf16.msra.mxu0 %v12207_v52 }
0x1000   :  { %10457 = vmatprep.subr.bf16.mxu0 %v12208_v53  ;;  %v12257_v53 = vld [vmem:[%s15480_s24 + $0x1b0] sm:$0xff]  }
0x1003   :  { %10458 = vmatpush3.bf16.msra.mxu0 %v12209_v54 }
0x1004   :  { %10459 = vmatprep.subr.bf16.mxu0 %v12210_v55 }
0x1007   :  { %10460 = vmatpush3.bf16.msra.mxu0 %v12211_v57  ;;  %v12258_v57 = vld [vmem:[%s15480_s24 + $0x1f8] sm:$0xff]  }
0x1008   :  { %11330 = vmatprep.subr.bf16.mxu0 %v12648_v28 }
0x100a   :  { %3360 = vmatmul.mubr.bf16.vlgmr.msra.gmra.mrb[56].mxu0 %v12928_v49 }
0x100b   :  { %11331 = vmatpush3.bf16.msra.mxu0 %v12212_v58  ;;  %11346 = vmatprep.mubr.msk.bf16.mxu0 %vm12649_vm0, %v12648_v28  ;;  %v12259_v58 = vld [vmem:[%s15480_s24 + $0x1b8] sm:$0xff]  }
0x100c   :  { %11332 = vmatprep.subr.bf16.mxu0 %v12648_v28 }
0x100f   :  { %11333 = vmatpush3.bf16.msra.mxu0 %v12213_v59  ;;  %v12260_v59 = vld [vmem:[%s15470_s14] sm:$0xff]  }
0x1010   :  { %11334 = vmatprep.subr.bf16.mxu0 %v12648_v28 }
0x1013   :  { %11335 = vmatpush3.bf16.msra.mxu0 %v12214_v60  ;;  %v12261_v60 = vld [vmem:[%s15470_s14 + $0x8] sm:$0xff]  }
0x1014   :  { %11336 = vmatprep.subr.bf16.mxu0 %v12648_v28 }
0x1017   :  { %11337 = vmatpush3.bf16.msra.mxu0 %v12215_v56  ;;  %v12262_v56 = vld [vmem:[%s15470_s14 + $0x10] sm:$0xff]  }
0x1018   :  { %11338 = vmatprep.subr.bf16.mxu0 %v12648_v28 }
0x101b   :  { %11339 = vmatpush3.bf16.msra.mxu0 %v12216_v63  ;;  %v12264_v63 = vld [vmem:[%s15470_s14 + $0x20] sm:$0xff]  }
0x101c   :  { %11340 = vmatprep.subr.bf16.mxu0 %v12648_v28 }
0x101f   :  { %11341 = vmatpush3.bf16.msra.mxu0 %v12217_v1  ;;  %v12265_v1 = vld [vmem:[%s15470_s14 + $0x28] sm:$0xff]  }
0x1020   :  { %11342 = vmatprep.subr.bf16.mxu0 %v12648_v28 }
0x1023   :  { %11343 = vmatpush3.bf16.msra.mxu0 %v12218_v61 }
0x1024   :  { %11344 = vmatprep.subr.bf16.mxu0 %v12648_v28 }
0x1027   :  { %11345 = vmatpush3.bf16.msra.mxu0 %v12219_v25  ;;  %v9177_v25 = vld [vmem:[%s15481_s25] ss:$0 sm:$0xff] }
0x1028   :  { %10494 = vmatprep.subr.bf16.mxu0 %v12220_v20 }
0x102a   :  { %11347 = vmatmul.mubr.bf16.vlgmr.msra.gmra.mrb[60].mxu0 %v13621_v4 }
0x102b   :  { %10495 = vmatpush3.bf16.msra.mxu0 %v12221_v2  ;;  %3946 = vmatprep.mubr.bf16.mxu0 %v12879_v33  ;;  %v12266_v2 = vld [vmem:[%s15470_s14 + $0x30] sm:$0xff]  }
0x102c   :  { %10496 = vmatprep.subr.bf16.mxu0 %v12222_v62 }
0x102f   :  { %10497 = vmatpush3.bf16.msra.mxu0 %v12223_v11 }
0x1030   :  { %10498 = vmatprep.subr.bf16.mxu0 %v12224_v5 }
0x1033   :  { %10499 = vmatpush3.bf16.msra.mxu0 %v12225_v6 }
0x1034   :  { %10500 = vmatprep.subr.bf16.mxu0 %v12226_v7 }
0x1037   :  { %10501 = vmatpush3.bf16.msra.mxu0 %v12227_v9  ;;  %v12267_v9 = vld [vmem:[%s15470_s14 + $0x38] sm:$0xff]  }
0x1038   :  { %10502 = vmatprep.subr.bf16.mxu0 %v12228_v10 }
0x103b   :  { %10503 = vmatpush3.bf16.msra.mxu0 %v12229_v13 }
0x103c   :  { %10504 = vmatprep.subr.bf16.mxu0 %v12230_v14  ;;  %v12268_v14 = vld [vmem:[%s15474_s18] sm:$0xff]  }
0x103f   :  { %10505 = vmatpush3.bf16.msra.mxu0 %v12231_v15  ;;  %v13975_v15 = vrot.slane %v13057_v3, 4  ;;  %v12270_v3 = vld [vmem:[%s15474_s18 + $0x10] sm:$0xff]  }
0x1040   :  { %10506 = vmatprep.subr.bf16.mxu0 %v12232_v21  ;;  %v12269_v21 = vld [vmem:[%s15474_s18 + $0x8] sm:$0xff]  }
0x1043   :  { %10507 = vmatpush3.bf16.msra.mxu0 %v12233_v17  ;;  %v12271_v17 = vld [vmem:[%s15474_s18 + $0x18] sm:$0xff]  }
0x1044   :  { %10508 = vmatprep.subr.bf16.mxu0 %v12234_v18  ;;  %v12272_v18 = vld [vmem:[%s15474_s18 + $0x20] sm:$0xff]  }
0x1047   :  { %10509 = vmatpush3.bf16.msra.mxu0 %v12235_v19  ;;  %v12273_v19 = vld [vmem:[%s15474_s18 + $0x28] sm:$0xff]  }
0x1048   :  { %11394 = vmatprep.subr.bf16.mxu0 %v12648_v28 }
0x104a   :  { %3947 = vmatmul.mubr.bf16.vlgmr.msra.gmra.mrb[64].mxu0 %v12928_v49 }
0x104b   :  { %11395 = vmatpush3.bf16.msra.mxu0 %v12236_v22  ;;  %11410 = vmatprep.mubr.msk.bf16.mxu0 %vm12649_vm0, %v12648_v28 }
0x104c   :  { %11396 = vmatprep.subr.bf16.mxu0 %v12648_v28 }
0x104f   :  { %11397 = vmatpush3.bf16.msra.mxu0 %v12237_v23 }
0x1050   :  { %11398 = vmatprep.subr.bf16.mxu0 %v12648_v28 }
0x1053   :  { %11399 = vmatpush3.bf16.msra.mxu0 %v12238_v24 }
0x1054   :  { %11400 = vmatprep.subr.bf16.mxu0 %v12648_v28 }
0x1057   :  { %11401 = vmatpush3.bf16.msra.mxu0 %v12239_v26  ;;  %v12274_v26 = vld [vmem:[%s15474_s18 + $0x30] sm:$0xff]  }
0x1058   :  { %11402 = vmatprep.subr.bf16.mxu0 %v12648_v28 }
0x105b   :  { %11403 = vmatpush3.bf16.msra.mxu0 %v12240_v27 }
0x105c   :  { %11404 = vmatprep.subr.bf16.mxu0 %v12648_v28 }
0x105f   :  { %11405 = vmatpush3.bf16.msra.mxu0 %v12241_v29  ;;  %v12275_v29 = vld [vmem:[%s15474_s18 + $0x38] sm:$0xff]  }
0x1060   :  { %11406 = vmatprep.subr.bf16.mxu0 %v12648_v28 }
0x1063   :  { %11407 = vmatpush3.bf16.msra.mxu0 %v12242_v30  ;;  %v12276_v30 = vld [vmem:[%s15472_s16 + $0x40] sm:$0xff]  }
0x1064   :  { %11408 = vmatprep.subr.bf16.mxu0 %v12648_v28 }
0x1067   :  { %11409 = vmatpush3.bf16.msra.mxu0 %v12243_v34  ;;  %v14016_v34 = vrot.slane %v13051_v0, 4  ;;  %v12278_v0 = vld [vmem:[%s15472_s16 + $0x50] sm:$0xff]  }
0x1068   :  { %10543 = vmatprep.subr.bf16.mxu0 %v12244_v35  ;;  %v12277_v35 = vld [vmem:[%s15472_s16 + $0x48] sm:$0xff]  }
0x106a   :  { %11411 = vmatmul.mubr.bf16.vlgmr.msra.gmra.mrb[68].mxu0 %v13621_v4  ;;  %v12250_v4 = vld [vmem:[%s15480_s24 + $0x1d8] sm:$0xff]  }
0x106b   :  { %10544 = vmatpush3.bf16.msra.mxu0 %v12245_v36  ;;  %4533 = vmatprep.mubr.bf16.mxu0 %v12879_v33  ;;  %v12251_v33 = vld [vmem:[%s15480_s24 + $0x198] sm:$0xff]  }
0x106c   :  { %10545 = vmatprep.subr.bf16.mxu0 %v12246_v37  ;;  %v12279_v36 = vld [vmem:[%s15472_s16 + $0x58] sm:$0xff]   ;;  %v12280_v37 = vld [vmem:[%s15472_s16 + $0x60] sm:$0xff]  }
0x106f   :  { %10546 = vmatpush3.bf16.msra.mxu0 %v12247_v38  ;;  %v12281_v38 = vld [vmem:[%s15472_s16 + $0x68] sm:$0xff]  }
0x1070   :  { %10547 = vmatprep.subr.bf16.mxu0 %v12248_v39 }
0x1073   :  { %10548 = vmatpush3.bf16.msra.mxu0 %v12249_v40  ;;  %v9286_v40 = vld [vmem:[%s15481_s25 + $0x1] ss:$0 sm:$0xff] }
0x1074   :  { %10549 = vmatprep.subr.bf16.mxu0 %v12250_v4 }
0x1077   :  { %10550 = vmatpush3.bf16.msra.mxu0 %v12251_v33  ;;  %v12282_v33 = vld [vmem:[%s15472_s16 + $0x70] sm:$0xff]  }
0x1078   :  { %10551 = vmatprep.subr.bf16.mxu0 %v12252_v41 }
0x107b   :  { %10552 = vmatpush3.bf16.msra.mxu0 %v12253_v42 }
0x107c   :  { %10553 = vmatprep.subr.bf16.mxu0 %v12254_v43 }
0x107d   :  { %v2486_v47 = vpop.f32.mrb[44].mxu0 }
0x107e   :  { %v2487_v48 = vadd.f32 %v9159_v44, %v2486_v47  ;;  %v11220_v50 = vpop.f32.mrb[45].mxu0 }
0x107f   :  { %10554 = vmatpush3.bf16.msra.mxu0 %v12255_v45  ;;  %v2489_v52 = vpop.f32.mrb[46].mxu0 }
0x1080   :  { %v2780_v54 = vpack.c.bf16 %v2487_v48, %v2487_v48  ;;  %v11221_v55 = vpop.f32.mrb[47].mxu0  ;;  %10555 = vmatprep.subr.bf16.mxu0 %v12256_v46  ;;  %v12283_v46 = vld [vmem:[%s15472_s16 + $0x78] sm:$0xff]  }
0x1082   :  { %11245 = vmatmul.mubr.msk.bf16.vlgmr.msra.gmra.mrb[52].mxu1 %vm907_vm1, %v2780_v54 }
0x1083   :  { %10556 = vmatpush3.bf16.msra.mxu0 %v12257_v53  ;;  %11250 = vmatprep.mubr.msk.bf16.mxu1 %vm12649_vm0, %v12648_v28 }
0x1084   :  { %10557 = vmatprep.subr.bf16.mxu0 %v12258_v57  ;;  %v9403_v57 = vld [vmem:[%s15481_s25 + $0x2] ss:$0 sm:$0xff] }
0x1087   :  { %10558 = vmatpush3.bf16.msra.mxu0 %v12259_v58 }
0x1088   :  { %11458 = vmatprep.subr.bf16.mxu0 %v12648_v28 }
0x108a   :  { %4534 = vmatmul.mubr.bf16.vlgmr.msra.gmra.mrb[72].mxu0 %v12928_v49  ;;  %v12263_v49 = vld [vmem:[%s15470_s14 + $0x18] sm:$0xff]  }
0x108b   :  { %11459 = vmatpush3.bf16.msra.mxu0 %v12260_v59  ;;  %11474 = vmatprep.mubr.msk.bf16.mxu0 %vm12649_vm0, %v12648_v28 }
0x108c   :  { %11460 = vmatprep.subr.bf16.mxu0 %v12648_v28 }
0x108f   :  { %11461 = vmatpush3.bf16.msra.mxu0 %v12261_v60 }
0x1090   :  { %11462 = vmatprep.subr.bf16.mxu0 %v12648_v28 }
0x1093   :  { %11463 = vmatpush3.bf16.msra.mxu0 %v12262_v56 }
0x1094   :  { %11464 = vmatprep.subr.bf16.mxu0 %v12648_v28 }
0x1097   :  { %11465 = vmatpush3.bf16.msra.mxu0 %v12263_v49 }
0x1098   :  { %11466 = vmatprep.subr.bf16.mxu0 %v12648_v28 }
0x109b   :  { %11467 = vmatpush3.bf16.msra.mxu0 %v12264_v63 }
0x109c   :  { %11468 = vmatprep.subr.bf16.mxu0 %v12648_v28 }
0x109d   :  { %v10412_v61 = vpop.f32.mrb[48].mxu0 }
0x109e   :  { %v10413_v20 = vpop.f32.mrb[49].mxu0 }
0x109f   :  { %11469 = vmatpush3.bf16.msra.mxu0 %v12265_v1  ;;  %v10414_v62 = vadd.f32 %v10413_v20, %v10412_v61  ;;  %v10415_v11 = vpop.f32.mrb[50].mxu0 }
0x10a0   :  { %11470 = vmatprep.subr.bf16.mxu0 %v12648_v28  ;;  %v10416_v5 = vpop.f32.mrb[51].mxu0 }
0x10a1   :  { %v2774_v6 = vadd.f32 %v10414_v62, %v9177_v25  ;;  %v10417_v7 = vadd.f32 %v10416_v5, %v10415_v11 }
0x10a3   :  { %11471 = vmatpush3.bf16.msra.mxu0 %v12266_v2  ;;  %v2777_v10 = vadd.f32 %v10417_v7, %v9177_v25 }
0x10a4   :  { %11472 = vmatprep.subr.bf16.mxu0 %v12648_v28 }
0x10a5   :  { %v2841_v13 = vpack.c.bf16 %v2777_v10, %v2774_v6 }
0x10a7   :  { %11473 = vmatpush3.bf16.msra.mxu0 %v12267_v9  ;;  %11249 = vmatpush3.bf16.msra.mxu1 %v2841_v13  ;;  %v9520_v13 = vld [vmem:[%s15481_s25 + $0x3] ss:$0 sm:$0xff] }
0x10a8   :  { %11498 = vmatprep.subr.bf16.mxu0 %v12648_v28  ;;  %11254 = vmatprep.subr.bf16.mxu1 %v12648_v28 }
0x10aa   :  { %11475 = vmatmul.mubr.bf16.vlgmr.msra.gmra.mrb[76].mxu0 %v13975_v15 }
0x10ab   :  { %11499 = vmatpush3.bf16.msra.mxu0 %v12268_v14  ;;  %11514 = vmatprep.mubr.msk.bf16.mxu0 %vm12649_vm0, %v12648_v28 }
0x10ac   :  { %11500 = vmatprep.subr.bf16.mxu0 %v12648_v28 }
0x10af   :  { %11501 = vmatpush3.bf16.msra.mxu0 %v12269_v21 }
0x10b0   :  { %11502 = vmatprep.subr.bf16.mxu0 %v12648_v28 }
0x10b3   :  { %11503 = vmatpush3.bf16.msra.mxu0 %v12270_v3 }
0x10b4   :  { %11504 = vmatprep.subr.bf16.mxu0 %v12648_v28 }
0x10b7   :  { %11505 = vmatpush3.bf16.msra.mxu0 %v12271_v17 }
0x10b8   :  { %11506 = vmatprep.subr.bf16.mxu0 %v12648_v28 }
0x10bb   :  { %11507 = vmatpush3.bf16.msra.mxu0 %v12272_v18 }
0x10bc   :  { %11508 = vmatprep.subr.bf16.mxu0 %v12648_v28 }
0x10bd   :  { %v14002_v22 = vpop.f32.mrb[52].mxu0 }
0x10be   :  { %v11284_v23 = vpop.f32.mrb[53].mxu0 }
0x10bf   :  { %v3073_v24 = vpop.f32.mrb[54].mxu0  ;;  %11509 = vmatpush3.bf16.msra.mxu0 %v12273_v19 }
0x10c0   :  { %v11285_v27 = vpop.f32.mrb[55].mxu0  ;;  %11510 = vmatprep.subr.bf16.mxu0 %v12648_v28 }
0x10c3   :  { %11511 = vmatpush3.bf16.msra.mxu0 %v12274_v26 }
0x10c4   :  { %11512 = vmatprep.subr.bf16.mxu0 %v12648_v28 }
0x10c7   :  { %11513 = vmatpush3.bf16.msra.mxu0 %v12275_v29 }
0x10c8   :  { %11550 = vmatprep.subr.bf16.mxu0 %v12648_v28 }
0x10ca   :  { %11515 = vmatmul.mubr.bf16.vlgmr.msra.gmra.mrb[80].mxu0 %v14016_v34 }
0x10cb   :  { %11551 = vmatpush3.bf16.msra.mxu0 %v12276_v30  ;;  %11566 = vmatprep.mubr.msk.bf16.mxu0 %vm12649_vm0, %v12648_v28 }
0x10cc   :  { %11552 = vmatprep.subr.bf16.mxu0 %v12648_v28 }
0x10cf   :  { %11553 = vmatpush3.bf16.msra.mxu0 %v12277_v35 }
0x10d0   :  { %11554 = vmatprep.subr.bf16.mxu0 %v12648_v28 }
0x10d3   :  { %11555 = vmatpush3.bf16.msra.mxu0 %v12278_v0 }
0x10d4   :  { %11556 = vmatprep.subr.bf16.mxu0 %v12648_v28 }
0x10d7   :  { %11557 = vmatpush3.bf16.msra.mxu0 %v12279_v36 }
0x10d8   :  { %11558 = vmatprep.subr.bf16.mxu0 %v12648_v28 }
0x10db   :  { %11559 = vmatpush3.bf16.msra.mxu0 %v12280_v37 }
0x10dc   :  { %11560 = vmatprep.subr.bf16.mxu0 %v12648_v28 }
0x10dd   :  { %v10461_v39 = vpop.f32.mrb[56].mxu0 }
0x10de   :  { %v10462_v4 = vpop.f32.mrb[57].mxu0 }
0x10df   :  { %11561 = vmatpush3.bf16.msra.mxu0 %v12281_v38  ;;  %v10463_v41 = vadd.f32 %v10462_v4, %v10461_v39  ;;  %v10464_v42 = vpop.f32.mrb[58].mxu0  ;;  %v9626_v38 = vld [vmem:[%s15473_s17 + $0x1] ss:$0 sm:$0xff] }
0x10e0   :  { %11562 = vmatprep.subr.bf16.mxu0 %v12648_v28  ;;  %v10465_v43 = vpop.f32.mrb[59].mxu0 }
0x10e1   :  { %v14049_v44 = vadd.f32 %v10463_v41, %v9286_v40  ;;  %v10466_v45 = vadd.f32 %v10465_v43, %v10464_v42 }
0x10e3   :  { %11563 = vmatpush3.bf16.msra.mxu0 %v12282_v33  ;;  %v14054_v47 = vadd.f32 %v10466_v45, %v9286_v40 }
0x10e4   :  { %11564 = vmatprep.subr.bf16.mxu0 %v12648_v28 }
0x10e5   :  { %v3428_v48 = vpack.c.bf16 %v14054_v47, %v14049_v44 }
0x10e7   :  { %11565 = vmatpush3.bf16.msra.mxu0 %v12283_v46 }
0x10e8   :  { %11590 = vmatprep.subr.bf16.mxu0 %v12648_v28 }
0x10ea   :  { %11567 = vmatmul.mubr.bf16.vlgmr.msra.gmra.mrb[84].mxu0 %v14016_v34 }
0x10eb   :  { %11592 = vmatprep.mubr.msk.bf16.mxu0 %vm12649_vm0, %v12648_v28 }
0x10fd   :  { %v14063_v50 = vpop.f32.mrb[60].mxu0 }
0x10fe   :  { %v11348_v52 = vpop.f32.mrb[61].mxu0 }
0x10ff   :  { %v3660_v53 = vpop.f32.mrb[62].mxu0 }
0x1100   :  { %v11349_v54 = vpop.f32.mrb[63].mxu0 }
0x111d   :  { %v10510_v55 = vpop.f32.mrb[64].mxu0 }
0x111e   :  { %v10511_v58 = vpop.f32.mrb[65].mxu0 }
0x111f   :  { %v10512_v59 = vadd.f32 %v10511_v58, %v10510_v55  ;;  %v10513_v60 = vpop.f32.mrb[66].mxu0 }
0x1120   :  { %v10514_v56 = vpop.f32.mrb[67].mxu0 }
0x1121   :  { %v14068_v49 = vadd.f32 %v10512_v59, %v9403_v57  ;;  %v10515_v63 = vadd.f32 %v10514_v56, %v10513_v60  ;;  %v12284_v59 = vld [vmem:[%s15482_s26] sm:$0xff]   ;;  %v12285_v56 = vld [vmem:[%s15482_s26 + $0x8] sm:$0xff]  }
0x1123   :  { %v14070_v1 = vadd.f32 %v10515_v63, %v9403_v57  ;;  %v12286_v63 = vld [vmem:[%s15482_s26 + $0x10] sm:$0xff]  }
0x1125   :  { %v4015_v61 = vpack.c.bf16 %v14070_v1, %v14068_v49 }
0x113d   :  { %v14074_v25 = vpop.f32.mrb[68].mxu0 }
0x113e   :  { %v11412_v20 = vpop.f32.mrb[69].mxu0 }
0x113f   :  { %v4247_v2 = vpop.f32.mrb[70].mxu0  ;;  %v12287_v20 = vld [vmem:[%s15482_s26 + $0x18] sm:$0xff]  }
0x1140   :  { %v11413_v62 = vpop.f32.mrb[71].mxu0 }
0x1141   :  { %v12288_v62 = vld [vmem:[%s15478_s22 + $0x40] sm:$0xff]  }
0x1155   :  { %v2822_v11 = vpop.f32.mrb[52].mxu1 }
0x1156   :  { %v11246_v5 = vpop.f32.mrb[53].mxu1  ;;  %v2829_v6 = vsel %vm2828_vm7, %v2822_v11, -inf }
0x1157   :  { %2830 = vmax.xlane.f32.xlu1 %v2829_v6  ;;  %v2825_v7 = vpop.f32.mrb[54].mxu1 }
0x1158   :  { %v11247_v9 = vpop.f32.mrb[55].mxu1 }
0x1159   :  { %v12289_v9 = vld [vmem:[%s15478_s22 + $0x48] sm:$0xff]  }
0x115d   :  { %v10559_v10 = vpop.f32.mrb[72].mxu0 }
0x115e   :  { %v10560_v14 = vpop.f32.mrb[73].mxu0 }
0x115f   :  { %v10561_v21 = vadd.f32 %v10560_v14, %v10559_v10  ;;  %v10562_v3 = vpop.f32.mrb[74].mxu0  ;;  %v12290_v10 = vld [vmem:[%s15478_s22 + $0x50] sm:$0xff]   ;;  %v12292_v14 = vld [vmem:[%s15478_s22 + $0x60] sm:$0xff]  }
0x1160   :  { %v10563_v17 = vpop.f32.mrb[75].mxu0 }
0x1161   :  { %v14080_v18 = vadd.f32 %v10561_v21, %v9520_v13  ;;  %v10564_v19 = vadd.f32 %v10563_v17, %v10562_v3  ;;  %v12293_v21 = vld [vmem:[%s15478_s22 + $0x68] sm:$0xff]   ;;  %v12294_v3 = vld [vmem:[%s15478_s22 + $0x70] sm:$0xff]   ;;  %v12295_v17 = vld [vmem:[%s15478_s22 + $0x78] sm:$0xff]  }
0x1163   :  { %v14082_v23 = vadd.f32 %v10564_v19, %v9520_v13  ;;  %v12291_v13 = vld [vmem:[%s15478_s22 + $0x58] sm:$0xff]   ;;  %v9244_v19 = vld [vmem:[%s15479_s23 + $0x1] ss:$0 sm:$0xff] }
0x1165   :  { %v4602_v24 = vpack.c.bf16 %v14082_v23, %v14080_v18 }
0x117d   :  { %v14086_v26 = vpop.f32.mrb[76].mxu0 }
0x117e   :  { %v11476_v27 = vpop.f32.mrb[77].mxu0 }
0x117f   :  { %v4838_v29 = vpop.f32.mrb[78].mxu0 }
0x1180   :  { %v11477_v30 = vpop.f32.mrb[79].mxu0 }
0x119d   :  { %v14088_v35 = vpop.f32.mrb[80].mxu0 }
0x119e   :  { %v11516_v0 = vpop.f32.mrb[81].mxu0 }
0x119f   :  { %v5063_v36 = vpop.f32.mrb[82].mxu0 }
0x11a0   :  { %v11517_v37 = vpop.f32.mrb[83].mxu0 }
0x11bd   :  { %v5396_v39 = vpop.f32.mrb[84].mxu0 }
0x11be   :  { %v5397_v40 = vadd.f32 %v9626_v38, %v5396_v39  ;;  %v11568_v4 = vpop.f32.mrb[85].mxu0  ;;  %v9218_v39 = vld [vmem:[%s15477_s21 + $0x1] ss:$0 sm:$0xff] }
0x11bf   :  { %v5399_v33 = vpop.f32.mrb[86].mxu0  ;;  %v3071_v4 = vadd.f32 %v9218_v39, %v14002_v22 }
0x11c0   :  { %v5514_v41 = vpack.c.bf16 %v5397_v40, %v5397_v40  ;;  %v11569_v42 = vpop.f32.mrb[87].mxu0 }
0x11c1   :  { %v3368_v33 = vpack.c.bf16 %v3071_v4, %v3071_v4 }
0x11c2   :  { %v5519_v43 = vsel %vm907_vm1, %v5514_v41, 0 }
0x11c3   :  { %11591 = vmatpush3.bf16.xpose.msra.mxu0 %v5519_v43 }
0x11c4   :  { %11596 = vmatprep.subr.bf16.mxu0 %v12648_v28 }
0x11e4   :  { %v2831_v45 = vpop.xlane.xlu1 %2830 }
0x11e5   :  { %v2832_v46 = vsub.f32 %v2822_v11, %v2831_v45 }
0x11e7   :  { %v2833_v52 = vmul.f32 1.442695, %v2832_v46 }
0x11e9   :  { %12568 = vpow2.f32 %v2833_v52 }
0x11f3   :  { %v12569_v53 = vpop.eup %12568 }
0x11f4   :  { %v2835_v54 = vsel %vm2828_vm7, %v12569_v53, 0.0 }
0x11f5   :  { %2836 = vadd.xlane.f32.xlu0 %v2835_v54 }
0x1282   :  { %v2837_v55 = vpop.xlane.xlu0 %2836 }
0x1283   :  { %12570 = vrcp.f32 %v2837_v55 }
0x128d   :  { %v12571_v57 = vpop.eup %12570 }
0x128e   :  { %v2839_v58 = vmul.f32 %v12571_v57, %v12569_v53  ;;  %v12296_v57 = vld [vmem:[%s15482_s26 + $0x20] sm:$0xff]  }
0x1290   :  { %v2840_v60 = vpack.c.bf16 %v2839_v58, %v2839_v58 }
0x1292   :  { %11251 = vmatmul.mubr.msk.bf16.vlgmr.msra.gmra.mrb[56].mxu1 %vm2828_vm7, %v2840_v60  ;;  %v12298_v60 = vld [vmem:[%s15482_s26 + $0x30] sm:$0xff]  }
0x1293   :  { %11255 = vmatpush3.bf16.msra.mxu1 %v12284_v59  ;;  %11262 = vmatprep.mubr.msk.bf16.mxu1 %vm12649_vm0, %v12648_v28  ;;  %v12297_v59 = vld [vmem:[%s15482_s26 + $0x28] sm:$0xff]  }
0x1294   :  { %11256 = vmatprep.subr.bf16.mxu1 %v12648_v28 }
0x1297   :  { %11257 = vmatpush3.bf16.msra.mxu1 %v12285_v56  ;;  %v12299_v56 = vld [vmem:[%s15482_s26 + $0x38] sm:$0xff]  }
0x1298   :  { %11258 = vmatprep.subr.bf16.mxu1 %v12648_v28 }
0x129b   :  { %11259 = vmatpush3.bf16.msra.mxu1 %v12286_v63 }
0x129c   :  { %11260 = vmatprep.subr.bf16.mxu1 %v12648_v28 }
0x129f   :  { %11261 = vmatpush3.bf16.msra.mxu1 %v12287_v20  ;;  %v12300_v20 = vld [vmem:[%s15478_s22 + $0x80] sm:$0xff]  }
0x12a0   :  { %11286 = vmatprep.subr.bf16.mxu1 %v12648_v28 }
0x1365   :  { %v2879_v2 = vpop.f32.mrb[56].mxu1 }
0x1366   :  { %v2885_v11 = vpack.c.bf16 %v2879_v2, %v2879_v2  ;;  %v11252_v5 = vpop.f32.mrb[57].mxu1 }
0x1367   :  { %v2882_v6 = vpop.f32.mrb[58].mxu1 }
0x1368   :  { %v11253_v7 = vpop.f32.mrb[59].mxu1  ;;  %11263 = vmatmul.mubr.msk.bf16.vlgmr.msra.gmra.mrb[60].mxu1 %vm2918_vm8, %v2885_v11  ;;  %v12301_v6 = vld [vmem:[%s15478_s22 + $0x88] sm:$0xff]  }
0x1369   :  { %11287 = vmatpush3.bf16.msra.mxu1 %v12288_v62  ;;  %11302 = vmatprep.mubr.msk.bf16.mxu1 %vm12649_vm0, %v12648_v28  ;;  %v12302_v7 = vld [vmem:[%s15478_s22 + $0x90] sm:$0xff]  }
0x136a   :  { %11288 = vmatprep.subr.bf16.mxu1 %v12648_v28 }
0x136d   :  { %11289 = vmatpush3.bf16.msra.mxu1 %v12289_v9  ;;  %v12303_v9 = vld [vmem:[%s15478_s22 + $0x98] sm:$0xff]  }
0x136e   :  { %11290 = vmatprep.subr.bf16.mxu1 %v12648_v28 }
0x1371   :  { %11291 = vmatpush3.bf16.msra.mxu1 %v12290_v10  ;;  %v12304_v10 = vld [vmem:[%s15478_s22 + $0xa0] sm:$0xff]  }
0x1372   :  { %11292 = vmatprep.subr.bf16.mxu1 %v12648_v28 }
0x1375   :  { %11293 = vmatpush3.bf16.msra.mxu1 %v12291_v13  ;;  %v12305_v13 = vld [vmem:[%s15478_s22 + $0xa8] sm:$0xff]  }
0x1376   :  { %11294 = vmatprep.subr.bf16.mxu1 %v12648_v28 }
0x1379   :  { %11295 = vmatpush3.bf16.msra.mxu1 %v12292_v14  ;;  %v12306_v14 = vld [vmem:[%s15478_s22 + $0xb0] sm:$0xff]  }
0x137a   :  { %11296 = vmatprep.subr.bf16.mxu1 %v12648_v28 }
0x137d   :  { %11297 = vmatpush3.bf16.msra.mxu1 %v12293_v21  ;;  %v12307_v21 = vld [vmem:[%s15478_s22 + $0xb8] sm:$0xff]  }
0x137e   :  { %11298 = vmatprep.subr.bf16.mxu1 %v12648_v28 }
0x1381   :  { %11299 = vmatpush3.bf16.msra.mxu1 %v12294_v3  ;;  %v9361_v3 = vld [vmem:[%s15479_s23 + $0x2] ss:$0 sm:$0xff] }
0x1382   :  { %11300 = vmatprep.subr.bf16.mxu1 %v12648_v28 }
0x1385   :  { %11301 = vmatpush3.bf16.msra.mxu1 %v12295_v17 }
0x1386   :  { %11306 = vmatprep.subr.bf16.mxu1 %v12648_v28 }
0x1388   :  { %11303 = vmatmul.mubr.bf16.vlgmr.msra.gmra.mrb[64].mxu1 %v13601_v51 }
0x1389   :  { %11308 = vmatprep.mubr.msk.bf16.mxu1 %vm12649_vm0, %v12648_v28 }
0x145b   :  { %v3183_v27 = vpop.f32.mrb[64].mxu1 }
0x145c   :  { %v11304_v29 = vpop.f32.mrb[65].mxu1  ;;  %v3184_v0 = vadd.f32 %v9244_v19, %v3183_v27 }
0x145d   :  { %v3186_v30 = vpop.f32.mrb[66].mxu1 }
0x145e   :  { %v3187_v36 = vadd.f32 %v9244_v19, %v3186_v30  ;;  %v11305_v37 = vpop.f32.mrb[67].mxu1 }
0x145f   :  { %v9335_v37 = vld [vmem:[%s15477_s21 + $0x2] ss:$0 sm:$0xff] }
0x1460   :  { %v3369_v38 = vpack.c.bf16 %v3187_v36, %v3184_v0  ;;  %v3658_v39 = vadd.f32 %v9335_v37, %v14063_v50 }
0x1462   :  { %v3374_v40 = vsel %vm907_vm1, %v3369_v38, 0 }
0x1463   :  { %11307 = vmatpush3.bf16.xpose.msra.mxu1 %v3374_v40  ;;  %v3955_v40 = vpack.c.bf16 %v3658_v39, %v3658_v39 }
0x1464   :  { %11312 = vmatprep.subr.bf16.mxu1 %v12648_v28 }
0x146a   :  { %11309 = vmatmul.mubr.msk.bf16.vlgmr.msra.gmra.mrb[68].mxu1 %vm907_vm1, %v3368_v33 }
0x146b   :  { %11313 = vmatpush3.bf16.msra.mxu1 %v3428_v48  ;;  %11314 = vmatprep.mubr.msk.bf16.mxu1 %vm12649_vm0, %v12648_v28 }
0x146c   :  { %11318 = vmatprep.subr.bf16.mxu1 %v12648_v28 }
0x153d   :  { %v3410_v41 = vpop.f32.mrb[68].mxu1 }
0x153e   :  { %v11310_v42 = vpop.f32.mrb[69].mxu1  ;;  %v3416_v43 = vsel %vm2828_vm7, %v3410_v41, -inf }
0x153f   :  { %3417 = vmax.xlane.f32.xlu0 %v3416_v43  ;;  %v3413_v22 = vpop.f32.mrb[70].mxu1 }
0x1540   :  { %v11311_v45 = vpop.f32.mrb[71].mxu1 }
0x15cc   :  { %v3418_v46 = vpop.xlane.xlu0 %3417 }
0x15cd   :  { %v3419_v52 = vsub.f32 %v3410_v41, %v3418_v46 }
0x15cf   :  { %v3420_v53 = vmul.f32 1.442695, %v3419_v52 }
0x15d1   :  { %12572 = vpow2.f32 %v3420_v53  ;;  %v12308_v53 = vld [vmem:[%s15482_s26 + $0x40] sm:$0xff]  }
0x15db   :  { %v12573_v54 = vpop.eup %12572 }
0x15dc   :  { %v3422_v44 = vsel %vm2828_vm7, %v12573_v54, 0.0 }
0x15dd   :  { %3423 = vadd.xlane.f32.xlu0 %v3422_v44  ;;  %v12309_v44 = vld [vmem:[%s15482_s26 + $0x48] sm:$0xff]  }
0x166a   :  { %v3424_v47 = vpop.xlane.xlu0 %3423 }
0x166b   :  { %12574 = vrcp.f32 %v3424_v47  ;;  %v12310_v47 = vld [vmem:[%s15482_s26 + $0x50] sm:$0xff]  }
0x1675   :  { %v12575_v48 = vpop.eup %12574 }
0x1676   :  { %v3426_v55 = vmul.f32 %v12575_v48, %v12573_v54  ;;  %v12311_v48 = vld [vmem:[%s15482_s26 + $0x58] sm:$0xff]  }
0x1678   :  { %v3427_v58 = vpack.c.bf16 %v3426_v55, %v3426_v55 }
0x167a   :  { %11315 = vmatmul.mubr.msk.bf16.vlgmr.msra.gmra.mrb[72].mxu1 %vm2828_vm7, %v3427_v58 }
0x167b   :  { %11319 = vmatpush3.bf16.msra.mxu1 %v12296_v57  ;;  %11326 = vmatprep.mubr.msk.bf16.mxu1 %vm12649_vm0, %v12648_v28  ;;  %v12312_v57 = vld [vmem:[%s15478_s22 + $0xc0] sm:$0xff]  }
0x167c   :  { %11320 = vmatprep.subr.bf16.mxu1 %v12648_v28 }
0x167f   :  { %11321 = vmatpush3.bf16.msra.mxu1 %v12297_v59 }
0x1680   :  { %11322 = vmatprep.subr.bf16.mxu1 %v12648_v28 }
0x1683   :  { %11323 = vmatpush3.bf16.msra.mxu1 %v12298_v60 }
0x1684   :  { %11324 = vmatprep.subr.bf16.mxu1 %v12648_v28 }
0x1687   :  { %11325 = vmatpush3.bf16.msra.mxu1 %v12299_v56 }
0x1688   :  { %11350 = vmatprep.subr.bf16.mxu1 %v12648_v28 }
0x174d   :  { %v3466_v63 = vpop.f32.mrb[72].mxu1 }
0x174e   :  { %v3472_v2 = vpack.c.bf16 %v3466_v63, %v3466_v63  ;;  %v11316_v62 = vpop.f32.mrb[73].mxu1  ;;  %v12313_v63 = vld [vmem:[%s15478_s22 + $0xc8] sm:$0xff]  }
0x174f   :  { %v3469_v11 = vpop.f32.mrb[74].mxu1  ;;  %v12316_v62 = vld [vmem:[%s15478_s22 + $0xe0] sm:$0xff]  }
0x1750   :  { %v11317_v5 = vpop.f32.mrb[75].mxu1  ;;  %11327 = vmatmul.mubr.msk.bf16.vlgmr.msra.gmra.mrb[60].mxu1 %vm2918_vm8, %v3472_v2  ;;  %v12315_v2 = vld [vmem:[%s15478_s22 + $0xd8] sm:$0xff]   ;;  %v12317_v11 = vld [vmem:[%s15478_s22 + $0xe8] sm:$0xff]  }
0x1751   :  { %11351 = vmatpush3.bf16.msra.mxu1 %v12300_v20  ;;  %11366 = vmatprep.mubr.msk.bf16.mxu1 %vm12649_vm0, %v12648_v28  ;;  %v12314_v20 = vld [vmem:[%s15478_s22 + $0xd0] sm:$0xff]  }
0x1752   :  { %11352 = vmatprep.subr.bf16.mxu1 %v12648_v28  ;;  %v12318_v5 = vld [vmem:[%s15478_s22 + $0xf0] sm:$0xff]  }
0x1755   :  { %11353 = vmatpush3.bf16.msra.mxu1 %v12301_v6  ;;  %v12319_v6 = vld [vmem:[%s15478_s22 + $0xf8] sm:$0xff]  }
0x1756   :  { %11354 = vmatprep.subr.bf16.mxu1 %v12648_v28 }
0x1759   :  { %11355 = vmatpush3.bf16.msra.mxu1 %v12302_v7  ;;  %v9478_v7 = vld [vmem:[%s15479_s23 + $0x3] ss:$0 sm:$0xff] }
0x175a   :  { %11356 = vmatprep.subr.bf16.mxu1 %v12648_v28 }
0x175d   :  { %11357 = vmatpush3.bf16.msra.mxu1 %v12303_v9 }
0x175e   :  { %11358 = vmatprep.subr.bf16.mxu1 %v12648_v28 }
0x1761   :  { %11359 = vmatpush3.bf16.msra.mxu1 %v12304_v10 }
0x1762   :  { %11360 = vmatprep.subr.bf16.mxu1 %v12648_v28 }
0x1765   :  { %11361 = vmatpush3.bf16.msra.mxu1 %v12305_v13 }
0x1766   :  { %11362 = vmatprep.subr.bf16.mxu1 %v12648_v28 }
0x1769   :  { %11363 = vmatpush3.bf16.msra.mxu1 %v12306_v14 }
0x176a   :  { %11364 = vmatprep.subr.bf16.mxu1 %v12648_v28 }
0x176d   :  { %11365 = vmatpush3.bf16.msra.mxu1 %v12307_v21 }
0x176e   :  { %11370 = vmatprep.subr.bf16.mxu1 %v12648_v28 }
0x1770   :  { %11367 = vmatmul.mubr.bf16.vlgmr.msra.gmra.mrb[76].mxu1 %v13601_v51 }
0x1771   :  { %11372 = vmatprep.mubr.msk.bf16.mxu1 %vm12649_vm0, %v12648_v28 }
0x1843   :  { %v3770_v17 = vpop.f32.mrb[76].mxu1 }
0x1844   :  { %v11368_v19 = vpop.f32.mrb[77].mxu1  ;;  %v3771_v29 = vadd.f32 %v9361_v3, %v3770_v17 }
0x1845   :  { %v3773_v27 = vpop.f32.mrb[78].mxu1  ;;  %v9452_v19 = vld [vmem:[%s15477_s21 + $0x3] ss:$0 sm:$0xff] }
0x1846   :  { %v3774_v30 = vadd.f32 %v9361_v3, %v3773_v27  ;;  %v11369_v0 = vpop.f32.mrb[79].mxu1  ;;  %v4245_v27 = vadd.f32 %v9452_v19, %v14074_v25 }
0x1848   :  { %v3956_v36 = vpack.c.bf16 %v3774_v30, %v3771_v29  ;;  %v4542_v29 = vpack.c.bf16 %v4245_v27, %v4245_v27 }
0x184a   :  { %v3961_v38 = vsel %vm907_vm1, %v3956_v36, 0 }
0x184b   :  { %11371 = vmatpush3.bf16.xpose.msra.mxu1 %v3961_v38 }
0x184c   :  { %11376 = vmatprep.subr.bf16.mxu1 %v12648_v28 }
0x1852   :  { %11373 = vmatmul.mubr.msk.bf16.vlgmr.msra.gmra.mrb[80].mxu1 %vm907_vm1, %v3955_v40 }
0x1853   :  { %11377 = vmatpush3.bf16.msra.mxu1 %v4015_v61  ;;  %11378 = vmatprep.mubr.msk.bf16.mxu1 %vm12649_vm0, %v12648_v28 }
0x1854   :  { %11382 = vmatprep.subr.bf16.mxu1 %v12648_v28 }
0x1925   :  { %v3997_v4 = vpop.f32.mrb[80].mxu1 }
0x1926   :  { %v11374_v33 = vpop.f32.mrb[81].mxu1  ;;  %v4003_v41 = vsel %vm2828_vm7, %v3997_v4, -inf }
0x1927   :  { %4004 = vmax.xlane.f32.xlu1 %v4003_v41  ;;  %v4000_v50 = vpop.f32.mrb[82].mxu1  ;;  %v12320_v41 = vld [vmem:[%s15482_s26 + $0x60] sm:$0xff]  }
0x1928   :  { %v11375_v42 = vpop.f32.mrb[83].mxu1 }
0x1929   :  { %v12321_v42 = vld [vmem:[%s15482_s26 + $0x68] sm:$0xff]  }
0x19b4   :  { %v4005_v43 = vpop.xlane.xlu1 %4004 }
0x19b5   :  { %v4006_v22 = vsub.f32 %v3997_v4, %v4005_v43  ;;  %v12322_v43 = vld [vmem:[%s15482_s26 + $0x70] sm:$0xff]  }
0x19b7   :  { %v4007_v45 = vmul.f32 1.442695, %v4006_v22  ;;  %v12323_v22 = vld [vmem:[%s15482_s26 + $0x78] sm:$0xff]  }
0x19b9   :  { %12576 = vpow2.f32 %v4007_v45 }
0x19c3   :  { %v12577_v46 = vpop.eup %12576 }
0x19c4   :  { %v4009_v49 = vsel %vm2828_vm7, %v12577_v46, 0.0 }
0x19c5   :  { %4010 = vadd.xlane.f32.xlu0 %v4009_v49 }
0x1a52   :  { %v4011_v1 = vpop.xlane.xlu0 %4010 }
0x1a53   :  { %12578 = vrcp.f32 %v4011_v1 }
0x1a5d   :  { %v12579_v61 = vpop.eup %12578 }
0x1a5e   :  { %v4013_v52 = vmul.f32 %v12579_v61, %v12577_v46  ;;  %v12324_v46 = vld [vmem:[%s15472_s16] sm:$0xff]  }
0x1a60   :  { %v4014_v54 = vpack.c.bf16 %v4013_v52, %v4013_v52 }
0x1a62   :  { %11379 = vmatmul.mubr.msk.bf16.vlgmr.msra.gmra.mrb[84].mxu1 %vm2828_vm7, %v4014_v54  ;;  %v12326_v54 = vld [vmem:[%s15472_s16 + $0x10] sm:$0xff]  }
0x1a63   :  { %11383 = vmatpush3.bf16.msra.mxu1 %v12308_v53  ;;  %11390 = vmatprep.mubr.msk.bf16.mxu1 %vm12649_vm0, %v12648_v28  ;;  %v12325_v53 = vld [vmem:[%s15472_s16 + $0x8] sm:$0xff]  }
0x1a64   :  { %11384 = vmatprep.subr.bf16.mxu1 %v12648_v28 }
0x1a67   :  { %11385 = vmatpush3.bf16.msra.mxu1 %v12309_v44  ;;  %v12327_v44 = vld [vmem:[%s15472_s16 + $0x18] sm:$0xff]  }
0x1a68   :  { %11386 = vmatprep.subr.bf16.mxu1 %v12648_v28 }
0x1a6b   :  { %11387 = vmatpush3.bf16.msra.mxu1 %v12310_v47  ;;  %v12328_v47 = vld [vmem:[%s15472_s16 + $0x20] sm:$0xff]  }
0x1a6c   :  { %11388 = vmatprep.subr.bf16.mxu1 %v12648_v28 }
0x1a6f   :  { %11389 = vmatpush3.bf16.msra.mxu1 %v12311_v48  ;;  %v12329_v48 = vld [vmem:[%s15472_s16 + $0x28] sm:$0xff]  }
0x1a70   :  { %11414 = vmatprep.subr.bf16.mxu1 %v12648_v28 }
0x1b35   :  { %v4053_v55 = vpop.f32.mrb[84].mxu1 }
0x1b36   :  { %v4059_v58 = vpack.c.bf16 %v4053_v55, %v4053_v55  ;;  %v11380_v59 = vpop.f32.mrb[85].mxu1  ;;  %v12330_v55 = vld [vmem:[%s15472_s16 + $0x30] sm:$0xff]  }
0x1b37   :  { %v4056_v60 = vpop.f32.mrb[86].mxu1  ;;  %v12621_v59 = vld [vmem:[%s15483_s27] ss:$0 sm:$0xff] }
0x1b38   :  { %v11381_v56 = vpop.f32.mrb[87].mxu1  ;;  %11391 = vmatmul.mubr.msk.bf16.vlgmr.msra.gmra.mrb[60].mxu1 %vm2918_vm8, %v4059_v58  ;;  %v12620_v58 = vld [vmem:[%s15507_s7] sm:$0xff]  ;;  %s12653_s7 = smov [#allocation3]  }
0x1b39   :  { %11415 = vmatpush3.bf16.msra.mxu1 %v12312_v57  ;;  %11430 = vmatprep.mubr.msk.bf16.mxu1 %vm12649_vm0, %v12648_v28  ;;  %v12331_v57 = vld [vmem:[%s15472_s16 + $0x38] sm:$0xff]   ;;  %v2380_v60 = vadd.f32 %v12621_v59, %v12620_v58  ;;  %v12349_v58 = vld [vmem:[%s15472_s16 + $0x88] sm:$0xff]   ;;  %v12350_v59 = vld [vmem:[%s15472_s16 + $0x90] sm:$0xff]   ;;  %s8845_s27 = sshll.u32 %s12653_s7, 4  ;;  %s8846_s27 = int_to_ptr.vmem [resolvable:$true] %s8845_s27 }
0x1b3a   :  { %11416 = vmatprep.subr.bf16.mxu1 %v12648_v28  ;;  %s12624_s12 = scalar_lea.vmem %s8846_s27, 256  ;;  %p12629_p1 = scmp.lt.s32.totalorder %s8846_s27, %s8846_s27 }
0x1b3b   :  { %p12625_p0 = scmp.ne.s32.totalorder %s8846_s27, %s12624_s12  ;;  %p12630_p2 = scmp.lt.s32.totalorder %s12624_s12, %s12624_s12 }
0x1b3d   :  { %11417 = vmatpush3.bf16.msra.mxu1 %v12313_v63  ;;  %p12631_p3 = por %p12630_p2, %p12629_p1 }
0x1b3e   :  { %11418 = vmatprep.subr.bf16.mxu1 %v12648_v28 }
0x1b3f   :  { %p12632_p4 = pnand %p12631_p3, %p12625_p0 }
0x1b41   :  { %11419 = vmatpush3.bf16.msra.mxu1 %v12314_v20 }
0x1b42   :  { %11420 = vmatprep.subr.bf16.mxu1 %v12648_v28 }
0x1b45   :  { %11421 = vmatpush3.bf16.msra.mxu1 %v12315_v2 }
0x1b46   :  { %11422 = vmatprep.subr.bf16.mxu1 %v12648_v28 }
0x1b49   :  { %11423 = vmatpush3.bf16.msra.mxu1 %v12316_v62 }
0x1b4a   :  { %11424 = vmatprep.subr.bf16.mxu1 %v12648_v28 }
0x1b4d   :  { %11425 = vmatpush3.bf16.msra.mxu1 %v12317_v11  ;;  %v9562_v11 = vld [vmem:[%s15473_s17] ss:$0 sm:$0xff] }
0x1b4e   :  { %11426 = vmatprep.subr.bf16.mxu1 %v12648_v28 }
0x1b51   :  { %11427 = vmatpush3.bf16.msra.mxu1 %v12318_v5 }
0x1b52   :  { %11428 = vmatprep.subr.bf16.mxu1 %v12648_v28 }
0x1b55   :  { %11429 = vmatpush3.bf16.msra.mxu1 %v12319_v6 }
0x1b56   :  { %11434 = vmatprep.subr.bf16.mxu1 %v12648_v28 }
0x1b58   :  { %11431 = vmatmul.mubr.bf16.vlgmr.msra.gmra.mrb[88].mxu1 %v13601_v51 }
0x1b59   :  { %11436 = vmatprep.mubr.msk.bf16.mxu1 %vm12649_vm0, %v12648_v28 }
0x1c2b   :  { %v4357_v9 = vpop.f32.mrb[88].mxu1 }
0x1c2c   :  { %v11432_v10 = vpop.f32.mrb[89].mxu1  ;;  %v4358_v14 = vadd.f32 %v9478_v7, %v4357_v9  ;;  %v9571_v9 = vld [vmem:[%s15475_s19] ss:$0 sm:$0xff] }
0x1c2d   :  { %v4360_v13 = vpop.f32.mrb[90].mxu1 }
0x1c2e   :  { %v4361_v21 = vadd.f32 %v9478_v7, %v4360_v13  ;;  %v11433_v3 = vpop.f32.mrb[91].mxu1 }
0x1c2f   :  { %v5061_v3 = vadd.f32 %v9571_v9, %v14088_v35  ;;  %v14405_v35 = vld [vmem:[%s15517_s2 + $0x1] ss:$0 sm:$0xff] }
0x1c30   :  { %v4543_v17 = vpack.c.bf16 %v4361_v21, %v4358_v14  ;;  %v9553_v21 = vld [vmem:[%s15471_s15] ss:$0 sm:$0xff] }
0x1c31   :  { %v4836_v19 = vadd.f32 %v9553_v21, %v14086_v26 }
0x1c32   :  { %v4548_v51 = vsel %vm907_vm1, %v4543_v17, 0 }
0x1c33   :  { %11435 = vmatpush3.bf16.xpose.msra.mxu1 %v4548_v51  ;;  %v5132_v51 = vpack.c.bf16 %v5061_v3, %v5061_v3  ;;  %v5066_v27 = vpack.c.bf16 %v4836_v19, %v4836_v19 }
0x1c34   :  { %11440 = vmatprep.subr.bf16.mxu1 %v12648_v28 }
0x1c3a   :  { %11437 = vmatmul.mubr.msk.bf16.vlgmr.msra.gmra.mrb[92].mxu1 %vm907_vm1, %v4542_v29  ;;  %v5137_v29 = vsel %vm971_vm2, %v5132_v51, 0 }
0x1c3b   :  { %11441 = vmatpush3.bf16.msra.mxu1 %v4602_v24  ;;  %11442 = vmatprep.mubr.msk.bf16.mxu1 %vm12649_vm0, %v12648_v28 }
0x1c3c   :  { %11446 = vmatprep.subr.bf16.mxu1 %v12648_v28 }
0x1d0d   :  { %v4584_v30 = vpop.f32.mrb[92].mxu1 }
0x1d0e   :  { %v11438_v0 = vpop.f32.mrb[93].mxu1  ;;  %v4590_v36 = vsel %vm2828_vm7, %v4584_v30, -inf }
0x1d0f   :  { %4591 = vmax.xlane.f32.xlu1 %v4590_v36  ;;  %v4587_v25 = vpop.f32.mrb[94].mxu1 }
0x1d10   :  { %v11439_v37 = vpop.f32.mrb[95].mxu1 }
0x1d9c   :  { %v4592_v38 = vpop.xlane.xlu1 %4591 }
0x1d9d   :  { %v4593_v39 = vsub.f32 %v4584_v30, %v4592_v38 }
0x1d9f   :  { %v4594_v40 = vmul.f32 1.442695, %v4593_v39 }
0x1da1   :  { %12580 = vpow2.f32 %v4594_v40 }
0x1dab   :  { %v12581_v4 = vpop.eup %12580 }
0x1dac   :  { %v4596_v18 = vsel %vm2828_vm7, %v12581_v4, 0.0 }
0x1dad   :  { %4597 = vadd.xlane.f32.xlu0 %v4596_v18 }
0x1e3a   :  { %v4598_v23 = vpop.xlane.xlu0 %4597 }
0x1e3b   :  { %12582 = vrcp.f32 %v4598_v23 }
0x1e45   :  { %v12583_v24 = vpop.eup %12582 }
0x1e46   :  { %v4600_v33 = vmul.f32 %v12583_v24, %v12581_v4 }
0x1e48   :  { %v4601_v50 = vpack.c.bf16 %v4600_v33, %v4600_v33 }
0x1e4a   :  { %11443 = vmatmul.mubr.msk.bf16.vlgmr.msra.gmra.mrb[96].mxu1 %vm2828_vm7, %v4601_v50 }
0x1e4b   :  { %11447 = vmatpush3.bf16.msra.mxu1 %v12320_v41  ;;  %11454 = vmatprep.mubr.msk.bf16.mxu1 %vm12649_vm0, %v12648_v28  ;;  %v12332_v41 = vld [vmem:[%s15470_s14 + $0x40] sm:$0xff]  }
0x1e4c   :  { %11448 = vmatprep.subr.bf16.mxu1 %v12648_v28 }
0x1e4f   :  { %11449 = vmatpush3.bf16.msra.mxu1 %v12321_v42  ;;  %v12333_v42 = vld [vmem:[%s15470_s14 + $0x48] sm:$0xff]  }
0x1e50   :  { %11450 = vmatprep.subr.bf16.mxu1 %v12648_v28 }
0x1e53   :  { %11451 = vmatpush3.bf16.msra.mxu1 %v12322_v43  ;;  %v12334_v43 = vld [vmem:[%s15470_s14 + $0x50] sm:$0xff]  }
0x1e54   :  { %11452 = vmatprep.subr.bf16.mxu1 %v12648_v28 }
0x1e57   :  { %11453 = vmatpush3.bf16.msra.mxu1 %v12323_v22  ;;  %v12335_v22 = vld [vmem:[%s15470_s14 + $0x58] sm:$0xff]  }
0x1e58   :  { %11478 = vmatprep.subr.bf16.mxu1 %v12648_v28 }
0x1f1d   :  { %v4640_v45 = vpop.f32.mrb[96].mxu1 }
0x1f1e   :  { %v4646_v49 = vpack.c.bf16 %v4640_v45, %v4640_v45  ;;  %v11444_v1 = vpop.f32.mrb[97].mxu1  ;;  %v12336_v45 = vld [vmem:[%s15470_s14 + $0x60] sm:$0xff]  }
0x1f1f   :  { %v4643_v61 = vpop.f32.mrb[98].mxu1  ;;  %v12339_v1 = vld [vmem:[%s15470_s14 + $0x78] sm:$0xff]  }
0x1f20   :  { %v11445_v52 = vpop.f32.mrb[99].mxu1  ;;  %11455 = vmatmul.mubr.msk.bf16.vlgmr.msra.gmra.mrb[60].mxu1 %vm2918_vm8, %v4646_v49  ;;  %v12338_v49 = vld [vmem:[%s15470_s14 + $0x70] sm:$0xff]   ;;  %v12340_v61 = vld [vmem:[%s15474_s18 + $0x40] sm:$0xff]  }
0x1f21   :  { %11479 = vmatpush3.bf16.msra.mxu1 %v12324_v46  ;;  %11494 = vmatprep.mubr.msk.bf16.mxu1 %vm12649_vm0, %v12648_v28  ;;  %v12337_v46 = vld [vmem:[%s15470_s14 + $0x68] sm:$0xff]  }
0x1f22   :  { %11480 = vmatprep.subr.bf16.mxu1 %v12648_v28  ;;  %v12341_v52 = vld [vmem:[%s15474_s18 + $0x48] sm:$0xff]  }
0x1f25   :  { %11481 = vmatpush3.bf16.msra.mxu1 %v12325_v53  ;;  %v12342_v53 = vld [vmem:[%s15474_s18 + $0x50] sm:$0xff]  }
0x1f26   :  { %11482 = vmatprep.subr.bf16.mxu1 %v12648_v28 }
0x1f29   :  { %11483 = vmatpush3.bf16.msra.mxu1 %v12326_v54  ;;  %v12343_v54 = vld [vmem:[%s15474_s18 + $0x58] sm:$0xff]  }
0x1f2a   :  { %11484 = vmatprep.subr.bf16.mxu1 %v12648_v28 }
0x1f2d   :  { %11485 = vmatpush3.bf16.msra.mxu1 %v12327_v44  ;;  %v12344_v44 = vld [vmem:[%s15474_s18 + $0x60] sm:$0xff]  }
0x1f2e   :  { %11486 = vmatprep.subr.bf16.mxu1 %v12648_v28 }
0x1f31   :  { %11487 = vmatpush3.bf16.msra.mxu1 %v12328_v47  ;;  %v12345_v47 = vld [vmem:[%s15474_s18 + $0x68] sm:$0xff]  }
0x1f32   :  { %11488 = vmatprep.subr.bf16.mxu1 %v12648_v28 }
0x1f35   :  { %11489 = vmatpush3.bf16.msra.mxu1 %v12329_v48  ;;  %v12346_v48 = vld [vmem:[%s15474_s18 + $0x70] sm:$0xff]  }
0x1f36   :  { %11490 = vmatprep.subr.bf16.mxu1 %v12648_v28 }
0x1f39   :  { %11491 = vmatpush3.bf16.msra.mxu1 %v12330_v55  ;;  %v12347_v55 = vld [vmem:[%s15474_s18 + $0x78] sm:$0xff]  }
0x1f3a   :  { %11492 = vmatprep.subr.bf16.mxu1 %v12648_v28 }
0x1f3d   :  { %11493 = vmatpush3.bf16.msra.mxu1 %v12331_v57  ;;  %v12348_v57 = vld [vmem:[%s15472_s16 + $0x80] sm:$0xff]  }
0x1f3e   :  { %11518 = vmatprep.subr.bf16.mxu1 %v12648_v28 }
0x1f40   :  { %11495 = vmatmul.mubr.bf16.vlgmr.msra.gmra.mrb[100].mxu1 %v14016_v34 }
0x1f41   :  { %11520 = vmatprep.mubr.msk.bf16.mxu1 %vm12649_vm0, %v12648_v28 }
0x1ff3   :  { %v4717_v56 = vpop.f32.mrb[60].mxu1 }
0x1ff4   :  { %v12002_v63 = vadd.f32 %v4717_v56, %v2380_v60  ;;  %v11456_v20 = vpop.f32.mrb[61].mxu1  ;;  %v12351_v60 = vld [vmem:[%s15472_s16 + $0x98] sm:$0xff]   ;;  %v12352_v56 = vld [vmem:[%s15472_s16 + $0xa0] sm:$0xff]  }
0x1ff5   :  { %v4720_v2 = vpop.f32.mrb[62].mxu1  ;;  %v12354_v20 = vld [vmem:[%s15472_s16 + $0xb0] sm:$0xff]  }
0x1ff6   :  { %4724 = vst [vmem:[#allocation3] sm:$0xff] %v12002_v63  ;;  %v11457_v62 = vpop.f32.mrb[63].mxu1  ;;  %v12353_v63 = vld [vmem:[%s15472_s16 + $0xa8] sm:$0xff]   ;;  %v12355_v2 = vld [vmem:[%s15472_s16 + $0xb8] sm:$0xff]  }
0x2013   :  { %v4949_v5 = vpop.f32.mrb[100].mxu1 }
0x2014   :  { %v4950_v6 = vadd.f32 %v9562_v11, %v4949_v5  ;;  %v11496_v7 = vpop.f32.mrb[101].mxu1 }
0x2015   :  { %v4952_v10 = vpop.f32.mrb[102].mxu1  ;;  %v9600_v7 = vld [vmem:[%s15471_s15 + $0x1] ss:$0 sm:$0xff] }
0x2016   :  { %v5067_v13 = vpack.c.bf16 %v4950_v6, %v4950_v6  ;;  %v11497_v14 = vpop.f32.mrb[103].mxu1 }
0x2018   :  { %v5078_v17 = vsel %vm907_vm1, %v5067_v13, 0 }
0x2019   :  { %11519 = vmatpush3.bf16.xpose.msra.mxu1 %v5078_v17  ;;  %v9652_v17 = vld [vmem:[%s15475_s19 + $0x1] ss:$0 sm:$0xff] }
0x201a   :  { %11524 = vmatprep.subr.bf16.mxu1 %v12648_v28 }
0x2020   :  { %11521 = vmatmul.mubr.msk.bf16.vlgmr.msra.gmra.mrb[104].mxu1 %vm907_vm1, %v5066_v27 }
0x2021   :  { %11525 = vmatpush3.bf16.msra.mxu1 %v5137_v29  ;;  %11526 = vmatprep.mubr.msk.bf16.mxu1 %vm12649_vm0, %v12648_v28 }
0x2022   :  { %11530 = vmatprep.subr.bf16.mxu1 %v12648_v28 }
0x20f3   :  { %v5114_v26 = vpop.f32.mrb[104].mxu1 }
0x20f4   :  { %v5115_v30 = vadd.f32 %v14405_v35, %v5114_v26  ;;  %v11522_v0 = vpop.f32.mrb[105].mxu1 }
0x20f5   :  { %v5117_v36 = vpop.f32.mrb[106].mxu1 }
0x20f6   :  { %v11523_v25 = vpop.f32.mrb[107].mxu1  ;;  %v5120_v37 = vsel %vm954_vm3, %v5115_v30, -inf  ;;  %v9706_v36 = vld [vmem:[%s15473_s17 + $0x2] ss:$0 sm:$0xff] }
0x20f7   :  { %5121 = vmax.xlane.f32.xlu1 %v5120_v37 }
0x2184   :  { %v5122_v38 = vpop.xlane.xlu1 %5121 }
0x2185   :  { %v5123_v39 = vsub.f32 %v5115_v30, %v5122_v38 }
0x2187   :  { %v5124_v40 = vmul.f32 1.442695, %v5123_v39 }
0x2189   :  { %12584 = vpow2.f32 %v5124_v40 }
0x2193   :  { %v12585_v4 = vpop.eup %12584 }
0x2194   :  { %v5126_v18 = vsel %vm954_vm3, %v12585_v4, 0.0 }
0x2195   :  { %5127 = vadd.xlane.f32.xlu0 %v5126_v18 }
0x2222   :  { %v5128_v23 = vpop.xlane.xlu0 %5127 }
0x2223   :  { %12586 = vrcp.f32 %v5128_v23 }
0x222d   :  { %v12587_v24 = vpop.eup %12586 }
0x222e   :  { %v5130_v33 = vmul.f32 %v12587_v24, %v12585_v4 }
0x2230   :  { %v5131_v50 = vpack.c.bf16 %v5130_v33, %v5130_v33 }
0x2232   :  { %11527 = vmatmul.mubr.msk.bf16.vlgmr.msra.gmra.mrb[108].mxu1 %vm954_vm3, %v5131_v50 }
0x2233   :  { %11531 = vmatpush3.bf16.msra.mxu1 %v12332_v41  ;;  %11546 = vmatprep.mubr.msk.bf16.mxu1 %vm12649_vm0, %v12648_v28 }
0x2234   :  { %11532 = vmatprep.subr.bf16.mxu1 %v12648_v28 }
0x2237   :  { %11533 = vmatpush3.bf16.msra.mxu1 %v12333_v42 }
0x2238   :  { %11534 = vmatprep.subr.bf16.mxu1 %v12648_v28 }
0x223b   :  { %11535 = vmatpush3.bf16.msra.mxu1 %v12334_v43 }
0x223c   :  { %11536 = vmatprep.subr.bf16.mxu1 %v12648_v28 }
0x223f   :  { %11537 = vmatpush3.bf16.msra.mxu1 %v12335_v22 }
0x2240   :  { %11538 = vmatprep.subr.bf16.mxu1 %v12648_v28 }
0x2243   :  { %11539 = vmatpush3.bf16.msra.mxu1 %v12336_v45 }
0x2244   :  { %11540 = vmatprep.subr.bf16.mxu1 %v12648_v28 }
0x2247   :  { %11541 = vmatpush3.bf16.msra.mxu1 %v12337_v46 }
0x2248   :  { %11542 = vmatprep.subr.bf16.mxu1 %v12648_v28 }
0x224b   :  { %11543 = vmatpush3.bf16.msra.mxu1 %v12338_v49 }
0x224c   :  { %11544 = vmatprep.subr.bf16.mxu1 %v12648_v28 }
0x224f   :  { %11545 = vmatpush3.bf16.msra.mxu1 %v12339_v1 }
0x2250   :  { %11570 = vmatprep.subr.bf16.mxu1 %v12648_v28 }
0x2252   :  { %11547 = vmatmul.mubr.bf16.vlgmr.msra.gmra.mrb[112].mxu1 %v13975_v15 }
0x2253   :  { %11571 = vmatpush3.bf16.msra.mxu1 %v12340_v61  ;;  %11586 = vmatprep.mubr.msk.bf16.mxu1 %vm12649_vm0, %v12648_v28 }
0x2254   :  { %11572 = vmatprep.subr.bf16.mxu1 %v12648_v28 }
0x2257   :  { %11573 = vmatpush3.bf16.msra.mxu1 %v12341_v52 }
0x2258   :  { %11574 = vmatprep.subr.bf16.mxu1 %v12648_v28 }
0x225b   :  { %11575 = vmatpush3.bf16.msra.mxu1 %v12342_v53  ;;  %v12356_v53 = vld [vmem:[%s15470_s14 + $0x80] sm:$0xff]  }
0x225c   :  { %11576 = vmatprep.subr.bf16.mxu1 %v12648_v28 }
0x225f   :  { %11577 = vmatpush3.bf16.msra.mxu1 %v12343_v54 }
0x2260   :  { %11578 = vmatprep.subr.bf16.mxu1 %v12648_v28 }
0x2263   :  { %11579 = vmatpush3.bf16.msra.mxu1 %v12344_v44  ;;  %v12357_v44 = vld [vmem:[%s15470_s14 + $0x88] sm:$0xff]  }
0x2264   :  { %11580 = vmatprep.subr.bf16.mxu1 %v12648_v28 }
0x2267   :  { %11581 = vmatpush3.bf16.msra.mxu1 %v12345_v47  ;;  %v12358_v47 = vld [vmem:[%s15470_s14 + $0x90] sm:$0xff]  }
0x2268   :  { %11582 = vmatprep.subr.bf16.mxu1 %v12648_v28 }
0x226b   :  { %11583 = vmatpush3.bf16.msra.mxu1 %v12346_v48  ;;  %v12359_v48 = vld [vmem:[%s15470_s14 + $0x98] sm:$0xff]  }
0x226c   :  { %11584 = vmatprep.subr.bf16.mxu1 %v12648_v28 }
0x226f   :  { %11585 = vmatpush3.bf16.msra.mxu1 %v12347_v55  ;;  %v12360_v55 = vld [vmem:[%s15470_s14 + $0xa0] sm:$0xff]  }
0x2270   :  { %11622 = vmatprep.subr.bf16.mxu1 %v12648_v28 }
0x2272   :  { %11587 = vmatmul.mubr.bf16.vlgmr.msra.gmra.mrb[116].mxu1 %v14016_v34 }
0x2273   :  { %11623 = vmatpush3.bf16.msra.mxu1 %v12348_v57  ;;  %11638 = vmatprep.mubr.msk.bf16.mxu1 %vm12649_vm0, %v12648_v28  ;;  %v12361_v57 = vld [vmem:[%s15470_s14 + $0xa8] sm:$0xff]  }
0x2274   :  { %11624 = vmatprep.subr.bf16.mxu1 %v12648_v28 }
0x2277   :  { %11625 = vmatpush3.bf16.msra.mxu1 %v12349_v58  ;;  %v12362_v58 = vld [vmem:[%s15470_s14 + $0xb0] sm:$0xff]  }
0x2278   :  { %11626 = vmatprep.subr.bf16.mxu1 %v12648_v28 }
0x227b   :  { %11627 = vmatpush3.bf16.msra.mxu1 %v12350_v59  ;;  %v12363_v59 = vld [vmem:[%s15470_s14 + $0xb8] sm:$0xff]  }
0x227c   :  { %11628 = vmatprep.subr.bf16.mxu1 %v12648_v28 }
0x227f   :  { %11629 = vmatpush3.bf16.msra.mxu1 %v12351_v60  ;;  %v12364_v60 = vld [vmem:[%s15474_s18 + $0x80] sm:$0xff]  }
0x2280   :  { %11630 = vmatprep.subr.bf16.mxu1 %v12648_v28 }
0x2283   :  { %11631 = vmatpush3.bf16.msra.mxu1 %v12352_v56  ;;  %v12365_v56 = vld [vmem:[%s15474_s18 + $0x88] sm:$0xff]  }
0x2284   :  { %11632 = vmatprep.subr.bf16.mxu1 %v12648_v28 }
0x2287   :  { %11633 = vmatpush3.bf16.msra.mxu1 %v12353_v63  ;;  %v12366_v63 = vld [vmem:[%s15474_s18 + $0x90] sm:$0xff]  }
0x2288   :  { %11634 = vmatprep.subr.bf16.mxu1 %v12648_v28 }
0x228b   :  { %11635 = vmatpush3.bf16.msra.mxu1 %v12354_v20  ;;  %v12367_v20 = vld [vmem:[%s15474_s18 + $0x98] sm:$0xff]  }
0x228c   :  { %11636 = vmatprep.subr.bf16.mxu1 %v12648_v28 }
0x228f   :  { %11637 = vmatpush3.bf16.msra.mxu1 %v12355_v2  ;;  %v12368_v2 = vld [vmem:[%s15474_s18 + $0xa0] sm:$0xff]  }
0x2290   :  { %11662 = vmatprep.subr.bf16.mxu1 %v12648_v28 }
0x2292   :  { %11639 = vmatmul.mubr.bf16.vlgmr.msra.gmra.mrb[120].mxu1 %v14016_v34 }
0x2293   :  { %11664 = vmatprep.mubr.msk.bf16.mxu1 %vm12649_vm0, %v12648_v28 }
0x2305   :  { %v5173_v62 = vpop.f32.mrb[108].mxu1 }
0x2306   :  { %5179 = vst.msk [vmem:[#allocation2] sm:$0xff] %vm907_vm1, %v5173_v62  ;;  %v11528_v11 = vpop.f32.mrb[109].mxu1  ;;  %v12369_v62 = vld [vmem:[%s15474_s18 + $0xa8] sm:$0xff]  }
0x2307   :  { %v5176_v5 = vpop.f32.mrb[110].mxu1  ;;  %v12370_v11 = vld [vmem:[%s15474_s18 + $0xb0] sm:$0xff]  }
0x2308   :  { %v11529_v6 = vpop.f32.mrb[111].mxu1  ;;  %v12371_v5 = vld [vmem:[%s15474_s18 + $0xb8] sm:$0xff]  }
0x2309   :  { %v12372_v6 = vld [vmem:[%s15472_s16 + $0xc0] sm:$0xff]  }
0x2325   :  { %v5285_v9 = vpop.f32.mrb[112].mxu1 }
0x2326   :  { %v5286_v10 = vadd.f32 %v9600_v7, %v5285_v9  ;;  %v11548_v13 = vpop.f32.mrb[113].mxu1  ;;  %v12373_v7 = vld [vmem:[%s15472_s16 + $0xc8] sm:$0xff]   ;;  %v12374_v9 = vld [vmem:[%s15472_s16 + $0xd0] sm:$0xff]  }
0x2327   :  { %v5288_v14 = vpop.f32.mrb[114].mxu1  ;;  %v12376_v13 = vld [vmem:[%s15472_s16 + $0xe0] sm:$0xff]  }
0x2328   :  { %v5513_v21 = vpack.c.bf16 %v5286_v10, %v5286_v10  ;;  %v11549_v3 = vpop.f32.mrb[115].mxu1  ;;  %v12375_v10 = vld [vmem:[%s15472_s16 + $0xd8] sm:$0xff]   ;;  %v12377_v14 = vld [vmem:[%s15472_s16 + $0xe8] sm:$0xff]  }
0x2329   :  { %v12379_v3 = vld [vmem:[%s15472_s16 + $0xf8] sm:$0xff]  }
0x232a   :  { %11593 = vmatmul.mubr.msk.bf16.vlgmr.msra.gmra.mrb[88].mxu0 %vm907_vm1, %v5513_v21  ;;  %v12378_v21 = vld [vmem:[%s15472_s16 + $0xf0] sm:$0xff]  }
0x232b   :  { %11598 = vmatprep.mubr.msk.bf16.mxu0 %vm12649_vm0, %v12648_v28 }
0x2345   :  { %v5507_v19 = vpop.f32.mrb[116].mxu1 }
0x2346   :  { %v5508_v51 = vadd.f32 %v9652_v17, %v5507_v19  ;;  %v11588_v27 = vpop.f32.mrb[117].mxu1 }
0x2347   :  { %v5510_v29 = vpop.f32.mrb[118].mxu1 }
0x2348   :  { %v5573_v26 = vpack.c.bf16 %v5508_v51, %v5508_v51  ;;  %v11589_v30 = vpop.f32.mrb[119].mxu1  ;;  %v9680_v29 = vld [vmem:[%s15471_s15 + $0x2] ss:$0 sm:$0xff] }
0x234a   :  { %v5578_v0 = vsel %vm971_vm2, %v5573_v26, 0 }
0x234b   :  { %11597 = vmatpush3.bf16.msra.mxu0 %v5578_v0 }
0x234c   :  { %11602 = vmatprep.subr.bf16.mxu0 %v12648_v28 }
0x2365   :  { %v5841_v25 = vpop.f32.mrb[120].mxu1 }
0x2366   :  { %v5842_v37 = vadd.f32 %v9706_v36, %v5841_v25  ;;  %v11640_v38 = vpop.f32.mrb[121].mxu1 }
0x2367   :  { %v5844_v39 = vpop.f32.mrb[122].mxu1  ;;  %v9732_v38 = vld [vmem:[%s15475_s19 + $0x2] ss:$0 sm:$0xff] }
0x2368   :  { %v5959_v40 = vpack.c.bf16 %v5842_v37, %v5842_v37  ;;  %v11641_v4 = vpop.f32.mrb[123].mxu1 }
0x236a   :  { %v5964_v18 = vsel %vm907_vm1, %v5959_v40, 0 }
0x236b   :  { %11663 = vmatpush3.bf16.xpose.msra.mxu1 %v5964_v18 }
0x236c   :  { %11668 = vmatprep.subr.bf16.mxu1 %v12648_v28 }
0x23fd   :  { %v5555_v23 = vpop.f32.mrb[88].mxu0 }
0x23fe   :  { %v5556_v24 = vadd.f32 %v14405_v35, %v5555_v23  ;;  %v11594_v33 = vpop.f32.mrb[89].mxu0 }
0x23ff   :  { %v5558_v41 = vpop.f32.mrb[90].mxu0 }
0x2400   :  { %v11595_v50 = vpop.f32.mrb[91].mxu0  ;;  %v5561_v42 = vsel %vm954_vm3, %v5556_v24, -inf  ;;  %v9786_v41 = vld [vmem:[%s15473_s17 + $0x3] ss:$0 sm:$0xff]  ;;  %s15519_s17 = smov 96  }
0x2401   :  { %5562 = vmax.xlane.f32.xlu1 %v5561_v42 }
0x248e   :  { %v5563_v43 = vpop.xlane.xlu1 %5562 }
0x248f   :  { %v5564_v22 = vsub.f32 %v5556_v24, %v5563_v43 }
0x2491   :  { %v5565_v45 = vmul.f32 1.442695, %v5564_v22 }
0x2493   :  { %12588 = vpow2.f32 %v5565_v45 }
0x249d   :  { %v12589_v46 = vpop.eup %12588 }
0x249e   :  { %v5567_v49 = vsel %vm954_vm3, %v12589_v46, 0.0 }
0x249f   :  { %5568 = vadd.xlane.f32.xlu0 %v5567_v49 }
0x252c   :  { %v5569_v1 = vpop.xlane.xlu0 %5568 }
0x252d   :  { %12590 = vrcp.f32 %v5569_v1 }
0x2537   :  { %v12591_v61 = vpop.eup %12590 }
0x2538   :  { %v5571_v52 = vmul.f32 %v12591_v61, %v12589_v46 }
0x253a   :  { %v5572_v54 = vpack.c.bf16 %v5571_v52, %v5571_v52 }
0x253c   :  { %11599 = vmatmul.mubr.msk.bf16.vlgmr.msra.gmra.mrb[92].mxu0 %vm954_vm3, %v5572_v54 }
0x253d   :  { %11603 = vmatpush3.bf16.msra.mxu0 %v12356_v53  ;;  %11618 = vmatprep.mubr.msk.bf16.mxu0 %vm12649_vm0, %v12648_v28 }
0x253e   :  { %11604 = vmatprep.subr.bf16.mxu0 %v12648_v28 }
0x2541   :  { %11605 = vmatpush3.bf16.msra.mxu0 %v12357_v44 }
0x2542   :  { %11606 = vmatprep.subr.bf16.mxu0 %v12648_v28 }
0x2545   :  { %11607 = vmatpush3.bf16.msra.mxu0 %v12358_v47 }
0x2546   :  { %11608 = vmatprep.subr.bf16.mxu0 %v12648_v28 }
0x2549   :  { %11609 = vmatpush3.bf16.msra.mxu0 %v12359_v48 }
0x254a   :  { %11610 = vmatprep.subr.bf16.mxu0 %v12648_v28 }
0x254d   :  { %11611 = vmatpush3.bf16.msra.mxu0 %v12360_v55 }
0x254e   :  { %11612 = vmatprep.subr.bf16.mxu0 %v12648_v28 }
0x2551   :  { %11613 = vmatpush3.bf16.msra.mxu0 %v12361_v57 }
0x2552   :  { %11614 = vmatprep.subr.bf16.mxu0 %v12648_v28 }
0x2555   :  { %11615 = vmatpush3.bf16.msra.mxu0 %v12362_v58 }
0x2556   :  { %11616 = vmatprep.subr.bf16.mxu0 %v12648_v28 }
0x2559   :  { %11617 = vmatpush3.bf16.msra.mxu0 %v12363_v59 }
0x255a   :  { %11642 = vmatprep.subr.bf16.mxu0 %v12648_v28 }
0x255c   :  { %11619 = vmatmul.mubr.bf16.vlgmr.msra.gmra.mrb[96].mxu0 %v13975_v15 }
0x255d   :  { %11643 = vmatpush3.bf16.msra.mxu0 %v12364_v60  ;;  %11658 = vmatprep.mubr.msk.bf16.mxu0 %vm12649_vm0, %v12648_v28 }
0x255e   :  { %11644 = vmatprep.subr.bf16.mxu0 %v12648_v28 }
0x2561   :  { %11645 = vmatpush3.bf16.msra.mxu0 %v12365_v56 }
0x2562   :  { %11646 = vmatprep.subr.bf16.mxu0 %v12648_v28 }
0x2565   :  { %11647 = vmatpush3.bf16.msra.mxu0 %v12366_v63  ;;  %v12380_v63 = vld [vmem:[%s15470_s14 + $0xc0] sm:$0xff]  }
0x2566   :  { %11648 = vmatprep.subr.bf16.mxu0 %v12648_v28 }
0x2569   :  { %11649 = vmatpush3.bf16.msra.mxu0 %v12367_v20 }
0x256a   :  { %11650 = vmatprep.subr.bf16.mxu0 %v12648_v28 }
0x256d   :  { %11651 = vmatpush3.bf16.msra.mxu0 %v12368_v2  ;;  %v12381_v2 = vld [vmem:[%s15470_s14 + $0xc8] sm:$0xff]  }
0x256e   :  { %11652 = vmatprep.subr.bf16.mxu0 %v12648_v28 }
0x2571   :  { %11653 = vmatpush3.bf16.msra.mxu0 %v12369_v62  ;;  %v12382_v62 = vld [vmem:[%s15470_s14 + $0xd0] sm:$0xff]  }
0x2572   :  { %11654 = vmatprep.subr.bf16.mxu0 %v12648_v28 }
0x2575   :  { %11655 = vmatpush3.bf16.msra.mxu0 %v12370_v11  ;;  %v12383_v11 = vld [vmem:[%s15470_s14 + $0xd8] sm:$0xff]  }
0x2576   :  { %11656 = vmatprep.subr.bf16.mxu0 %v12648_v28 }
0x2579   :  { %11657 = vmatpush3.bf16.msra.mxu0 %v12371_v5  ;;  %v12384_v5 = vld [vmem:[%s15470_s14 + $0xe0] sm:$0xff]  }
0x257a   :  { %11694 = vmatprep.subr.bf16.mxu0 %v12648_v28 }
0x257c   :  { %11659 = vmatmul.mubr.bf16.vlgmr.msra.gmra.mrb[100].mxu0 %v14016_v34 }
0x257d   :  { %11695 = vmatpush3.bf16.msra.mxu0 %v12372_v6  ;;  %11710 = vmatprep.mubr.msk.bf16.mxu0 %vm12649_vm0, %v12648_v28  ;;  %v12385_v6 = vld [vmem:[%s15470_s14 + $0xe8] sm:$0xff]  }
0x257e   :  { %11696 = vmatprep.subr.bf16.mxu0 %v12648_v28 }
0x2581   :  { %11697 = vmatpush3.bf16.msra.mxu0 %v12373_v7  ;;  %v12386_v7 = vld [vmem:[%s15470_s14 + $0xf0] sm:$0xff]  }
0x2582   :  { %11698 = vmatprep.subr.bf16.mxu0 %v12648_v28 }
0x2585   :  { %11699 = vmatpush3.bf16.msra.mxu0 %v12374_v9  ;;  %v12387_v9 = vld [vmem:[%s15470_s14 + $0xf8] sm:$0xff]  }
0x2586   :  { %11700 = vmatprep.subr.bf16.mxu0 %v12648_v28 }
0x2589   :  { %11701 = vmatpush3.bf16.msra.mxu0 %v12375_v10  ;;  %v12388_v10 = vld [vmem:[%s15474_s18 + $0xc0] sm:$0xff]  }
0x258a   :  { %11702 = vmatprep.subr.bf16.mxu0 %v12648_v28 }
0x258d   :  { %11703 = vmatpush3.bf16.msra.mxu0 %v12376_v13  ;;  %v12389_v13 = vld [vmem:[%s15474_s18 + $0xc8] sm:$0xff]  }
0x258e   :  { %11704 = vmatprep.subr.bf16.mxu0 %v12648_v28 }
0x2591   :  { %11705 = vmatpush3.bf16.msra.mxu0 %v12377_v14  ;;  %v12390_v14 = vld [vmem:[%s15474_s18 + $0xd0] sm:$0xff]  }
0x2592   :  { %11706 = vmatprep.subr.bf16.mxu0 %v12648_v28 }
0x2595   :  { %11707 = vmatpush3.bf16.msra.mxu0 %v12378_v21  ;;  %v12392_v21 = vld [vmem:[%s15474_s18 + $0xe0] sm:$0xff]  }
0x2596   :  { %11708 = vmatprep.subr.bf16.mxu0 %v12648_v28 }
0x2599   :  { %11709 = vmatpush3.bf16.msra.mxu0 %v12379_v3  ;;  %v12393_v3 = vld [vmem:[%s15474_s18 + $0xe8] sm:$0xff]  }
0x259a   :  { %11734 = vmatprep.subr.bf16.mxu0 %v12648_v28 }
0x259c   :  { %11711 = vmatmul.mubr.bf16.vlgmr.msra.gmra.mrb[104].mxu0 %v14016_v34 }
0x259d   :  { %11736 = vmatprep.mubr.msk.bf16.mxu0 %vm12649_vm0, %v12648_v28 }
0x260f   :  { %v14646_v17 = vpop.f32.mrb[92].mxu0 }
0x2610   :  { %v11600_v19 = vpop.f32.mrb[93].mxu0 }
0x2611   :  { %v5617_v51 = vpop.f32.mrb[94].mxu0  ;;  %v12394_v19 = vld [vmem:[%s15474_s18 + $0xf0] sm:$0xff]  }
0x2612   :  { %v11601_v27 = vpop.f32.mrb[95].mxu0  ;;  %v12395_v51 = vld [vmem:[%s15474_s18 + $0xf8] sm:$0xff]  }
0x262f   :  { %v5730_v26 = vpop.f32.mrb[96].mxu0 }
0x2630   :  { %v5731_v30 = vadd.f32 %v9680_v29, %v5730_v26  ;;  %v11620_v0 = vpop.f32.mrb[97].mxu0 }
0x2631   :  { %v5733_v36 = vpop.f32.mrb[98].mxu0  ;;  %v9760_v0 = vld [vmem:[%s15471_s15 + $0x3] ss:$0 sm:$0xff] }
0x2632   :  { %v5958_v25 = vpack.c.bf16 %v5731_v30, %v5731_v30  ;;  %v11621_v37 = vpop.f32.mrb[99].mxu0 }
0x2634   :  { %11665 = vmatmul.mubr.msk.bf16.vlgmr.msra.gmra.mrb[124].mxu1 %vm907_vm1, %v5958_v25 }
0x2635   :  { %11670 = vmatprep.mubr.msk.bf16.mxu1 %vm12649_vm0, %v12648_v28 }
0x264f   :  { %v5952_v39 = vpop.f32.mrb[100].mxu0 }
0x2650   :  { %v5953_v40 = vadd.f32 %v9732_v38, %v5952_v39  ;;  %v11660_v4 = vpop.f32.mrb[101].mxu0 }
0x2651   :  { %v5955_v18 = vpop.f32.mrb[102].mxu0 }
0x2652   :  { %v6018_v23 = vpack.c.bf16 %v5953_v40, %v5953_v40  ;;  %v11661_v24 = vpop.f32.mrb[103].mxu0 }
0x2654   :  { %v6023_v33 = vsel %vm971_vm2, %v6018_v23, 0 }
0x2655   :  { %11669 = vmatpush3.bf16.msra.mxu1 %v6023_v33 }
0x2656   :  { %11674 = vmatprep.subr.bf16.mxu1 %v12648_v28 }
0x266f   :  { %v6286_v50 = vpop.f32.mrb[104].mxu0 }
0x2670   :  { %v6287_v42 = vadd.f32 %v9786_v41, %v6286_v50  ;;  %v11712_v43 = vpop.f32.mrb[105].mxu0 }
0x2671   :  { %v6289_v22 = vpop.f32.mrb[106].mxu0 }
0x2672   :  { %v6404_v45 = vpack.c.bf16 %v6287_v42, %v6287_v42  ;;  %v11713_v46 = vpop.f32.mrb[107].mxu0 }
0x2674   :  { %v6409_v49 = vsel %vm907_vm1, %v6404_v45, 0 }
0x2675   :  { %11735 = vmatpush3.bf16.xpose.msra.mxu0 %v6409_v49 }
0x2676   :  { %11740 = vmatprep.subr.bf16.mxu0 %v12648_v28 }
0x2707   :  { %v6000_v1 = vpop.f32.mrb[124].mxu1 }
0x2708   :  { %v6001_v61 = vadd.f32 %v14405_v35, %v6000_v1  ;;  %v11666_v52 = vpop.f32.mrb[125].mxu1 }
0x2709   :  { %v6003_v53 = vpop.f32.mrb[126].mxu1 }
0x270a   :  { %v11667_v54 = vpop.f32.mrb[127].mxu1  ;;  %v6006_v44 = vsel %vm954_vm3, %v6001_v61, -inf }
0x270b   :  { %6007 = vmax.xlane.f32.xlu1 %v6006_v44 }
0x2798   :  { %v6008_v47 = vpop.xlane.xlu1 %6007 }
0x2799   :  { %v6009_v48 = vsub.f32 %v6001_v61, %v6008_v47 }
0x279b   :  { %v6010_v55 = vmul.f32 1.442695, %v6009_v48 }
0x279d   :  { %12592 = vpow2.f32 %v6010_v55  ;;  %v12396_v55 = vld [vmem:[%s15478_s22] sm:$0xff]  }
0x27a7   :  { %v12593_v57 = vpop.eup %12592 }
0x27a8   :  { %v6012_v58 = vsel %vm954_vm3, %v12593_v57, 0.0 }
0x27a9   :  { %6013 = vadd.xlane.f32.xlu0 %v6012_v58 }
0x2836   :  { %v6014_v59 = vpop.xlane.xlu0 %6013 }
0x2837   :  { %12594 = vrcp.f32 %v6014_v59 }
0x2841   :  { %v12595_v60 = vpop.eup %12594 }
0x2842   :  { %v6016_v56 = vmul.f32 %v12595_v60, %v12593_v57 }
0x2844   :  { %v6017_v20 = vpack.c.bf16 %v6016_v56, %v6016_v56 }
0x2846   :  { %11671 = vmatmul.mubr.msk.bf16.vlgmr.msra.gmra.mrb[128].mxu1 %vm954_vm3, %v6017_v20 }
0x2847   :  { %11675 = vmatpush3.bf16.msra.mxu1 %v12380_v63  ;;  %11690 = vmatprep.mubr.msk.bf16.mxu1 %vm12649_vm0, %v12648_v28 }
0x2848   :  { %11676 = vmatprep.subr.bf16.mxu1 %v12648_v28 }
0x284b   :  { %11677 = vmatpush3.bf16.msra.mxu1 %v12381_v2 }
0x284c   :  { %11678 = vmatprep.subr.bf16.mxu1 %v12648_v28 }
0x284f   :  { %11679 = vmatpush3.bf16.msra.mxu1 %v12382_v62 }
0x2850   :  { %11680 = vmatprep.subr.bf16.mxu1 %v12648_v28 }
0x2853   :  { %11681 = vmatpush3.bf16.msra.mxu1 %v12383_v11  ;;  %v12398_v11 = vld [vmem:[%s15478_s22 + $0x10] sm:$0xff]  }
0x2854   :  { %11682 = vmatprep.subr.bf16.mxu1 %v12648_v28 }
0x2857   :  { %11683 = vmatpush3.bf16.msra.mxu1 %v12384_v5  ;;  %v12400_v5 = vld [vmem:[%s15478_s22 + $0x20] sm:$0xff]  }
0x2858   :  { %11684 = vmatprep.subr.bf16.mxu1 %v12648_v28 }
0x285b   :  { %11685 = vmatpush3.bf16.msra.mxu1 %v12385_v6  ;;  %v12401_v6 = vld [vmem:[%s15478_s22 + $0x28] sm:$0xff]  }
0x285c   :  { %11686 = vmatprep.subr.bf16.mxu1 %v12648_v28 }
0x285f   :  { %11687 = vmatpush3.bf16.msra.mxu1 %v12386_v7  ;;  %v12402_v7 = vld [vmem:[%s15478_s22 + $0x30] sm:$0xff]  }
0x2860   :  { %11688 = vmatprep.subr.bf16.mxu1 %v12648_v28 }
0x2863   :  { %11689 = vmatpush3.bf16.msra.mxu1 %v12387_v9  ;;  %v12403_v9 = vld [vmem:[%s15478_s22 + $0x38] sm:$0xff]  }
0x2864   :  { %11714 = vmatprep.subr.bf16.mxu1 %v12648_v28 }
0x2866   :  { %11691 = vmatmul.mubr.bf16.vlgmr.msra.gmra.mrb[132].mxu1 %v13975_v15  ;;  %v12391_v15 = vld [vmem:[%s15474_s18 + $0xd8] sm:$0xff]  }
0x2867   :  { %11715 = vmatpush3.bf16.msra.mxu1 %v12388_v10  ;;  %11730 = vmatprep.mubr.msk.bf16.mxu1 %vm12649_vm0, %v12648_v28  ;;  %v12404_v10 = vld [vmem:[%s15476_s20] sm:$0xff]  }
0x2868   :  { %11716 = vmatprep.subr.bf16.mxu1 %v12648_v28 }
0x286b   :  { %11717 = vmatpush3.bf16.msra.mxu1 %v12389_v13  ;;  %v12405_v13 = vld [vmem:[%s15476_s20 + $0x8] sm:$0xff]  }
0x286c   :  { %11718 = vmatprep.subr.bf16.mxu1 %v12648_v28 }
0x286f   :  { %11719 = vmatpush3.bf16.msra.mxu1 %v12390_v14  ;;  %v12406_v14 = vld [vmem:[%s15476_s20 + $0x10] sm:$0xff]  }
0x2870   :  { %11720 = vmatprep.subr.bf16.mxu1 %v12648_v28 }
0x2873   :  { %11721 = vmatpush3.bf16.msra.mxu1 %v12391_v15  ;;  %v12407_v15 = vld [vmem:[%s15476_s20 + $0x18] sm:$0xff]  }
0x2874   :  { %11722 = vmatprep.subr.bf16.mxu1 %v12648_v28 }
0x2877   :  { %11723 = vmatpush3.bf16.msra.mxu1 %v12392_v21  ;;  %v12408_v21 = vld [vmem:[%s15476_s20 + $0x20] sm:$0xff]  }
0x2878   :  { %11724 = vmatprep.subr.bf16.mxu1 %v12648_v28 }
0x287b   :  { %11725 = vmatpush3.bf16.msra.mxu1 %v12393_v3  ;;  %v12409_v3 = vld [vmem:[%s15476_s20 + $0x28] sm:$0xff]  }
0x287c   :  { %11726 = vmatprep.subr.bf16.mxu1 %v12648_v28 }
0x287f   :  { %11727 = vmatpush3.bf16.msra.mxu1 %v12394_v19 }
0x2880   :  { %11728 = vmatprep.subr.bf16.mxu1 %v12648_v28 }
0x2883   :  { %11729 = vmatpush3.bf16.msra.mxu1 %v12395_v51 }
0x2884   :  { %11766 = vmatprep.subr.bf16.mxu1 %v12648_v28 }
0x2886   :  { %11731 = vmatmul.mubr.bf16.vlgmr.msra.gmra.mrb[136].mxu1 %v14016_v34  ;;  %v9812_v34 = vld [vmem:[%s15475_s19 + $0x3] ss:$0 sm:$0xff] }
0x2887   :  { %11782 = vmatprep.mubr.msk.bf16.mxu1 %vm12649_vm0, %v12648_v28  ;;  %11767 = vmatpush3.bf16.msra.mxu1 %v12396_v55  ;;  %v12422_v55 = vld [vmem:[%s15480_s24 + $0x68] sm:$0xff]  }
0x2888   :  { %11768 = vmatprep.subr.bf16.mxu1 %v12648_v28 }
0x2919   :  { %v14740_v27 = vpop.f32.mrb[128].mxu1 }
0x291a   :  { %v11672_v29 = vpop.f32.mrb[129].mxu1 }
0x291b   :  { %v6062_v26 = vpop.f32.mrb[130].mxu1 }
0x291c   :  { %v11673_v30 = vpop.f32.mrb[131].mxu1 }
0x2939   :  { %v6175_v36 = vpop.f32.mrb[132].mxu1 }
0x293a   :  { %v6176_v25 = vadd.f32 %v9760_v0, %v6175_v36  ;;  %v11692_v37 = vpop.f32.mrb[133].mxu1 }
0x293b   :  { %v6178_v38 = vpop.f32.mrb[134].mxu1 }
0x293c   :  { %v6403_v39 = vpack.c.bf16 %v6176_v25, %v6176_v25  ;;  %v11693_v40 = vpop.f32.mrb[135].mxu1  ;;  %v12622_v38 = vld [vmem:[%s15518_s11] ss:$0 sm:$0xff] }
0x293e   :  { %11737 = vmatmul.mubr.msk.bf16.vlgmr.msra.gmra.mrb[108].mxu0 %vm907_vm1, %v6403_v39 }
0x293f   :  { %11742 = vmatprep.mubr.msk.bf16.mxu0 %vm12649_vm0, %v12648_v28 }
0x2959   :  { %v6397_v4 = vpop.f32.mrb[136].mxu1 }
0x295a   :  { %v6398_v18 = vadd.f32 %v9812_v34, %v6397_v4  ;;  %v11732_v23 = vpop.f32.mrb[137].mxu1  ;;  %v12623_v34 = vld [vmem:[%s15469_s13] ss:$0 sm:$0xff] }
0x295b   :  { %v6400_v24 = vpop.f32.mrb[138].mxu1 }
0x295c   :  { %v6463_v33 = vpack.c.bf16 %v6398_v18, %v6398_v18  ;;  %v11733_v41 = vpop.f32.mrb[139].mxu1  ;;  %v12410_v24 = vld [vmem:[%s15476_s20 + $0x30] sm:$0xff]  }
0x295d   :  { %v12412_v41 = vld [vmem:[%s15480_s24 + $0x40] sm:$0xff]  }
0x295e   :  { %v6468_v50 = vsel %vm971_vm2, %v6463_v33, 0  ;;  %v12411_v33 = vld [vmem:[%s15476_s20 + $0x38] sm:$0xff]  }
0x295f   :  { %11741 = vmatpush3.bf16.msra.mxu0 %v6468_v50 }
0x2960   :  { %11746 = vmatprep.subr.bf16.mxu0 %v12648_v28 }
0x2a11   :  { %v6445_v42 = vpop.f32.mrb[108].mxu0 }
0x2a12   :  { %v6446_v43 = vadd.f32 %v14405_v35, %v6445_v42  ;;  %v11738_v22 = vpop.f32.mrb[109].mxu0 }
0x2a13   :  { %v6448_v45 = vpop.f32.mrb[110].mxu0 }
0x2a14   :  { %v11739_v46 = vpop.f32.mrb[111].mxu0  ;;  %v6451_v49 = vsel %vm954_vm3, %v6446_v43, -inf }
0x2a15   :  { %6452 = vmax.xlane.f32.xlu1 %v6451_v49  ;;  %v12413_v49 = vld [vmem:[%s15480_s24] sm:$0xff]  }
0x2a19   :  { %500 = vadd.xlane.f32.xlu1 %v13141_v31 }
0x2aa2   :  { %v6453_v1 = vpop.xlane.xlu1 %6452 }
0x2aa3   :  { %v6454_v61 = vsub.f32 %v6446_v43, %v6453_v1 }
0x2aa5   :  { %v6455_v52 = vmul.f32 1.442695, %v6454_v61  ;;  %v12414_v61 = vld [vmem:[%s15480_s24 + $0x48] sm:$0xff]  }
0x2aa6   :  { %v501_v53 = vpop.xlane.xlu1 %500 }
0x2aa7   :  { %12596 = vpow2.f32 %v6455_v52  ;;  %v506_v54 = vmul.f32 0.0078125, %v501_v53  ;;  %v12415_v52 = vld [vmem:[%s15480_s24 + $0x8] sm:$0xff]   ;;  %v12416_v53 = vld [vmem:[%s15480_s24 + $0x50] sm:$0xff]  }
0x2aa9   :  { %v14757_v44 = vsub.f32 %v13141_v31, %v506_v54  ;;  %v12397_v31 = vld [vmem:[%s15478_s22 + $0x8] sm:$0xff]   ;;  %v12417_v54 = vld [vmem:[%s15480_s24 + $0x10] sm:$0xff]  }
0x2aaa   :  { %11769 = vmatpush3.bf16.msra.mxu1 %v12397_v31  ;;  %v12423_v31 = vld [vmem:[%s15480_s24 + $0x28] sm:$0xff]  }
0x2aab   :  { %v514_v35 = vmul.f32 %v14757_v44, %v14757_v44  ;;  %11770 = vmatprep.subr.bf16.mxu1 %v12648_v28 }
0x2aad   :  { %520 = vadd.xlane.f32.xlu1 %v514_v35  ;;  %v12419_v35 = vld [vmem:[%s15480_s24 + $0x18] sm:$0xff]  }
0x2aae   :  { %11771 = vmatpush3.bf16.msra.mxu1 %v12398_v11 }
0x2aaf   :  { %11772 = vmatprep.subr.bf16.mxu1 %v12648_v28 }
0x2ab1   :  { %v12597_v47 = vpop.eup %12596 }
0x2ab2   :  { %v6457_v48 = vsel %vm954_vm3, %v12597_v47, 0.0 }
0x2ab3   :  { %6458 = vadd.xlane.f32.xlu0 %v6457_v48  ;;  %v12421_v48 = vld [vmem:[%s15480_s24 + $0x20] sm:$0xff]  }
0x2ab7   :  { %502 = vadd.xlane.f32.xlu0 %v13144_v32 }
0x2abe   :  { %5621 = vrot.lane.b32.xlu1 %v14646_v17, %s12650_s1 }
0x2b3a   :  { %v521_v57 = vpop.xlane.xlu1 %520 }
0x2b3b   :  { %v526_v19 = vmul.f32 0.0078125, %v521_v57  ;;  %v12424_v57 = vld [vmem:[%s15480_s24 + $0x70] sm:$0xff]  }
0x2b3d   :  { %v530_v51 = vadd.f32 1e-05, %v526_v19  ;;  %v12437_v19 = vld [vmem:[%s15480_s24 + $0x80] sm:$0xff]  }
0x2b3e   :  { %v5622_v58 = vpop.permute.xlu1 %5621 }
0x2b3f   :  { %5624 = vst.msk [vmem:[#allocation2] sm:$0xff] %vm1466_vm4, %v5622_v58  ;;  %v12425_v58 = vld [vmem:[%s15480_s24 + $0x30] sm:$0xff]  }
0x2b40   :  { %v6459_v59 = vpop.xlane.xlu0 %6458 }
0x2b41   :  { %12598 = vrcp.f32 %v6459_v59  ;;  %v12426_v59 = vld [vmem:[%s15480_s24 + $0x78] sm:$0xff]  }
0x2b42   :  { %12600 = vrsqrt.f32 %v530_v51  ;;  %v12438_v51 = vld [vmem:[%s15480_s24 + $0xc8] sm:$0xff]  }
0x2b44   :  { %v503_v17 = vpop.xlane.xlu0 %502 }
0x2b45   :  { %v507_v60 = vmul.f32 0.0078125, %v503_v17  ;;  %v12427_v17 = vld [vmem:[%s15480_s24 + $0x38] sm:$0xff]  }
0x2b47   :  { %v511_v56 = vsub.f32 %v13144_v32, %v507_v60  ;;  %v12399_v32 = vld [vmem:[%s15478_s22 + $0x18] sm:$0xff]   ;;  %v12428_v60 = vld [vmem:[%s15476_s20 + $0x40] sm:$0xff]  }
0x2b48   :  { %11773 = vmatpush3.bf16.msra.mxu1 %v12399_v32 }
0x2b49   :  { %v515_v63 = vmul.f32 %v511_v56, %v511_v56  ;;  %11774 = vmatprep.subr.bf16.mxu1 %v12648_v28 }
0x2b4b   :  { %v12599_v20 = vpop.eup %12598  ;;  %522 = vadd.xlane.f32.xlu0 %v515_v63  ;;  %v9832_v63 = vld [vmem:[%s15479_s23] ss:$0 sm:$0xff] }
0x2b4c   :  { %v6461_v2 = vmul.f32 %v12599_v20, %v12597_v47  ;;  %11775 = vmatpush3.bf16.msra.mxu1 %v12400_v5  ;;  %v12601_v0 = vpop.eup %12600  ;;  %v12420_v47 = vld [vmem:[%s15480_s24 + $0x60] sm:$0xff]  }
0x2b4d   :  { %11776 = vmatprep.subr.bf16.mxu1 %v12648_v28  ;;  %v538_v36 = vmul.f32 %v12601_v0, %v14757_v44  ;;  %v12418_v44 = vld [vmem:[%s15480_s24 + $0x58] sm:$0xff]  }
0x2b4e   :  { %v6462_v62 = vpack.c.bf16 %v6461_v2, %v6461_v2  ;;  %v12443_v0 = vld [vmem:[%s15480_s24 + $0x98] sm:$0xff]  }
0x2b4f   :  { %v549_v39 = vmul.f32 %v12622_v38, %v538_v36  ;;  %v12444_v36 = vld [vmem:[%s15480_s24 + $0xe0] sm:$0xff]  }
0x2b50   :  { %11743 = vmatmul.mubr.msk.bf16.vlgmr.msra.gmra.mrb[112].mxu0 %vm954_vm3, %v6462_v62  ;;  %11777 = vmatpush3.bf16.msra.mxu1 %v12401_v6  ;;  %v12430_v6 = vld [vmem:[%s15476_s20 + $0x50] sm:$0xff]  }
0x2b51   :  { %11762 = vmatprep.mubr.msk.bf16.mxu0 %vm12649_vm0, %v12648_v28  ;;  %11778 = vmatprep.subr.bf16.mxu1 %v12648_v28  ;;  %v560_v4 = vadd.f32 %v12623_v34, %v549_v39  ;;  %v12448_v39 = vld [vmem:[%s15480_s24 + $0xf0] sm:$0xff]  }
0x2b52   :  { %11747 = vmatpush3.bf16.msra.mxu0 %v12404_v10  ;;  %v12431_v10 = vld [vmem:[%s15476_s20 + $0x58] sm:$0xff]  }
0x2b53   :  { %11748 = vmatprep.subr.bf16.mxu0 %v12648_v28 }
0x2b54   :  { %11779 = vmatpush3.bf16.msra.mxu1 %v12402_v7 }
0x2b55   :  { %11780 = vmatprep.subr.bf16.mxu1 %v12648_v28 }
0x2b56   :  { %11749 = vmatpush3.bf16.msra.mxu0 %v12405_v13  ;;  %v12432_v13 = vld [vmem:[%s15476_s20 + $0x60] sm:$0xff]  }
0x2b57   :  { %11750 = vmatprep.subr.bf16.mxu0 %v12648_v28 }
0x2b58   :  { %11781 = vmatpush3.bf16.msra.mxu1 %v12403_v9 }
0x2b59   :  { %11786 = vmatprep.subr.bf16.mxu1 %v12648_v28 }
0x2b5a   :  { %11751 = vmatpush3.bf16.msra.mxu0 %v12406_v14  ;;  %v12433_v14 = vld [vmem:[%s15476_s20 + $0x68] sm:$0xff]  }
0x2b5b   :  { %11752 = vmatprep.subr.bf16.mxu0 %v12648_v28 }
0x2b5e   :  { %11753 = vmatpush3.bf16.msra.mxu0 %v12407_v15  ;;  %v12434_v15 = vld [vmem:[%s15476_s20 + $0x70] sm:$0xff]  }
0x2b5f   :  { %11754 = vmatprep.subr.bf16.mxu0 %v12648_v28 }
0x2b61   :  { %6066 = vrot.lane.b32.xlu0 %v14740_v27, %s12651_s0 }
0x2b62   :  { %11755 = vmatpush3.bf16.msra.mxu0 %v12408_v21  ;;  %v12435_v21 = vld [vmem:[%s15476_s20 + $0x78] sm:$0xff]  }
0x2b63   :  { %11756 = vmatprep.subr.bf16.mxu0 %v12648_v28 }
0x2b66   :  { %11757 = vmatpush3.bf16.msra.mxu0 %v12409_v3  ;;  %v12436_v3 = vld [vmem:[%s15480_s24 + $0xc0] sm:$0xff]  }
0x2b67   :  { %11758 = vmatprep.subr.bf16.mxu0 %v12648_v28 }
0x2b6a   :  { %11759 = vmatpush3.bf16.msra.mxu0 %v12410_v24  ;;  %v12453_v24 = vld [vmem:[%s15476_s20 + $0x88] sm:$0xff]  }
0x2b6b   :  { %11760 = vmatprep.subr.bf16.mxu0 %v12648_v28 }
0x2b6e   :  { %11761 = vmatpush3.bf16.msra.mxu0 %v12411_v33  ;;  %v12454_v33 = vld [vmem:[%s15476_s20 + $0x90] sm:$0xff]  }
0x2b6f   :  { %10716 = vmatprep.subr.bf16.mxu0 %v12412_v41  ;;  %v12455_v41 = vld [vmem:[%s15476_s20 + $0x98] sm:$0xff]  }
0x2bd8   :  { %v523_v27 = vpop.xlane.xlu0 %522 }
0x2bd9   :  { %v527_v29 = vmul.f32 0.0078125, %v523_v27  ;;  %v12439_v27 = vld [vmem:[%s15480_s24 + $0x88] sm:$0xff]  }
0x2bdb   :  { %v531_v26 = vadd.f32 1e-05, %v527_v29  ;;  %v12440_v29 = vld [vmem:[%s15480_s24 + $0xd0] sm:$0xff]  }
0x2bdc   :  { %v6067_v30 = vpop.permute.xlu0 %6066 }
0x2bdd   :  { %12602 = vrsqrt.f32 %v531_v26  ;;  %6069 = vst.msk [vmem:[#allocation2] sm:$0xff] %vm1918_vm5, %v6067_v30  ;;  %v12441_v26 = vld [vmem:[%s15480_s24 + $0x90] sm:$0xff]   ;;  %v12442_v30 = vld [vmem:[%s15480_s24 + $0xd8] sm:$0xff]  }
0x2be7   :  { %v12603_v25 = vpop.eup %12602 }
0x2be8   :  { %v539_v37 = vmul.f32 %v12603_v25, %v511_v56  ;;  %v12429_v56 = vld [vmem:[%s15476_s20 + $0x48] sm:$0xff]   ;;  %v12445_v25 = vld [vmem:[%s15480_s24 + $0xa0] sm:$0xff]  }
0x2bea   :  { %v550_v40 = vmul.f32 %v12622_v38, %v539_v37  ;;  %v12446_v37 = vld [vmem:[%s15480_s24 + $0xe8] sm:$0xff]  }
0x2beb   :  { %v12447_v38 = vld [vmem:[%s15480_s24 + $0xa8] sm:$0xff]  }
0x2bec   :  { %v561_v18 = vadd.f32 %v12623_v34, %v550_v40  ;;  %v12449_v40 = vld [vmem:[%s15480_s24 + $0xb0] sm:$0xff]   ;;  %v12450_v34 = vld [vmem:[%s15480_s24 + $0xf8] sm:$0xff]  }
0x2bee   :  { %v14836_v23 = vpack.c.bf16 %v561_v18, %v560_v4  ;;  %v12451_v4 = vld [vmem:[%s15480_s24 + $0xb8] sm:$0xff]   ;;  %v12452_v18 = vld [vmem:[%s15476_s20 + $0x80] sm:$0xff]  }
0x2bf0   :  { %11783 = vmatmul.mubr.bf16.vlgmr.msra.gmra.mrb[140].mxu1 %v14836_v23 }
0x2bf1   :  { %11788 = vmatprep.mubr.msk.bf16.mxu1 %vm12649_vm0, %v12648_v28 }
0x2c23   :  { %v6504_v50 = vpop.f32.mrb[112].mxu0 }
0x2c24   :  { %6511 = vrot.lane.b32.xlu1 %v6504_v50, %s15519_s17  ;;  %v11744_v42 = vpop.f32.mrb[113].mxu0  ;;  %v12456_v50 = vld [vmem:[%s15476_s20 + $0xa0] sm:$0xff]  }
0x2c25   :  { %v6507_v43 = vpop.f32.mrb[114].mxu0  ;;  %v12457_v42 = vld [vmem:[%s15476_s20 + $0xa8] sm:$0xff]  }
0x2c26   :  { %v11745_v22 = vpop.f32.mrb[115].mxu0  ;;  %v12458_v43 = vld [vmem:[%s15476_s20 + $0xb0] sm:$0xff]  }
0x2c27   :  { %v12459_v22 = vld [vmem:[%s15476_s20 + $0xb8] sm:$0xff]  }
0x2c96   :  { %v6512_v45 = vpop.permute.xlu1 %6511 }
0x2c97   :  { %6514 = vst.msk [vmem:[#allocation2] sm:$0xff] %vm2370_vm6, %v6512_v45  ;;  %v12460_v45 = vld [vmem:[%s15480_s24 + $0x140] sm:$0xff]  }
0x2c9e   :  { %v6515_v46 = vld [vmem:[#allocation2] sm:$0xff] }
0x2c9f   :  { %v14856_v1 = vpack.c.bf16 %v6515_v46, %v6515_v46  ;;  %v12461_v46 = vld [vmem:[%s15480_s24 + $0x100] sm:$0xff]  }
0x2ca1   :  { %11763 = vmatmul.mubr.bf16.vlgmr.msra.gmra.mrb[116].mxu0 %v14856_v1 }
0x2ca2   :  { %10717 = vmatpush3.bf16.msra.mxu0 %v12413_v49  ;;  %6908 = vmatprep.mubr.bf16.mxu0 %v12986_v12  ;;  %v12462_v49 = vld [vmem:[%s15480_s24 + $0x148] sm:$0xff]  }
0x2ca3   :  { %10718 = vmatprep.subr.bf16.mxu0 %v12414_v61  ;;  %v12463_v61 = vld [vmem:[%s15480_s24 + $0x108] sm:$0xff]  }
0x2ca6   :  { %10719 = vmatpush3.bf16.msra.mxu0 %v12415_v52  ;;  %v12464_v52 = vld [vmem:[%s15480_s24 + $0x150] sm:$0xff]  }
0x2ca7   :  { %10720 = vmatprep.subr.bf16.mxu0 %v12416_v53  ;;  %v12465_v53 = vld [vmem:[%s15480_s24 + $0x110] sm:$0xff]  }
0x2caa   :  { %10721 = vmatpush3.bf16.msra.mxu0 %v12417_v54  ;;  %v12466_v54 = vld [vmem:[%s15480_s24 + $0x158] sm:$0xff]  }
0x2cab   :  { %10722 = vmatprep.subr.bf16.mxu0 %v12418_v44  ;;  %v12467_v44 = vld [vmem:[%s15480_s24 + $0x118] sm:$0xff]  }
0x2cae   :  { %10723 = vmatpush3.bf16.msra.mxu0 %v12419_v35  ;;  %v12468_v35 = vld [vmem:[%s15480_s24 + $0x160] sm:$0xff]  }
0x2caf   :  { %10724 = vmatprep.subr.bf16.mxu0 %v12420_v47  ;;  %v12469_v47 = vld [vmem:[%s15480_s24 + $0x120] sm:$0xff]  }
0x2cb2   :  { %10725 = vmatpush3.bf16.msra.mxu0 %v12421_v48  ;;  %v12470_v48 = vld [vmem:[%s15480_s24 + $0x168] sm:$0xff]  }
0x2cb3   :  { %10726 = vmatprep.subr.bf16.mxu0 %v12422_v55  ;;  %v12471_v55 = vld [vmem:[%s15480_s24 + $0x128] sm:$0xff]  }
0x2cb6   :  { %10727 = vmatpush3.bf16.msra.mxu0 %v12423_v31  ;;  %v12472_v31 = vld [vmem:[%s15480_s24 + $0x170] sm:$0xff]  }
0x2cb7   :  { %10728 = vmatprep.subr.bf16.mxu0 %v12424_v57  ;;  %v12473_v57 = vld [vmem:[%s15480_s24 + $0x130] sm:$0xff]  }
0x2cba   :  { %10729 = vmatpush3.bf16.msra.mxu0 %v12425_v58  ;;  %v12474_v58 = vld [vmem:[%s15480_s24 + $0x178] sm:$0xff]  }
0x2cbb   :  { %10730 = vmatprep.subr.bf16.mxu0 %v12426_v59  ;;  %v12475_v59 = vld [vmem:[%s15480_s24 + $0x138] sm:$0xff]  }
0x2cbe   :  { %10731 = vmatpush3.bf16.msra.mxu0 %v12427_v17  ;;  %v12476_v17 = vld [vmem:[%s15476_s20 + $0xc0] sm:$0xff]  }
0x2cbf   :  { %11810 = vmatprep.subr.bf16.mxu0 %v12648_v28 }
0x2cc1   :  { %6909 = vmatmul.mubr.bf16.vlgmr.msra.gmra.mrb[120].mxu0 %v12998_v16 }
0x2cc2   :  { %11811 = vmatpush3.bf16.msra.mxu0 %v12428_v60  ;;  %11826 = vmatprep.mubr.msk.bf16.mxu0 %vm12649_vm0, %v12648_v28  ;;  %v12477_v60 = vld [vmem:[%s15476_s20 + $0xc8] sm:$0xff]  }
0x2cc3   :  { %v6734_v20 = vpop.f32.mrb[140].mxu1  ;;  %11812 = vmatprep.subr.bf16.mxu0 %v12648_v28 }
0x2cc4   :  { %v11784_v2 = vpop.f32.mrb[141].mxu1  ;;  %v6735_v11 = vadd.f32 %v9832_v63, %v6734_v20  ;;  %v12480_v20 = vld [vmem:[%s15476_s20 + $0xe0] sm:$0xff]  }
0x2cc5   :  { %v6737_v62 = vpop.f32.mrb[142].mxu1  ;;  %v12481_v2 = vld [vmem:[%s15476_s20 + $0xe8] sm:$0xff]  }
0x2cc6   :  { %v6738_v32 = vadd.f32 %v9832_v63, %v6737_v62  ;;  %11813 = vmatpush3.bf16.msra.mxu0 %v12429_v56  ;;  %v11785_v5 = vpop.f32.mrb[143].mxu1  ;;  %v12478_v56 = vld [vmem:[%s15476_s20 + $0xd0] sm:$0xff]   ;;  %v12479_v63 = vld [vmem:[%s15476_s20 + $0xd8] sm:$0xff]  }
0x2cc7   :  { %11814 = vmatprep.subr.bf16.mxu0 %v12648_v28  ;;  %v12482_v62 = vld [vmem:[%s15476_s20 + $0xf0] sm:$0xff]  }
0x2cc8   :  { %v6918_v7 = vpack.c.bf16 %v6738_v32, %v6735_v11  ;;  %v12483_v11 = vld [vmem:[%s15476_s20 + $0xf8] sm:$0xff]   ;;  %v9823_v32 = vld [vmem:[%s15477_s21] ss:$0 sm:$0xff] }
0x2cca   :  { %11815 = vmatpush3.bf16.msra.mxu0 %v12430_v6  ;;  %v6923_v9 = vsel %vm907_vm1, %v6918_v7, 0 }
0x2ccb   :  { %11787 = vmatpush3.bf16.xpose.msra.mxu1 %v6923_v9  ;;  %11816 = vmatprep.subr.bf16.mxu0 %v12648_v28 }
0x2ccc   :  { %11792 = vmatprep.subr.bf16.mxu1 %v12648_v28 }
0x2cce   :  { %11817 = vmatpush3.bf16.msra.mxu0 %v12431_v10 }
0x2ccf   :  { %11818 = vmatprep.subr.bf16.mxu0 %v12648_v28 }
0x2cd2   :  { %11819 = vmatpush3.bf16.msra.mxu0 %v12432_v13 }
0x2cd3   :  { %11820 = vmatprep.subr.bf16.mxu0 %v12648_v28 }
0x2cd6   :  { %11821 = vmatpush3.bf16.msra.mxu0 %v12433_v14 }
0x2cd7   :  { %11822 = vmatprep.subr.bf16.mxu0 %v12648_v28 }
0x2cda   :  { %11823 = vmatpush3.bf16.msra.mxu0 %v12434_v15 }
0x2cdb   :  { %11824 = vmatprep.subr.bf16.mxu0 %v12648_v28 }
0x2cde   :  { %11825 = vmatpush3.bf16.msra.mxu0 %v12435_v21 }
0x2cdf   :  { %10765 = vmatprep.subr.bf16.mxu0 %v12436_v3 }
0x2ce1   :  { %11827 = vmatmul.mubr.bf16.vlgmr.msra.gmra.mrb[124].mxu0 %v14856_v1 }
0x2ce2   :  { %10766 = vmatpush3.bf16.msra.mxu0 %v12437_v19  ;;  %7488 = vmatprep.mubr.bf16.mxu0 %v12986_v12 }
0x2ce3   :  { %10767 = vmatprep.subr.bf16.mxu0 %v12438_v51 }
0x2ce6   :  { %10768 = vmatpush3.bf16.msra.mxu0 %v12439_v27 }
0x2ce7   :  { %10769 = vmatprep.subr.bf16.mxu0 %v12440_v29 }
0x2cea   :  { %10770 = vmatpush3.bf16.msra.mxu0 %v12441_v26 }
0x2ceb   :  { %10771 = vmatprep.subr.bf16.mxu0 %v12442_v30 }
0x2cee   :  { %10772 = vmatpush3.bf16.msra.mxu0 %v12443_v0 }
0x2cef   :  { %10773 = vmatprep.subr.bf16.mxu0 %v12444_v36 }
0x2cf2   :  { %10774 = vmatpush3.bf16.msra.mxu0 %v12445_v25 }
0x2cf3   :  { %10775 = vmatprep.subr.bf16.mxu0 %v12446_v37  ;;  %v9950_v37 = vld [vmem:[%s15481_s25 + $0x1] ss:$0 sm:$0xff] }
0x2cf6   :  { %10776 = vmatpush3.bf16.msra.mxu0 %v12447_v38 }
0x2cf7   :  { %10777 = vmatprep.subr.bf16.mxu0 %v12448_v39 }
0x2cfa   :  { %10778 = vmatpush3.bf16.msra.mxu0 %v12449_v40 }
0x2cfb   :  { %10779 = vmatprep.subr.bf16.mxu0 %v12450_v34 }
0x2cfe   :  { %10780 = vmatpush3.bf16.msra.mxu0 %v12451_v4 }
0x2cff   :  { %11874 = vmatprep.subr.bf16.mxu0 %v12648_v28 }
0x2d01   :  { %7489 = vmatmul.mubr.bf16.vlgmr.msra.gmra.mrb[128].mxu0 %v12998_v16 }
0x2d02   :  { %11875 = vmatpush3.bf16.msra.mxu0 %v12452_v18  ;;  %11890 = vmatprep.mubr.msk.bf16.mxu0 %vm12649_vm0, %v12648_v28 }
0x2d03   :  { %11876 = vmatprep.subr.bf16.mxu0 %v12648_v28 }
0x2d06   :  { %11877 = vmatpush3.bf16.msra.mxu0 %v12453_v24 }
0x2d07   :  { %11878 = vmatprep.subr.bf16.mxu0 %v12648_v28 }
0x2d0a   :  { %11879 = vmatpush3.bf16.msra.mxu0 %v12454_v33 }
0x2d0b   :  { %11880 = vmatprep.subr.bf16.mxu0 %v12648_v28 }
0x2d0e   :  { %11881 = vmatpush3.bf16.msra.mxu0 %v12455_v41 }
0x2d0f   :  { %11882 = vmatprep.subr.bf16.mxu0 %v12648_v28 }
0x2d12   :  { %11883 = vmatpush3.bf16.msra.mxu0 %v12456_v50 }
0x2d13   :  { %11884 = vmatprep.subr.bf16.mxu0 %v12648_v28 }
0x2d16   :  { %11885 = vmatpush3.bf16.msra.mxu0 %v12457_v42 }
0x2d17   :  { %11886 = vmatprep.subr.bf16.mxu0 %v12648_v28 }
0x2d1a   :  { %11887 = vmatpush3.bf16.msra.mxu0 %v12458_v43 }
0x2d1b   :  { %11888 = vmatprep.subr.bf16.mxu0 %v12648_v28 }
0x2d1e   :  { %11889 = vmatpush3.bf16.msra.mxu0 %v12459_v22 }
0x2d1f   :  { %10814 = vmatprep.subr.bf16.mxu0 %v12460_v45  ;;  %v10067_v45 = vld [vmem:[%s15481_s25 + $0x2] ss:$0 sm:$0xff] }
0x2d21   :  { %11891 = vmatmul.mubr.bf16.vlgmr.msra.gmra.mrb[132].mxu0 %v14856_v1 }
0x2d22   :  { %10815 = vmatpush3.bf16.msra.mxu0 %v12461_v46  ;;  %8068 = vmatprep.mubr.bf16.mxu0 %v12986_v12 }
0x2d23   :  { %10816 = vmatprep.subr.bf16.mxu0 %v12462_v49 }
0x2d26   :  { %10817 = vmatpush3.bf16.msra.mxu0 %v12463_v61 }
0x2d27   :  { %10818 = vmatprep.subr.bf16.mxu0 %v12464_v52 }
0x2d2a   :  { %10819 = vmatpush3.bf16.msra.mxu0 %v12465_v53 }
0x2d2b   :  { %10820 = vmatprep.subr.bf16.mxu0 %v12466_v54 }
0x2d2e   :  { %10821 = vmatpush3.bf16.msra.mxu0 %v12467_v44 }
0x2d2f   :  { %10822 = vmatprep.subr.bf16.mxu0 %v12468_v35 }
0x2d32   :  { %10823 = vmatpush3.bf16.msra.mxu0 %v12469_v47 }
0x2d33   :  { %10824 = vmatprep.subr.bf16.mxu0 %v12470_v48 }
0x2d36   :  { %10825 = vmatpush3.bf16.msra.mxu0 %v12471_v55 }
0x2d37   :  { %10826 = vmatprep.subr.bf16.mxu0 %v12472_v31 }
0x2d3a   :  { %10827 = vmatpush3.bf16.msra.mxu0 %v12473_v57 }
0x2d3b   :  { %10828 = vmatprep.subr.bf16.mxu0 %v12474_v58 }
0x2d3e   :  { %10829 = vmatpush3.bf16.msra.mxu0 %v12475_v59 }
0x2d3f   :  { %11938 = vmatprep.subr.bf16.mxu0 %v12648_v28 }
0x2d41   :  { %8069 = vmatmul.mubr.bf16.vlgmr.msra.gmra.mrb[136].mxu0 %v12998_v16 }
0x2d42   :  { %11939 = vmatpush3.bf16.msra.mxu0 %v12476_v17  ;;  %11954 = vmatprep.mubr.msk.bf16.mxu0 %vm12649_vm0, %v12648_v28 }
0x2d43   :  { %11940 = vmatprep.subr.bf16.mxu0 %v12648_v28 }
0x2d46   :  { %11941 = vmatpush3.bf16.msra.mxu0 %v12477_v60 }
0x2d47   :  { %11942 = vmatprep.subr.bf16.mxu0 %v12648_v28 }
0x2d4a   :  { %11943 = vmatpush3.bf16.msra.mxu0 %v12478_v56 }
0x2d4b   :  { %11944 = vmatprep.subr.bf16.mxu0 %v12648_v28 }
0x2d4e   :  { %11945 = vmatpush3.bf16.msra.mxu0 %v12479_v63 }
0x2d4f   :  { %11946 = vmatprep.subr.bf16.mxu0 %v12648_v28 }
0x2d52   :  { %11947 = vmatpush3.bf16.msra.mxu0 %v12480_v20 }
0x2d53   :  { %11948 = vmatprep.subr.bf16.mxu0 %v12648_v28 }
0x2d56   :  { %11949 = vmatpush3.bf16.msra.mxu0 %v12481_v2 }
0x2d57   :  { %11950 = vmatprep.subr.bf16.mxu0 %v12648_v28 }
0x2d5a   :  { %11951 = vmatpush3.bf16.msra.mxu0 %v12482_v62 }
0x2d5b   :  { %11952 = vmatprep.subr.bf16.mxu0 %v12648_v28 }
0x2d5e   :  { %11953 = vmatpush3.bf16.msra.mxu0 %v12483_v11 }
0x2d61   :  { %11955 = vmatmul.mubr.bf16.vlgmr.msra.gmra.mrb[140].mxu0 %v14856_v1 }
0x2d62   :  { %8648 = vmatprep.mubr.bf16.mxu0 %v12986_v12  ;;  %v9841_v12 = vld [vmem:[%s15481_s25] ss:$0 sm:$0xff] }
0x2d74   :  { %v6623_v5 = vpop.f32.mrb[116].mxu0 }
0x2d75   :  { %v6624_v6 = vadd.f32 %v9823_v32, %v6623_v5  ;;  %v11764_v7 = vpop.f32.mrb[117].mxu0 }
0x2d76   :  { %v6626_v9 = vpop.f32.mrb[118].mxu0 }
0x2d77   :  { %v6917_v10 = vpack.c.bf16 %v6624_v6, %v6624_v6  ;;  %v11765_v13 = vpop.f32.mrb[119].mxu0  ;;  %v12484_v6 = vld [vmem:[%s15482_s26] sm:$0xff]   ;;  %v12485_v9 = vld [vmem:[%s15482_s26 + $0x8] sm:$0xff]  }
0x2d78   :  { %v12487_v13 = vld [vmem:[%s15482_s26 + $0x18] sm:$0xff]  }
0x2d79   :  { %11789 = vmatmul.mubr.msk.bf16.vlgmr.msra.gmra.mrb[144].mxu1 %vm907_vm1, %v6917_v10  ;;  %v12486_v10 = vld [vmem:[%s15482_s26 + $0x10] sm:$0xff]  }
0x2d7a   :  { %11794 = vmatprep.mubr.msk.bf16.mxu1 %vm12649_vm0, %v12648_v28 }
0x2d94   :  { %v10732_v14 = vpop.f32.mrb[120].mxu0 }
0x2d95   :  { %v10733_v1 = vpop.f32.mrb[121].mxu0 }
0x2d96   :  { %v10734_v15 = vadd.f32 %v10733_v1, %v10732_v14  ;;  %v10735_v21 = vpop.f32.mrb[122].mxu0 }
0x2d97   :  { %v10736_v3 = vpop.f32.mrb[123].mxu0 }
0x2d98   :  { %v6911_v19 = vadd.f32 %v10734_v15, %v9841_v12  ;;  %v10737_v51 = vadd.f32 %v10736_v3, %v10735_v21 }
0x2d9a   :  { %v6914_v27 = vadd.f32 %v10737_v51, %v9841_v12  ;;  %v12488_v12 = vld [vmem:[%s15478_s22 + $0x40] sm:$0xff]   ;;  %v12490_v51 = vld [vmem:[%s15478_s22 + $0x50] sm:$0xff]  }
0x2d9c   :  { %v6977_v29 = vpack.c.bf16 %v6914_v27, %v6911_v19  ;;  %v12489_v19 = vld [vmem:[%s15478_s22 + $0x48] sm:$0xff]   ;;  %v12491_v27 = vld [vmem:[%s15478_s22 + $0x58] sm:$0xff]  }
0x2d9e   :  { %11793 = vmatpush3.bf16.msra.mxu1 %v6977_v29  ;;  %v12492_v29 = vld [vmem:[%s15478_s22 + $0x60] sm:$0xff]  }
0x2d9f   :  { %11798 = vmatprep.subr.bf16.mxu1 %v12648_v28 }
0x2db4   :  { %v15124_v26 = vpop.f32.mrb[124].mxu0 }
0x2db5   :  { %v11828_v30 = vpop.f32.mrb[125].mxu0 }
0x2db6   :  { %v7206_v0 = vpop.f32.mrb[126].mxu0  ;;  %v12493_v30 = vld [vmem:[%s15478_s22 + $0x68] sm:$0xff]  }
0x2db7   :  { %v11829_v36 = vpop.f32.mrb[127].mxu0  ;;  %v12494_v0 = vld [vmem:[%s15478_s22 + $0x70] sm:$0xff]  }
0x2db8   :  { %v12495_v36 = vld [vmem:[%s15478_s22 + $0x78] sm:$0xff]  }
0x2dd4   :  { %v10781_v25 = vpop.f32.mrb[128].mxu0 }
0x2dd5   :  { %v10782_v38 = vpop.f32.mrb[129].mxu0 }
0x2dd6   :  { %v10783_v39 = vadd.f32 %v10782_v38, %v10781_v25  ;;  %v10784_v40 = vpop.f32.mrb[130].mxu0  ;;  %v9908_v25 = vld [vmem:[%s15479_s23 + $0x1] ss:$0 sm:$0xff] }
0x2dd7   :  { %v10785_v34 = vpop.f32.mrb[131].mxu0 }
0x2dd8   :  { %v15129_v4 = vadd.f32 %v10783_v39, %v9950_v37  ;;  %v10786_v18 = vadd.f32 %v10785_v34, %v10784_v40 }
0x2dda   :  { %v15131_v24 = vadd.f32 %v10786_v18, %v9950_v37 }
0x2ddc   :  { %v7557_v33 = vpack.c.bf16 %v15131_v24, %v15129_v4 }
0x2df4   :  { %v15135_v41 = vpop.f32.mrb[132].mxu0 }
0x2df5   :  { %v11892_v50 = vpop.f32.mrb[133].mxu0 }
0x2df6   :  { %v7786_v42 = vpop.f32.mrb[134].mxu0 }
0x2df7   :  { %v11893_v43 = vpop.f32.mrb[135].mxu0  ;;  %v9882_v42 = vld [vmem:[%s15477_s21 + $0x1] ss:$0 sm:$0xff] }
0x2e14   :  { %v10830_v22 = vpop.f32.mrb[136].mxu0 }
0x2e15   :  { %v10831_v46 = vpop.f32.mrb[137].mxu0 }
0x2e16   :  { %v10832_v49 = vadd.f32 %v10831_v46, %v10830_v22  ;;  %v10833_v61 = vpop.f32.mrb[138].mxu0  ;;  %v7204_v22 = vadd.f32 %v9882_v42, %v15124_v26 }
0x2e17   :  { %v10834_v52 = vpop.f32.mrb[139].mxu0 }
0x2e18   :  { %v15140_v53 = vadd.f32 %v10832_v49, %v10067_v45  ;;  %v10835_v54 = vadd.f32 %v10834_v52, %v10833_v61 }
0x2e1a   :  { %v15142_v44 = vadd.f32 %v10835_v54, %v10067_v45  ;;  %v7497_v45 = vpack.c.bf16 %v7204_v22, %v7204_v22 }
0x2e1c   :  { %v8137_v35 = vpack.c.bf16 %v15142_v44, %v15140_v53 }
0x2e34   :  { %v15146_v47 = vpop.f32.mrb[140].mxu0 }
0x2e35   :  { %v11956_v48 = vpop.f32.mrb[141].mxu0 }
0x2e36   :  { %v8366_v55 = vpop.f32.mrb[142].mxu0 }
0x2e37   :  { %v11957_v31 = vpop.f32.mrb[143].mxu0 }
0x2e4c   :  { %v6959_v57 = vpop.f32.mrb[144].mxu1 }
0x2e4d   :  { %v11790_v58 = vpop.f32.mrb[145].mxu1  ;;  %v6965_v59 = vsel %vm2828_vm7, %v6959_v57, -inf }
0x2e4e   :  { %6966 = vmax.xlane.f32.xlu1 %v6965_v59  ;;  %v6962_v17 = vpop.f32.mrb[146].mxu1  ;;  %v12496_v58 = vld [vmem:[%s15482_s26 + $0x20] sm:$0xff]  }
0x2e4f   :  { %v11791_v60 = vpop.f32.mrb[147].mxu1  ;;  %v12497_v17 = vld [vmem:[%s15482_s26 + $0x28] sm:$0xff]  }
0x2e50   :  { %v12498_v60 = vld [vmem:[%s15482_s26 + $0x30] sm:$0xff]  }
0x2edb   :  { %v6967_v56 = vpop.xlane.xlu1 %6966 }
0x2edc   :  { %v6968_v63 = vsub.f32 %v6959_v57, %v6967_v56  ;;  %v12499_v56 = vld [vmem:[%s15482_s26 + $0x38] sm:$0xff]  }
0x2ede   :  { %v6969_v20 = vmul.f32 1.442695, %v6968_v63 }
0x2ee0   :  { %12604 = vpow2.f32 %v6969_v20  ;;  %v12500_v20 = vld [vmem:[%s15478_s22 + $0x80] sm:$0xff]  }
0x2eea   :  { %v12605_v2 = vpop.eup %12604 }
0x2eeb   :  { %v6971_v62 = vsel %vm2828_vm7, %v12605_v2, 0.0 }
0x2eec   :  { %6972 = vadd.xlane.f32.xlu0 %v6971_v62 }
0x2f79   :  { %v6973_v11 = vpop.xlane.xlu0 %6972 }
0x2f7a   :  { %12606 = vrcp.f32 %v6973_v11 }
0x2f84   :  { %v12607_v32 = vpop.eup %12606 }
0x2f85   :  { %v6975_v5 = vmul.f32 %v12607_v32, %v12605_v2 }
0x2f87   :  { %v6976_v7 = vpack.c.bf16 %v6975_v5, %v6975_v5  ;;  %v12501_v5 = vld [vmem:[%s15478_s22 + $0x88] sm:$0xff]  }
0x2f89   :  { %11795 = vmatmul.mubr.msk.bf16.vlgmr.msra.gmra.mrb[148].mxu1 %vm2828_vm7, %v6976_v7  ;;  %v12503_v7 = vld [vmem:[%s15478_s22 + $0x98] sm:$0xff]  }
0x2f8a   :  { %11799 = vmatpush3.bf16.msra.mxu1 %v12484_v6  ;;  %11806 = vmatprep.mubr.msk.bf16.mxu1 %vm12649_vm0, %v12648_v28  ;;  %v12502_v6 = vld [vmem:[%s15478_s22 + $0x90] sm:$0xff]  }
0x2f8b   :  { %11800 = vmatprep.subr.bf16.mxu1 %v12648_v28 }
0x2f8e   :  { %11801 = vmatpush3.bf16.msra.mxu1 %v12485_v9  ;;  %v12504_v9 = vld [vmem:[%s15478_s22 + $0xa0] sm:$0xff]  }
0x2f8f   :  { %11802 = vmatprep.subr.bf16.mxu1 %v12648_v28 }
0x2f92   :  { %11803 = vmatpush3.bf16.msra.mxu1 %v12486_v10  ;;  %v12505_v10 = vld [vmem:[%s15478_s22 + $0xa8] sm:$0xff]  }
0x2f93   :  { %11804 = vmatprep.subr.bf16.mxu1 %v12648_v28 }
0x2f96   :  { %11805 = vmatpush3.bf16.msra.mxu1 %v12487_v13  ;;  %v12506_v13 = vld [vmem:[%s15478_s22 + $0xb0] sm:$0xff]  }
0x2f97   :  { %11830 = vmatprep.subr.bf16.mxu1 %v12648_v28 }
0x305c   :  { %v7015_v14 = vpop.f32.mrb[148].mxu1 }
0x305d   :  { %v7021_v1 = vpack.c.bf16 %v7015_v14, %v7015_v14  ;;  %v11796_v15 = vpop.f32.mrb[149].mxu1  ;;  %v12507_v14 = vld [vmem:[%s15478_s22 + $0xb8] sm:$0xff]  }
0x305e   :  { %v7018_v21 = vpop.f32.mrb[150].mxu1 }
0x305f   :  { %v11797_v3 = vpop.f32.mrb[151].mxu1  ;;  %11807 = vmatmul.mubr.msk.bf16.vlgmr.msra.gmra.mrb[152].mxu1 %vm2918_vm8, %v7021_v1 }
0x3060   :  { %11831 = vmatpush3.bf16.msra.mxu1 %v12488_v12  ;;  %11846 = vmatprep.mubr.msk.bf16.mxu1 %vm12649_vm0, %v12648_v28  ;;  %v10025_v12 = vld [vmem:[%s15479_s23 + $0x2] ss:$0 sm:$0xff] }
0x3061   :  { %11832 = vmatprep.subr.bf16.mxu1 %v12648_v28 }
0x3064   :  { %11833 = vmatpush3.bf16.msra.mxu1 %v12489_v19 }
0x3065   :  { %11834 = vmatprep.subr.bf16.mxu1 %v12648_v28 }
0x3068   :  { %11835 = vmatpush3.bf16.msra.mxu1 %v12490_v51 }
0x3069   :  { %11836 = vmatprep.subr.bf16.mxu1 %v12648_v28 }
0x306c   :  { %11837 = vmatpush3.bf16.msra.mxu1 %v12491_v27 }
0x306d   :  { %11838 = vmatprep.subr.bf16.mxu1 %v12648_v28 }
0x3070   :  { %11839 = vmatpush3.bf16.msra.mxu1 %v12492_v29  ;;  %v9999_v29 = vld [vmem:[%s15477_s21 + $0x2] ss:$0 sm:$0xff] }
0x3071   :  { %11840 = vmatprep.subr.bf16.mxu1 %v12648_v28 }
0x3074   :  { %11841 = vmatpush3.bf16.msra.mxu1 %v12493_v30 }
0x3075   :  { %11842 = vmatprep.subr.bf16.mxu1 %v12648_v28 }
0x3078   :  { %11843 = vmatpush3.bf16.msra.mxu1 %v12494_v0  ;;  %v7784_v0 = vadd.f32 %v9999_v29, %v15135_v41  ;;  %v12534_v29 = vld [vmem:[%s15480_s24 + $0x1f8] sm:$0xff]  }
0x3079   :  { %11844 = vmatprep.subr.bf16.mxu1 %v12648_v28 }
0x307c   :  { %11845 = vmatpush3.bf16.msra.mxu1 %v12495_v36  ;;  %v8077_v36 = vpack.c.bf16 %v7784_v0, %v7784_v0 }
0x307d   :  { %11850 = vmatprep.subr.bf16.mxu1 %v12648_v28 }
0x307f   :  { %11847 = vmatmul.mubr.bf16.vlgmr.msra.gmra.mrb[156].mxu1 %v14836_v23 }
0x3080   :  { %11852 = vmatprep.mubr.msk.bf16.mxu1 %vm12649_vm0, %v12648_v28 }
0x3152   :  { %v7314_v37 = vpop.f32.mrb[156].mxu1 }
0x3153   :  { %v11848_v38 = vpop.f32.mrb[157].mxu1  ;;  %v7315_v40 = vadd.f32 %v9908_v25, %v7314_v37 }
0x3154   :  { %v7317_v39 = vpop.f32.mrb[158].mxu1 }
0x3155   :  { %v7318_v34 = vadd.f32 %v9908_v25, %v7317_v39  ;;  %v11849_v18 = vpop.f32.mrb[159].mxu1 }
0x3157   :  { %v7498_v50 = vpack.c.bf16 %v7318_v34, %v7315_v40 }
0x3159   :  { %v7503_v43 = vsel %vm907_vm1, %v7498_v50, 0 }
0x315a   :  { %11851 = vmatpush3.bf16.xpose.msra.mxu1 %v7503_v43  ;;  %v12508_v43 = vld [vmem:[%s15482_s26 + $0x40] sm:$0xff]  }
0x315b   :  { %11856 = vmatprep.subr.bf16.mxu1 %v12648_v28 }
0x3161   :  { %11853 = vmatmul.mubr.msk.bf16.vlgmr.msra.gmra.mrb[160].mxu1 %vm907_vm1, %v7497_v45  ;;  %v12509_v45 = vld [vmem:[%s15482_s26 + $0x48] sm:$0xff]  }
0x3162   :  { %11857 = vmatpush3.bf16.msra.mxu1 %v7557_v33  ;;  %11858 = vmatprep.mubr.msk.bf16.mxu1 %vm12649_vm0, %v12648_v28 }
0x3163   :  { %11862 = vmatprep.subr.bf16.mxu1 %v12648_v28 }
0x3234   :  { %v7539_v46 = vpop.f32.mrb[160].mxu1 }
0x3235   :  { %v11854_v49 = vpop.f32.mrb[161].mxu1  ;;  %v7545_v61 = vsel %vm2828_vm7, %v7539_v46, -inf }
0x3236   :  { %7546 = vmax.xlane.f32.xlu0 %v7545_v61  ;;  %v7542_v26 = vpop.f32.mrb[162].mxu1  ;;  %v12511_v49 = vld [vmem:[%s15482_s26 + $0x58] sm:$0xff]  }
0x3237   :  { %v11855_v52 = vpop.f32.mrb[163].mxu1  ;;  %v12512_v26 = vld [vmem:[%s15478_s22 + $0xc0] sm:$0xff]  }
0x32c3   :  { %v7547_v54 = vpop.xlane.xlu0 %7546 }
0x32c4   :  { %v7548_v48 = vsub.f32 %v7539_v46, %v7547_v54  ;;  %v12510_v46 = vld [vmem:[%s15482_s26 + $0x50] sm:$0xff]  }
0x32c6   :  { %v7549_v55 = vmul.f32 1.442695, %v7548_v48 }
0x32c8   :  { %12608 = vpow2.f32 %v7549_v55 }
0x32d2   :  { %v12609_v31 = vpop.eup %12608 }
0x32d3   :  { %v7551_v4 = vsel %vm2828_vm7, %v12609_v31, 0.0 }
0x32d4   :  { %7552 = vadd.xlane.f32.xlu1 %v7551_v4  ;;  %v12514_v4 = vld [vmem:[%s15478_s22 + $0xd0] sm:$0xff]  }
0x3361   :  { %v7553_v24 = vpop.xlane.xlu1 %7552 }
0x3362   :  { %12610 = vrcp.f32 %v7553_v24  ;;  %v12515_v24 = vld [vmem:[%s15478_s22 + $0xd8] sm:$0xff]  }
0x336c   :  { %v12611_v33 = vpop.eup %12610 }
0x336d   :  { %v7555_v57 = vmul.f32 %v12611_v33, %v12609_v31  ;;  %v12513_v31 = vld [vmem:[%s15478_s22 + $0xc8] sm:$0xff]   ;;  %v12516_v33 = vld [vmem:[%s15478_s22 + $0xe0] sm:$0xff]  }
0x336f   :  { %v7556_v59 = vpack.c.bf16 %v7555_v57, %v7555_v57  ;;  %v12517_v57 = vld [vmem:[%s15478_s22 + $0xe8] sm:$0xff]  }
0x3371   :  { %11859 = vmatmul.mubr.msk.bf16.vlgmr.msra.gmra.mrb[164].mxu1 %vm2828_vm7, %v7556_v59  ;;  %v12519_v59 = vld [vmem:[%s15478_s22 + $0xf8] sm:$0xff]  }
0x3372   :  { %11863 = vmatpush3.bf16.msra.mxu1 %v12496_v58  ;;  %11870 = vmatprep.mubr.msk.bf16.mxu1 %vm12649_vm0, %v12648_v28  ;;  %v12518_v58 = vld [vmem:[%s15478_s22 + $0xf0] sm:$0xff]  }
0x3373   :  { %11864 = vmatprep.subr.bf16.mxu1 %v12648_v28 }
0x3376   :  { %11865 = vmatpush3.bf16.msra.mxu1 %v12497_v17  ;;  %v10142_v17 = vld [vmem:[%s15479_s23 + $0x3] ss:$0 sm:$0xff] }
0x3377   :  { %11866 = vmatprep.subr.bf16.mxu1 %v12648_v28 }
0x337a   :  { %11867 = vmatpush3.bf16.msra.mxu1 %v12498_v60 }
0x337b   :  { %11868 = vmatprep.subr.bf16.mxu1 %v12648_v28 }
0x337e   :  { %11869 = vmatpush3.bf16.msra.mxu1 %v12499_v56 }
0x337f   :  { %11894 = vmatprep.subr.bf16.mxu1 %v12648_v28 }
0x3444   :  { %v7595_v63 = vpop.f32.mrb[164].mxu1 }
0x3445   :  { %v7601_v2 = vpack.c.bf16 %v7595_v63, %v7595_v63  ;;  %v11860_v62 = vpop.f32.mrb[165].mxu1 }
0x3446   :  { %v7598_v11 = vpop.f32.mrb[166].mxu1 }
0x3447   :  { %v11861_v32 = vpop.f32.mrb[167].mxu1  ;;  %11871 = vmatmul.mubr.msk.bf16.vlgmr.msra.gmra.mrb[152].mxu1 %vm2918_vm8, %v7601_v2 }
0x3448   :  { %11895 = vmatpush3.bf16.msra.mxu1 %v12500_v20  ;;  %11910 = vmatprep.mubr.msk.bf16.mxu1 %vm12649_vm0, %v12648_v28  ;;  %v10116_v32 = vld [vmem:[%s15477_s21 + $0x3] ss:$0 sm:$0xff] }
0x3449   :  { %11896 = vmatprep.subr.bf16.mxu1 %v12648_v28 }
0x344c   :  { %11897 = vmatpush3.bf16.msra.mxu1 %v12501_v5  ;;  %v8364_v5 = vadd.f32 %v10116_v32, %v15146_v47  ;;  %v12522_v47 = vld [vmem:[%s15480_s24 + $0x1c8] sm:$0xff]  }
0x344d   :  { %11898 = vmatprep.subr.bf16.mxu1 %v12648_v28 }
0x3450   :  { %11899 = vmatpush3.bf16.msra.mxu1 %v12502_v6  ;;  %v8657_v6 = vpack.c.bf16 %v8364_v5, %v8364_v5 }
0x3451   :  { %11900 = vmatprep.subr.bf16.mxu1 %v12648_v28 }
0x3454   :  { %11901 = vmatpush3.bf16.msra.mxu1 %v12503_v7  ;;  %v12520_v7 = vld [vmem:[%s15480_s24 + $0x1c0] sm:$0xff]  }
0x3455   :  { %11902 = vmatprep.subr.bf16.mxu1 %v12648_v28  ;;  %10863 = vmatprep.subr.bf16.mxu0 %v12520_v7 }
0x3458   :  { %11903 = vmatpush3.bf16.msra.mxu1 %v12504_v9  ;;  %v12521_v9 = vld [vmem:[%s15480_s24 + $0x180] sm:$0xff]  }
0x3459   :  { %11904 = vmatprep.subr.bf16.mxu1 %v12648_v28  ;;  %10864 = vmatpush3.bf16.msra.mxu0 %v12521_v9 }
0x345a   :  { %10865 = vmatprep.subr.bf16.mxu0 %v12522_v47 }
0x345c   :  { %11905 = vmatpush3.bf16.msra.mxu1 %v12505_v10  ;;  %v12523_v10 = vld [vmem:[%s15480_s24 + $0x188] sm:$0xff]  }
0x345d   :  { %11906 = vmatprep.subr.bf16.mxu1 %v12648_v28  ;;  %10866 = vmatpush3.bf16.msra.mxu0 %v12523_v10 }
0x3460   :  { %11907 = vmatpush3.bf16.msra.mxu1 %v12506_v13  ;;  %v12524_v13 = vld [vmem:[%s15480_s24 + $0x1d0] sm:$0xff]  }
0x3461   :  { %11908 = vmatprep.subr.bf16.mxu1 %v12648_v28  ;;  %10867 = vmatprep.subr.bf16.mxu0 %v12524_v13 }
0x3464   :  { %11909 = vmatpush3.bf16.msra.mxu1 %v12507_v14  ;;  %v12525_v14 = vld [vmem:[%s15480_s24 + $0x190] sm:$0xff]  }
0x3465   :  { %11914 = vmatprep.subr.bf16.mxu1 %v12648_v28  ;;  %10868 = vmatpush3.bf16.msra.mxu0 %v12525_v14 }
0x3467   :  { %11911 = vmatmul.mubr.bf16.vlgmr.msra.gmra.mrb[168].mxu1 %v14836_v23 }
0x3468   :  { %11916 = vmatprep.mubr.msk.bf16.mxu1 %vm12649_vm0, %v12648_v28 }
0x353a   :  { %v7894_v1 = vpop.f32.mrb[168].mxu1 }
0x353b   :  { %v11912_v15 = vpop.f32.mrb[169].mxu1  ;;  %v7895_v3 = vadd.f32 %v10025_v12, %v7894_v1  ;;  %v12527_v1 = vld [vmem:[%s15480_s24 + $0x198] sm:$0xff]  }
0x353c   :  { %v7897_v21 = vpop.f32.mrb[170].mxu1  ;;  %v12528_v15 = vld [vmem:[%s15480_s24 + $0x1e0] sm:$0xff]  }
0x353d   :  { %v7898_v19 = vadd.f32 %v10025_v12, %v7897_v21  ;;  %v11913_v51 = vpop.f32.mrb[171].mxu1  ;;  %v12526_v12 = vld [vmem:[%s15480_s24 + $0x1d8] sm:$0xff]   ;;  %v12529_v21 = vld [vmem:[%s15480_s24 + $0x1a0] sm:$0xff]  }
0x353e   :  { %10869 = vmatprep.subr.bf16.mxu0 %v12526_v12  ;;  %v12532_v51 = vld [vmem:[%s15480_s24 + $0x1f0] sm:$0xff]  }
0x353f   :  { %v8078_v27 = vpack.c.bf16 %v7898_v19, %v7895_v3  ;;  %10870 = vmatpush3.bf16.msra.mxu0 %v12527_v1  ;;  %v12530_v3 = vld [vmem:[%s15480_s24 + $0x1e8] sm:$0xff]  }
0x3540   :  { %10871 = vmatprep.subr.bf16.mxu0 %v12528_v15  ;;  %v12531_v19 = vld [vmem:[%s15480_s24 + $0x1a8] sm:$0xff]  }
0x3541   :  { %v8083_v30 = vsel %vm907_vm1, %v8078_v27, 0  ;;  %v12533_v27 = vld [vmem:[%s15480_s24 + $0x1b0] sm:$0xff]  }
0x3542   :  { %11915 = vmatpush3.bf16.xpose.msra.mxu1 %v8083_v30  ;;  %v12535_v30 = vld [vmem:[%s15480_s24 + $0x1b8] sm:$0xff]  }
0x3543   :  { %11920 = vmatprep.subr.bf16.mxu1 %v12648_v28  ;;  %10872 = vmatpush3.bf16.msra.mxu0 %v12529_v21 }
0x3544   :  { %10873 = vmatprep.subr.bf16.mxu0 %v12530_v3 }
0x3547   :  { %10874 = vmatpush3.bf16.msra.mxu0 %v12531_v19 }
0x3548   :  { %10875 = vmatprep.subr.bf16.mxu0 %v12532_v51 }
0x3549   :  { %11917 = vmatmul.mubr.msk.bf16.vlgmr.msra.gmra.mrb[172].mxu1 %vm907_vm1, %v8077_v36 }
0x354a   :  { %11921 = vmatpush3.bf16.msra.mxu1 %v8137_v35  ;;  %11922 = vmatprep.mubr.msk.bf16.mxu1 %vm12649_vm0, %v12648_v28 }
0x354b   :  { %11926 = vmatprep.subr.bf16.mxu1 %v12648_v28  ;;  %10876 = vmatpush3.bf16.msra.mxu0 %v12533_v27 }
0x354c   :  { %10877 = vmatprep.subr.bf16.mxu0 %v12534_v29 }
0x354f   :  { %10878 = vmatpush3.bf16.msra.mxu0 %v12535_v30 }
0x3552   :  { %8649 = vmatmul.mubr.bf16.vlgmr.msra.gmra.mrb[144].mxu0 %v12998_v16 }
0x361c   :  { %v8119_v25 = vpop.f32.mrb[172].mxu1 }
0x361d   :  { %v11918_v37 = vpop.f32.mrb[173].mxu1  ;;  %v8125_v38 = vsel %vm2828_vm7, %v8119_v25, -inf }
0x361e   :  { %8126 = vmax.xlane.f32.xlu0 %v8125_v38  ;;  %v8122_v41 = vpop.f32.mrb[174].mxu1 }
0x361f   :  { %v11919_v39 = vpop.f32.mrb[175].mxu1 }
0x3620   :  { %v10184_v39 = vld [vmem:[%s15481_s25 + $0x3] ss:$0 sm:$0xff] }
0x3625   :  { %v10879_v41 = vpop.f32.mrb[144].mxu0 }
0x36ab   :  { %v8127_v40 = vpop.xlane.xlu0 %8126 }
0x36ac   :  { %v8128_v34 = vsub.f32 %v8119_v25, %v8127_v40  ;;  %v10880_v40 = vpop.f32.mrb[145].mxu0 }
0x36ae   :  { %v8129_v18 = vmul.f32 1.442695, %v8128_v34  ;;  %v10881_v34 = vadd.f32 %v10880_v40, %v10879_v41 }
0x36b0   :  { %12612 = vpow2.f32 %v8129_v18  ;;  %v10882_v18 = vpop.f32.mrb[146].mxu0 }
0x36ba   :  { %v12613_v50 = vpop.eup %12612 }
0x36bb   :  { %v8131_v53 = vsel %vm2828_vm7, %v12613_v50, 0.0 }
0x36bc   :  { %8132 = vadd.xlane.f32.xlu1 %v8131_v53  ;;  %v8651_v53 = vadd.f32 %v10881_v34, %v10184_v39 }
0x3749   :  { %v8133_v44 = vpop.xlane.xlu1 %8132 }
0x374a   :  { %12614 = vrcp.f32 %v8133_v44 }
0x3754   :  { %v12615_v35 = vpop.eup %12614 }
0x3755   :  { %v8135_v42 = vmul.f32 %v12615_v35, %v12613_v50  ;;  %v10883_v50 = vpop.f32.mrb[147].mxu0 }
0x3756   :  { %v10884_v44 = vadd.f32 %v10883_v50, %v10882_v18 }
0x3757   :  { %v8136_v22 = vpack.c.bf16 %v8135_v42, %v8135_v42 }
0x3758   :  { %v8654_v35 = vadd.f32 %v10884_v44, %v10184_v39 }
0x3759   :  { %11923 = vmatmul.mubr.msk.bf16.vlgmr.msra.gmra.mrb[176].mxu1 %vm2828_vm7, %v8136_v22 }
0x375a   :  { %11927 = vmatpush3.bf16.msra.mxu1 %v12508_v43  ;;  %11934 = vmatprep.mubr.msk.bf16.mxu1 %vm12649_vm0, %v12648_v28  ;;  %v8717_v16 = vpack.c.bf16 %v8654_v35, %v8651_v53 }
0x375b   :  { %11928 = vmatprep.subr.bf16.mxu1 %v12648_v28 }
0x375e   :  { %11929 = vmatpush3.bf16.msra.mxu1 %v12509_v45 }
0x375f   :  { %11930 = vmatprep.subr.bf16.mxu1 %v12648_v28 }
0x3762   :  { %11931 = vmatpush3.bf16.msra.mxu1 %v12510_v46 }
0x3763   :  { %11932 = vmatprep.subr.bf16.mxu1 %v12648_v28 }
0x3766   :  { %11933 = vmatpush3.bf16.msra.mxu1 %v12511_v49 }
0x3767   :  { %11958 = vmatprep.subr.bf16.mxu1 %v12648_v28 }
0x382c   :  { %v8175_v61 = vpop.f32.mrb[176].mxu1 }
0x382d   :  { %v8181_v52 = vpack.c.bf16 %v8175_v61, %v8175_v61  ;;  %v11924_v54 = vpop.f32.mrb[177].mxu1 }
0x382e   :  { %v8178_v48 = vpop.f32.mrb[178].mxu1 }
0x382f   :  { %v11925_v55 = vpop.f32.mrb[179].mxu1  ;;  %11935 = vmatmul.mubr.msk.bf16.vlgmr.msra.gmra.mrb[152].mxu1 %vm2918_vm8, %v8181_v52  ;;  %v12536_v52 = vld [vmem:[%s15482_s26 + $0x60] sm:$0xff]   ;;  %v12537_v48 = vld [vmem:[%s15482_s26 + $0x68] sm:$0xff]  }
0x3830   :  { %11959 = vmatpush3.bf16.msra.mxu1 %v12512_v26  ;;  %11974 = vmatprep.mubr.msk.bf16.mxu1 %vm12649_vm0, %v12648_v28  ;;  %v12538_v55 = vld [vmem:[%s15482_s26 + $0x70] sm:$0xff]  }
0x3831   :  { %11960 = vmatprep.subr.bf16.mxu1 %v12648_v28 }
0x3834   :  { %11961 = vmatpush3.bf16.msra.mxu1 %v12513_v31  ;;  %v12539_v31 = vld [vmem:[%s15482_s26 + $0x78] sm:$0xff]  }
0x3835   :  { %11962 = vmatprep.subr.bf16.mxu1 %v12648_v28 }
0x3838   :  { %11963 = vmatpush3.bf16.msra.mxu1 %v12514_v4 }
0x3839   :  { %11964 = vmatprep.subr.bf16.mxu1 %v12648_v28 }
0x383c   :  { %11965 = vmatpush3.bf16.msra.mxu1 %v12515_v24 }
0x383d   :  { %11966 = vmatprep.subr.bf16.mxu1 %v12648_v28 }
0x3840   :  { %11967 = vmatpush3.bf16.msra.mxu1 %v12516_v33 }
0x3841   :  { %11968 = vmatprep.subr.bf16.mxu1 %v12648_v28 }
0x3844   :  { %11969 = vmatpush3.bf16.msra.mxu1 %v12517_v57 }
0x3845   :  { %11970 = vmatprep.subr.bf16.mxu1 %v12648_v28 }
0x3848   :  { %11971 = vmatpush3.bf16.msra.mxu1 %v12518_v58 }
0x3849   :  { %11972 = vmatprep.subr.bf16.mxu1 %v12648_v28 }
0x384c   :  { %11973 = vmatpush3.bf16.msra.mxu1 %v12519_v59 }
0x384d   :  { %11978 = vmatprep.subr.bf16.mxu1 %v12648_v28 }
0x384f   :  { %11975 = vmatmul.mubr.bf16.vlgmr.msra.gmra.mrb[180].mxu1 %v14836_v23 }
0x3850   :  { %11980 = vmatprep.mubr.msk.bf16.mxu1 %vm12649_vm0, %v12648_v28 }
0x3922   :  { %v8474_v60 = vpop.f32.mrb[180].mxu1 }
0x3923   :  { %v11976_v56 = vpop.f32.mrb[181].mxu1  ;;  %v8475_v20 = vadd.f32 %v10142_v17, %v8474_v60 }
0x3924   :  { %v8477_v63 = vpop.f32.mrb[182].mxu1 }
0x3925   :  { %v8478_v2 = vadd.f32 %v10142_v17, %v8477_v63  ;;  %v11977_v62 = vpop.f32.mrb[183].mxu1 }
0x3927   :  { %v8658_v11 = vpack.c.bf16 %v8478_v2, %v8475_v20 }
0x3929   :  { %v8663_v23 = vsel %vm907_vm1, %v8658_v11, 0 }
0x392a   :  { %11979 = vmatpush3.bf16.xpose.msra.mxu1 %v8663_v23 }
0x392b   :  { %11984 = vmatprep.subr.bf16.mxu1 %v12648_v28 }
0x3931   :  { %11981 = vmatmul.mubr.msk.bf16.vlgmr.msra.gmra.mrb[184].mxu1 %vm907_vm1, %v8657_v6 }
0x3932   :  { %11986 = vmatprep.mubr.msk.bf16.mxu1 %vm12649_vm0, %v12648_v28  ;;  %11985 = vmatpush3.bf16.msra.mxu1 %v8717_v16 }
0x3933   :  { %11990 = vmatprep.subr.bf16.mxu1 %v12648_v28 }
0x3a04   :  { %v8699_v0 = vpop.f32.mrb[184].mxu1 }
0x3a05   :  { %v11982_v36 = vpop.f32.mrb[185].mxu1  ;;  %v8705_v25 = vsel %vm2828_vm7, %v8699_v0, -inf }
0x3a06   :  { %8706 = vmax.xlane.f32.xlu0 %v8705_v25  ;;  %v8702_v37 = vpop.f32.mrb[186].mxu1 }
0x3a07   :  { %v11983_v38 = vpop.f32.mrb[187].mxu1 }
0x3a93   :  { %v8707_v42 = vpop.xlane.xlu0 %8706 }
0x3a94   :  { %v8708_v43 = vsub.f32 %v8699_v0, %v8707_v42 }
0x3a96   :  { %v8709_v22 = vmul.f32 1.442695, %v8708_v43 }
0x3a98   :  { %12616 = vpow2.f32 %v8709_v22 }
0x3aa2   :  { %v12617_v45 = vpop.eup %12616 }
0x3aa3   :  { %v8711_v46 = vsel %vm2828_vm7, %v12617_v45, 0.0 }
0x3aa4   :  { %8712 = vadd.xlane.f32.xlu1 %v8711_v46 }
0x3b31   :  { %v8713_v49 = vpop.xlane.xlu1 %8712 }
0x3b32   :  { %12618 = vrcp.f32 %v8713_v49 }
0x3b3c   :  { %v12619_v61 = vpop.eup %12618 }
0x3b3d   :  { %v8715_v26 = vmul.f32 %v12619_v61, %v12617_v45 }
0x3b3f   :  { %v8716_v54 = vpack.c.bf16 %v8715_v26, %v8715_v26 }
0x3b41   :  { %11987 = vmatmul.mubr.msk.bf16.vlgmr.msra.gmra.mrb[188].mxu1 %vm2828_vm7, %v8716_v54 }
0x3b42   :  { %11991 = vmatpush3.bf16.msra.mxu1 %v12536_v52  ;;  %11998 = vmatprep.mubr.msk.bf16.mxu1 %vm12649_vm0, %v12648_v28 }
0x3b43   :  { %11992 = vmatprep.subr.bf16.mxu1 %v12648_v28 }
0x3b46   :  { %11993 = vmatpush3.bf16.msra.mxu1 %v12537_v48 }
0x3b47   :  { %11994 = vmatprep.subr.bf16.mxu1 %v12648_v28 }
0x3b4a   :  { %11995 = vmatpush3.bf16.msra.mxu1 %v12538_v55 }
0x3b4b   :  { %11996 = vmatprep.subr.bf16.mxu1 %v12648_v28 }
0x3b4e   :  { %11997 = vmatpush3.bf16.msra.mxu1 %v12539_v31 }
0x3c14   :  { %v8755_v4 = vpop.f32.mrb[188].mxu1 }
0x3c15   :  { %v8761_v24 = vpack.c.bf16 %v8755_v4, %v8755_v4  ;;  %v11988_v33 = vpop.f32.mrb[189].mxu1 }
0x3c16   :  { %v8758_v57 = vpop.f32.mrb[190].mxu1 }
0x3c17   :  { %v11989_v58 = vpop.f32.mrb[191].mxu1  ;;  %11999 = vmatmul.mubr.msk.bf16.vlgmr.msra.gmra.mrb[152].mxu1 %vm2918_vm8, %v8761_v24 }
0x3cea   :  { %v8831_v59 = vpop.f32.mrb[152].mxu1 }
0x3ceb   :  { %v12003_v17 = vadd.f32 %v8831_v59, %v12822_v8  ;;  %v12000_v60 = vpop.f32.mrb[153].mxu1 }
0x3cec   :  { %v8834_v28 = vpop.f32.mrb[154].mxu1 }
0x3ced   :  { %8839 = vst [vmem:[#allocation3 + $0x8] sm:$0xff] %v12003_v17  ;;  %v12001_v56 = vpop.f32.mrb[155].mxu1 }
0x3cee   :  { %12635 = shalt.err (!%p12632_p4)
}
0x3cef   :  { %s12636_s4 = scalar_lea.hbm %s15484_s28, 256 }
0x3cf0   :  { %p12637_p5 = scmp.ne.s32.totalorder %s15484_s28, %s12636_s4  ;;  %p12640_p6 = scmp.lt.u32.totalorder %s12636_s4, %s15484_s28 }
0x3cf2   :  { %p12642_p7 = pnand %p12640_p6, %p12637_p5 }
0x3cf4   :  { %12645 = shalt.err (!%p12642_p7)
}
0x3cf5   :  { %s12654_s13 = smov 128   ;;  %s12655_s3 = smov 8  }
0x3cf6   :  { %8851 = dma.vmem_to_hbm [thread:$0]  %s8846_s27, 256, %s15484_s28, [#allocation4], %s12654_s13, %s12654_s13, %s12655_s3  }
0x3cf7   :  { %12646 = dma.done.wait [#allocation4], 256  }
0x3cf8   :  { %12647 = vsyncadd [#allocation4], 4294967040 }
0x3cf9   :  { %8855 = vsyncpa [#allocation4], 1 }

</bundles_post_ra>
